<compile_context>
chip_gen: v7x
topology: tpu7x:2x2x1
jax: 0.10.0
libtpu: 0.0.40
codegen_flags: <defaults>
</compile_context>

<pallas_src>
import functools

import jax
import jax.numpy as jnp
from jax.experimental import pallas as pl
from jax.experimental.pallas import tpu as pltpu

BN_EPS = 1e-5
MAX_TM = 256                      # M-tile for the conv matmul
MAX_TP = 512                      # spatial tile for max-pool
VMEM_LIMIT = 32 * 1024 * 1024     # safe on v5e/v6e/v7x


def _round_up(a, b):
    return (a + b - 1) // b * b


def _pick_tk(k_pad):
    # k_pad is a multiple of 128; pick the largest K-tile (<=512) dividing it.
    for tk in (512, 384, 256, 128):
        if k_pad % tk == 0:
            return tk
    return 128


# ---------------------------------------------------------------------------
# Pallas kernels
# ---------------------------------------------------------------------------
def conv_mm_kernel(*refs, relu, has_res):
    """out = [relu]( (A @ B) * scale + bias [+ residual] ), M/K-tiled matmul."""
    if has_res:
        a_ref, b_ref, scale_ref, bias_ref, res_ref, o_ref, acc_ref = refs
    else:
        a_ref, b_ref, scale_ref, bias_ref, o_ref, acc_ref = refs
        res_ref = None

    k = pl.program_id(1)

    @pl.when(k == 0)
    def _():
        acc_ref[...] = jnp.zeros_like(acc_ref)

    acc_ref[...] += jnp.dot(a_ref[...], b_ref[...],
                            preferred_element_type=jnp.float32)

    @pl.when(k == pl.num_programs(1) - 1)
    def _():
        r = acc_ref[...] * scale_ref[...] + bias_ref[...]
        if res_ref is not None:
            r = r + res_ref[...].astype(jnp.float32)
        if relu:
            r = jnp.maximum(r, 0.0)
        o_ref[...] = r.astype(o_ref.dtype)


def maxpool_kernel(x_ref, o_ref):
    # x_ref: (9, TP, C) window taps -> elementwise max over the 9 taps
    o_ref[...] = jnp.max(x_ref[...], axis=0)


def head_kernel(feat_ref, w_ref, b_ref, o_ref, *, inv_s):
    # global average pool over spatial rows (f32), then linear classifier
    pooled = jnp.sum(feat_ref[...].astype(jnp.float32), axis=0,
                     keepdims=True) * inv_s                       # (1, 512)
    o_ref[...] = (jnp.dot(pooled.astype(jnp.bfloat16), w_ref[...],
                          preferred_element_type=jnp.float32)
                  + b_ref[...]).astype(o_ref.dtype)


# ---------------------------------------------------------------------------
# Wrappers (glue: im2col, padding, reshapes)
# ---------------------------------------------------------------------------
def conv_bn_act(x, w_pad, scale_pad, bias_pad, cout, *, kh, kw, stride, pad,
                relu, residual=None):
    """x: (H, W, Cin) bf16 -> (Ho, Wo, cout) bf16; conv+BN (+residual) (+ReLU)."""
    H, W, cin = x.shape
    k_pad, n_pad = w_pad.shape
    K = kh * kw * cin
    ho = (H + 2 * pad - kh) // stride + 1
    wo = (W + 2 * pad - kw) // stride + 1
    m = ho * wo

    xp = jnp.pad(x, ((pad, pad), (pad, pad), (0, 0)))
    cols = []
    for i in range(kh):
        for j in range(kw):
            cols.append(jax.lax.slice(
                xp, (i, j, 0),
                (i + stride * (ho - 1) + 1, j + stride * (wo - 1) + 1, cin),
                (stride, stride, 1)))
    patches = jnp.stack(cols, axis=2).reshape(m, K)

    # M tiling: tile_m divides m_pad; K tiling: tk divides k_pad.
    if m > MAX_TM:
        tm = MAX_TM
        m_pad = _round_up(m, tm)
    else:
        m_pad = _round_up(max(m, 8), 8)
        tm = m_pad
    tk = _pick_tk(k_pad)

    a = jnp.pad(patches.astype(jnp.bfloat16),
                ((0, m_pad - m), (0, k_pad - K)))

    args = [a, w_pad, scale_pad, bias_pad]
    in_specs = [
        pl.BlockSpec((tm, tk), lambda mi, ki: (mi, ki)),
        pl.BlockSpec((tk, n_pad), lambda mi, ki: (ki, 0)),
        pl.BlockSpec((1, n_pad), lambda mi, ki: (0, 0)),
        pl.BlockSpec((1, n_pad), lambda mi, ki: (0, 0)),
    ]
    has_res = residual is not None
    if has_res:
        res = jnp.pad(residual.reshape(m, cout).astype(jnp.bfloat16),
                      ((0, m_pad - m), (0, n_pad - cout)))
        args.append(res)
        in_specs.append(pl.BlockSpec((tm, n_pad), lambda mi, ki: (mi, 0)))

    out = pl.pallas_call(
        functools.partial(conv_mm_kernel, relu=relu, has_res=has_res),
        out_shape=jax.ShapeDtypeStruct((m_pad, n_pad), jnp.bfloat16),
        grid=(m_pad // tm, k_pad // tk),
        in_specs=in_specs,
        out_specs=pl.BlockSpec((tm, n_pad), lambda mi, ki: (mi, 0)),
        scratch_shapes=[pltpu.VMEM((tm, n_pad), jnp.float32)],
        compiler_params=pltpu.CompilerParams(
            dimension_semantics=("parallel", "arbitrary"),
            vmem_limit_bytes=VMEM_LIMIT),
    )(*args)
    return out[:m, :cout].reshape(ho, wo, cout)


def maxpool_3x3_s2_p1(x):
    """PyTorch F.max_pool2d(kernel=3, stride=2, padding=1) on (H, W, C) bf16."""
    H, W, c = x.shape
    ho = (H + 2 - 3) // 2 + 1
    wo = (W + 2 - 3) // 2 + 1
    neg = jnp.asarray(jnp.finfo(x.dtype).min, x.dtype)   # safe "-inf" pad
    xp = jnp.pad(x, ((1, 1), (1, 1), (0, 0)), constant_values=neg)
    cols = []
    for i in range(3):
        for j in range(3):
            cols.append(jax.lax.slice(
                xp, (i, j, 0),
                (i + 2 * (ho - 1) + 1, j + 2 * (wo - 1) + 1, c),
                (2, 2, 1)))
    stacked = jnp.stack(cols, axis=0).reshape(9, ho * wo, c)

    p = ho * wo
    c_pad = _round_up(max(c, 128), 128)
    if p > MAX_TP:
        tp = MAX_TP
        p_pad = _round_up(p, tp)
    else:
        p_pad = _round_up(max(p, 8), 8)
        tp = p_pad
    xin = jnp.pad(stacked, ((0, 0), (0, p_pad - p), (0, c_pad - c)))

    out = pl.pallas_call(
        maxpool_kernel,
        out_shape=jax.ShapeDtypeStruct((p_pad, c_pad), x.dtype),
        grid=(p_pad // tp,),
        in_specs=[pl.BlockSpec((9, tp, c_pad), lambda i: (0, i, 0))],
        out_specs=pl.BlockSpec((tp, c_pad), lambda i: (i, 0)),
        compiler_params=pltpu.CompilerParams(
            dimension_semantics=("parallel",),
            vmem_limit_bytes=VMEM_LIMIT),
    )(xin)
    return out[:p, :c].reshape(ho, wo, c)


def avgpool_linear(feat, fc_w, fc_b, n_out):
    """AdaptiveAvgPool2d((1,1)) + flatten + Linear(512, 10), in one kernel."""
    s, c = feat.shape              # (Hf*Wf, 512) bf16
    n_pad = fc_w.shape[1]          # 128 (pre-padded)
    s_pad = _round_up(max(s, 8), 8)
    f = jnp.pad(feat.astype(jnp.bfloat16), ((0, s_pad - s), (0, 0)))
    out = pl.pallas_call(
        functools.partial(head_kernel, inv_s=1.0 / s),
        out_shape=jax.ShapeDtypeStruct((1, n_pad), jnp.float32),
        grid=(1,),
        in_specs=[
            pl.BlockSpec((s_pad, c), lambda i: (0, 0)),
            pl.BlockSpec((c, n_pad), lambda i: (0, 0)),
            pl.BlockSpec((1, n_pad), lambda i: (0, 0)),
        ],
        out_specs=pl.BlockSpec((1, n_pad), lambda i: (0, 0)),
        compiler_params=pltpu.CompilerParams(vmem_limit_bytes=VMEM_LIMIT),
    )(f, fc_w, fc_b)
    return out[0, :n_out]


# ---------------------------------------------------------------------------
# Parameters (deterministic synthetic init; BN folded, pre-padded, bf16)
# ---------------------------------------------------------------------------
def _fold_conv_bn(w, gamma, beta, mean, var):
    cout, cin, kh, kw = w.shape
    K = kh * kw * cin
    k_pad = _round_up(K, 128)
    n_pad = _round_up(max(cout, 128), 128)
    # (Cout, Cin, kh, kw) -> (kh*kw*Cin, Cout), matching the im2col patch order
    w_mat = jnp.transpose(w, (2, 3, 1, 0)).reshape(K, cout)
    scale = gamma / jnp.sqrt(var + BN_EPS)
    bias = beta - mean * scale
    w_p = jnp.zeros((k_pad, n_pad), jnp.bfloat16).at[:K, :cout].set(
        w_mat.astype(jnp.bfloat16))
    s_p = jnp.zeros((1, n_pad), jnp.float32).at[0, :cout].set(
        scale.astype(jnp.float32))
    b_p = jnp.zeros((1, n_pad), jnp.float32).at[0, :cout].set(
        bias.astype(jnp.float32))
    return w_p, s_p, b_p


def make_params(seed=0):
    root = jax.random.PRNGKey(seed)
    ctr = [0]

    def nk():
        k = jax.random.fold_in(root, ctr[0])
        ctr[0] += 1
        return k

    def conv_bn(cout, cin, kh, kw):
        fan_in = cin * kh * kw
        w = jax.random.normal(nk(), (cout, cin, kh, kw), jnp.float32)
        w = w * (2.0 / fan_in) ** 0.5 * 0.5
        gamma = 1.0 + 0.1 * jax.random.normal(nk(), (cout,), jnp.float32)
        beta = 0.05 * jax.random.normal(nk(), (cout,), jnp.float32)
        mean = 0.05 * jax.random.normal(nk(), (cout,), jnp.float32)
        var = 1.0 + 0.1 * jax.random.uniform(nk(), (cout,), jnp.float32)
        return _fold_conv_bn(w, gamma, beta, mean, var)

    params = {'stem': conv_bn(64, 3, 7, 7)}
    in_c = 64
    for lname, out_c in zip(['layer1', 'layer2', 'layer3', 'layer4'],
                            [64, 128, 256, 512]):
        blocks = []
        for bidx in range(2):
            stride = 2 if (lname != 'layer1' and bidx == 0) else 1
            blk = {
                'conv1': conv_bn(out_c, in_c, 3, 3),
                'conv2': conv_bn(out_c, out_c, 3, 3),
            }
            if stride != 1 or in_c != out_c:
                blk['down'] = conv_bn(out_c, in_c, 1, 1)
            blocks.append(blk)
            in_c = out_c
        params[lname] = blocks
    # classifier Linear(512, 10); stored transposed and pre-padded to (512,128)
    fc_w = (jax.random.normal(nk(), (512, 10), jnp.float32)
            * (1.0 / 512.0) ** 0.5)
    fc_b = 0.01 * jax.random.normal(nk(), (10,), jnp.float32)
    params['fc_w'] = jnp.zeros((512, 128), jnp.bfloat16).at[:, :10].set(
        fc_w.astype(jnp.bfloat16))
    params['fc_b'] = jnp.zeros((1, 128), jnp.float32).at[0, :10].set(fc_b)
    return params


# ---------------------------------------------------------------------------
# Forward pass (== Resnet.forward)
# ---------------------------------------------------------------------------
def basic_block(x, bp, stride, cout):
    if 'down' in bp:
        identity = conv_bn_act(x, *bp['down'], cout, kh=1, kw=1, stride=stride,
                               pad=0, relu=False)
    else:
        identity = x
    out = conv_bn_act(x, *bp['conv1'], cout, kh=3, kw=3, stride=stride, pad=1,
                      relu=True)
    # conv2 + bn2 + residual add + relu, fused into one Pallas kernel
    out = conv_bn_act(out, *bp['conv2'], cout, kh=3, kw=3, stride=1, pad=1,
                      relu=True, residual=identity)
    return out


def resnet_forward(x_nchw, params):
    # x_nchw: (1, 3, H, W) float32  (batch must be 1, as in the torch module)
    x = jnp.transpose(x_nchw[0], (1, 2, 0)).astype(jnp.bfloat16)   # HWC, bf16
    x = conv_bn_act(x, *params['stem'], 64, kh=7, kw=7, stride=2, pad=3,
                    relu=True)
    x = maxpool_3x3_s2_p1(x)
    layer_channels = [64, 128, 256, 512]
    for li, (lname, out_c) in enumerate(
            zip(['layer1', 'layer2', 'layer3', 'layer4'], layer_channels)):
        stride = 1 if li == 0 else 2
        x = basic_block(x, params[lname][0], stride, out_c)
        x = basic_block(x, params[lname][1], 1, out_c)
    feat = x.reshape(-1, x.shape[-1])          # (Hf*Wf, 512)
    # avgpool -> flatten(1) -> fc(identity) -> torch.flatten -> Linear(512,10)
    return avgpool_linear(feat, params['fc_w'], params['fc_b'], 10)   # (10,)


if __name__ == "__main__":
    key = jax.random.PRNGKey(0)
    x = jax.random.normal(key, (1, 3, 32, 32), jnp.float32)
    params = make_params(0)
    fwd = jax.jit(resnet_forward)
    out = jax.block_until_ready(fwd(x, params))
    assert out.shape == (10,), out.shape
    assert bool(jnp.all(jnp.isfinite(out)))
    print("KERNEL_OK")
</pallas_src>

<mosaic_0001>
module attributes {stable_mosaic.version = 11 : i64} {
  func.func @conv_mm_kernel(%arg0: i32, %arg1: i32, %arg2: memref<256x256xbf16, #tpu.memory_space<vmem>>, %arg3: memref<256x128xbf16, #tpu.memory_space<vmem>>, %arg4: memref<1x128xf32, #tpu.memory_space<vmem>>, %arg5: memref<1x128xf32, #tpu.memory_space<vmem>>, %arg6: memref<256x128xbf16, #tpu.memory_space<vmem>>, %arg7: memref<256x128xf32, #tpu.memory_space<vmem>>) attributes {dimension_semantics = [#tpu.dimension_semantics<parallel>, #tpu.dimension_semantics<arbitrary>], iteration_bounds = array<i64: 1, 1>, scalar_prefetch = 0 : i64, scratch_operands = 1 : i64, tpu.core_type = #tpu.core_type<tc>, window_params = [{transform_indices = @transform_0, window_bounds = array<i64: 256, 256>}, {transform_indices = @transform_1, window_bounds = array<i64: 256, 128>}, {pipeline_mode = #tpu.pipeline_mode<synchronous>, transform_indices = @transform_2, window_bounds = array<i64: 1, 128>}, {pipeline_mode = #tpu.pipeline_mode<synchronous>, transform_indices = @transform_3, window_bounds = array<i64: 1, 128>}, {transform_indices = @transform_4, window_bounds = array<i64: 256, 128>}]} {
    %c0_i32 = arith.constant 0 : i32
    %0 = arith.cmpi eq, %arg1, %c0_i32 : i32
    %1 = arith.extui %0 : i1 to i32
    %c0_i32_0 = arith.constant 0 : i32
    %2 = arith.cmpi ne, %1, %c0_i32_0 : i32
    scf.if %2 {
      %cst_10 = arith.constant 0.000000e+00 : f32
      %12 = vector.broadcast %cst_10 : f32 to vector<256x128xf32>
      %c0_11 = arith.constant 0 : index
      %c0_12 = arith.constant 0 : index
      %13 = vector.load %arg7[%c0_11, %c0_12] : memref<256x128xf32, #tpu.memory_space<vmem>>, vector<256x128xf32>
      tpu.vector_store %arg7[%c0_11, %c0_12], %12 {strides = array<i32>} : memref<256x128xf32, #tpu.memory_space<vmem>>, vector<256x128xf32>,
    } else {
    }
    %c0 = arith.constant 0 : index
    %c0_1 = arith.constant 0 : index
    %3 = vector.load %arg7[%c0, %c0_1] : memref<256x128xf32, #tpu.memory_space<vmem>>, vector<256x128xf32>
    %c0_2 = arith.constant 0 : index
    %c0_3 = arith.constant 0 : index
    %4 = vector.load %arg2[%c0_2, %c0_3] : memref<256x256xbf16, #tpu.memory_space<vmem>>, vector<256x256xbf16>
    %c0_4 = arith.constant 0 : index
    %c0_5 = arith.constant 0 : index
    %5 = vector.load %arg3[%c0_4, %c0_5] : memref<256x128xbf16, #tpu.memory_space<vmem>>, vector<256x128xbf16>
    %cst = arith.constant dense<0.000000e+00> : vector<256x128xf32>
    %6 = tpu.matmul %4, %5, %cst {dimension_numbers = #tpu.dot_dimension_numbers<[1], [0], [0], [1], [0, 0, 1, 1], [], []>} : vector<256x256xbf16>, vector<256x128xbf16>, vector<256x128xf32> -> vector<256x128xf32>
    %7 = arith.addf %3, %6 : vector<256x128xf32>
    %c0_6 = arith.constant 0 : index
    %c0_7 = arith.constant 0 : index
    %8 = vector.load %arg7[%c0_6, %c0_7] : memref<256x128xf32, #tpu.memory_space<vmem>>, vector<256x128xf32>
    tpu.vector_store %arg7[%c0_6, %c0_7], %7 {strides = array<i32>} : memref<256x128xf32, #tpu.memory_space<vmem>>, vector<256x128xf32>,
    %c0_i32_8 = arith.constant 0 : i32
    %9 = arith.cmpi eq, %arg1, %c0_i32_8 : i32
    %10 = arith.extui %9 : i1 to i32
    %c0_i32_9 = arith.constant 0 : i32
    %11 = arith.cmpi ne, %10, %c0_i32_9 : i32
    scf.if %11 {
      %c0_10 = arith.constant 0 : index
      %c0_11 = arith.constant 0 : index
      %12 = vector.load %arg7[%c0_10, %c0_11] : memref<256x128xf32, #tpu.memory_space<vmem>>, vector<256x128xf32>
      %c0_12 = arith.constant 0 : index
      %c0_13 = arith.constant 0 : index
      %13 = vector.load %arg4[%c0_12, %c0_13] : memref<1x128xf32, #tpu.memory_space<vmem>>, vector<1x128xf32>
      %14 = vector.broadcast %13 : vector<1x128xf32> to vector<256x128xf32>
      %15 = arith.mulf %12, %14 : vector<256x128xf32>
      %c0_14 = arith.constant 0 : index
      %c0_15 = arith.constant 0 : index
      %16 = vector.load %arg5[%c0_14, %c0_15] : memref<1x128xf32, #tpu.memory_space<vmem>>, vector<1x128xf32>
      %17 = vector.broadcast %16 : vector<1x128xf32> to vector<256x128xf32>
      %18 = arith.addf %15, %17 : vector<256x128xf32>
      %cst_16 = arith.constant 0.000000e+00 : f32
      %19 = vector.broadcast %cst_16 : f32 to vector<256x128xf32>
      %20 = arith.maximumf %18, %19 : vector<256x128xf32>
      %21 = arith.truncf %20 : vector<256x128xf32> to vector<256x128xbf16>
      %c0_17 = arith.constant 0 : index
      %c0_18 = arith.constant 0 : index
      %22 = vector.load %arg6[%c0_17, %c0_18] : memref<256x128xbf16, #tpu.memory_space<vmem>>, vector<256x128xbf16>
      tpu.vector_store %arg6[%c0_17, %c0_18], %21 {strides = array<i32>} : memref<256x128xbf16, #tpu.memory_space<vmem>>, vector<256x128xbf16>,
    } else {
    }
    return
  }
  func.func @transform_0(%arg0: i32, %arg1: i32) -> (i32, i32) {
    %c0_i32 = arith.constant 0 : i32
    return %arg0, %arg1 : i32, i32
  }
  func.func @transform_1(%arg0: i32, %arg1: i32) -> (i32, i32) {
    %c0_i32 = arith.constant 0 : i32
    %c0_i32_0 = arith.constant 0 : i32
    return %arg1, %c0_i32 : i32, i32
  }
  func.func @transform_2(%arg0: i32, %arg1: i32) -> (i32, i32) {
    %c0_i32 = arith.constant 0 : i32
    %c0_i32_0 = arith.constant 0 : i32
    %c0_i32_1 = arith.constant 0 : i32
    return %c0_i32, %c0_i32_0 : i32, i32
  }
  func.func @transform_3(%arg0: i32, %arg1: i32) -> (i32, i32) {
    %c0_i32 = arith.constant 0 : i32
    %c0_i32_0 = arith.constant 0 : i32
    %c0_i32_1 = arith.constant 0 : i32
    return %c0_i32, %c0_i32_0 : i32, i32
  }
  func.func @transform_4(%arg0: i32, %arg1: i32) -> (i32, i32) {
    %c0_i32 = arith.constant 0 : i32
    %c0_i32_0 = arith.constant 0 : i32
    return %arg0, %c0_i32 : i32, i32
  }
}

module attributes {stable_mosaic.version = 11 : i64} {
  func.func @maxpool_kernel(%arg0: i32, %arg1: memref<9x64x128xbf16, #tpu.memory_space<vmem>>, %arg2: memref<64x128xbf16, #tpu.memory_space<vmem>>) attributes {dimension_semantics = [#tpu.dimension_semantics<parallel>], iteration_bounds = array<i64: 1>, scalar_prefetch = 0 : i64, scratch_operands = 0 : i64, tpu.core_type = #tpu.core_type<tc>, window_params = [{transform_indices = @transform_0, window_bounds = array<i64: 9, 64, 128>}, {transform_indices = @transform_1, window_bounds = array<i64: 64, 128>}]} {
    %c0 = arith.constant 0 : index
    %c0_0 = arith.constant 0 : index
    %c0_1 = arith.constant 0 : index
    %0 = vector.load %arg1[%c0, %c0_0, %c0_1] : memref<9x64x128xbf16, #tpu.memory_space<vmem>>, vector<9x64x128xbf16>
    %cst = arith.constant dense<0xFF80> : vector<64x128xbf16>
    %1 = vector.multi_reduction <maximumf>, %0, %cst [0] : vector<9x64x128xbf16> to vector<64x128xbf16>
    %c0_2 = arith.constant 0 : index
    %c0_3 = arith.constant 0 : index
    %2 = vector.load %arg2[%c0_2, %c0_3] : memref<64x128xbf16, #tpu.memory_space<vmem>>, vector<64x128xbf16>
    tpu.vector_store %arg2[%c0_2, %c0_3], %1 {strides = array<i32>} : memref<64x128xbf16, #tpu.memory_space<vmem>>, vector<64x128xbf16>,
    return
  }
  func.func @transform_0(%arg0: i32) -> (i32, i32, i32) {
    %c0_i32 = arith.constant 0 : i32
    %c0_i32_0 = arith.constant 0 : i32
    %c0_i32_1 = arith.constant 0 : i32
    return %c0_i32, %arg0, %c0_i32_0 : i32, i32, i32
  }
  func.func @transform_1(%arg0: i32) -> (i32, i32) {
    %c0_i32 = arith.constant 0 : i32
    %c0_i32_0 = arith.constant 0 : i32
    return %arg0, %c0_i32 : i32, i32
  }
}

module attributes {stable_mosaic.version = 11 : i64} {
  func.func @conv_mm_kernel(%arg0: i32, %arg1: i32, %arg2: memref<64x128xbf16, #tpu.memory_space<vmem>>, %arg3: memref<128x128xbf16, #tpu.memory_space<vmem>>, %arg4: memref<1x128xf32, #tpu.memory_space<vmem>>, %arg5: memref<1x128xf32, #tpu.memory_space<vmem>>, %arg6: memref<64x128xbf16, #tpu.memory_space<vmem>>, %arg7: memref<64x128xf32, #tpu.memory_space<vmem>>) attributes {dimension_semantics = [#tpu.dimension_semantics<parallel>, #tpu.dimension_semantics<arbitrary>], iteration_bounds = array<i64: 1, 5>, scalar_prefetch = 0 : i64, scratch_operands = 1 : i64, tpu.core_type = #tpu.core_type<tc>, window_params = [{transform_indices = @transform_0, window_bounds = array<i64: 64, 128>}, {transform_indices = @transform_1, window_bounds = array<i64: 128, 128>}, {pipeline_mode = #tpu.pipeline_mode<synchronous>, transform_indices = @transform_2, window_bounds = array<i64: 1, 128>}, {pipeline_mode = #tpu.pipeline_mode<synchronous>, transform_indices = @transform_3, window_bounds = array<i64: 1, 128>}, {transform_indices = @transform_4, window_bounds = array<i64: 64, 128>}]} {
    %c0_i32 = arith.constant 0 : i32
    %0 = arith.cmpi eq, %arg1, %c0_i32 : i32
    %1 = arith.extui %0 : i1 to i32
    %c0_i32_0 = arith.constant 0 : i32
    %2 = arith.cmpi ne, %1, %c0_i32_0 : i32
    scf.if %2 {
      %cst_9 = arith.constant 0.000000e+00 : f32
      %12 = vector.broadcast %cst_9 : f32 to vector<64x128xf32>
      %c0_10 = arith.constant 0 : index
      %c0_11 = arith.constant 0 : index
      %13 = vector.load %arg7[%c0_10, %c0_11] : memref<64x128xf32, #tpu.memory_space<vmem>>, vector<64x128xf32>
      tpu.vector_store %arg7[%c0_10, %c0_11], %12 {strides = array<i32>} : memref<64x128xf32, #tpu.memory_space<vmem>>, vector<64x128xf32>,
    } else {
    }
    %c0 = arith.constant 0 : index
    %c0_1 = arith.constant 0 : index
    %3 = vector.load %arg7[%c0, %c0_1] : memref<64x128xf32, #tpu.memory_space<vmem>>, vector<64x128xf32>
    %c0_2 = arith.constant 0 : index
    %c0_3 = arith.constant 0 : index
    %4 = vector.load %arg2[%c0_2, %c0_3] : memref<64x128xbf16, #tpu.memory_space<vmem>>, vector<64x128xbf16>
    %c0_4 = arith.constant 0 : index
    %c0_5 = arith.constant 0 : index
    %5 = vector.load %arg3[%c0_4, %c0_5] : memref<128x128xbf16, #tpu.memory_space<vmem>>, vector<128x128xbf16>
    %cst = arith.constant dense<0.000000e+00> : vector<64x128xf32>
    %6 = tpu.matmul %4, %5, %cst {dimension_numbers = #tpu.dot_dimension_numbers<[1], [0], [0], [1], [0, 0, 1, 1], [], []>} : vector<64x128xbf16>, vector<128x128xbf16>, vector<64x128xf32> -> vector<64x128xf32>
    %7 = arith.addf %3, %6 : vector<64x128xf32>
    %c0_6 = arith.constant 0 : index
    %c0_7 = arith.constant 0 : index
    %8 = vector.load %arg7[%c0_6, %c0_7] : memref<64x128xf32, #tpu.memory_space<vmem>>, vector<64x128xf32>
    tpu.vector_store %arg7[%c0_6, %c0_7], %7 {strides = array<i32>} : memref<64x128xf32, #tpu.memory_space<vmem>>, vector<64x128xf32>,
    %c4_i32 = arith.constant 4 : i32
    %9 = arith.cmpi eq, %arg1, %c4_i32 : i32
    %10 = arith.extui %9 : i1 to i32
    %c0_i32_8 = arith.constant 0 : i32
    %11 = arith.cmpi ne, %10, %c0_i32_8 : i32
    scf.if %11 {
      %c0_9 = arith.constant 0 : index
      %c0_10 = arith.constant 0 : index
      %12 = vector.load %arg7[%c0_9, %c0_10] : memref<64x128xf32, #tpu.memory_space<vmem>>, vector<64x128xf32>
      %c0_11 = arith.constant 0 : index
      %c0_12 = arith.constant 0 : index
      %13 = vector.load %arg4[%c0_11, %c0_12] : memref<1x128xf32, #tpu.memory_space<vmem>>, vector<1x128xf32>
      %14 = vector.broadcast %13 : vector<1x128xf32> to vector<64x128xf32>
      %15 = arith.mulf %12, %14 : vector<64x128xf32>
      %c0_13 = arith.constant 0 : index
      %c0_14 = arith.constant 0 : index
      %16 = vector.load %arg5[%c0_13, %c0_14] : memref<1x128xf32, #tpu.memory_space<vmem>>, vector<1x128xf32>
      %17 = vector.broadcast %16 : vector<1x128xf32> to vector<64x128xf32>
      %18 = arith.addf %15, %17 : vector<64x128xf32>
      %cst_15 = arith.constant 0.000000e+00 : f32
      %19 = vector.broadcast %cst_15 : f32 to vector<64x128xf32>
      %20 = arith.maximumf %18, %19 : vector<64x128xf32>
      %21 = arith.truncf %20 : vector<64x128xf32> to vector<64x128xbf16>
      %c0_16 = arith.constant 0 : index
      %c0_17 = arith.constant 0 : index
      %22 = vector.load %arg6[%c0_16, %c0_17] : memref<64x128xbf16, #tpu.memory_space<vmem>>, vector<64x128xbf16>
      tpu.vector_store %arg6[%c0_16, %c0_17], %21 {strides = array<i32>} : memref<64x128xbf16, #tpu.memory_space<vmem>>, vector<64x128xbf16>,
    } else {
    }
    return
  }
  func.func @transform_0(%arg0: i32, %arg1: i32) -> (i32, i32) {
    %c0_i32 = arith.constant 0 : i32
    return %arg0, %arg1 : i32, i32
  }
  func.func @transform_1(%arg0: i32, %arg1: i32) -> (i32, i32) {
    %c0_i32 = arith.constant 0 : i32
    %c0_i32_0 = arith.constant 0 : i32
    return %arg1, %c0_i32 : i32, i32
  }
  func.func @transform_2(%arg0: i32, %arg1: i32) -> (i32, i32) {
    %c0_i32 = arith.constant 0 : i32
    %c0_i32_0 = arith.constant 0 : i32
    %c0_i32_1 = arith.constant 0 : i32
    return %c0_i32, %c0_i32_0 : i32, i32
  }
  func.func @transform_3(%arg0: i32, %arg1: i32) -> (i32, i32) {
    %c0_i32 = arith.constant 0 : i32
    %c0_i32_0 = arith.constant 0 : i32
    %c0_i32_1 = arith.constant 0 : i32
    return %c0_i32, %c0_i32_0 : i32, i32
  }
  func.func @transform_4(%arg0: i32, %arg1: i32) -> (i32, i32) {
    %c0_i32 = arith.constant 0 : i32
    %c0_i32_0 = arith.constant 0 : i32
    return %arg0, %c0_i32 : i32, i32
  }
}

module attributes {stable_mosaic.version = 11 : i64} {
  func.func @conv_mm_kernel(%arg0: i32, %arg1: i32, %arg2: memref<64x128xbf16, #tpu.memory_space<vmem>>, %arg3: memref<128x128xbf16, #tpu.memory_space<vmem>>, %arg4: memref<1x128xf32, #tpu.memory_space<vmem>>, %arg5: memref<1x128xf32, #tpu.memory_space<vmem>>, %arg6: memref<64x128xbf16, #tpu.memory_space<vmem>>, %arg7: memref<64x128xbf16, #tpu.memory_space<vmem>>, %arg8: memref<64x128xf32, #tpu.memory_space<vmem>>) attributes {dimension_semantics = [#tpu.dimension_semantics<parallel>, #tpu.dimension_semantics<arbitrary>], iteration_bounds = array<i64: 1, 5>, scalar_prefetch = 0 : i64, scratch_operands = 1 : i64, tpu.core_type = #tpu.core_type<tc>, window_params = [{transform_indices = @transform_0, window_bounds = array<i64: 64, 128>}, {transform_indices = @transform_1, window_bounds = array<i64: 128, 128>}, {pipeline_mode = #tpu.pipeline_mode<synchronous>, transform_indices = @transform_2, window_bounds = array<i64: 1, 128>}, {pipeline_mode = #tpu.pipeline_mode<synchronous>, transform_indices = @transform_3, window_bounds = array<i64: 1, 128>}, {transform_indices = @transform_4, window_bounds = array<i64: 64, 128>}, {transform_indices = @transform_5, window_bounds = array<i64: 64, 128>}]} {
    %c0_i32 = arith.constant 0 : i32
    %0 = arith.cmpi eq, %arg1, %c0_i32 : i32
    %1 = arith.extui %0 : i1 to i32
    %c0_i32_0 = arith.constant 0 : i32
    %2 = arith.cmpi ne, %1, %c0_i32_0 : i32
    scf.if %2 {
      %cst_9 = arith.constant 0.000000e+00 : f32
      %12 = vector.broadcast %cst_9 : f32 to vector<64x128xf32>
      %c0_10 = arith.constant 0 : index
      %c0_11 = arith.constant 0 : index
      %13 = vector.load %arg8[%c0_10, %c0_11] : memref<64x128xf32, #tpu.memory_space<vmem>>, vector<64x128xf32>
      tpu.vector_store %arg8[%c0_10, %c0_11], %12 {strides = array<i32>} : memref<64x128xf32, #tpu.memory_space<vmem>>, vector<64x128xf32>,
    } else {
    }
    %c0 = arith.constant 0 : index
    %c0_1 = arith.constant 0 : index
    %3 = vector.load %arg8[%c0, %c0_1] : memref<64x128xf32, #tpu.memory_space<vmem>>, vector<64x128xf32>
    %c0_2 = arith.constant 0 : index
    %c0_3 = arith.constant 0 : index
    %4 = vector.load %arg2[%c0_2, %c0_3] : memref<64x128xbf16, #tpu.memory_space<vmem>>, vector<64x128xbf16>
    %c0_4 = arith.constant 0 : index
    %c0_5 = arith.constant 0 : index
    %5 = vector.load %arg3[%c0_4, %c0_5] : memref<128x128xbf16, #tpu.memory_space<vmem>>, vector<128x128xbf16>
    %cst = arith.constant dense<0.000000e+00> : vector<64x128xf32>
    %6 = tpu.matmul %4, %5, %cst {dimension_numbers = #tpu.dot_dimension_numbers<[1], [0], [0], [1], [0, 0, 1, 1], [], []>} : vector<64x128xbf16>, vector<128x128xbf16>, vector<64x128xf32> -> vector<64x128xf32>
    %7 = arith.addf %3, %6 : vector<64x128xf32>
    %c0_6 = arith.constant 0 : index
    %c0_7 = arith.constant 0 : index
    %8 = vector.load %arg8[%c0_6, %c0_7] : memref<64x128xf32, #tpu.memory_space<vmem>>, vector<64x128xf32>
    tpu.vector_store %arg8[%c0_6, %c0_7], %7 {strides = array<i32>} : memref<64x128xf32, #tpu.memory_space<vmem>>, vector<64x128xf32>,
    %c4_i32 = arith.constant 4 : i32
    %9 = arith.cmpi eq, %arg1, %c4_i32 : i32
    %10 = arith.extui %9 : i1 to i32
    %c0_i32_8 = arith.constant 0 : i32
    %11 = arith.cmpi ne, %10, %c0_i32_8 : i32
    scf.if %11 {
      %c0_9 = arith.constant 0 : index
      %c0_10 = arith.constant 0 : index
      %12 = vector.load %arg8[%c0_9, %c0_10] : memref<64x128xf32, #tpu.memory_space<vmem>>, vector<64x128xf32>
      %c0_11 = arith.constant 0 : index
      %c0_12 = arith.constant 0 : index
      %13 = vector.load %arg4[%c0_11, %c0_12] : memref<1x128xf32, #tpu.memory_space<vmem>>, vector<1x128xf32>
      %14 = vector.broadcast %13 : vector<1x128xf32> to vector<64x128xf32>
      %15 = arith.mulf %12, %14 : vector<64x128xf32>
      %c0_13 = arith.constant 0 : index
      %c0_14 = arith.constant 0 : index
      %16 = vector.load %arg5[%c0_13, %c0_14] : memref<1x128xf32, #tpu.memory_space<vmem>>, vector<1x128xf32>
      %17 = vector.broadcast %16 : vector<1x128xf32> to vector<64x128xf32>
      %18 = arith.addf %15, %17 : vector<64x128xf32>
      %c0_15 = arith.constant 0 : index
      %c0_16 = arith.constant 0 : index
      %19 = vector.load %arg6[%c0_15, %c0_16] : memref<64x128xbf16, #tpu.memory_space<vmem>>, vector<64x128xbf16>
      %20 = arith.extf %19 : vector<64x128xbf16> to vector<64x128xf32>
      %21 = arith.addf %18, %20 : vector<64x128xf32>
      %cst_17 = arith.constant 0.000000e+00 : f32
      %22 = vector.broadcast %cst_17 : f32 to vector<64x128xf32>
      %23 = arith.maximumf %21, %22 : vector<64x128xf32>
      %24 = arith.truncf %23 : vector<64x128xf32> to vector<64x128xbf16>
      %c0_18 = arith.constant 0 : index
      %c0_19 = arith.constant 0 : index
      %25 = vector.load %arg7[%c0_18, %c0_19] : memref<64x128xbf16, #tpu.memory_space<vmem>>, vector<64x128xbf16>
      tpu.vector_store %arg7[%c0_18, %c0_19], %24 {strides = array<i32>} : memref<64x128xbf16, #tpu.memory_space<vmem>>, vector<64x128xbf16>,
    } else {
    }
    return
  }
  func.func @transform_0(%arg0: i32, %arg1: i32) -> (i32, i32) {
    %c0_i32 = arith.constant 0 : i32
    return %arg0, %arg1 : i32, i32
  }
  func.func @transform_1(%arg0: i32, %arg1: i32) -> (i32, i32) {
    %c0_i32 = arith.constant 0 : i32
    %c0_i32_0 = arith.constant 0 : i32
    return %arg1, %c0_i32 : i32, i32
  }
  func.func @transform_2(%arg0: i32, %arg1: i32) -> (i32, i32) {
    %c0_i32 = arith.constant 0 : i32
    %c0_i32_0 = arith.constant 0 : i32
    %c0_i32_1 = arith.constant 0 : i32
    return %c0_i32, %c0_i32_0 : i32, i32
  }
  func.func @transform_3(%arg0: i32, %arg1: i32) -> (i32, i32) {
    %c0_i32 = arith.constant 0 : i32
    %c0_i32_0 = arith.constant 0 : i32
    %c0_i32_1 = arith.constant 0 : i32
    return %c0_i32, %c0_i32_0 : i32, i32
  }
  func.func @transform_4(%arg0: i32, %arg1: i32) -> (i32, i32) {
    %c0_i32 = arith.constant 0 : i32
    %c0_i32_0 = arith.constant 0 : i32
    return %arg0, %c0_i32 : i32, i32
  }
  func.func @transform_5(%arg0: i32, %arg1: i32) -> (i32, i32) {
    %c0_i32 = arith.constant 0 : i32
    %c0_i32_0 = arith.constant 0 : i32
    return %arg0, %c0_i32 : i32, i32
  }
}

module attributes {stable_mosaic.version = 11 : i64} {
  func.func @conv_mm_kernel(%arg0: i32, %arg1: i32, %arg2: memref<16x128xbf16, #tpu.memory_space<vmem>>, %arg3: memref<128x128xbf16, #tpu.memory_space<vmem>>, %arg4: memref<1x128xf32, #tpu.memory_space<vmem>>, %arg5: memref<1x128xf32, #tpu.memory_space<vmem>>, %arg6: memref<16x128xbf16, #tpu.memory_space<vmem>>, %arg7: memref<16x128xf32, #tpu.memory_space<vmem>>) attributes {dimension_semantics = [#tpu.dimension_semantics<parallel>, #tpu.dimension_semantics<arbitrary>], iteration_bounds = array<i64: 1, 5>, scalar_prefetch = 0 : i64, scratch_operands = 1 : i64, tpu.core_type = #tpu.core_type<tc>, window_params = [{transform_indices = @transform_0, window_bounds = array<i64: 16, 128>}, {transform_indices = @transform_1, window_bounds = array<i64: 128, 128>}, {pipeline_mode = #tpu.pipeline_mode<synchronous>, transform_indices = @transform_2, window_bounds = array<i64: 1, 128>}, {pipeline_mode = #tpu.pipeline_mode<synchronous>, transform_indices = @transform_3, window_bounds = array<i64: 1, 128>}, {transform_indices = @transform_4, window_bounds = array<i64: 16, 128>}]} {
    %c0_i32 = arith.constant 0 : i32
    %0 = arith.cmpi eq, %arg1, %c0_i32 : i32
    %1 = arith.extui %0 : i1 to i32
    %c0_i32_0 = arith.constant 0 : i32
    %2 = arith.cmpi ne, %1, %c0_i32_0 : i32
    scf.if %2 {
      %cst_9 = arith.constant 0.000000e+00 : f32
      %12 = vector.broadcast %cst_9 : f32 to vector<16x128xf32>
      %c0_10 = arith.constant 0 : index
      %c0_11 = arith.constant 0 : index
      %13 = vector.load %arg7[%c0_10, %c0_11] : memref<16x128xf32, #tpu.memory_space<vmem>>, vector<16x128xf32>
      tpu.vector_store %arg7[%c0_10, %c0_11], %12 {strides = array<i32>} : memref<16x128xf32, #tpu.memory_space<vmem>>, vector<16x128xf32>,
    } else {
    }
    %c0 = arith.constant 0 : index
    %c0_1 = arith.constant 0 : index
    %3 = vector.load %arg7[%c0, %c0_1] : memref<16x128xf32, #tpu.memory_space<vmem>>, vector<16x128xf32>
    %c0_2 = arith.constant 0 : index
    %c0_3 = arith.constant 0 : index
    %4 = vector.load %arg2[%c0_2, %c0_3] : memref<16x128xbf16, #tpu.memory_space<vmem>>, vector<16x128xbf16>
    %c0_4 = arith.constant 0 : index
    %c0_5 = arith.constant 0 : index
    %5 = vector.load %arg3[%c0_4, %c0_5] : memref<128x128xbf16, #tpu.memory_space<vmem>>, vector<128x128xbf16>
    %cst = arith.constant dense<0.000000e+00> : vector<16x128xf32>
    %6 = tpu.matmul %4, %5, %cst {dimension_numbers = #tpu.dot_dimension_numbers<[1], [0], [0], [1], [0, 0, 1, 1], [], []>} : vector<16x128xbf16>, vector<128x128xbf16>, vector<16x128xf32> -> vector<16x128xf32>
    %7 = arith.addf %3, %6 : vector<16x128xf32>
    %c0_6 = arith.constant 0 : index
    %c0_7 = arith.constant 0 : index
    %8 = vector.load %arg7[%c0_6, %c0_7] : memref<16x128xf32, #tpu.memory_space<vmem>>, vector<16x128xf32>
    tpu.vector_store %arg7[%c0_6, %c0_7], %7 {strides = array<i32>} : memref<16x128xf32, #tpu.memory_space<vmem>>, vector<16x128xf32>,
    %c4_i32 = arith.constant 4 : i32
    %9 = arith.cmpi eq, %arg1, %c4_i32 : i32
    %10 = arith.extui %9 : i1 to i32
    %c0_i32_8 = arith.constant 0 : i32
    %11 = arith.cmpi ne, %10, %c0_i32_8 : i32
    scf.if %11 {
      %c0_9 = arith.constant 0 : index
      %c0_10 = arith.constant 0 : index
      %12 = vector.load %arg7[%c0_9, %c0_10] : memref<16x128xf32, #tpu.memory_space<vmem>>, vector<16x128xf32>
      %c0_11 = arith.constant 0 : index
      %c0_12 = arith.constant 0 : index
      %13 = vector.load %arg4[%c0_11, %c0_12] : memref<1x128xf32, #tpu.memory_space<vmem>>, vector<1x128xf32>
      %14 = vector.broadcast %13 : vector<1x128xf32> to vector<16x128xf32>
      %15 = arith.mulf %12, %14 : vector<16x128xf32>
      %c0_13 = arith.constant 0 : index
      %c0_14 = arith.constant 0 : index
      %16 = vector.load %arg5[%c0_13, %c0_14] : memref<1x128xf32, #tpu.memory_space<vmem>>, vector<1x128xf32>
      %17 = vector.broadcast %16 : vector<1x128xf32> to vector<16x128xf32>
      %18 = arith.addf %15, %17 : vector<16x128xf32>
      %cst_15 = arith.constant 0.000000e+00 : f32
      %19 = vector.broadcast %cst_15 : f32 to vector<16x128xf32>
      %20 = arith.maximumf %18, %19 : vector<16x128xf32>
      %21 = arith.truncf %20 : vector<16x128xf32> to vector<16x128xbf16>
      %c0_16 = arith.constant 0 : index
      %c0_17 = arith.constant 0 : index
      %22 = vector.load %arg6[%c0_16, %c0_17] : memref<16x128xbf16, #tpu.memory_space<vmem>>, vector<16x128xbf16>
      tpu.vector_store %arg6[%c0_16, %c0_17], %21 {strides = array<i32>} : memref<16x128xbf16, #tpu.memory_space<vmem>>, vector<16x128xbf16>,
    } else {
    }
    return
  }
  func.func @transform_0(%arg0: i32, %arg1: i32) -> (i32, i32) {
    %c0_i32 = arith.constant 0 : i32
    return %arg0, %arg1 : i32, i32
  }
  func.func @transform_1(%arg0: i32, %arg1: i32) -> (i32, i32) {
    %c0_i32 = arith.constant 0 : i32
    %c0_i32_0 = arith.constant 0 : i32
    return %arg1, %c0_i32 : i32, i32
  }
  func.func @transform_2(%arg0: i32, %arg1: i32) -> (i32, i32) {
    %c0_i32 = arith.constant 0 : i32
    %c0_i32_0 = arith.constant 0 : i32
    %c0_i32_1 = arith.constant 0 : i32
    return %c0_i32, %c0_i32_0 : i32, i32
  }
  func.func @transform_3(%arg0: i32, %arg1: i32) -> (i32, i32) {
    %c0_i32 = arith.constant 0 : i32
    %c0_i32_0 = arith.constant 0 : i32
    %c0_i32_1 = arith.constant 0 : i32
    return %c0_i32, %c0_i32_0 : i32, i32
  }
  func.func @transform_4(%arg0: i32, %arg1: i32) -> (i32, i32) {
    %c0_i32 = arith.constant 0 : i32
    %c0_i32_0 = arith.constant 0 : i32
    return %arg0, %c0_i32 : i32, i32
  }
}

module attributes {stable_mosaic.version = 11 : i64} {
  func.func @conv_mm_kernel(%arg0: i32, %arg1: i32, %arg2: memref<16x128xbf16, #tpu.memory_space<vmem>>, %arg3: memref<128x128xbf16, #tpu.memory_space<vmem>>, %arg4: memref<1x128xf32, #tpu.memory_space<vmem>>, %arg5: memref<1x128xf32, #tpu.memory_space<vmem>>, %arg6: memref<16x128xbf16, #tpu.memory_space<vmem>>, %arg7: memref<16x128xf32, #tpu.memory_space<vmem>>) attributes {dimension_semantics = [#tpu.dimension_semantics<parallel>, #tpu.dimension_semantics<arbitrary>], iteration_bounds = array<i64: 1, 1>, scalar_prefetch = 0 : i64, scratch_operands = 1 : i64, tpu.core_type = #tpu.core_type<tc>, window_params = [{transform_indices = @transform_0, window_bounds = array<i64: 16, 128>}, {transform_indices = @transform_1, window_bounds = array<i64: 128, 128>}, {pipeline_mode = #tpu.pipeline_mode<synchronous>, transform_indices = @transform_2, window_bounds = array<i64: 1, 128>}, {pipeline_mode = #tpu.pipeline_mode<synchronous>, transform_indices = @transform_3, window_bounds = array<i64: 1, 128>}, {transform_indices = @transform_4, window_bounds = array<i64: 16, 128>}]} {
    %c0_i32 = arith.constant 0 : i32
    %0 = arith.cmpi eq, %arg1, %c0_i32 : i32
    %1 = arith.extui %0 : i1 to i32
    %c0_i32_0 = arith.constant 0 : i32
    %2 = arith.cmpi ne, %1, %c0_i32_0 : i32
    scf.if %2 {
      %cst_10 = arith.constant 0.000000e+00 : f32
      %12 = vector.broadcast %cst_10 : f32 to vector<16x128xf32>
      %c0_11 = arith.constant 0 : index
      %c0_12 = arith.constant 0 : index
      %13 = vector.load %arg7[%c0_11, %c0_12] : memref<16x128xf32, #tpu.memory_space<vmem>>, vector<16x128xf32>
      tpu.vector_store %arg7[%c0_11, %c0_12], %12 {strides = array<i32>} : memref<16x128xf32, #tpu.memory_space<vmem>>, vector<16x128xf32>,
    } else {
    }
    %c0 = arith.constant 0 : index
    %c0_1 = arith.constant 0 : index
    %3 = vector.load %arg7[%c0, %c0_1] : memref<16x128xf32, #tpu.memory_space<vmem>>, vector<16x128xf32>
    %c0_2 = arith.constant 0 : index
    %c0_3 = arith.constant 0 : index
    %4 = vector.load %arg2[%c0_2, %c0_3] : memref<16x128xbf16, #tpu.memory_space<vmem>>, vector<16x128xbf16>
    %c0_4 = arith.constant 0 : index
    %c0_5 = arith.constant 0 : index
    %5 = vector.load %arg3[%c0_4, %c0_5] : memref<128x128xbf16, #tpu.memory_space<vmem>>, vector<128x128xbf16>
    %cst = arith.constant dense<0.000000e+00> : vector<16x128xf32>
    %6 = tpu.matmul %4, %5, %cst {dimension_numbers = #tpu.dot_dimension_numbers<[1], [0], [0], [1], [0, 0, 1, 1], [], []>} : vector<16x128xbf16>, vector<128x128xbf16>, vector<16x128xf32> -> vector<16x128xf32>
    %7 = arith.addf %3, %6 : vector<16x128xf32>
    %c0_6 = arith.constant 0 : index
    %c0_7 = arith.constant 0 : index
    %8 = vector.load %arg7[%c0_6, %c0_7] : memref<16x128xf32, #tpu.memory_space<vmem>>, vector<16x128xf32>
    tpu.vector_store %arg7[%c0_6, %c0_7], %7 {strides = array<i32>} : memref<16x128xf32, #tpu.memory_space<vmem>>, vector<16x128xf32>,
    %c0_i32_8 = arith.constant 0 : i32
    %9 = arith.cmpi eq, %arg1, %c0_i32_8 : i32
    %10 = arith.extui %9 : i1 to i32
    %c0_i32_9 = arith.constant 0 : i32
    %11 = arith.cmpi ne, %10, %c0_i32_9 : i32
    scf.if %11 {
      %c0_10 = arith.constant 0 : index
      %c0_11 = arith.constant 0 : index
      %12 = vector.load %arg7[%c0_10, %c0_11] : memref<16x128xf32, #tpu.memory_space<vmem>>, vector<16x128xf32>
      %c0_12 = arith.constant 0 : index
      %c0_13 = arith.constant 0 : index
      %13 = vector.load %arg4[%c0_12, %c0_13] : memref<1x128xf32, #tpu.memory_space<vmem>>, vector<1x128xf32>
      %14 = vector.broadcast %13 : vector<1x128xf32> to vector<16x128xf32>
      %15 = arith.mulf %12, %14 : vector<16x128xf32>
      %c0_14 = arith.constant 0 : index
      %c0_15 = arith.constant 0 : index
      %16 = vector.load %arg5[%c0_14, %c0_15] : memref<1x128xf32, #tpu.memory_space<vmem>>, vector<1x128xf32>
      %17 = vector.broadcast %16 : vector<1x128xf32> to vector<16x128xf32>
      %18 = arith.addf %15, %17 : vector<16x128xf32>
      %19 = arith.truncf %18 : vector<16x128xf32> to vector<16x128xbf16>
      %c0_16 = arith.constant 0 : index
      %c0_17 = arith.constant 0 : index
      %20 = vector.load %arg6[%c0_16, %c0_17] : memref<16x128xbf16, #tpu.memory_space<vmem>>, vector<16x128xbf16>
      tpu.vector_store %arg6[%c0_16, %c0_17], %19 {strides = array<i32>} : memref<16x128xbf16, #tpu.memory_space<vmem>>, vector<16x128xbf16>,
    } else {
    }
    return
  }
  func.func @transform_0(%arg0: i32, %arg1: i32) -> (i32, i32) {
    %c0_i32 = arith.constant 0 : i32
    return %arg0, %arg1 : i32, i32
  }
  func.func @transform_1(%arg0: i32, %arg1: i32) -> (i32, i32) {
    %c0_i32 = arith.constant 0 : i32
    %c0_i32_0 = arith.constant 0 : i32
    return %arg1, %c0_i32 : i32, i32
  }
  func.func @transform_2(%arg0: i32, %arg1: i32) -> (i32, i32) {
    %c0_i32 = arith.constant 0 : i32
    %c0_i32_0 = arith.constant 0 : i32
    %c0_i32_1 = arith.constant 0 : i32
    return %c0_i32, %c0_i32_0 : i32, i32
  }
  func.func @transform_3(%arg0: i32, %arg1: i32) -> (i32, i32) {
    %c0_i32 = arith.constant 0 : i32
    %c0_i32_0 = arith.constant 0 : i32
    %c0_i32_1 = arith.constant 0 : i32
    return %c0_i32, %c0_i32_0 : i32, i32
  }
  func.func @transform_4(%arg0: i32, %arg1: i32) -> (i32, i32) {
    %c0_i32 = arith.constant 0 : i32
    %c0_i32_0 = arith.constant 0 : i32
    return %arg0, %c0_i32 : i32, i32
  }
}

module attributes {stable_mosaic.version = 11 : i64} {
  func.func @conv_mm_kernel(%arg0: i32, %arg1: i32, %arg2: memref<16x384xbf16, #tpu.memory_space<vmem>>, %arg3: memref<384x128xbf16, #tpu.memory_space<vmem>>, %arg4: memref<1x128xf32, #tpu.memory_space<vmem>>, %arg5: memref<1x128xf32, #tpu.memory_space<vmem>>, %arg6: memref<16x128xbf16, #tpu.memory_space<vmem>>, %arg7: memref<16x128xbf16, #tpu.memory_space<vmem>>, %arg8: memref<16x128xf32, #tpu.memory_space<vmem>>) attributes {dimension_semantics = [#tpu.dimension_semantics<parallel>, #tpu.dimension_semantics<arbitrary>], iteration_bounds = array<i64: 1, 3>, scalar_prefetch = 0 : i64, scratch_operands = 1 : i64, tpu.core_type = #tpu.core_type<tc>, window_params = [{transform_indices = @transform_0, window_bounds = array<i64: 16, 384>}, {transform_indices = @transform_1, window_bounds = array<i64: 384, 128>}, {pipeline_mode = #tpu.pipeline_mode<synchronous>, transform_indices = @transform_2, window_bounds = array<i64: 1, 128>}, {pipeline_mode = #tpu.pipeline_mode<synchronous>, transform_indices = @transform_3, window_bounds = array<i64: 1, 128>}, {transform_indices = @transform_4, window_bounds = array<i64: 16, 128>}, {transform_indices = @transform_5, window_bounds = array<i64: 16, 128>}]} {
    %c0_i32 = arith.constant 0 : i32
    %0 = arith.cmpi eq, %arg1, %c0_i32 : i32
    %1 = arith.extui %0 : i1 to i32
    %c0_i32_0 = arith.constant 0 : i32
    %2 = arith.cmpi ne, %1, %c0_i32_0 : i32
    scf.if %2 {
      %cst_9 = arith.constant 0.000000e+00 : f32
      %12 = vector.broadcast %cst_9 : f32 to vector<16x128xf32>
      %c0_10 = arith.constant 0 : index
      %c0_11 = arith.constant 0 : index
      %13 = vector.load %arg8[%c0_10, %c0_11] : memref<16x128xf32, #tpu.memory_space<vmem>>, vector<16x128xf32>
      tpu.vector_store %arg8[%c0_10, %c0_11], %12 {strides = array<i32>} : memref<16x128xf32, #tpu.memory_space<vmem>>, vector<16x128xf32>,
    } else {
    }
    %c0 = arith.constant 0 : index
    %c0_1 = arith.constant 0 : index
    %3 = vector.load %arg8[%c0, %c0_1] : memref<16x128xf32, #tpu.memory_space<vmem>>, vector<16x128xf32>
    %c0_2 = arith.constant 0 : index
    %c0_3 = arith.constant 0 : index
    %4 = vector.load %arg2[%c0_2, %c0_3] : memref<16x384xbf16, #tpu.memory_space<vmem>>, vector<16x384xbf16>
    %c0_4 = arith.constant 0 : index
    %c0_5 = arith.constant 0 : index
    %5 = vector.load %arg3[%c0_4, %c0_5] : memref<384x128xbf16, #tpu.memory_space<vmem>>, vector<384x128xbf16>
    %cst = arith.constant dense<0.000000e+00> : vector<16x128xf32>
    %6 = tpu.matmul %4, %5, %cst {dimension_numbers = #tpu.dot_dimension_numbers<[1], [0], [0], [1], [0, 0, 1, 1], [], []>} : vector<16x384xbf16>, vector<384x128xbf16>, vector<16x128xf32> -> vector<16x128xf32>
    %7 = arith.addf %3, %6 : vector<16x128xf32>
    %c0_6 = arith.constant 0 : index
    %c0_7 = arith.constant 0 : index
    %8 = vector.load %arg8[%c0_6, %c0_7] : memref<16x128xf32, #tpu.memory_space<vmem>>, vector<16x128xf32>
    tpu.vector_store %arg8[%c0_6, %c0_7], %7 {strides = array<i32>} : memref<16x128xf32, #tpu.memory_space<vmem>>, vector<16x128xf32>,
    %c2_i32 = arith.constant 2 : i32
    %9 = arith.cmpi eq, %arg1, %c2_i32 : i32
    %10 = arith.extui %9 : i1 to i32
    %c0_i32_8 = arith.constant 0 : i32
    %11 = arith.cmpi ne, %10, %c0_i32_8 : i32
    scf.if %11 {
      %c0_9 = arith.constant 0 : index
      %c0_10 = arith.constant 0 : index
      %12 = vector.load %arg8[%c0_9, %c0_10] : memref<16x128xf32, #tpu.memory_space<vmem>>, vector<16x128xf32>
      %c0_11 = arith.constant 0 : index
      %c0_12 = arith.constant 0 : index
      %13 = vector.load %arg4[%c0_11, %c0_12] : memref<1x128xf32, #tpu.memory_space<vmem>>, vector<1x128xf32>
      %14 = vector.broadcast %13 : vector<1x128xf32> to vector<16x128xf32>
      %15 = arith.mulf %12, %14 : vector<16x128xf32>
      %c0_13 = arith.constant 0 : index
      %c0_14 = arith.constant 0 : index
      %16 = vector.load %arg5[%c0_13, %c0_14] : memref<1x128xf32, #tpu.memory_space<vmem>>, vector<1x128xf32>
      %17 = vector.broadcast %16 : vector<1x128xf32> to vector<16x128xf32>
      %18 = arith.addf %15, %17 : vector<16x128xf32>
      %c0_15 = arith.constant 0 : index
      %c0_16 = arith.constant 0 : index
      %19 = vector.load %arg6[%c0_15, %c0_16] : memref<16x128xbf16, #tpu.memory_space<vmem>>, vector<16x128xbf16>
      %20 = arith.extf %19 : vector<16x128xbf16> to vector<16x128xf32>
      %21 = arith.addf %18, %20 : vector<16x128xf32>
      %cst_17 = arith.constant 0.000000e+00 : f32
      %22 = vector.broadcast %cst_17 : f32 to vector<16x128xf32>
      %23 = arith.maximumf %21, %22 : vector<16x128xf32>
      %24 = arith.truncf %23 : vector<16x128xf32> to vector<16x128xbf16>
      %c0_18 = arith.constant 0 : index
      %c0_19 = arith.constant 0 : index
      %25 = vector.load %arg7[%c0_18, %c0_19] : memref<16x128xbf16, #tpu.memory_space<vmem>>, vector<16x128xbf16>
      tpu.vector_store %arg7[%c0_18, %c0_19], %24 {strides = array<i32>} : memref<16x128xbf16, #tpu.memory_space<vmem>>, vector<16x128xbf16>,
    } else {
    }
    return
  }
  func.func @transform_0(%arg0: i32, %arg1: i32) -> (i32, i32) {
    %c0_i32 = arith.constant 0 : i32
    return %arg0, %arg1 : i32, i32
  }
  func.func @transform_1(%arg0: i32, %arg1: i32) -> (i32, i32) {
    %c0_i32 = arith.constant 0 : i32
    %c0_i32_0 = arith.constant 0 : i32
    return %arg1, %c0_i32 : i32, i32
  }
  func.func @transform_2(%arg0: i32, %arg1: i32) -> (i32, i32) {
    %c0_i32 = arith.constant 0 : i32
    %c0_i32_0 = arith.constant 0 : i32
    %c0_i32_1 = arith.constant 0 : i32
    return %c0_i32, %c0_i32_0 : i32, i32
  }
  func.func @transform_3(%arg0: i32, %arg1: i32) -> (i32, i32) {
    %c0_i32 = arith.constant 0 : i32
    %c0_i32_0 = arith.constant 0 : i32
    %c0_i32_1 = arith.constant 0 : i32
    return %c0_i32, %c0_i32_0 : i32, i32
  }
  func.func @transform_4(%arg0: i32, %arg1: i32) -> (i32, i32) {
    %c0_i32 = arith.constant 0 : i32
    %c0_i32_0 = arith.constant 0 : i32
    return %arg0, %c0_i32 : i32, i32
  }
  func.func @transform_5(%arg0: i32, %arg1: i32) -> (i32, i32) {
    %c0_i32 = arith.constant 0 : i32
    %c0_i32_0 = arith.constant 0 : i32
    return %arg0, %c0_i32 : i32, i32
  }
}

module attributes {stable_mosaic.version = 11 : i64} {
  func.func @conv_mm_kernel(%arg0: i32, %arg1: i32, %arg2: memref<16x384xbf16, #tpu.memory_space<vmem>>, %arg3: memref<384x128xbf16, #tpu.memory_space<vmem>>, %arg4: memref<1x128xf32, #tpu.memory_space<vmem>>, %arg5: memref<1x128xf32, #tpu.memory_space<vmem>>, %arg6: memref<16x128xbf16, #tpu.memory_space<vmem>>, %arg7: memref<16x128xbf16, #tpu.memory_space<vmem>>, %arg8: memref<16x128xf32, #tpu.memory_space<vmem>>) attributes {dimension_semantics = [#tpu.dimension_semantics<parallel>, #tpu.dimension_semantics<arbitrary>], iteration_bounds = array<i64: 1, 3>, scalar_prefetch = 0 : i64, scratch_operands = 1 : i64, tpu.core_type = #tpu.core_type<tc>, window_params = [{transform_indices = @transform_0, window_bounds = array<i64: 16, 384>}, {transform_indices = @transform_1, window_bounds = array<i64: 384, 128>}, {pipeline_mode = #tpu.pipeline_mode<synchronous>, transform_indices = @transform_2, window_bounds = array<i64: 1, 128>}, {pipeline_mode = #tpu.pipeline_mode<synchronous>, transform_indices = @transform_3, window_bounds = array<i64: 1, 128>}, {transform_indices = @transform_4, window_bounds = array<i64: 16, 128>}, {transform_indices = @transform_5, window_bounds = array<i64: 16, 128>}]} {
    %c0_i32 = arith.constant 0 : i32
    %0 = arith.cmpi eq, %arg1, %c0_i32 : i32
    %1 = arith.extui %0 : i1 to i32
    %c0_i32_0 = arith.constant 0 : i32
    %2 = arith.cmpi ne, %1, %c0_i32_0 : i32
    scf.if %2 {
      %cst_9 = arith.constant 0.000000e+00 : f32
      %12 = vector.broadcast %cst_9 : f32 to vector<16x128xf32>
      %c0_10 = arith.constant 0 : index
      %c0_11 = arith.constant 0 : index
      %13 = vector.load %arg8[%c0_10, %c0_11] : memref<16x128xf32, #tpu.memory_space<vmem>>, vector<16x128xf32>
      tpu.vector_store %arg8[%c0_10, %c0_11], %12 {strides = array<i32>} : memref<16x128xf32, #tpu.memory_space<vmem>>, vector<16x128xf32>,
    } else {
    }
    %c0 = arith.constant 0 : index
    %c0_1 = arith.constant 0 : index
    %3 = vector.load %arg8[%c0, %c0_1] : memref<16x128xf32, #tpu.memory_space<vmem>>, vector<16x128xf32>
    %c0_2 = arith.constant 0 : index
    %c0_3 = arith.constant 0 : index
    %4 = vector.load %arg2[%c0_2, %c0_3] : memref<16x384xbf16, #tpu.memory_space<vmem>>, vector<16x384xbf16>
    %c0_4 = arith.constant 0 : index
    %c0_5 = arith.constant 0 : index
    %5 = vector.load %arg3[%c0_4, %c0_5] : memref<384x128xbf16, #tpu.memory_space<vmem>>, vector<384x128xbf16>
    %cst = arith.constant dense<0.000000e+00> : vector<16x128xf32>
    %6 = tpu.matmul %4, %5, %cst {dimension_numbers = #tpu.dot_dimension_numbers<[1], [0], [0], [1], [0, 0, 1, 1], [], []>} : vector<16x384xbf16>, vector<384x128xbf16>, vector<16x128xf32> -> vector<16x128xf32>
    %7 = arith.addf %3, %6 : vector<16x128xf32>
    %c0_6 = arith.constant 0 : index
    %c0_7 = arith.constant 0 : index
    %8 = vector.load %arg8[%c0_6, %c0_7] : memref<16x128xf32, #tpu.memory_space<vmem>>, vector<16x128xf32>
    tpu.vector_store %arg8[%c0_6, %c0_7], %7 {strides = array<i32>} : memref<16x128xf32, #tpu.memory_space<vmem>>, vector<16x128xf32>,
    %c2_i32 = arith.constant 2 : i32
    %9 = arith.cmpi eq, %arg1, %c2_i32 : i32
    %10 = arith.extui %9 : i1 to i32
    %c0_i32_8 = arith.constant 0 : i32
    %11 = arith.cmpi ne, %10, %c0_i32_8 : i32
    scf.if %11 {
      %c0_9 = arith.constant 0 : index
      %c0_10 = arith.constant 0 : index
      %12 = vector.load %arg8[%c0_9, %c0_10] : memref<16x128xf32, #tpu.memory_space<vmem>>, vector<16x128xf32>
      %c0_11 = arith.constant 0 : index
      %c0_12 = arith.constant 0 : index
      %13 = vector.load %arg4[%c0_11, %c0_12] : memref<1x128xf32, #tpu.memory_space<vmem>>, vector<1x128xf32>
      %14 = vector.broadcast %13 : vector<1x128xf32> to vector<16x128xf32>
      %15 = arith.mulf %12, %14 : vector<16x128xf32>
      %c0_13 = arith.constant 0 : index
      %c0_14 = arith.constant 0 : index
      %16 = vector.load %arg5[%c0_13, %c0_14] : memref<1x128xf32, #tpu.memory_space<vmem>>, vector<1x128xf32>
      %17 = vector.broadcast %16 : vector<1x128xf32> to vector<16x128xf32>
      %18 = arith.addf %15, %17 : vector<16x128xf32>
      %c0_15 = arith.constant 0 : index
      %c0_16 = arith.constant 0 : index
      %19 = vector.load %arg6[%c0_15, %c0_16] : memref<16x128xbf16, #tpu.memory_space<vmem>>, vector<16x128xbf16>
      %20 = arith.extf %19 : vector<16x128xbf16> to vector<16x128xf32>
      %21 = arith.addf %18, %20 : vector<16x128xf32>
      %cst_17 = arith.constant 0.000000e+00 : f32
      %22 = vector.broadcast %cst_17 : f32 to vector<16x128xf32>
      %23 = arith.maximumf %21, %22 : vector<16x128xf32>
      %24 = arith.truncf %23 : vector<16x128xf32> to vector<16x128xbf16>
      %c0_18 = arith.constant 0 : index
      %c0_19 = arith.constant 0 : index
      %25 = vector.load %arg7[%c0_18, %c0_19] : memref<16x128xbf16, #tpu.memory_space<vmem>>, vector<16x128xbf16>
      tpu.vector_store %arg7[%c0_18, %c0_19], %24 {strides = array<i32>} : memref<16x128xbf16, #tpu.memory_space<vmem>>, vector<16x128xbf16>,
    } else {
    }
    return
  }
  func.func @transform_0(%arg0: i32, %arg1: i32) -> (i32, i32) {
    %c0_i32 = arith.constant 0 : i32
    return %arg0, %arg1 : i32, i32
  }
  func.func @transform_1(%arg0: i32, %arg1: i32) -> (i32, i32) {
    %c0_i32 = arith.constant 0 : i32
    %c0_i32_0 = arith.constant 0 : i32
    return %arg1, %c0_i32 : i32, i32
  }
  func.func @transform_2(%arg0: i32, %arg1: i32) -> (i32, i32) {
    %c0_i32 = arith.constant 0 : i32
    %c0_i32_0 = arith.constant 0 : i32
    %c0_i32_1 = arith.constant 0 : i32
    return %c0_i32, %c0_i32_0 : i32, i32
  }
  func.func @transform_3(%arg0: i32, %arg1: i32) -> (i32, i32) {
    %c0_i32 = arith.constant 0 : i32
    %c0_i32_0 = arith.constant 0 : i32
    %c0_i32_1 = arith.constant 0 : i32
    return %c0_i32, %c0_i32_0 : i32, i32
  }
  func.func @transform_4(%arg0: i32, %arg1: i32) -> (i32, i32) {
    %c0_i32 = arith.constant 0 : i32
    %c0_i32_0 = arith.constant 0 : i32
    return %arg0, %c0_i32 : i32, i32
  }
  func.func @transform_5(%arg0: i32, %arg1: i32) -> (i32, i32) {
    %c0_i32 = arith.constant 0 : i32
    %c0_i32_0 = arith.constant 0 : i32
    return %arg0, %c0_i32 : i32, i32
  }
}

module attributes {stable_mosaic.version = 11 : i64} {
  func.func @conv_mm_kernel(%arg0: i32, %arg1: i32, %arg2: memref<16x384xbf16, #tpu.memory_space<vmem>>, %arg3: memref<384x128xbf16, #tpu.memory_space<vmem>>, %arg4: memref<1x128xf32, #tpu.memory_space<vmem>>, %arg5: memref<1x128xf32, #tpu.memory_space<vmem>>, %arg6: memref<16x128xbf16, #tpu.memory_space<vmem>>, %arg7: memref<16x128xf32, #tpu.memory_space<vmem>>) attributes {dimension_semantics = [#tpu.dimension_semantics<parallel>, #tpu.dimension_semantics<arbitrary>], iteration_bounds = array<i64: 1, 3>, scalar_prefetch = 0 : i64, scratch_operands = 1 : i64, tpu.core_type = #tpu.core_type<tc>, window_params = [{transform_indices = @transform_0, window_bounds = array<i64: 16, 384>}, {transform_indices = @transform_1, window_bounds = array<i64: 384, 128>}, {pipeline_mode = #tpu.pipeline_mode<synchronous>, transform_indices = @transform_2, window_bounds = array<i64: 1, 128>}, {pipeline_mode = #tpu.pipeline_mode<synchronous>, transform_indices = @transform_3, window_bounds = array<i64: 1, 128>}, {transform_indices = @transform_4, window_bounds = array<i64: 16, 128>}]} {
    %c0_i32 = arith.constant 0 : i32
    %0 = arith.cmpi eq, %arg1, %c0_i32 : i32
    %1 = arith.extui %0 : i1 to i32
    %c0_i32_0 = arith.constant 0 : i32
    %2 = arith.cmpi ne, %1, %c0_i32_0 : i32
    scf.if %2 {
      %cst_9 = arith.constant 0.000000e+00 : f32
      %12 = vector.broadcast %cst_9 : f32 to vector<16x128xf32>
      %c0_10 = arith.constant 0 : index
      %c0_11 = arith.constant 0 : index
      %13 = vector.load %arg7[%c0_10, %c0_11] : memref<16x128xf32, #tpu.memory_space<vmem>>, vector<16x128xf32>
      tpu.vector_store %arg7[%c0_10, %c0_11], %12 {strides = array<i32>} : memref<16x128xf32, #tpu.memory_space<vmem>>, vector<16x128xf32>,
    } else {
    }
    %c0 = arith.constant 0 : index
    %c0_1 = arith.constant 0 : index
    %3 = vector.load %arg7[%c0, %c0_1] : memref<16x128xf32, #tpu.memory_space<vmem>>, vector<16x128xf32>
    %c0_2 = arith.constant 0 : index
    %c0_3 = arith.constant 0 : index
    %4 = vector.load %arg2[%c0_2, %c0_3] : memref<16x384xbf16, #tpu.memory_space<vmem>>, vector<16x384xbf16>
    %c0_4 = arith.constant 0 : index
    %c0_5 = arith.constant 0 : index
    %5 = vector.load %arg3[%c0_4, %c0_5] : memref<384x128xbf16, #tpu.memory_space<vmem>>, vector<384x128xbf16>
    %cst = arith.constant dense<0.000000e+00> : vector<16x128xf32>
    %6 = tpu.matmul %4, %5, %cst {dimension_numbers = #tpu.dot_dimension_numbers<[1], [0], [0], [1], [0, 0, 1, 1], [], []>} : vector<16x384xbf16>, vector<384x128xbf16>, vector<16x128xf32> -> vector<16x128xf32>
    %7 = arith.addf %3, %6 : vector<16x128xf32>
    %c0_6 = arith.constant 0 : index
    %c0_7 = arith.constant 0 : index
    %8 = vector.load %arg7[%c0_6, %c0_7] : memref<16x128xf32, #tpu.memory_space<vmem>>, vector<16x128xf32>
    tpu.vector_store %arg7[%c0_6, %c0_7], %7 {strides = array<i32>} : memref<16x128xf32, #tpu.memory_space<vmem>>, vector<16x128xf32>,
    %c2_i32 = arith.constant 2 : i32
    %9 = arith.cmpi eq, %arg1, %c2_i32 : i32
    %10 = arith.extui %9 : i1 to i32
    %c0_i32_8 = arith.constant 0 : i32
    %11 = arith.cmpi ne, %10, %c0_i32_8 : i32
    scf.if %11 {
      %c0_9 = arith.constant 0 : index
      %c0_10 = arith.constant 0 : index
      %12 = vector.load %arg7[%c0_9, %c0_10] : memref<16x128xf32, #tpu.memory_space<vmem>>, vector<16x128xf32>
      %c0_11 = arith.constant 0 : index
      %c0_12 = arith.constant 0 : index
      %13 = vector.load %arg4[%c0_11, %c0_12] : memref<1x128xf32, #tpu.memory_space<vmem>>, vector<1x128xf32>
      %14 = vector.broadcast %13 : vector<1x128xf32> to vector<16x128xf32>
      %15 = arith.mulf %12, %14 : vector<16x128xf32>
      %c0_13 = arith.constant 0 : index
      %c0_14 = arith.constant 0 : index
      %16 = vector.load %arg5[%c0_13, %c0_14] : memref<1x128xf32, #tpu.memory_space<vmem>>, vector<1x128xf32>
      %17 = vector.broadcast %16 : vector<1x128xf32> to vector<16x128xf32>
      %18 = arith.addf %15, %17 : vector<16x128xf32>
      %cst_15 = arith.constant 0.000000e+00 : f32
      %19 = vector.broadcast %cst_15 : f32 to vector<16x128xf32>
      %20 = arith.maximumf %18, %19 : vector<16x128xf32>
      %21 = arith.truncf %20 : vector<16x128xf32> to vector<16x128xbf16>
      %c0_16 = arith.constant 0 : index
      %c0_17 = arith.constant 0 : index
      %22 = vector.load %arg6[%c0_16, %c0_17] : memref<16x128xbf16, #tpu.memory_space<vmem>>, vector<16x128xbf16>
      tpu.vector_store %arg6[%c0_16, %c0_17], %21 {strides = array<i32>} : memref<16x128xbf16, #tpu.memory_space<vmem>>, vector<16x128xbf16>,
    } else {
    }
    return
  }
  func.func @transform_0(%arg0: i32, %arg1: i32) -> (i32, i32) {
    %c0_i32 = arith.constant 0 : i32
    return %arg0, %arg1 : i32, i32
  }
  func.func @transform_1(%arg0: i32, %arg1: i32) -> (i32, i32) {
    %c0_i32 = arith.constant 0 : i32
    %c0_i32_0 = arith.constant 0 : i32
    return %arg1, %c0_i32 : i32, i32
  }
  func.func @transform_2(%arg0: i32, %arg1: i32) -> (i32, i32) {
    %c0_i32 = arith.constant 0 : i32
    %c0_i32_0 = arith.constant 0 : i32
    %c0_i32_1 = arith.constant 0 : i32
    return %c0_i32, %c0_i32_0 : i32, i32
  }
  func.func @transform_3(%arg0: i32, %arg1: i32) -> (i32, i32) {
    %c0_i32 = arith.constant 0 : i32
    %c0_i32_0 = arith.constant 0 : i32
    %c0_i32_1 = arith.constant 0 : i32
    return %c0_i32, %c0_i32_0 : i32, i32
  }
  func.func @transform_4(%arg0: i32, %arg1: i32) -> (i32, i32) {
    %c0_i32 = arith.constant 0 : i32
    %c0_i32_0 = arith.constant 0 : i32
    return %arg0, %c0_i32 : i32, i32
  }
}

module attributes {stable_mosaic.version = 11 : i64} {
  func.func @conv_mm_kernel(%arg0: i32, %arg1: i32, %arg2: memref<8x128xbf16, #tpu.memory_space<vmem>>, %arg3: memref<128x256xbf16, #tpu.memory_space<vmem>>, %arg4: memref<1x256xf32, #tpu.memory_space<vmem>>, %arg5: memref<1x256xf32, #tpu.memory_space<vmem>>, %arg6: memref<8x256xbf16, #tpu.memory_space<vmem>>, %arg7: memref<8x256xf32, #tpu.memory_space<vmem>>) attributes {dimension_semantics = [#tpu.dimension_semantics<parallel>, #tpu.dimension_semantics<arbitrary>], iteration_bounds = array<i64: 1, 1>, scalar_prefetch = 0 : i64, scratch_operands = 1 : i64, tpu.core_type = #tpu.core_type<tc>, window_params = [{transform_indices = @transform_0, window_bounds = array<i64: 8, 128>}, {transform_indices = @transform_1, window_bounds = array<i64: 128, 256>}, {pipeline_mode = #tpu.pipeline_mode<synchronous>, transform_indices = @transform_2, window_bounds = array<i64: 1, 256>}, {pipeline_mode = #tpu.pipeline_mode<synchronous>, transform_indices = @transform_3, window_bounds = array<i64: 1, 256>}, {transform_indices = @transform_4, window_bounds = array<i64: 8, 256>}]} {
    %c0_i32 = arith.constant 0 : i32
    %0 = arith.cmpi eq, %arg1, %c0_i32 : i32
    %1 = arith.extui %0 : i1 to i32
    %c0_i32_0 = arith.constant 0 : i32
    %2 = arith.cmpi ne, %1, %c0_i32_0 : i32
    scf.if %2 {
      %cst_10 = arith.constant 0.000000e+00 : f32
      %12 = vector.broadcast %cst_10 : f32 to vector<8x256xf32>
      %c0_11 = arith.constant 0 : index
      %c0_12 = arith.constant 0 : index
      %13 = vector.load %arg7[%c0_11, %c0_12] : memref<8x256xf32, #tpu.memory_space<vmem>>, vector<8x256xf32>
      tpu.vector_store %arg7[%c0_11, %c0_12], %12 {strides = array<i32>} : memref<8x256xf32, #tpu.memory_space<vmem>>, vector<8x256xf32>,
    } else {
    }
    %c0 = arith.constant 0 : index
    %c0_1 = arith.constant 0 : index
    %3 = vector.load %arg7[%c0, %c0_1] : memref<8x256xf32, #tpu.memory_space<vmem>>, vector<8x256xf32>
    %c0_2 = arith.constant 0 : index
    %c0_3 = arith.constant 0 : index
    %4 = vector.load %arg2[%c0_2, %c0_3] : memref<8x128xbf16, #tpu.memory_space<vmem>>, vector<8x128xbf16>
    %c0_4 = arith.constant 0 : index
    %c0_5 = arith.constant 0 : index
    %5 = vector.load %arg3[%c0_4, %c0_5] : memref<128x256xbf16, #tpu.memory_space<vmem>>, vector<128x256xbf16>
    %cst = arith.constant dense<0.000000e+00> : vector<8x256xf32>
    %6 = tpu.matmul %4, %5, %cst {dimension_numbers = #tpu.dot_dimension_numbers<[1], [0], [0], [1], [0, 0, 1, 1], [], []>} : vector<8x128xbf16>, vector<128x256xbf16>, vector<8x256xf32> -> vector<8x256xf32>
    %7 = arith.addf %3, %6 : vector<8x256xf32>
    %c0_6 = arith.constant 0 : index
    %c0_7 = arith.constant 0 : index
    %8 = vector.load %arg7[%c0_6, %c0_7] : memref<8x256xf32, #tpu.memory_space<vmem>>, vector<8x256xf32>
    tpu.vector_store %arg7[%c0_6, %c0_7], %7 {strides = array<i32>} : memref<8x256xf32, #tpu.memory_space<vmem>>, vector<8x256xf32>,
    %c0_i32_8 = arith.constant 0 : i32
    %9 = arith.cmpi eq, %arg1, %c0_i32_8 : i32
    %10 = arith.extui %9 : i1 to i32
    %c0_i32_9 = arith.constant 0 : i32
    %11 = arith.cmpi ne, %10, %c0_i32_9 : i32
    scf.if %11 {
      %c0_10 = arith.constant 0 : index
      %c0_11 = arith.constant 0 : index
      %12 = vector.load %arg7[%c0_10, %c0_11] : memref<8x256xf32, #tpu.memory_space<vmem>>, vector<8x256xf32>
      %c0_12 = arith.constant 0 : index
      %c0_13 = arith.constant 0 : index
      %13 = vector.load %arg4[%c0_12, %c0_13] : memref<1x256xf32, #tpu.memory_space<vmem>>, vector<1x256xf32>
      %14 = vector.broadcast %13 : vector<1x256xf32> to vector<8x256xf32>
      %15 = arith.mulf %12, %14 : vector<8x256xf32>
      %c0_14 = arith.constant 0 : index
      %c0_15 = arith.constant 0 : index
      %16 = vector.load %arg5[%c0_14, %c0_15] : memref<1x256xf32, #tpu.memory_space<vmem>>, vector<1x256xf32>
      %17 = vector.broadcast %16 : vector<1x256xf32> to vector<8x256xf32>
      %18 = arith.addf %15, %17 : vector<8x256xf32>
      %19 = arith.truncf %18 : vector<8x256xf32> to vector<8x256xbf16>
      %c0_16 = arith.constant 0 : index
      %c0_17 = arith.constant 0 : index
      %20 = vector.load %arg6[%c0_16, %c0_17] : memref<8x256xbf16, #tpu.memory_space<vmem>>, vector<8x256xbf16>
      tpu.vector_store %arg6[%c0_16, %c0_17], %19 {strides = array<i32>} : memref<8x256xbf16, #tpu.memory_space<vmem>>, vector<8x256xbf16>,
    } else {
    }
    return
  }
  func.func @transform_0(%arg0: i32, %arg1: i32) -> (i32, i32) {
    %c0_i32 = arith.constant 0 : i32
    return %arg0, %arg1 : i32, i32
  }
  func.func @transform_1(%arg0: i32, %arg1: i32) -> (i32, i32) {
    %c0_i32 = arith.constant 0 : i32
    %c0_i32_0 = arith.constant 0 : i32
    return %arg1, %c0_i32 : i32, i32
  }
  func.func @transform_2(%arg0: i32, %arg1: i32) -> (i32, i32) {
    %c0_i32 = arith.constant 0 : i32
    %c0_i32_0 = arith.constant 0 : i32
    %c0_i32_1 = arith.constant 0 : i32
    return %c0_i32, %c0_i32_0 : i32, i32
  }
  func.func @transform_3(%arg0: i32, %arg1: i32) -> (i32, i32) {
    %c0_i32 = arith.constant 0 : i32
    %c0_i32_0 = arith.constant 0 : i32
    %c0_i32_1 = arith.constant 0 : i32
    return %c0_i32, %c0_i32_0 : i32, i32
  }
  func.func @transform_4(%arg0: i32, %arg1: i32) -> (i32, i32) {
    %c0_i32 = arith.constant 0 : i32
    %c0_i32_0 = arith.constant 0 : i32
    return %arg0, %c0_i32 : i32, i32
  }
}

module attributes {stable_mosaic.version = 11 : i64} {
  func.func @conv_mm_kernel(%arg0: i32, %arg1: i32, %arg2: memref<8x384xbf16, #tpu.memory_space<vmem>>, %arg3: memref<384x256xbf16, #tpu.memory_space<vmem>>, %arg4: memref<1x256xf32, #tpu.memory_space<vmem>>, %arg5: memref<1x256xf32, #tpu.memory_space<vmem>>, %arg6: memref<8x256xbf16, #tpu.memory_space<vmem>>, %arg7: memref<8x256xf32, #tpu.memory_space<vmem>>) attributes {dimension_semantics = [#tpu.dimension_semantics<parallel>, #tpu.dimension_semantics<arbitrary>], iteration_bounds = array<i64: 1, 3>, scalar_prefetch = 0 : i64, scratch_operands = 1 : i64, tpu.core_type = #tpu.core_type<tc>, window_params = [{transform_indices = @transform_0, window_bounds = array<i64: 8, 384>}, {transform_indices = @transform_1, window_bounds = array<i64: 384, 256>}, {pipeline_mode = #tpu.pipeline_mode<synchronous>, transform_indices = @transform_2, window_bounds = array<i64: 1, 256>}, {pipeline_mode = #tpu.pipeline_mode<synchronous>, transform_indices = @transform_3, window_bounds = array<i64: 1, 256>}, {transform_indices = @transform_4, window_bounds = array<i64: 8, 256>}]} {
    %c0_i32 = arith.constant 0 : i32
    %0 = arith.cmpi eq, %arg1, %c0_i32 : i32
    %1 = arith.extui %0 : i1 to i32
    %c0_i32_0 = arith.constant 0 : i32
    %2 = arith.cmpi ne, %1, %c0_i32_0 : i32
    scf.if %2 {
      %cst_9 = arith.constant 0.000000e+00 : f32
      %12 = vector.broadcast %cst_9 : f32 to vector<8x256xf32>
      %c0_10 = arith.constant 0 : index
      %c0_11 = arith.constant 0 : index
      %13 = vector.load %arg7[%c0_10, %c0_11] : memref<8x256xf32, #tpu.memory_space<vmem>>, vector<8x256xf32>
      tpu.vector_store %arg7[%c0_10, %c0_11], %12 {strides = array<i32>} : memref<8x256xf32, #tpu.memory_space<vmem>>, vector<8x256xf32>,
    } else {
    }
    %c0 = arith.constant 0 : index
    %c0_1 = arith.constant 0 : index
    %3 = vector.load %arg7[%c0, %c0_1] : memref<8x256xf32, #tpu.memory_space<vmem>>, vector<8x256xf32>
    %c0_2 = arith.constant 0 : index
    %c0_3 = arith.constant 0 : index
    %4 = vector.load %arg2[%c0_2, %c0_3] : memref<8x384xbf16, #tpu.memory_space<vmem>>, vector<8x384xbf16>
    %c0_4 = arith.constant 0 : index
    %c0_5 = arith.constant 0 : index
    %5 = vector.load %arg3[%c0_4, %c0_5] : memref<384x256xbf16, #tpu.memory_space<vmem>>, vector<384x256xbf16>
    %cst = arith.constant dense<0.000000e+00> : vector<8x256xf32>
    %6 = tpu.matmul %4, %5, %cst {dimension_numbers = #tpu.dot_dimension_numbers<[1], [0], [0], [1], [0, 0, 1, 1], [], []>} : vector<8x384xbf16>, vector<384x256xbf16>, vector<8x256xf32> -> vector<8x256xf32>
    %7 = arith.addf %3, %6 : vector<8x256xf32>
    %c0_6 = arith.constant 0 : index
    %c0_7 = arith.constant 0 : index
    %8 = vector.load %arg7[%c0_6, %c0_7] : memref<8x256xf32, #tpu.memory_space<vmem>>, vector<8x256xf32>
    tpu.vector_store %arg7[%c0_6, %c0_7], %7 {strides = array<i32>} : memref<8x256xf32, #tpu.memory_space<vmem>>, vector<8x256xf32>,
    %c2_i32 = arith.constant 2 : i32
    %9 = arith.cmpi eq, %arg1, %c2_i32 : i32
    %10 = arith.extui %9 : i1 to i32
    %c0_i32_8 = arith.constant 0 : i32
    %11 = arith.cmpi ne, %10, %c0_i32_8 : i32
    scf.if %11 {
      %c0_9 = arith.constant 0 : index
      %c0_10 = arith.constant 0 : index
      %12 = vector.load %arg7[%c0_9, %c0_10] : memref<8x256xf32, #tpu.memory_space<vmem>>, vector<8x256xf32>
      %c0_11 = arith.constant 0 : index
      %c0_12 = arith.constant 0 : index
      %13 = vector.load %arg4[%c0_11, %c0_12] : memref<1x256xf32, #tpu.memory_space<vmem>>, vector<1x256xf32>
      %14 = vector.broadcast %13 : vector<1x256xf32> to vector<8x256xf32>
      %15 = arith.mulf %12, %14 : vector<8x256xf32>
      %c0_13 = arith.constant 0 : index
      %c0_14 = arith.constant 0 : index
      %16 = vector.load %arg5[%c0_13, %c0_14] : memref<1x256xf32, #tpu.memory_space<vmem>>, vector<1x256xf32>
      %17 = vector.broadcast %16 : vector<1x256xf32> to vector<8x256xf32>
      %18 = arith.addf %15, %17 : vector<8x256xf32>
      %cst_15 = arith.constant 0.000000e+00 : f32
      %19 = vector.broadcast %cst_15 : f32 to vector<8x256xf32>
      %20 = arith.maximumf %18, %19 : vector<8x256xf32>
      %21 = arith.truncf %20 : vector<8x256xf32> to vector<8x256xbf16>
      %c0_16 = arith.constant 0 : index
      %c0_17 = arith.constant 0 : index
      %22 = vector.load %arg6[%c0_16, %c0_17] : memref<8x256xbf16, #tpu.memory_space<vmem>>, vector<8x256xbf16>
      tpu.vector_store %arg6[%c0_16, %c0_17], %21 {strides = array<i32>} : memref<8x256xbf16, #tpu.memory_space<vmem>>, vector<8x256xbf16>,
    } else {
    }
    return
  }
  func.func @transform_0(%arg0: i32, %arg1: i32) -> (i32, i32) {
    %c0_i32 = arith.constant 0 : i32
    return %arg0, %arg1 : i32, i32
  }
  func.func @transform_1(%arg0: i32, %arg1: i32) -> (i32, i32) {
    %c0_i32 = arith.constant 0 : i32
    %c0_i32_0 = arith.constant 0 : i32
    return %arg1, %c0_i32 : i32, i32
  }
  func.func @transform_2(%arg0: i32, %arg1: i32) -> (i32, i32) {
    %c0_i32 = arith.constant 0 : i32
    %c0_i32_0 = arith.constant 0 : i32
    %c0_i32_1 = arith.constant 0 : i32
    return %c0_i32, %c0_i32_0 : i32, i32
  }
  func.func @transform_3(%arg0: i32, %arg1: i32) -> (i32, i32) {
    %c0_i32 = arith.constant 0 : i32
    %c0_i32_0 = arith.constant 0 : i32
    %c0_i32_1 = arith.constant 0 : i32
    return %c0_i32, %c0_i32_0 : i32, i32
  }
  func.func @transform_4(%arg0: i32, %arg1: i32) -> (i32, i32) {
    %c0_i32 = arith.constant 0 : i32
    %c0_i32_0 = arith.constant 0 : i32
    return %arg0, %c0_i32 : i32, i32
  }
}

module attributes {stable_mosaic.version = 11 : i64} {
  func.func @conv_mm_kernel(%arg0: i32, %arg1: i32, %arg2: memref<8x384xbf16, #tpu.memory_space<vmem>>, %arg3: memref<384x256xbf16, #tpu.memory_space<vmem>>, %arg4: memref<1x256xf32, #tpu.memory_space<vmem>>, %arg5: memref<1x256xf32, #tpu.memory_space<vmem>>, %arg6: memref<8x256xbf16, #tpu.memory_space<vmem>>, %arg7: memref<8x256xbf16, #tpu.memory_space<vmem>>, %arg8: memref<8x256xf32, #tpu.memory_space<vmem>>) attributes {dimension_semantics = [#tpu.dimension_semantics<parallel>, #tpu.dimension_semantics<arbitrary>], iteration_bounds = array<i64: 1, 6>, scalar_prefetch = 0 : i64, scratch_operands = 1 : i64, tpu.core_type = #tpu.core_type<tc>, window_params = [{transform_indices = @transform_0, window_bounds = array<i64: 8, 384>}, {transform_indices = @transform_1, window_bounds = array<i64: 384, 256>}, {pipeline_mode = #tpu.pipeline_mode<synchronous>, transform_indices = @transform_2, window_bounds = array<i64: 1, 256>}, {pipeline_mode = #tpu.pipeline_mode<synchronous>, transform_indices = @transform_3, window_bounds = array<i64: 1, 256>}, {transform_indices = @transform_4, window_bounds = array<i64: 8, 256>}, {transform_indices = @transform_5, window_bounds = array<i64: 8, 256>}]} {
    %c0_i32 = arith.constant 0 : i32
    %0 = arith.cmpi eq, %arg1, %c0_i32 : i32
    %1 = arith.extui %0 : i1 to i32
    %c0_i32_0 = arith.constant 0 : i32
    %2 = arith.cmpi ne, %1, %c0_i32_0 : i32
    scf.if %2 {
      %cst_9 = arith.constant 0.000000e+00 : f32
      %12 = vector.broadcast %cst_9 : f32 to vector<8x256xf32>
      %c0_10 = arith.constant 0 : index
      %c0_11 = arith.constant 0 : index
      %13 = vector.load %arg8[%c0_10, %c0_11] : memref<8x256xf32, #tpu.memory_space<vmem>>, vector<8x256xf32>
      tpu.vector_store %arg8[%c0_10, %c0_11], %12 {strides = array<i32>} : memref<8x256xf32, #tpu.memory_space<vmem>>, vector<8x256xf32>,
    } else {
    }
    %c0 = arith.constant 0 : index
    %c0_1 = arith.constant 0 : index
    %3 = vector.load %arg8[%c0, %c0_1] : memref<8x256xf32, #tpu.memory_space<vmem>>, vector<8x256xf32>
    %c0_2 = arith.constant 0 : index
    %c0_3 = arith.constant 0 : index
    %4 = vector.load %arg2[%c0_2, %c0_3] : memref<8x384xbf16, #tpu.memory_space<vmem>>, vector<8x384xbf16>
    %c0_4 = arith.constant 0 : index
    %c0_5 = arith.constant 0 : index
    %5 = vector.load %arg3[%c0_4, %c0_5] : memref<384x256xbf16, #tpu.memory_space<vmem>>, vector<384x256xbf16>
    %cst = arith.constant dense<0.000000e+00> : vector<8x256xf32>
    %6 = tpu.matmul %4, %5, %cst {dimension_numbers = #tpu.dot_dimension_numbers<[1], [0], [0], [1], [0, 0, 1, 1], [], []>} : vector<8x384xbf16>, vector<384x256xbf16>, vector<8x256xf32> -> vector<8x256xf32>
    %7 = arith.addf %3, %6 : vector<8x256xf32>
    %c0_6 = arith.constant 0 : index
    %c0_7 = arith.constant 0 : index
    %8 = vector.load %arg8[%c0_6, %c0_7] : memref<8x256xf32, #tpu.memory_space<vmem>>, vector<8x256xf32>
    tpu.vector_store %arg8[%c0_6, %c0_7], %7 {strides = array<i32>} : memref<8x256xf32, #tpu.memory_space<vmem>>, vector<8x256xf32>,
    %c5_i32 = arith.constant 5 : i32
    %9 = arith.cmpi eq, %arg1, %c5_i32 : i32
    %10 = arith.extui %9 : i1 to i32
    %c0_i32_8 = arith.constant 0 : i32
    %11 = arith.cmpi ne, %10, %c0_i32_8 : i32
    scf.if %11 {
      %c0_9 = arith.constant 0 : index
      %c0_10 = arith.constant 0 : index
      %12 = vector.load %arg8[%c0_9, %c0_10] : memref<8x256xf32, #tpu.memory_space<vmem>>, vector<8x256xf32>
      %c0_11 = arith.constant 0 : index
      %c0_12 = arith.constant 0 : index
      %13 = vector.load %arg4[%c0_11, %c0_12] : memref<1x256xf32, #tpu.memory_space<vmem>>, vector<1x256xf32>
      %14 = vector.broadcast %13 : vector<1x256xf32> to vector<8x256xf32>
      %15 = arith.mulf %12, %14 : vector<8x256xf32>
      %c0_13 = arith.constant 0 : index
      %c0_14 = arith.constant 0 : index
      %16 = vector.load %arg5[%c0_13, %c0_14] : memref<1x256xf32, #tpu.memory_space<vmem>>, vector<1x256xf32>
      %17 = vector.broadcast %16 : vector<1x256xf32> to vector<8x256xf32>
      %18 = arith.addf %15, %17 : vector<8x256xf32>
      %c0_15 = arith.constant 0 : index
      %c0_16 = arith.constant 0 : index
      %19 = vector.load %arg6[%c0_15, %c0_16] : memref<8x256xbf16, #tpu.memory_space<vmem>>, vector<8x256xbf16>
      %20 = arith.extf %19 : vector<8x256xbf16> to vector<8x256xf32>
      %21 = arith.addf %18, %20 : vector<8x256xf32>
      %cst_17 = arith.constant 0.000000e+00 : f32
      %22 = vector.broadcast %cst_17 : f32 to vector<8x256xf32>
      %23 = arith.maximumf %21, %22 : vector<8x256xf32>
      %24 = arith.truncf %23 : vector<8x256xf32> to vector<8x256xbf16>
      %c0_18 = arith.constant 0 : index
      %c0_19 = arith.constant 0 : index
      %25 = vector.load %arg7[%c0_18, %c0_19] : memref<8x256xbf16, #tpu.memory_space<vmem>>, vector<8x256xbf16>
      tpu.vector_store %arg7[%c0_18, %c0_19], %24 {strides = array<i32>} : memref<8x256xbf16, #tpu.memory_space<vmem>>, vector<8x256xbf16>,
    } else {
    }
    return
  }
  func.func @transform_0(%arg0: i32, %arg1: i32) -> (i32, i32) {
    %c0_i32 = arith.constant 0 : i32
    return %arg0, %arg1 : i32, i32
  }
  func.func @transform_1(%arg0: i32, %arg1: i32) -> (i32, i32) {
    %c0_i32 = arith.constant 0 : i32
    %c0_i32_0 = arith.constant 0 : i32
    return %arg1, %c0_i32 : i32, i32
  }
  func.func @transform_2(%arg0: i32, %arg1: i32) -> (i32, i32) {
    %c0_i32 = arith.constant 0 : i32
    %c0_i32_0 = arith.constant 0 : i32
    %c0_i32_1 = arith.constant 0 : i32
    return %c0_i32, %c0_i32_0 : i32, i32
  }
  func.func @transform_3(%arg0: i32, %arg1: i32) -> (i32, i32) {
    %c0_i32 = arith.constant 0 : i32
    %c0_i32_0 = arith.constant 0 : i32
    %c0_i32_1 = arith.constant 0 : i32
    return %c0_i32, %c0_i32_0 : i32, i32
  }
  func.func @transform_4(%arg0: i32, %arg1: i32) -> (i32, i32) {
    %c0_i32 = arith.constant 0 : i32
    %c0_i32_0 = arith.constant 0 : i32
    return %arg0, %c0_i32 : i32, i32
  }
  func.func @transform_5(%arg0: i32, %arg1: i32) -> (i32, i32) {
    %c0_i32 = arith.constant 0 : i32
    %c0_i32_0 = arith.constant 0 : i32
    return %arg0, %c0_i32 : i32, i32
  }
}

module attributes {stable_mosaic.version = 11 : i64} {
  func.func @conv_mm_kernel(%arg0: i32, %arg1: i32, %arg2: memref<8x384xbf16, #tpu.memory_space<vmem>>, %arg3: memref<384x256xbf16, #tpu.memory_space<vmem>>, %arg4: memref<1x256xf32, #tpu.memory_space<vmem>>, %arg5: memref<1x256xf32, #tpu.memory_space<vmem>>, %arg6: memref<8x256xbf16, #tpu.memory_space<vmem>>, %arg7: memref<8x256xf32, #tpu.memory_space<vmem>>) attributes {dimension_semantics = [#tpu.dimension_semantics<parallel>, #tpu.dimension_semantics<arbitrary>], iteration_bounds = array<i64: 1, 6>, scalar_prefetch = 0 : i64, scratch_operands = 1 : i64, tpu.core_type = #tpu.core_type<tc>, window_params = [{transform_indices = @transform_0, window_bounds = array<i64: 8, 384>}, {transform_indices = @transform_1, window_bounds = array<i64: 384, 256>}, {pipeline_mode = #tpu.pipeline_mode<synchronous>, transform_indices = @transform_2, window_bounds = array<i64: 1, 256>}, {pipeline_mode = #tpu.pipeline_mode<synchronous>, transform_indices = @transform_3, window_bounds = array<i64: 1, 256>}, {transform_indices = @transform_4, window_bounds = array<i64: 8, 256>}]} {
    %c0_i32 = arith.constant 0 : i32
    %0 = arith.cmpi eq, %arg1, %c0_i32 : i32
    %1 = arith.extui %0 : i1 to i32
    %c0_i32_0 = arith.constant 0 : i32
    %2 = arith.cmpi ne, %1, %c0_i32_0 : i32
    scf.if %2 {
      %cst_9 = arith.constant 0.000000e+00 : f32
      %12 = vector.broadcast %cst_9 : f32 to vector<8x256xf32>
      %c0_10 = arith.constant 0 : index
      %c0_11 = arith.constant 0 : index
      %13 = vector.load %arg7[%c0_10, %c0_11] : memref<8x256xf32, #tpu.memory_space<vmem>>, vector<8x256xf32>
      tpu.vector_store %arg7[%c0_10, %c0_11], %12 {strides = array<i32>} : memref<8x256xf32, #tpu.memory_space<vmem>>, vector<8x256xf32>,
    } else {
    }
    %c0 = arith.constant 0 : index
    %c0_1 = arith.constant 0 : index
    %3 = vector.load %arg7[%c0, %c0_1] : memref<8x256xf32, #tpu.memory_space<vmem>>, vector<8x256xf32>
    %c0_2 = arith.constant 0 : index
    %c0_3 = arith.constant 0 : index
    %4 = vector.load %arg2[%c0_2, %c0_3] : memref<8x384xbf16, #tpu.memory_space<vmem>>, vector<8x384xbf16>
    %c0_4 = arith.constant 0 : index
    %c0_5 = arith.constant 0 : index
    %5 = vector.load %arg3[%c0_4, %c0_5] : memref<384x256xbf16, #tpu.memory_space<vmem>>, vector<384x256xbf16>
    %cst = arith.constant dense<0.000000e+00> : vector<8x256xf32>
    %6 = tpu.matmul %4, %5, %cst {dimension_numbers = #tpu.dot_dimension_numbers<[1], [0], [0], [1], [0, 0, 1, 1], [], []>} : vector<8x384xbf16>, vector<384x256xbf16>, vector<8x256xf32> -> vector<8x256xf32>
    %7 = arith.addf %3, %6 : vector<8x256xf32>
    %c0_6 = arith.constant 0 : index
    %c0_7 = arith.constant 0 : index
    %8 = vector.load %arg7[%c0_6, %c0_7] : memref<8x256xf32, #tpu.memory_space<vmem>>, vector<8x256xf32>
    tpu.vector_store %arg7[%c0_6, %c0_7], %7 {strides = array<i32>} : memref<8x256xf32, #tpu.memory_space<vmem>>, vector<8x256xf32>,
    %c5_i32 = arith.constant 5 : i32
    %9 = arith.cmpi eq, %arg1, %c5_i32 : i32
    %10 = arith.extui %9 : i1 to i32
    %c0_i32_8 = arith.constant 0 : i32
    %11 = arith.cmpi ne, %10, %c0_i32_8 : i32
    scf.if %11 {
      %c0_9 = arith.constant 0 : index
      %c0_10 = arith.constant 0 : index
      %12 = vector.load %arg7[%c0_9, %c0_10] : memref<8x256xf32, #tpu.memory_space<vmem>>, vector<8x256xf32>
      %c0_11 = arith.constant 0 : index
      %c0_12 = arith.constant 0 : index
      %13 = vector.load %arg4[%c0_11, %c0_12] : memref<1x256xf32, #tpu.memory_space<vmem>>, vector<1x256xf32>
      %14 = vector.broadcast %13 : vector<1x256xf32> to vector<8x256xf32>
      %15 = arith.mulf %12, %14 : vector<8x256xf32>
      %c0_13 = arith.constant 0 : index
      %c0_14 = arith.constant 0 : index
      %16 = vector.load %arg5[%c0_13, %c0_14] : memref<1x256xf32, #tpu.memory_space<vmem>>, vector<1x256xf32>
      %17 = vector.broadcast %16 : vector<1x256xf32> to vector<8x256xf32>
      %18 = arith.addf %15, %17 : vector<8x256xf32>
      %cst_15 = arith.constant 0.000000e+00 : f32
      %19 = vector.broadcast %cst_15 : f32 to vector<8x256xf32>
      %20 = arith.maximumf %18, %19 : vector<8x256xf32>
      %21 = arith.truncf %20 : vector<8x256xf32> to vector<8x256xbf16>
      %c0_16 = arith.constant 0 : index
      %c0_17 = arith.constant 0 : index
      %22 = vector.load %arg6[%c0_16, %c0_17] : memref<8x256xbf16, #tpu.memory_space<vmem>>, vector<8x256xbf16>
      tpu.vector_store %arg6[%c0_16, %c0_17], %21 {strides = array<i32>} : memref<8x256xbf16, #tpu.memory_space<vmem>>, vector<8x256xbf16>,
    } else {
    }
    return
  }
  func.func @transform_0(%arg0: i32, %arg1: i32) -> (i32, i32) {
    %c0_i32 = arith.constant 0 : i32
    return %arg0, %arg1 : i32, i32
  }
  func.func @transform_1(%arg0: i32, %arg1: i32) -> (i32, i32) {
    %c0_i32 = arith.constant 0 : i32
    %c0_i32_0 = arith.constant 0 : i32
    return %arg1, %c0_i32 : i32, i32
  }
  func.func @transform_2(%arg0: i32, %arg1: i32) -> (i32, i32) {
    %c0_i32 = arith.constant 0 : i32
    %c0_i32_0 = arith.constant 0 : i32
    %c0_i32_1 = arith.constant 0 : i32
    return %c0_i32, %c0_i32_0 : i32, i32
  }
  func.func @transform_3(%arg0: i32, %arg1: i32) -> (i32, i32) {
    %c0_i32 = arith.constant 0 : i32
    %c0_i32_0 = arith.constant 0 : i32
    %c0_i32_1 = arith.constant 0 : i32
    return %c0_i32, %c0_i32_0 : i32, i32
  }
  func.func @transform_4(%arg0: i32, %arg1: i32) -> (i32, i32) {
    %c0_i32 = arith.constant 0 : i32
    %c0_i32_0 = arith.constant 0 : i32
    return %arg0, %c0_i32 : i32, i32
  }
}

module attributes {stable_mosaic.version = 11 : i64} {
  func.func @conv_mm_kernel(%arg0: i32, %arg1: i32, %arg2: memref<8x384xbf16, #tpu.memory_space<vmem>>, %arg3: memref<384x512xbf16, #tpu.memory_space<vmem>>, %arg4: memref<1x512xf32, #tpu.memory_space<vmem>>, %arg5: memref<1x512xf32, #tpu.memory_space<vmem>>, %arg6: memref<8x512xbf16, #tpu.memory_space<vmem>>, %arg7: memref<8x512xf32, #tpu.memory_space<vmem>>) attributes {dimension_semantics = [#tpu.dimension_semantics<parallel>, #tpu.dimension_semantics<arbitrary>], iteration_bounds = array<i64: 1, 6>, scalar_prefetch = 0 : i64, scratch_operands = 1 : i64, tpu.core_type = #tpu.core_type<tc>, window_params = [{transform_indices = @transform_0, window_bounds = array<i64: 8, 384>}, {transform_indices = @transform_1, window_bounds = array<i64: 384, 512>}, {pipeline_mode = #tpu.pipeline_mode<synchronous>, transform_indices = @transform_2, window_bounds = array<i64: 1, 512>}, {pipeline_mode = #tpu.pipeline_mode<synchronous>, transform_indices = @transform_3, window_bounds = array<i64: 1, 512>}, {transform_indices = @transform_4, window_bounds = array<i64: 8, 512>}]} {
    %c0_i32 = arith.constant 0 : i32
    %0 = arith.cmpi eq, %arg1, %c0_i32 : i32
    %1 = arith.extui %0 : i1 to i32
    %c0_i32_0 = arith.constant 0 : i32
    %2 = arith.cmpi ne, %1, %c0_i32_0 : i32
    scf.if %2 {
      %cst_9 = arith.constant 0.000000e+00 : f32
      %12 = vector.broadcast %cst_9 : f32 to vector<8x512xf32>
      %c0_10 = arith.constant 0 : index
      %c0_11 = arith.constant 0 : index
      %13 = vector.load %arg7[%c0_10, %c0_11] : memref<8x512xf32, #tpu.memory_space<vmem>>, vector<8x512xf32>
      tpu.vector_store %arg7[%c0_10, %c0_11], %12 {strides = array<i32>} : memref<8x512xf32, #tpu.memory_space<vmem>>, vector<8x512xf32>,
    } else {
    }
    %c0 = arith.constant 0 : index
    %c0_1 = arith.constant 0 : index
    %3 = vector.load %arg7[%c0, %c0_1] : memref<8x512xf32, #tpu.memory_space<vmem>>, vector<8x512xf32>
    %c0_2 = arith.constant 0 : index
    %c0_3 = arith.constant 0 : index
    %4 = vector.load %arg2[%c0_2, %c0_3] : memref<8x384xbf16, #tpu.memory_space<vmem>>, vector<8x384xbf16>
    %c0_4 = arith.constant 0 : index
    %c0_5 = arith.constant 0 : index
    %5 = vector.load %arg3[%c0_4, %c0_5] : memref<384x512xbf16, #tpu.memory_space<vmem>>, vector<384x512xbf16>
    %cst = arith.constant dense<0.000000e+00> : vector<8x512xf32>
    %6 = tpu.matmul %4, %5, %cst {dimension_numbers = #tpu.dot_dimension_numbers<[1], [0], [0], [1], [0, 0, 1, 1], [], []>} : vector<8x384xbf16>, vector<384x512xbf16>, vector<8x512xf32> -> vector<8x512xf32>
    %7 = arith.addf %3, %6 : vector<8x512xf32>
    %c0_6 = arith.constant 0 : index
    %c0_7 = arith.constant 0 : index
    %8 = vector.load %arg7[%c0_6, %c0_7] : memref<8x512xf32, #tpu.memory_space<vmem>>, vector<8x512xf32>
    tpu.vector_store %arg7[%c0_6, %c0_7], %7 {strides = array<i32>} : memref<8x512xf32, #tpu.memory_space<vmem>>, vector<8x512xf32>,
    %c5_i32 = arith.constant 5 : i32
    %9 = arith.cmpi eq, %arg1, %c5_i32 : i32
    %10 = arith.extui %9 : i1 to i32
    %c0_i32_8 = arith.constant 0 : i32
    %11 = arith.cmpi ne, %10, %c0_i32_8 : i32
    scf.if %11 {
      %c0_9 = arith.constant 0 : index
      %c0_10 = arith.constant 0 : index
      %12 = vector.load %arg7[%c0_9, %c0_10] : memref<8x512xf32, #tpu.memory_space<vmem>>, vector<8x512xf32>
      %c0_11 = arith.constant 0 : index
      %c0_12 = arith.constant 0 : index
      %13 = vector.load %arg4[%c0_11, %c0_12] : memref<1x512xf32, #tpu.memory_space<vmem>>, vector<1x512xf32>
      %14 = vector.broadcast %13 : vector<1x512xf32> to vector<8x512xf32>
      %15 = arith.mulf %12, %14 : vector<8x512xf32>
      %c0_13 = arith.constant 0 : index
      %c0_14 = arith.constant 0 : index
      %16 = vector.load %arg5[%c0_13, %c0_14] : memref<1x512xf32, #tpu.memory_space<vmem>>, vector<1x512xf32>
      %17 = vector.broadcast %16 : vector<1x512xf32> to vector<8x512xf32>
      %18 = arith.addf %15, %17 : vector<8x512xf32>
      %cst_15 = arith.constant 0.000000e+00 : f32
      %19 = vector.broadcast %cst_15 : f32 to vector<8x512xf32>
      %20 = arith.maximumf %18, %19 : vector<8x512xf32>
      %21 = arith.truncf %20 : vector<8x512xf32> to vector<8x512xbf16>
      %c0_16 = arith.constant 0 : index
      %c0_17 = arith.constant 0 : index
      %22 = vector.load %arg6[%c0_16, %c0_17] : memref<8x512xbf16, #tpu.memory_space<vmem>>, vector<8x512xbf16>
      tpu.vector_store %arg6[%c0_16, %c0_17], %21 {strides = array<i32>} : memref<8x512xbf16, #tpu.memory_space<vmem>>, vector<8x512xbf16>,
    } else {
    }
    return
  }
  func.func @transform_0(%arg0: i32, %arg1: i32) -> (i32, i32) {
    %c0_i32 = arith.constant 0 : i32
    return %arg0, %arg1 : i32, i32
  }
  func.func @transform_1(%arg0: i32, %arg1: i32) -> (i32, i32) {
    %c0_i32 = arith.constant 0 : i32
    %c0_i32_0 = arith.constant 0 : i32
    return %arg1, %c0_i32 : i32, i32
  }
  func.func @transform_2(%arg0: i32, %arg1: i32) -> (i32, i32) {
    %c0_i32 = arith.constant 0 : i32
    %c0_i32_0 = arith.constant 0 : i32
    %c0_i32_1 = arith.constant 0 : i32
    return %c0_i32, %c0_i32_0 : i32, i32
  }
  func.func @transform_3(%arg0: i32, %arg1: i32) -> (i32, i32) {
    %c0_i32 = arith.constant 0 : i32
    %c0_i32_0 = arith.constant 0 : i32
    %c0_i32_1 = arith.constant 0 : i32
    return %c0_i32, %c0_i32_0 : i32, i32
  }
  func.func @transform_4(%arg0: i32, %arg1: i32) -> (i32, i32) {
    %c0_i32 = arith.constant 0 : i32
    %c0_i32_0 = arith.constant 0 : i32
    return %arg0, %c0_i32 : i32, i32
  }
}

module attributes {stable_mosaic.version = 11 : i64} {
  func.func @conv_mm_kernel(%arg0: i32, %arg1: i32, %arg2: memref<8x256xbf16, #tpu.memory_space<vmem>>, %arg3: memref<256x512xbf16, #tpu.memory_space<vmem>>, %arg4: memref<1x512xf32, #tpu.memory_space<vmem>>, %arg5: memref<1x512xf32, #tpu.memory_space<vmem>>, %arg6: memref<8x512xbf16, #tpu.memory_space<vmem>>, %arg7: memref<8x512xf32, #tpu.memory_space<vmem>>) attributes {dimension_semantics = [#tpu.dimension_semantics<parallel>, #tpu.dimension_semantics<arbitrary>], iteration_bounds = array<i64: 1, 1>, scalar_prefetch = 0 : i64, scratch_operands = 1 : i64, tpu.core_type = #tpu.core_type<tc>, window_params = [{transform_indices = @transform_0, window_bounds = array<i64: 8, 256>}, {transform_indices = @transform_1, window_bounds = array<i64: 256, 512>}, {pipeline_mode = #tpu.pipeline_mode<synchronous>, transform_indices = @transform_2, window_bounds = array<i64: 1, 512>}, {pipeline_mode = #tpu.pipeline_mode<synchronous>, transform_indices = @transform_3, window_bounds = array<i64: 1, 512>}, {transform_indices = @transform_4, window_bounds = array<i64: 8, 512>}]} {
    %c0_i32 = arith.constant 0 : i32
    %0 = arith.cmpi eq, %arg1, %c0_i32 : i32
    %1 = arith.extui %0 : i1 to i32
    %c0_i32_0 = arith.constant 0 : i32
    %2 = arith.cmpi ne, %1, %c0_i32_0 : i32
    scf.if %2 {
      %cst_10 = arith.constant 0.000000e+00 : f32
      %12 = vector.broadcast %cst_10 : f32 to vector<8x512xf32>
      %c0_11 = arith.constant 0 : index
      %c0_12 = arith.constant 0 : index
      %13 = vector.load %arg7[%c0_11, %c0_12] : memref<8x512xf32, #tpu.memory_space<vmem>>, vector<8x512xf32>
      tpu.vector_store %arg7[%c0_11, %c0_12], %12 {strides = array<i32>} : memref<8x512xf32, #tpu.memory_space<vmem>>, vector<8x512xf32>,
    } else {
    }
    %c0 = arith.constant 0 : index
    %c0_1 = arith.constant 0 : index
    %3 = vector.load %arg7[%c0, %c0_1] : memref<8x512xf32, #tpu.memory_space<vmem>>, vector<8x512xf32>
    %c0_2 = arith.constant 0 : index
    %c0_3 = arith.constant 0 : index
    %4 = vector.load %arg2[%c0_2, %c0_3] : memref<8x256xbf16, #tpu.memory_space<vmem>>, vector<8x256xbf16>
    %c0_4 = arith.constant 0 : index
    %c0_5 = arith.constant 0 : index
    %5 = vector.load %arg3[%c0_4, %c0_5] : memref<256x512xbf16, #tpu.memory_space<vmem>>, vector<256x512xbf16>
    %cst = arith.constant dense<0.000000e+00> : vector<8x512xf32>
    %6 = tpu.matmul %4, %5, %cst {dimension_numbers = #tpu.dot_dimension_numbers<[1], [0], [0], [1], [0, 0, 1, 1], [], []>} : vector<8x256xbf16>, vector<256x512xbf16>, vector<8x512xf32> -> vector<8x512xf32>
    %7 = arith.addf %3, %6 : vector<8x512xf32>
    %c0_6 = arith.constant 0 : index
    %c0_7 = arith.constant 0 : index
    %8 = vector.load %arg7[%c0_6, %c0_7] : memref<8x512xf32, #tpu.memory_space<vmem>>, vector<8x512xf32>
    tpu.vector_store %arg7[%c0_6, %c0_7], %7 {strides = array<i32>} : memref<8x512xf32, #tpu.memory_space<vmem>>, vector<8x512xf32>,
    %c0_i32_8 = arith.constant 0 : i32
    %9 = arith.cmpi eq, %arg1, %c0_i32_8 : i32
    %10 = arith.extui %9 : i1 to i32
    %c0_i32_9 = arith.constant 0 : i32
    %11 = arith.cmpi ne, %10, %c0_i32_9 : i32
    scf.if %11 {
      %c0_10 = arith.constant 0 : index
      %c0_11 = arith.constant 0 : index
      %12 = vector.load %arg7[%c0_10, %c0_11] : memref<8x512xf32, #tpu.memory_space<vmem>>, vector<8x512xf32>
      %c0_12 = arith.constant 0 : index
      %c0_13 = arith.constant 0 : index
      %13 = vector.load %arg4[%c0_12, %c0_13] : memref<1x512xf32, #tpu.memory_space<vmem>>, vector<1x512xf32>
      %14 = vector.broadcast %13 : vector<1x512xf32> to vector<8x512xf32>
      %15 = arith.mulf %12, %14 : vector<8x512xf32>
      %c0_14 = arith.constant 0 : index
      %c0_15 = arith.constant 0 : index
      %16 = vector.load %arg5[%c0_14, %c0_15] : memref<1x512xf32, #tpu.memory_space<vmem>>, vector<1x512xf32>
      %17 = vector.broadcast %16 : vector<1x512xf32> to vector<8x512xf32>
      %18 = arith.addf %15, %17 : vector<8x512xf32>
      %19 = arith.truncf %18 : vector<8x512xf32> to vector<8x512xbf16>
      %c0_16 = arith.constant 0 : index
      %c0_17 = arith.constant 0 : index
      %20 = vector.load %arg6[%c0_16, %c0_17] : memref<8x512xbf16, #tpu.memory_space<vmem>>, vector<8x512xbf16>
      tpu.vector_store %arg6[%c0_16, %c0_17], %19 {strides = array<i32>} : memref<8x512xbf16, #tpu.memory_space<vmem>>, vector<8x512xbf16>,
    } else {
    }
    return
  }
  func.func @transform_0(%arg0: i32, %arg1: i32) -> (i32, i32) {
    %c0_i32 = arith.constant 0 : i32
    return %arg0, %arg1 : i32, i32
  }
  func.func @transform_1(%arg0: i32, %arg1: i32) -> (i32, i32) {
    %c0_i32 = arith.constant 0 : i32
    %c0_i32_0 = arith.constant 0 : i32
    return %arg1, %c0_i32 : i32, i32
  }
  func.func @transform_2(%arg0: i32, %arg1: i32) -> (i32, i32) {
    %c0_i32 = arith.constant 0 : i32
    %c0_i32_0 = arith.constant 0 : i32
    %c0_i32_1 = arith.constant 0 : i32
    return %c0_i32, %c0_i32_0 : i32, i32
  }
  func.func @transform_3(%arg0: i32, %arg1: i32) -> (i32, i32) {
    %c0_i32 = arith.constant 0 : i32
    %c0_i32_0 = arith.constant 0 : i32
    %c0_i32_1 = arith.constant 0 : i32
    return %c0_i32, %c0_i32_0 : i32, i32
  }
  func.func @transform_4(%arg0: i32, %arg1: i32) -> (i32, i32) {
    %c0_i32 = arith.constant 0 : i32
    %c0_i32_0 = arith.constant 0 : i32
    return %arg0, %c0_i32 : i32, i32
  }
}

module attributes {stable_mosaic.version = 11 : i64} {
  func.func @conv_mm_kernel(%arg0: i32, %arg1: i32, %arg2: memref<8x512xbf16, #tpu.memory_space<vmem>>, %arg3: memref<512x512xbf16, #tpu.memory_space<vmem>>, %arg4: memref<1x512xf32, #tpu.memory_space<vmem>>, %arg5: memref<1x512xf32, #tpu.memory_space<vmem>>, %arg6: memref<8x512xbf16, #tpu.memory_space<vmem>>, %arg7: memref<8x512xbf16, #tpu.memory_space<vmem>>, %arg8: memref<8x512xf32, #tpu.memory_space<vmem>>) attributes {dimension_semantics = [#tpu.dimension_semantics<parallel>, #tpu.dimension_semantics<arbitrary>], iteration_bounds = array<i64: 1, 9>, scalar_prefetch = 0 : i64, scratch_operands = 1 : i64, tpu.core_type = #tpu.core_type<tc>, window_params = [{transform_indices = @transform_0, window_bounds = array<i64: 8, 512>}, {transform_indices = @transform_1, window_bounds = array<i64: 512, 512>}, {pipeline_mode = #tpu.pipeline_mode<synchronous>, transform_indices = @transform_2, window_bounds = array<i64: 1, 512>}, {pipeline_mode = #tpu.pipeline_mode<synchronous>, transform_indices = @transform_3, window_bounds = array<i64: 1, 512>}, {transform_indices = @transform_4, window_bounds = array<i64: 8, 512>}, {transform_indices = @transform_5, window_bounds = array<i64: 8, 512>}]} {
    %c0_i32 = arith.constant 0 : i32
    %0 = arith.cmpi eq, %arg1, %c0_i32 : i32
    %1 = arith.extui %0 : i1 to i32
    %c0_i32_0 = arith.constant 0 : i32
    %2 = arith.cmpi ne, %1, %c0_i32_0 : i32
    scf.if %2 {
      %cst_9 = arith.constant 0.000000e+00 : f32
      %12 = vector.broadcast %cst_9 : f32 to vector<8x512xf32>
      %c0_10 = arith.constant 0 : index
      %c0_11 = arith.constant 0 : index
      %13 = vector.load %arg8[%c0_10, %c0_11] : memref<8x512xf32, #tpu.memory_space<vmem>>, vector<8x512xf32>
      tpu.vector_store %arg8[%c0_10, %c0_11], %12 {strides = array<i32>} : memref<8x512xf32, #tpu.memory_space<vmem>>, vector<8x512xf32>,
    } else {
    }
    %c0 = arith.constant 0 : index
    %c0_1 = arith.constant 0 : index
    %3 = vector.load %arg8[%c0, %c0_1] : memref<8x512xf32, #tpu.memory_space<vmem>>, vector<8x512xf32>
    %c0_2 = arith.constant 0 : index
    %c0_3 = arith.constant 0 : index
    %4 = vector.load %arg2[%c0_2, %c0_3] : memref<8x512xbf16, #tpu.memory_space<vmem>>, vector<8x512xbf16>
    %c0_4 = arith.constant 0 : index
    %c0_5 = arith.constant 0 : index
    %5 = vector.load %arg3[%c0_4, %c0_5] : memref<512x512xbf16, #tpu.memory_space<vmem>>, vector<512x512xbf16>
    %cst = arith.constant dense<0.000000e+00> : vector<8x512xf32>
    %6 = tpu.matmul %4, %5, %cst {dimension_numbers = #tpu.dot_dimension_numbers<[1], [0], [0], [1], [0, 0, 1, 1], [], []>} : vector<8x512xbf16>, vector<512x512xbf16>, vector<8x512xf32> -> vector<8x512xf32>
    %7 = arith.addf %3, %6 : vector<8x512xf32>
    %c0_6 = arith.constant 0 : index
    %c0_7 = arith.constant 0 : index
    %8 = vector.load %arg8[%c0_6, %c0_7] : memref<8x512xf32, #tpu.memory_space<vmem>>, vector<8x512xf32>
    tpu.vector_store %arg8[%c0_6, %c0_7], %7 {strides = array<i32>} : memref<8x512xf32, #tpu.memory_space<vmem>>, vector<8x512xf32>,
    %c8_i32 = arith.constant 8 : i32
    %9 = arith.cmpi eq, %arg1, %c8_i32 : i32
    %10 = arith.extui %9 : i1 to i32
    %c0_i32_8 = arith.constant 0 : i32
    %11 = arith.cmpi ne, %10, %c0_i32_8 : i32
    scf.if %11 {
      %c0_9 = arith.constant 0 : index
      %c0_10 = arith.constant 0 : index
      %12 = vector.load %arg8[%c0_9, %c0_10] : memref<8x512xf32, #tpu.memory_space<vmem>>, vector<8x512xf32>
      %c0_11 = arith.constant 0 : index
      %c0_12 = arith.constant 0 : index
      %13 = vector.load %arg4[%c0_11, %c0_12] : memref<1x512xf32, #tpu.memory_space<vmem>>, vector<1x512xf32>
      %14 = vector.broadcast %13 : vector<1x512xf32> to vector<8x512xf32>
      %15 = arith.mulf %12, %14 : vector<8x512xf32>
      %c0_13 = arith.constant 0 : index
      %c0_14 = arith.constant 0 : index
      %16 = vector.load %arg5[%c0_13, %c0_14] : memref<1x512xf32, #tpu.memory_space<vmem>>, vector<1x512xf32>
      %17 = vector.broadcast %16 : vector<1x512xf32> to vector<8x512xf32>
      %18 = arith.addf %15, %17 : vector<8x512xf32>
      %c0_15 = arith.constant 0 : index
      %c0_16 = arith.constant 0 : index
      %19 = vector.load %arg6[%c0_15, %c0_16] : memref<8x512xbf16, #tpu.memory_space<vmem>>, vector<8x512xbf16>
      %20 = arith.extf %19 : vector<8x512xbf16> to vector<8x512xf32>
      %21 = arith.addf %18, %20 : vector<8x512xf32>
      %cst_17 = arith.constant 0.000000e+00 : f32
      %22 = vector.broadcast %cst_17 : f32 to vector<8x512xf32>
      %23 = arith.maximumf %21, %22 : vector<8x512xf32>
      %24 = arith.truncf %23 : vector<8x512xf32> to vector<8x512xbf16>
      %c0_18 = arith.constant 0 : index
      %c0_19 = arith.constant 0 : index
      %25 = vector.load %arg7[%c0_18, %c0_19] : memref<8x512xbf16, #tpu.memory_space<vmem>>, vector<8x512xbf16>
      tpu.vector_store %arg7[%c0_18, %c0_19], %24 {strides = array<i32>} : memref<8x512xbf16, #tpu.memory_space<vmem>>, vector<8x512xbf16>,
    } else {
    }
    return
  }
  func.func @transform_0(%arg0: i32, %arg1: i32) -> (i32, i32) {
    %c0_i32 = arith.constant 0 : i32
    return %arg0, %arg1 : i32, i32
  }
  func.func @transform_1(%arg0: i32, %arg1: i32) -> (i32, i32) {
    %c0_i32 = arith.constant 0 : i32
    %c0_i32_0 = arith.constant 0 : i32
    return %arg1, %c0_i32 : i32, i32
  }
  func.func @transform_2(%arg0: i32, %arg1: i32) -> (i32, i32) {
    %c0_i32 = arith.constant 0 : i32
    %c0_i32_0 = arith.constant 0 : i32
    %c0_i32_1 = arith.constant 0 : i32
    return %c0_i32, %c0_i32_0 : i32, i32
  }
  func.func @transform_3(%arg0: i32, %arg1: i32) -> (i32, i32) {
    %c0_i32 = arith.constant 0 : i32
    %c0_i32_0 = arith.constant 0 : i32
    %c0_i32_1 = arith.constant 0 : i32
    return %c0_i32, %c0_i32_0 : i32, i32
  }
  func.func @transform_4(%arg0: i32, %arg1: i32) -> (i32, i32) {
    %c0_i32 = arith.constant 0 : i32
    %c0_i32_0 = arith.constant 0 : i32
    return %arg0, %c0_i32 : i32, i32
  }
  func.func @transform_5(%arg0: i32, %arg1: i32) -> (i32, i32) {
    %c0_i32 = arith.constant 0 : i32
    %c0_i32_0 = arith.constant 0 : i32
    return %arg0, %c0_i32 : i32, i32
  }
}

module attributes {stable_mosaic.version = 11 : i64} {
  func.func @conv_mm_kernel(%arg0: i32, %arg1: i32, %arg2: memref<8x512xbf16, #tpu.memory_space<vmem>>, %arg3: memref<512x512xbf16, #tpu.memory_space<vmem>>, %arg4: memref<1x512xf32, #tpu.memory_space<vmem>>, %arg5: memref<1x512xf32, #tpu.memory_space<vmem>>, %arg6: memref<8x512xbf16, #tpu.memory_space<vmem>>, %arg7: memref<8x512xf32, #tpu.memory_space<vmem>>) attributes {dimension_semantics = [#tpu.dimension_semantics<parallel>, #tpu.dimension_semantics<arbitrary>], iteration_bounds = array<i64: 1, 9>, scalar_prefetch = 0 : i64, scratch_operands = 1 : i64, tpu.core_type = #tpu.core_type<tc>, window_params = [{transform_indices = @transform_0, window_bounds = array<i64: 8, 512>}, {transform_indices = @transform_1, window_bounds = array<i64: 512, 512>}, {pipeline_mode = #tpu.pipeline_mode<synchronous>, transform_indices = @transform_2, window_bounds = array<i64: 1, 512>}, {pipeline_mode = #tpu.pipeline_mode<synchronous>, transform_indices = @transform_3, window_bounds = array<i64: 1, 512>}, {transform_indices = @transform_4, window_bounds = array<i64: 8, 512>}]} {
    %c0_i32 = arith.constant 0 : i32
    %0 = arith.cmpi eq, %arg1, %c0_i32 : i32
    %1 = arith.extui %0 : i1 to i32
    %c0_i32_0 = arith.constant 0 : i32
    %2 = arith.cmpi ne, %1, %c0_i32_0 : i32
    scf.if %2 {
      %cst_9 = arith.constant 0.000000e+00 : f32
      %12 = vector.broadcast %cst_9 : f32 to vector<8x512xf32>
      %c0_10 = arith.constant 0 : index
      %c0_11 = arith.constant 0 : index
      %13 = vector.load %arg7[%c0_10, %c0_11] : memref<8x512xf32, #tpu.memory_space<vmem>>, vector<8x512xf32>
      tpu.vector_store %arg7[%c0_10, %c0_11], %12 {strides = array<i32>} : memref<8x512xf32, #tpu.memory_space<vmem>>, vector<8x512xf32>,
    } else {
    }
    %c0 = arith.constant 0 : index
    %c0_1 = arith.constant 0 : index
    %3 = vector.load %arg7[%c0, %c0_1] : memref<8x512xf32, #tpu.memory_space<vmem>>, vector<8x512xf32>
    %c0_2 = arith.constant 0 : index
    %c0_3 = arith.constant 0 : index
    %4 = vector.load %arg2[%c0_2, %c0_3] : memref<8x512xbf16, #tpu.memory_space<vmem>>, vector<8x512xbf16>
    %c0_4 = arith.constant 0 : index
    %c0_5 = arith.constant 0 : index
    %5 = vector.load %arg3[%c0_4, %c0_5] : memref<512x512xbf16, #tpu.memory_space<vmem>>, vector<512x512xbf16>
    %cst = arith.constant dense<0.000000e+00> : vector<8x512xf32>
    %6 = tpu.matmul %4, %5, %cst {dimension_numbers = #tpu.dot_dimension_numbers<[1], [0], [0], [1], [0, 0, 1, 1], [], []>} : vector<8x512xbf16>, vector<512x512xbf16>, vector<8x512xf32> -> vector<8x512xf32>
    %7 = arith.addf %3, %6 : vector<8x512xf32>
    %c0_6 = arith.constant 0 : index
    %c0_7 = arith.constant 0 : index
    %8 = vector.load %arg7[%c0_6, %c0_7] : memref<8x512xf32, #tpu.memory_space<vmem>>, vector<8x512xf32>
    tpu.vector_store %arg7[%c0_6, %c0_7], %7 {strides = array<i32>} : memref<8x512xf32, #tpu.memory_space<vmem>>, vector<8x512xf32>,
    %c8_i32 = arith.constant 8 : i32
    %9 = arith.cmpi eq, %arg1, %c8_i32 : i32
    %10 = arith.extui %9 : i1 to i32
    %c0_i32_8 = arith.constant 0 : i32
    %11 = arith.cmpi ne, %10, %c0_i32_8 : i32
    scf.if %11 {
      %c0_9 = arith.constant 0 : index
      %c0_10 = arith.constant 0 : index
      %12 = vector.load %arg7[%c0_9, %c0_10] : memref<8x512xf32, #tpu.memory_space<vmem>>, vector<8x512xf32>
      %c0_11 = arith.constant 0 : index
      %c0_12 = arith.constant 0 : index
      %13 = vector.load %arg4[%c0_11, %c0_12] : memref<1x512xf32, #tpu.memory_space<vmem>>, vector<1x512xf32>
      %14 = vector.broadcast %13 : vector<1x512xf32> to vector<8x512xf32>
      %15 = arith.mulf %12, %14 : vector<8x512xf32>
      %c0_13 = arith.constant 0 : index
      %c0_14 = arith.constant 0 : index
      %16 = vector.load %arg5[%c0_13, %c0_14] : memref<1x512xf32, #tpu.memory_space<vmem>>, vector<1x512xf32>
      %17 = vector.broadcast %16 : vector<1x512xf32> to vector<8x512xf32>
      %18 = arith.addf %15, %17 : vector<8x512xf32>
      %cst_15 = arith.constant 0.000000e+00 : f32
      %19 = vector.broadcast %cst_15 : f32 to vector<8x512xf32>
      %20 = arith.maximumf %18, %19 : vector<8x512xf32>
      %21 = arith.truncf %20 : vector<8x512xf32> to vector<8x512xbf16>
      %c0_16 = arith.constant 0 : index
      %c0_17 = arith.constant 0 : index
      %22 = vector.load %arg6[%c0_16, %c0_17] : memref<8x512xbf16, #tpu.memory_space<vmem>>, vector<8x512xbf16>
      tpu.vector_store %arg6[%c0_16, %c0_17], %21 {strides = array<i32>} : memref<8x512xbf16, #tpu.memory_space<vmem>>, vector<8x512xbf16>,
    } else {
    }
    return
  }
  func.func @transform_0(%arg0: i32, %arg1: i32) -> (i32, i32) {
    %c0_i32 = arith.constant 0 : i32
    return %arg0, %arg1 : i32, i32
  }
  func.func @transform_1(%arg0: i32, %arg1: i32) -> (i32, i32) {
    %c0_i32 = arith.constant 0 : i32
    %c0_i32_0 = arith.constant 0 : i32
    return %arg1, %c0_i32 : i32, i32
  }
  func.func @transform_2(%arg0: i32, %arg1: i32) -> (i32, i32) {
    %c0_i32 = arith.constant 0 : i32
    %c0_i32_0 = arith.constant 0 : i32
    %c0_i32_1 = arith.constant 0 : i32
    return %c0_i32, %c0_i32_0 : i32, i32
  }
  func.func @transform_3(%arg0: i32, %arg1: i32) -> (i32, i32) {
    %c0_i32 = arith.constant 0 : i32
    %c0_i32_0 = arith.constant 0 : i32
    %c0_i32_1 = arith.constant 0 : i32
    return %c0_i32, %c0_i32_0 : i32, i32
  }
  func.func @transform_4(%arg0: i32, %arg1: i32) -> (i32, i32) {
    %c0_i32 = arith.constant 0 : i32
    %c0_i32_0 = arith.constant 0 : i32
    return %arg0, %c0_i32 : i32, i32
  }
}

module attributes {stable_mosaic.version = 11 : i64} {
  func.func @head_kernel(%arg0: i32, %arg1: memref<8x512xbf16, #tpu.memory_space<vmem>>, %arg2: memref<512x128xbf16, #tpu.memory_space<vmem>>, %arg3: memref<1x128xf32, #tpu.memory_space<vmem>>, %arg4: memref<1x128xf32, #tpu.memory_space<vmem>>) attributes {dimension_semantics = [#tpu.dimension_semantics<arbitrary>], iteration_bounds = array<i64: 1>, scalar_prefetch = 0 : i64, scratch_operands = 0 : i64, tpu.core_type = #tpu.core_type<tc>, window_params = [{pipeline_mode = #tpu.pipeline_mode<synchronous>, transform_indices = @transform_0, window_bounds = array<i64: 8, 512>}, {pipeline_mode = #tpu.pipeline_mode<synchronous>, transform_indices = @transform_1, window_bounds = array<i64: 512, 128>}, {pipeline_mode = #tpu.pipeline_mode<synchronous>, transform_indices = @transform_2, window_bounds = array<i64: 1, 128>}, {pipeline_mode = #tpu.pipeline_mode<synchronous>, transform_indices = @transform_3, window_bounds = array<i64: 1, 128>}]} {
    %c0 = arith.constant 0 : index
    %c0_0 = arith.constant 0 : index
    %0 = vector.load %arg1[%c0, %c0_0] : memref<8x512xbf16, #tpu.memory_space<vmem>>, vector<8x512xbf16>
    %1 = arith.extf %0 : vector<8x512xbf16> to vector<8x512xf32>
    %cst = arith.constant dense<0.000000e+00> : vector<512xf32>
    %2 = vector.multi_reduction <add>, %1, %cst [0] : vector<8x512xf32> to vector<512xf32>
    %3 = vector.shape_cast %2 : vector<512xf32> to vector<1x512xf32>
    %cst_1 = arith.constant 1.000000e+00 : f32
    %4 = vector.broadcast %cst_1 : f32 to vector<1x512xf32>
    %5 = arith.mulf %3, %4 : vector<1x512xf32>
    %6 = arith.truncf %5 : vector<1x512xf32> to vector<1x512xbf16>
    %c0_2 = arith.constant 0 : index
    %c0_3 = arith.constant 0 : index
    %7 = vector.load %arg2[%c0_2, %c0_3] : memref<512x128xbf16, #tpu.memory_space<vmem>>, vector<512x128xbf16>
    %cst_4 = arith.constant dense<0.000000e+00> : vector<1x128xf32>
    %8 = tpu.matmul %6, %7, %cst_4 {dimension_numbers = #tpu.dot_dimension_numbers<[1], [0], [0], [1], [0, 0, 1, 1], [], []>} : vector<1x512xbf16>, vector<512x128xbf16>, vector<1x128xf32> -> vector<1x128xf32>
    %c0_5 = arith.constant 0 : index
    %c0_6 = arith.constant 0 : index
    %9 = vector.load %arg3[%c0_5, %c0_6] : memref<1x128xf32, #tpu.memory_space<vmem>>, vector<1x128xf32>
    %10 = arith.addf %8, %9 : vector<1x128xf32>
    %c0_7 = arith.constant 0 : index
    %c0_8 = arith.constant 0 : index
    %11 = vector.load %arg4[%c0_7, %c0_8] : memref<1x128xf32, #tpu.memory_space<vmem>>, vector<1x128xf32>
    tpu.vector_store %arg4[%c0_7, %c0_8], %10 {strides = array<i32>} : memref<1x128xf32, #tpu.memory_space<vmem>>, vector<1x128xf32>,
    return
  }
  func.func @transform_0(%arg0: i32) -> (i32, i32) {
    %c0_i32 = arith.constant 0 : i32
    %c0_i32_0 = arith.constant 0 : i32
    %c0_i32_1 = arith.constant 0 : i32
    return %c0_i32, %c0_i32_0 : i32, i32
  }
  func.func @transform_1(%arg0: i32) -> (i32, i32) {
    %c0_i32 = arith.constant 0 : i32
    %c0_i32_0 = arith.constant 0 : i32
    %c0_i32_1 = arith.constant 0 : i32
    return %c0_i32, %c0_i32_0 : i32, i32
  }
  func.func @transform_2(%arg0: i32) -> (i32, i32) {
    %c0_i32 = arith.constant 0 : i32
    %c0_i32_0 = arith.constant 0 : i32
    %c0_i32_1 = arith.constant 0 : i32
    return %c0_i32, %c0_i32_0 : i32, i32
  }
  func.func @transform_3(%arg0: i32) -> (i32, i32) {
    %c0_i32 = arith.constant 0 : i32
    %c0_i32_0 = arith.constant 0 : i32
    %c0_i32_1 = arith.constant 0 : i32
    return %c0_i32, %c0_i32_0 : i32, i32
  }
}

</mosaic_0001>

<bundles_post_ra>
// kernel: resnet_forward.22
= control target key start
LH: loop header
LB: loop body
LE: loop exit
PB: predicated region body
PF: predicated region fallthrough
CT: control target
= control target key end

     0   :  { %s1632_s1 = inlined_call_operand.vmem [shape: bf16[256,128], index: 1, kind: input, shape index: {}]   ;;  %s1633_s0 = inlined_call_operand.vmem [shape: bf16[256,256], index: 0, kind: input, shape index: {}]   ;;  %s1634_s2 = inlined_call_operand.vmem [shape: f32[1,128], index: 2, kind: input, shape index: {}]   ;;  %s1635_s3 = inlined_call_operand.vmem [shape: f32[1,128], index: 3, kind: input, shape index: {}]   ;;  %s1636_s4 = inlined_call_operand.vmem [shape: bf16[256,128], index: 4, kind: output, shape index: {}]  }
   0x1   :  { %v1277_v0 = vld [vmem:[%s1632_s1 + $0x40] sm:$0xff]   ;;  %v1279_v2 = vld [vmem:[%s1632_s1 + $0x48] sm:$0xff]   ;;  %v1281_v4 = vld [vmem:[%s1632_s1 + $0x50] sm:$0xff]  }
   0x2   :  { %v1278_v1 = vld [vmem:[%s1632_s1] sm:$0xff]   ;;  %1149 = vmatprep.subr.bf16.mxu0 %v1277_v0  ;;  %1261 = vmatprep.subr.bf16.mxu1 %v1277_v0  ;;  %v1280_v3 = vld [vmem:[%s1632_s1 + $0x8] sm:$0xff]   ;;  %v1282_v5 = vld [vmem:[%s1632_s1 + $0x10] sm:$0xff]  }
   0x3   :  { %1150 = vmatpush3.bf16.msra.mxu0 %v1278_v1  ;;  %1269 = vmatpush3.bf16.msra.mxu1 %v1278_v1  ;;  %v1283_v6 = vld [vmem:[%s1632_s1 + $0x58] sm:$0xff]   ;;  %v1285_v8 = vld [vmem:[%s1632_s1 + $0x60] sm:$0xff]   ;;  %v1287_v10 = vld [vmem:[%s1632_s1 + $0x68] sm:$0xff]  }
   0x4   :  { %1151 = vmatprep.subr.bf16.mxu0 %v1279_v2  ;;  %1262 = vmatprep.subr.bf16.mxu1 %v1279_v2  ;;  %v1284_v7 = vld [vmem:[%s1632_s1 + $0x18] sm:$0xff]   ;;  %v1286_v9 = vld [vmem:[%s1632_s1 + $0x20] sm:$0xff]   ;;  %v1288_v13 = vld [vmem:[%s1632_s1 + $0x28] sm:$0xff]  }
   0x5   :  { %v1295_v11 = vld [vmem:[%s1633_s0 + $0x4] ss:$8 sps:$4 sm:$0xff]   ;;  %v1289_v14 = vld [vmem:[%s1632_s1 + $0x70] sm:$0xff]   ;;  %v1291_v16 = vld [vmem:[%s1632_s1 + $0x78] sm:$0xff]  }
   0x6   :  { %v1298_v12 = vld [vmem:[%s1633_s0 + $0x84] ss:$8 sps:$4 sm:$0xff]   ;;  %438 = vmatprep.mubr.bf16.mxu0 %v1295_v11  ;;  %v1290_v15 = vld [vmem:[%s1632_s1 + $0x30] sm:$0xff]   ;;  %v1292_v17 = vld [vmem:[%s1632_s1 + $0x38] sm:$0xff]  }
   0x7   :  { %1152 = vmatpush3.bf16.msra.mxu0 %v1280_v3  ;;  %1270 = vmatpush3.bf16.msra.mxu1 %v1280_v3  ;;  %v1293_v18 = vld [vmem:[%s1633_s0] ss:$8 sps:$4 sm:$0xff]   ;;  %v1299_v20 = vld [vmem:[%s1633_s0 + $0x14] ss:$8 sps:$4 sm:$0xff]   ;;  %v1303_v22 = vld [vmem:[%s1633_s0 + $0x10] ss:$8 sps:$4 sm:$0xff]  }
   0x8   :  { %1153 = vmatprep.subr.bf16.mxu0 %v1281_v4  ;;  %1263 = vmatprep.subr.bf16.mxu1 %v1281_v4  ;;  %v1296_v19 = vld [vmem:[%s1633_s0 + $0x80] ss:$8 sps:$4 sm:$0xff]   ;;  %v1301_v21 = vld [vmem:[%s1633_s0 + $0x94] ss:$8 sps:$4 sm:$0xff]   ;;  %v1304_v23 = vld [vmem:[%s1633_s0 + $0x90] ss:$8 sps:$4 sm:$0xff]  }
   0x9   :  { %502 = vmatprep.mubr.bf16.mxu1 %v1298_v12  ;;  %v1305_v24 = vld [vmem:[%s1633_s0 + $0x24] ss:$8 sps:$4 sm:$0xff]   ;;  %v1309_v26 = vld [vmem:[%s1633_s0 + $0x20] ss:$8 sps:$4 sm:$0xff]   ;;  %v1311_v28 = vld [vmem:[%s1633_s0 + $0x34] ss:$8 sps:$4 sm:$0xff]  }
   0xa   :  { %v1307_v25 = vld [vmem:[%s1633_s0 + $0xa4] ss:$8 sps:$4 sm:$0xff]   ;;  %v1310_v27 = vld [vmem:[%s1633_s0 + $0xa0] ss:$8 sps:$4 sm:$0xff]   ;;  %v1313_v29 = vld [vmem:[%s1633_s0 + $0xb4] ss:$8 sps:$4 sm:$0xff]  }
   0xb   :  { %1154 = vmatpush3.bf16.msra.mxu0 %v1282_v5  ;;  %1271 = vmatpush3.bf16.msra.mxu1 %v1282_v5  ;;  %v1315_v30 = vld [vmem:[%s1633_s0 + $0x30] ss:$8 sps:$4 sm:$0xff]   ;;  %v1317_v32 = vld [vmem:[%s1633_s0 + $0x44] ss:$8 sps:$4 sm:$0xff]   ;;  %v1321_v34 = vld [vmem:[%s1633_s0 + $0x40] ss:$8 sps:$4 sm:$0xff]  }
   0xc   :  { %1155 = vmatprep.subr.bf16.mxu0 %v1283_v6  ;;  %1264 = vmatprep.subr.bf16.mxu1 %v1283_v6  ;;  %v1316_v31 = vld [vmem:[%s1633_s0 + $0xb0] ss:$8 sps:$4 sm:$0xff]   ;;  %v1319_v33 = vld [vmem:[%s1633_s0 + $0xc4] ss:$8 sps:$4 sm:$0xff]   ;;  %v1322_v35 = vld [vmem:[%s1633_s0 + $0xc0] ss:$8 sps:$4 sm:$0xff]  }
   0xd   :  { %v1323_v36 = vld [vmem:[%s1633_s0 + $0x54] ss:$8 sps:$4 sm:$0xff]   ;;  %v1327_v38 = vld [vmem:[%s1633_s0 + $0x50] ss:$8 sps:$4 sm:$0xff]   ;;  %v1329_v40 = vld [vmem:[%s1633_s0 + $0x64] ss:$8 sps:$4 sm:$0xff]  }
   0xe   :  { %v1325_v37 = vld [vmem:[%s1633_s0 + $0xd4] ss:$8 sps:$4 sm:$0xff]   ;;  %v1328_v39 = vld [vmem:[%s1633_s0 + $0xd0] ss:$8 sps:$4 sm:$0xff]   ;;  %v1331_v41 = vld [vmem:[%s1633_s0 + $0xe4] ss:$8 sps:$4 sm:$0xff]  }
   0xf   :  { %1156 = vmatpush3.bf16.msra.mxu0 %v1284_v7  ;;  %1272 = vmatpush3.bf16.msra.mxu1 %v1284_v7  ;;  %v1333_v42 = vld [vmem:[%s1633_s0 + $0x60] ss:$8 sps:$4 sm:$0xff]   ;;  %v1335_v44 = vld [vmem:[%s1633_s0 + $0x74] ss:$8 sps:$4 sm:$0xff]   ;;  %v1339_v46 = vld [vmem:[%s1633_s0 + $0x70] ss:$8 sps:$4 sm:$0xff]  }
  0x10   :  { %1157 = vmatprep.subr.bf16.mxu0 %v1285_v8  ;;  %1265 = vmatprep.subr.bf16.mxu1 %v1285_v8  ;;  %v1334_v43 = vld [vmem:[%s1633_s0 + $0xe0] ss:$8 sps:$4 sm:$0xff]   ;;  %v1337_v45 = vld [vmem:[%s1633_s0 + $0xf4] ss:$8 sps:$4 sm:$0xff]   ;;  %v1340_v47 = vld [vmem:[%s1633_s0 + $0xf0] ss:$8 sps:$4 sm:$0xff]  }
  0x11   :  { %v1513_v51 = vld [vmem:[%s1634_s2] ss:$0 sm:$0xff] }
  0x12   :  { %v1518_v57 = vld [vmem:[%s1635_s3] ss:$0 sm:$0xff] }
  0x13   :  { %1158 = vmatpush3.bf16.msra.mxu0 %v1286_v9  ;;  %1273 = vmatpush3.bf16.msra.mxu1 %v1286_v9 }
  0x14   :  { %1159 = vmatprep.subr.bf16.mxu0 %v1287_v10  ;;  %1266 = vmatprep.subr.bf16.mxu1 %v1287_v10 }
  0x17   :  { %1160 = vmatpush3.bf16.msra.mxu0 %v1288_v13  ;;  %1274 = vmatpush3.bf16.msra.mxu1 %v1288_v13 }
  0x18   :  { %1161 = vmatprep.subr.bf16.mxu0 %v1289_v14  ;;  %1267 = vmatprep.subr.bf16.mxu1 %v1289_v14 }
  0x1b   :  { %1162 = vmatpush3.bf16.msra.mxu0 %v1290_v15  ;;  %1275 = vmatpush3.bf16.msra.mxu1 %v1290_v15 }
  0x1c   :  { %1163 = vmatprep.subr.bf16.mxu0 %v1291_v16  ;;  %1268 = vmatprep.subr.bf16.mxu1 %v1291_v16 }
  0x1f   :  { %1164 = vmatpush3.bf16.msra.mxu0 %v1292_v17  ;;  %1276 = vmatpush3.bf16.msra.mxu1 %v1292_v17 }
  0x22   :  { %439 = vmatmul.mubr.bf16.vlgmr.msra.gmra.mrb[0].mxu0 %v1293_v18  ;;  %503 = vmatmul.mubr.bf16.vlgmr.msra.gmra.mrb[0].mxu1 %v1296_v19 }
  0x23   :  { %446 = vmatprep.mubr.bf16.mxu0 %v1299_v20  ;;  %510 = vmatprep.mubr.bf16.mxu1 %v1301_v21 }
  0x2a   :  { %447 = vmatmul.mubr.bf16.gmra.mrb[4].mxu0 %v1303_v22  ;;  %511 = vmatmul.mubr.bf16.gmra.mrb[4].mxu1 %v1304_v23 }
  0x2b   :  { %454 = vmatprep.mubr.bf16.mxu0 %v1305_v24  ;;  %518 = vmatprep.mubr.bf16.mxu1 %v1307_v25 }
  0x32   :  { %455 = vmatmul.mubr.bf16.gmra.mrb[8].mxu0 %v1309_v26  ;;  %519 = vmatmul.mubr.bf16.gmra.mrb[8].mxu1 %v1310_v27 }
  0x33   :  { %462 = vmatprep.mubr.bf16.mxu0 %v1311_v28  ;;  %526 = vmatprep.mubr.bf16.mxu1 %v1313_v29 }
  0x3a   :  { %463 = vmatmul.mubr.bf16.gmra.mrb[12].mxu0 %v1315_v30  ;;  %527 = vmatmul.mubr.bf16.gmra.mrb[12].mxu1 %v1316_v31 }
  0x3b   :  { %470 = vmatprep.mubr.bf16.mxu0 %v1317_v32  ;;  %534 = vmatprep.mubr.bf16.mxu1 %v1319_v33 }
  0x42   :  { %471 = vmatmul.mubr.bf16.gmra.mrb[16].mxu0 %v1321_v34  ;;  %535 = vmatmul.mubr.bf16.gmra.mrb[16].mxu1 %v1322_v35 }
  0x43   :  { %478 = vmatprep.mubr.bf16.mxu0 %v1323_v36  ;;  %542 = vmatprep.mubr.bf16.mxu1 %v1325_v37 }
  0x4a   :  { %479 = vmatmul.mubr.bf16.gmra.mrb[20].mxu0 %v1327_v38  ;;  %543 = vmatmul.mubr.bf16.gmra.mrb[20].mxu1 %v1328_v39 }
  0x4b   :  { %486 = vmatprep.mubr.bf16.mxu0 %v1329_v40  ;;  %550 = vmatprep.mubr.bf16.mxu1 %v1331_v41 }
  0x52   :  { %487 = vmatmul.mubr.bf16.gmra.mrb[24].mxu0 %v1333_v42  ;;  %551 = vmatmul.mubr.bf16.gmra.mrb[24].mxu1 %v1334_v43 }
  0x53   :  { %494 = vmatprep.mubr.bf16.mxu0 %v1335_v44  ;;  %558 = vmatprep.mubr.bf16.mxu1 %v1337_v45 }
  0x5a   :  { %495 = vmatmul.mubr.bf16.gmra.mrb[28].mxu0 %v1339_v46  ;;  %559 = vmatmul.mubr.bf16.gmra.mrb[28].mxu1 %v1340_v47 }
  0xf5   :  { %v1165_v48 = vpop.f32.mrb[0].mxu0  ;;  %v1213_v49 = vpop.f32.mrb[0].mxu1 }
  0xf6   :  { %v1166_v50 = vpop.f32.mrb[1].mxu0  ;;  %v1214_v52 = vpop.f32.mrb[1].mxu1 }
  0xf7   :  { %v1167_v53 = vadd.f32 %v1166_v50, %v1165_v48  ;;  %v1215_v54 = vadd.f32 %v1214_v52, %v1213_v49  ;;  %v1168_v55 = vpop.f32.mrb[2].mxu0  ;;  %v1216_v56 = vpop.f32.mrb[2].mxu1 }
  0xf8   :  { %v1169_v58 = vpop.f32.mrb[3].mxu0  ;;  %v1217_v59 = vpop.f32.mrb[3].mxu1 }
  0xf9   :  { %v673_v60 = vmul.f32 %v1167_v53, %v1513_v51  ;;  %v689_v61 = vmul.f32 %v1215_v54, %v1513_v51  ;;  %v1170_v62 = vadd.f32 %v1169_v58, %v1168_v55  ;;  %v1218_v63 = vadd.f32 %v1217_v59, %v1216_v56 }
  0xfb   :  { %v712_v0 = vadd.f32 %v1518_v57, %v673_v60  ;;  %v728_v1 = vadd.f32 %v1518_v57, %v689_v61  ;;  %v674_v2 = vmul.f32 %v1170_v62, %v1513_v51  ;;  %v690_v3 = vmul.f32 %v1218_v63, %v1513_v51 }
  0xfd   :  { %v713_v4 = vadd.f32 %v1518_v57, %v674_v2  ;;  %v729_v5 = vadd.f32 %v1518_v57, %v690_v3  ;;  %v1171_v6 = vpop.f32.mrb[4].mxu0  ;;  %v1219_v7 = vpop.f32.mrb[4].mxu1  ;;  %v744_v8 = vmax.f32 %v712_v0, 0.0  ;;  %v760_v9 = vmax.f32 %v728_v1, 0.0 }
  0xfe   :  { %v1172_v10 = vpop.f32.mrb[5].mxu0  ;;  %v1220_v11 = vpop.f32.mrb[5].mxu1 }
  0xff   :  { %v745_v12 = vmax.f32 %v713_v4, 0.0  ;;  %v761_v13 = vmax.f32 %v729_v5, 0.0  ;;  %v1173_v14 = vadd.f32 %v1172_v10, %v1171_v6  ;;  %v1221_v15 = vadd.f32 %v1220_v11, %v1219_v7  ;;  %v1174_v16 = vpop.f32.mrb[6].mxu0  ;;  %v1222_v17 = vpop.f32.mrb[6].mxu1 }
 0x100   :  { %v1175_v18 = vpop.f32.mrb[7].mxu0  ;;  %v1223_v19 = vpop.f32.mrb[7].mxu1 }
 0x101   :  { %v1057_v20 = vpack.c.bf16 %v745_v12, %v744_v8  ;;  %v1097_v21 = vpack.c.bf16 %v761_v13, %v760_v9  ;;  %v675_v22 = vmul.f32 %v1173_v14, %v1513_v51  ;;  %v691_v23 = vmul.f32 %v1221_v15, %v1513_v51 }
 0x102   :  { %v1176_v24 = vadd.f32 %v1175_v18, %v1174_v16  ;;  %v1224_v25 = vadd.f32 %v1223_v19, %v1222_v17 }
 0x103   :  { %1058 = vst [vmem:[%s1636_s4] sm:$0xff] %v1057_v20   ;;  %1141 = vst [vmem:[%s1636_s4 + $0x40] sm:$0xff] %v1097_v21   ;;  %v714_v26 = vadd.f32 %v1518_v57, %v675_v22  ;;  %v730_v27 = vadd.f32 %v1518_v57, %v691_v23 }
 0x104   :  { %v676_v28 = vmul.f32 %v1176_v24, %v1513_v51  ;;  %v692_v29 = vmul.f32 %v1224_v25, %v1513_v51 }
 0x105   :  { %v1177_v30 = vpop.f32.mrb[8].mxu0  ;;  %v1225_v31 = vpop.f32.mrb[8].mxu1  ;;  %v746_v40 = vmax.f32 %v714_v26, 0.0  ;;  %v762_v41 = vmax.f32 %v730_v27, 0.0 }
 0x106   :  { %v715_v32 = vadd.f32 %v1518_v57, %v676_v28  ;;  %v731_v33 = vadd.f32 %v1518_v57, %v692_v29  ;;  %v1178_v34 = vpop.f32.mrb[9].mxu0  ;;  %v1226_v35 = vpop.f32.mrb[9].mxu1 }
 0x107   :  { %v1179_v36 = vadd.f32 %v1178_v34, %v1177_v30  ;;  %v1227_v37 = vadd.f32 %v1226_v35, %v1225_v31  ;;  %v1180_v38 = vpop.f32.mrb[10].mxu0  ;;  %v1228_v39 = vpop.f32.mrb[10].mxu1 }
 0x108   :  { %v747_v42 = vmax.f32 %v715_v32, 0.0  ;;  %v763_v43 = vmax.f32 %v731_v33, 0.0  ;;  %v1181_v44 = vpop.f32.mrb[11].mxu0  ;;  %v1229_v45 = vpop.f32.mrb[11].mxu1 }
 0x109   :  { %v677_v46 = vmul.f32 %v1179_v36, %v1513_v51  ;;  %v693_v47 = vmul.f32 %v1227_v37, %v1513_v51  ;;  %v1182_v48 = vadd.f32 %v1181_v44, %v1180_v38  ;;  %v1230_v49 = vadd.f32 %v1229_v45, %v1228_v39 }
 0x10a   :  { %v1062_v50 = vpack.c.bf16 %v747_v42, %v746_v40  ;;  %v1102_v52 = vpack.c.bf16 %v763_v43, %v762_v41 }
 0x10b   :  { %v716_v53 = vadd.f32 %v1518_v57, %v677_v46  ;;  %v732_v54 = vadd.f32 %v1518_v57, %v693_v47  ;;  %v678_v55 = vmul.f32 %v1182_v48, %v1513_v51  ;;  %v694_v56 = vmul.f32 %v1230_v49, %v1513_v51 }
 0x10c   :  { %1134 = vst [vmem:[%s1636_s4 + $0x8] sm:$0xff] %v1062_v50   ;;  %1142 = vst [vmem:[%s1636_s4 + $0x48] sm:$0xff] %v1102_v52  }
 0x10d   :  { %v717_v58 = vadd.f32 %v1518_v57, %v678_v55  ;;  %v733_v59 = vadd.f32 %v1518_v57, %v694_v56  ;;  %v1183_v60 = vpop.f32.mrb[12].mxu0  ;;  %v1231_v61 = vpop.f32.mrb[12].mxu1  ;;  %v748_v62 = vmax.f32 %v716_v53, 0.0  ;;  %v764_v63 = vmax.f32 %v732_v54, 0.0 }
 0x10e   :  { %v1184_v0 = vpop.f32.mrb[13].mxu0  ;;  %v1232_v1 = vpop.f32.mrb[13].mxu1 }
 0x10f   :  { %v749_v2 = vmax.f32 %v717_v58, 0.0  ;;  %v765_v3 = vmax.f32 %v733_v59, 0.0  ;;  %v1185_v4 = vadd.f32 %v1184_v0, %v1183_v60  ;;  %v1233_v5 = vadd.f32 %v1232_v1, %v1231_v61  ;;  %v1186_v6 = vpop.f32.mrb[14].mxu0  ;;  %v1234_v7 = vpop.f32.mrb[14].mxu1 }
 0x110   :  { %v1187_v8 = vpop.f32.mrb[15].mxu0  ;;  %v1235_v9 = vpop.f32.mrb[15].mxu1 }
 0x111   :  { %v1067_v10 = vpack.c.bf16 %v749_v2, %v748_v62  ;;  %v1107_v11 = vpack.c.bf16 %v765_v3, %v764_v63  ;;  %v679_v12 = vmul.f32 %v1185_v4, %v1513_v51  ;;  %v695_v13 = vmul.f32 %v1233_v5, %v1513_v51 }
 0x112   :  { %v1188_v14 = vadd.f32 %v1187_v8, %v1186_v6  ;;  %v1236_v15 = vadd.f32 %v1235_v9, %v1234_v7 }
 0x113   :  { %1135 = vst [vmem:[%s1636_s4 + $0x10] sm:$0xff] %v1067_v10   ;;  %1143 = vst [vmem:[%s1636_s4 + $0x50] sm:$0xff] %v1107_v11   ;;  %v718_v16 = vadd.f32 %v1518_v57, %v679_v12  ;;  %v734_v17 = vadd.f32 %v1518_v57, %v695_v13 }
 0x114   :  { %v680_v18 = vmul.f32 %v1188_v14, %v1513_v51  ;;  %v696_v19 = vmul.f32 %v1236_v15, %v1513_v51 }
 0x115   :  { %v1189_v20 = vpop.f32.mrb[16].mxu0  ;;  %v1237_v21 = vpop.f32.mrb[16].mxu1  ;;  %v750_v30 = vmax.f32 %v718_v16, 0.0  ;;  %v766_v31 = vmax.f32 %v734_v17, 0.0 }
 0x116   :  { %v719_v22 = vadd.f32 %v1518_v57, %v680_v18  ;;  %v735_v23 = vadd.f32 %v1518_v57, %v696_v19  ;;  %v1190_v24 = vpop.f32.mrb[17].mxu0  ;;  %v1238_v25 = vpop.f32.mrb[17].mxu1 }
 0x117   :  { %v1191_v26 = vadd.f32 %v1190_v24, %v1189_v20  ;;  %v1239_v27 = vadd.f32 %v1238_v25, %v1237_v21  ;;  %v1192_v28 = vpop.f32.mrb[18].mxu0  ;;  %v1240_v29 = vpop.f32.mrb[18].mxu1 }
 0x118   :  { %v751_v32 = vmax.f32 %v719_v22, 0.0  ;;  %v767_v33 = vmax.f32 %v735_v23, 0.0  ;;  %v1193_v34 = vpop.f32.mrb[19].mxu0  ;;  %v1241_v35 = vpop.f32.mrb[19].mxu1 }
 0x119   :  { %v681_v36 = vmul.f32 %v1191_v26, %v1513_v51  ;;  %v697_v37 = vmul.f32 %v1239_v27, %v1513_v51  ;;  %v1194_v38 = vadd.f32 %v1193_v34, %v1192_v28  ;;  %v1242_v39 = vadd.f32 %v1241_v35, %v1240_v29 }
 0x11a   :  { %v1072_v40 = vpack.c.bf16 %v751_v32, %v750_v30  ;;  %v1112_v41 = vpack.c.bf16 %v767_v33, %v766_v31 }
 0x11b   :  { %v720_v42 = vadd.f32 %v1518_v57, %v681_v36  ;;  %v736_v43 = vadd.f32 %v1518_v57, %v697_v37  ;;  %v682_v44 = vmul.f32 %v1194_v38, %v1513_v51  ;;  %v698_v45 = vmul.f32 %v1242_v39, %v1513_v51 }
 0x11c   :  { %1136 = vst [vmem:[%s1636_s4 + $0x18] sm:$0xff] %v1072_v40   ;;  %1144 = vst [vmem:[%s1636_s4 + $0x58] sm:$0xff] %v1112_v41  }
 0x11d   :  { %v721_v46 = vadd.f32 %v1518_v57, %v682_v44  ;;  %v737_v47 = vadd.f32 %v1518_v57, %v698_v45  ;;  %v1195_v48 = vpop.f32.mrb[20].mxu0  ;;  %v1243_v49 = vpop.f32.mrb[20].mxu1  ;;  %v752_v50 = vmax.f32 %v720_v42, 0.0  ;;  %v768_v52 = vmax.f32 %v736_v43, 0.0 }
 0x11e   :  { %v1196_v53 = vpop.f32.mrb[21].mxu0  ;;  %v1244_v54 = vpop.f32.mrb[21].mxu1 }
 0x11f   :  { %v753_v55 = vmax.f32 %v721_v46, 0.0  ;;  %v769_v56 = vmax.f32 %v737_v47, 0.0  ;;  %v1197_v58 = vadd.f32 %v1196_v53, %v1195_v48  ;;  %v1245_v59 = vadd.f32 %v1244_v54, %v1243_v49  ;;  %v1198_v60 = vpop.f32.mrb[22].mxu0  ;;  %v1246_v61 = vpop.f32.mrb[22].mxu1 }
 0x120   :  { %v1199_v62 = vpop.f32.mrb[23].mxu0  ;;  %v1247_v63 = vpop.f32.mrb[23].mxu1 }
 0x121   :  { %v1077_v0 = vpack.c.bf16 %v753_v55, %v752_v50  ;;  %v1117_v1 = vpack.c.bf16 %v769_v56, %v768_v52  ;;  %v683_v2 = vmul.f32 %v1197_v58, %v1513_v51  ;;  %v699_v3 = vmul.f32 %v1245_v59, %v1513_v51 }
 0x122   :  { %v1200_v4 = vadd.f32 %v1199_v62, %v1198_v60  ;;  %v1248_v5 = vadd.f32 %v1247_v63, %v1246_v61 }
 0x123   :  { %1137 = vst [vmem:[%s1636_s4 + $0x20] sm:$0xff] %v1077_v0   ;;  %1145 = vst [vmem:[%s1636_s4 + $0x60] sm:$0xff] %v1117_v1   ;;  %v722_v6 = vadd.f32 %v1518_v57, %v683_v2  ;;  %v738_v7 = vadd.f32 %v1518_v57, %v699_v3 }
 0x124   :  { %v684_v8 = vmul.f32 %v1200_v4, %v1513_v51  ;;  %v700_v9 = vmul.f32 %v1248_v5, %v1513_v51 }
 0x125   :  { %v1201_v10 = vpop.f32.mrb[24].mxu0  ;;  %v1249_v11 = vpop.f32.mrb[24].mxu1  ;;  %v754_v20 = vmax.f32 %v722_v6, 0.0  ;;  %v770_v21 = vmax.f32 %v738_v7, 0.0 }
 0x126   :  { %v723_v12 = vadd.f32 %v1518_v57, %v684_v8  ;;  %v739_v13 = vadd.f32 %v1518_v57, %v700_v9  ;;  %v1202_v14 = vpop.f32.mrb[25].mxu0  ;;  %v1250_v15 = vpop.f32.mrb[25].mxu1 }
 0x127   :  { %v1203_v16 = vadd.f32 %v1202_v14, %v1201_v10  ;;  %v1251_v17 = vadd.f32 %v1250_v15, %v1249_v11  ;;  %v1204_v18 = vpop.f32.mrb[26].mxu0  ;;  %v1252_v19 = vpop.f32.mrb[26].mxu1 }
 0x128   :  { %v755_v22 = vmax.f32 %v723_v12, 0.0  ;;  %v771_v23 = vmax.f32 %v739_v13, 0.0  ;;  %v1205_v24 = vpop.f32.mrb[27].mxu0  ;;  %v1253_v25 = vpop.f32.mrb[27].mxu1 }
 0x129   :  { %v685_v26 = vmul.f32 %v1203_v16, %v1513_v51  ;;  %v701_v27 = vmul.f32 %v1251_v17, %v1513_v51  ;;  %v1206_v28 = vadd.f32 %v1205_v24, %v1204_v18  ;;  %v1254_v29 = vadd.f32 %v1253_v25, %v1252_v19 }
 0x12a   :  { %v1082_v30 = vpack.c.bf16 %v755_v22, %v754_v20  ;;  %v1122_v31 = vpack.c.bf16 %v771_v23, %v770_v21 }
 0x12b   :  { %v724_v32 = vadd.f32 %v1518_v57, %v685_v26  ;;  %v740_v33 = vadd.f32 %v1518_v57, %v701_v27  ;;  %v686_v34 = vmul.f32 %v1206_v28, %v1513_v51  ;;  %v702_v35 = vmul.f32 %v1254_v29, %v1513_v51 }
 0x12c   :  { %1138 = vst [vmem:[%s1636_s4 + $0x28] sm:$0xff] %v1082_v30   ;;  %1146 = vst [vmem:[%s1636_s4 + $0x68] sm:$0xff] %v1122_v31  }
 0x12d   :  { %v725_v36 = vadd.f32 %v1518_v57, %v686_v34  ;;  %v741_v37 = vadd.f32 %v1518_v57, %v702_v35  ;;  %v1207_v38 = vpop.f32.mrb[28].mxu0  ;;  %v1255_v39 = vpop.f32.mrb[28].mxu1  ;;  %v756_v40 = vmax.f32 %v724_v32, 0.0  ;;  %v772_v41 = vmax.f32 %v740_v33, 0.0 }
 0x12e   :  { %v1208_v42 = vpop.f32.mrb[29].mxu0  ;;  %v1256_v43 = vpop.f32.mrb[29].mxu1 }
 0x12f   :  { %v757_v44 = vmax.f32 %v725_v36, 0.0  ;;  %v773_v45 = vmax.f32 %v741_v37, 0.0  ;;  %v1209_v46 = vadd.f32 %v1208_v42, %v1207_v38  ;;  %v1257_v47 = vadd.f32 %v1256_v43, %v1255_v39  ;;  %v1210_v48 = vpop.f32.mrb[30].mxu0  ;;  %v1258_v49 = vpop.f32.mrb[30].mxu1 }
 0x130   :  { %v1211_v50 = vpop.f32.mrb[31].mxu0  ;;  %v1259_v52 = vpop.f32.mrb[31].mxu1 }
 0x131   :  { %v1087_v53 = vpack.c.bf16 %v757_v44, %v756_v40  ;;  %v1127_v54 = vpack.c.bf16 %v773_v45, %v772_v41  ;;  %v687_v55 = vmul.f32 %v1209_v46, %v1513_v51  ;;  %v703_v56 = vmul.f32 %v1257_v47, %v1513_v51 }
 0x132   :  { %v1212_v58 = vadd.f32 %v1211_v50, %v1210_v48  ;;  %v1260_v59 = vadd.f32 %v1259_v52, %v1258_v49 }
 0x133   :  { %1139 = vst [vmem:[%s1636_s4 + $0x30] sm:$0xff] %v1087_v53   ;;  %1147 = vst [vmem:[%s1636_s4 + $0x70] sm:$0xff] %v1127_v54   ;;  %v726_v60 = vadd.f32 %v1518_v57, %v687_v55  ;;  %v742_v61 = vadd.f32 %v1518_v57, %v703_v56 }
 0x134   :  { %v688_v62 = vmul.f32 %v1212_v58, %v1513_v51  ;;  %v704_v63 = vmul.f32 %v1260_v59, %v1513_v51 }
 0x135   :  { %v758_v2 = vmax.f32 %v726_v60, 0.0  ;;  %v774_v3 = vmax.f32 %v742_v61, 0.0 }
 0x136   :  { %v727_v0 = vadd.f32 %v1518_v57, %v688_v62  ;;  %v743_v1 = vadd.f32 %v1518_v57, %v704_v63 }
 0x138   :  { %v759_v4 = vmax.f32 %v727_v0, 0.0  ;;  %v775_v5 = vmax.f32 %v743_v1, 0.0 }
 0x13a   :  { %v1092_v6 = vpack.c.bf16 %v759_v4, %v758_v2  ;;  %v1132_v7 = vpack.c.bf16 %v775_v5, %v774_v3 }
 0x13c   :  { %1140 = vst [vmem:[%s1636_s4 + $0x38] sm:$0xff] %v1092_v6   ;;  %1148 = vst [vmem:[%s1636_s4 + $0x78] sm:$0xff] %v1132_v7  }

// kernel: resnet_forward.23
= control target key start
LH: loop header
LB: loop body
LE: loop exit
PB: predicated region body
PF: predicated region fallthrough
CT: control target
= control target key end

     0   :  { %vm81_vm0 = vcmask 1043456   ;;  %s712_s0 = inlined_call_operand.vmem [shape: bf16[9,64,128], index: 0, kind: input, shape index: {}]   ;;  %s713_s1 = inlined_call_operand.vmem [shape: bf16[64,128], index: 1, kind: output, shape index: {}]  }
   0x1   :  { %v9_v0 = vld [vmem:[%s712_s0] sm:$0xf]  ;;  %v10_v3 = vld [vmem:[%s712_s0 + $0x4] sm:$0xf]  ;;  %v11_v39 = vld [vmem:[%s712_s0 + $0x8] sm:$0xf] }
   0x2   :  { %v17_v1 = vld [vmem:[%s712_s0 + $0x20] sm:$0xf]  ;;  %v18_v4 = vld [vmem:[%s712_s0 + $0x24] sm:$0xf]  ;;  %v84_v7 = vsel %vm81_vm0, %v9_v0, 4286644096 }
   0x3   :  { %v25_v2 = vld [vmem:[%s712_s0 + $0x40] sm:$0xf]  ;;  %v26_v5 = vld [vmem:[%s712_s0 + $0x44] sm:$0xf]  ;;  %v87_v8 = vsel %vm81_vm0, %v17_v1, 4286644096 }
   0x4   :  { %v33_v6 = vld [vmem:[%s712_s0 + $0x60] sm:$0xf]  ;;  %v91_v9 = vsel %vm81_vm0, %v25_v2, 4286644096  ;;  %v89_v11 = vmax.bf16 %v87_v8, %v84_v7  ;;  %v34_v12 = vld [vmem:[%s712_s0 + $0x64] sm:$0xf] }
   0x5   :  { %v41_v10 = vld [vmem:[%s712_s0 + $0x80] sm:$0xf]  ;;  %v95_v14 = vsel %vm81_vm0, %v33_v6, 4286644096  ;;  %v119_v16 = vsel %vm81_vm0, %v10_v3, 4286644096 }
   0x6   :  { %v49_v13 = vld [vmem:[%s712_s0 + $0xa0] sm:$0xf]  ;;  %v93_v15 = vmax.bf16 %v91_v9, %v89_v11  ;;  %v122_v17 = vsel %vm81_vm0, %v18_v4, 4286644096  ;;  %v126_v18 = vsel %vm81_vm0, %v26_v5, 4286644096 }
   0x7   :  { %v42_v19 = vld [vmem:[%s712_s0 + $0x84] sm:$0xf]  ;;  %v99_v20 = vsel %vm81_vm0, %v41_v10, 4286644096  ;;  %v124_v21 = vmax.bf16 %v122_v17, %v119_v16  ;;  %v57_v23 = vld [vmem:[%s712_s0 + $0xc0] sm:$0xf] }
   0x8   :  { %v50_v22 = vld [vmem:[%s712_s0 + $0xa4] sm:$0xf]  ;;  %v97_v24 = vmax.bf16 %v95_v14, %v93_v15  ;;  %v130_v25 = vsel %vm81_vm0, %v34_v12, 4286644096  ;;  %v103_v27 = vsel %vm81_vm0, %v49_v13, 4286644096 }
   0x9   :  { %v58_v26 = vld [vmem:[%s712_s0 + $0xc4] sm:$0xf]  ;;  %v128_v28 = vmax.bf16 %v126_v18, %v124_v21  ;;  %v65_v29 = vld [vmem:[%s712_s0 + $0xe0] sm:$0xf]  ;;  %v134_v32 = vsel %vm81_vm0, %v42_v19, 4286644096 }
   0xa   :  { %v73_v30 = vld [vmem:[%s712_s0 + $0x100] sm:$0xf]  ;;  %v101_v31 = vmax.bf16 %v99_v20, %v97_v24  ;;  %v66_v33 = vld [vmem:[%s712_s0 + $0xe4] sm:$0xf]  ;;  %v107_v34 = vsel %vm81_vm0, %v57_v23, 4286644096 }
   0xb   :  { %v132_v35 = vmax.bf16 %v130_v25, %v128_v28  ;;  %v138_v36 = vsel %vm81_vm0, %v50_v22, 4286644096  ;;  %v74_v37 = vld [vmem:[%s712_s0 + $0x104] sm:$0xf]  ;;  %v19_v40 = vld [vmem:[%s712_s0 + $0x28] sm:$0xf] }
   0xc   :  { %v105_v38 = vmax.bf16 %v103_v27, %v101_v31  ;;  %v27_v41 = vld [vmem:[%s712_s0 + $0x48] sm:$0xf]  ;;  %v111_v42 = vsel %vm81_vm0, %v65_v29, 4286644096  ;;  %v115_v43 = vsel %vm81_vm0, %v73_v30, 4286644096 }
   0xd   :  { %v136_v44 = vmax.bf16 %v134_v32, %v132_v35  ;;  %v142_v45 = vsel %vm81_vm0, %v58_v26, 4286644096  ;;  %v12_v47 = vld [vmem:[%s712_s0 + $0xc] sm:$0xf]  ;;  %v35_v48 = vld [vmem:[%s712_s0 + $0x68] sm:$0xf] }
   0xe   :  { %v109_v46 = vmax.bf16 %v107_v34, %v105_v38  ;;  %v43_v49 = vld [vmem:[%s712_s0 + $0x88] sm:$0xf]  ;;  %v154_v51 = vsel %vm81_vm0, %v11_v39, 4286644096  ;;  %v157_v52 = vsel %vm81_vm0, %v19_v40, 4286644096 }
   0xf   :  { %v140_v50 = vmax.bf16 %v138_v36, %v136_v44  ;;  %v161_v53 = vsel %vm81_vm0, %v27_v41, 4286644096  ;;  %v146_v55 = vsel %vm81_vm0, %v66_v33, 4286644096  ;;  %v20_v56 = vld [vmem:[%s712_s0 + $0x2c] sm:$0xf]  ;;  %v159_v58 = vmax.bf16 %v157_v52, %v154_v51 }
  0x10   :  { %v113_v54 = vmax.bf16 %v111_v42, %v109_v46  ;;  %v28_v57 = vld [vmem:[%s712_s0 + $0x4c] sm:$0xf]  ;;  %v150_v60 = vsel %vm81_vm0, %v74_v37, 4286644096  ;;  %v165_v62 = vsel %vm81_vm0, %v35_v48, 4286644096 }
  0x11   :  { %v144_v59 = vmax.bf16 %v142_v45, %v140_v50  ;;  %v36_v61 = vld [vmem:[%s712_s0 + $0x6c] sm:$0xf]  ;;  %v51_v63 = vld [vmem:[%s712_s0 + $0xa8] sm:$0xf]  ;;  %v163_v0 = vmax.bf16 %v161_v53, %v159_v58  ;;  %v169_v1 = vsel %vm81_vm0, %v43_v49, 4286644096 }
  0x12   :  { %v189_v2 = vsel %vm81_vm0, %v12_v47, 4286644096  ;;  %v117_v3 = vmax.bf16 %v115_v43, %v113_v54  ;;  %v192_v5 = vsel %vm81_vm0, %v20_v56, 4286644096  ;;  %v196_v6 = vsel %vm81_vm0, %v28_v57, 4286644096 }
  0x13   :  { %v148_v4 = vmax.bf16 %v146_v55, %v144_v59  ;;  %v44_v7 = vld [vmem:[%s712_s0 + $0x8c] sm:$0xf]  ;;  %v59_v8 = vld [vmem:[%s712_s0 + $0xc8] sm:$0xf]  ;;  %v167_v9 = vmax.bf16 %v165_v62, %v163_v0  ;;  %v194_v10 = vmax.bf16 %v192_v5, %v189_v2  ;;  %v173_v12 = vsel %vm81_vm0, %v51_v63, 4286644096 }
  0x14   :  { %v200_v13 = vsel %vm81_vm0, %v36_v61, 4286644096  ;;  %v52_v14 = vld [vmem:[%s712_s0 + $0xac] sm:$0xf]  ;;  %v67_v16 = vld [vmem:[%s712_s0 + $0xe8] sm:$0xf] }
  0x15   :  { %v152_v11 = vmax.bf16 %v150_v60, %v148_v4  ;;  %v60_v15 = vld [vmem:[%s712_s0 + $0xcc] sm:$0xf]  ;;  %v171_v17 = vmax.bf16 %v169_v1, %v167_v9  ;;  %v198_v18 = vmax.bf16 %v196_v6, %v194_v10  ;;  %v75_v20 = vld [vmem:[%s712_s0 + $0x108] sm:$0xf]  ;;  %v177_v21 = vsel %vm81_vm0, %v59_v8, 4286644096 }
  0x16   :  { %v204_v22 = vsel %vm81_vm0, %v44_v7, 4286644096  ;;  %v68_v23 = vld [vmem:[%s712_s0 + $0xec] sm:$0xf]  ;;  %v13_v26 = vld [vmem:[%s712_s0 + $0x10] sm:$0xf] }
  0x17   :  { %v395_v19 = vcombine.low %v117_v3, %v152_v11  ;;  %v175_v24 = vmax.bf16 %v173_v12, %v171_v17  ;;  %v202_v25 = vmax.bf16 %v200_v13, %v198_v18  ;;  %v21_v27 = vld [vmem:[%s712_s0 + $0x30] sm:$0xf]  ;;  %v76_v29 = vld [vmem:[%s712_s0 + $0x10c] sm:$0xf]  ;;  %v181_v30 = vsel %vm81_vm0, %v67_v16, 4286644096 }
  0x18   :  { %v29_v28 = vld [vmem:[%s712_s0 + $0x50] sm:$0xf]  ;;  %v208_v31 = vsel %vm81_vm0, %v52_v14, 4286644096  ;;  %v185_v33 = vsel %vm81_vm0, %v75_v20, 4286644096 }
  0x19   :  { %379 = vst [vmem:[%s713_s1] sm:$0xff] %v395_v19   ;;  %v179_v32 = vmax.bf16 %v177_v21, %v175_v24  ;;  %v206_v34 = vmax.bf16 %v204_v22, %v202_v25  ;;  %v212_v35 = vsel %vm81_vm0, %v60_v15, 4286644096  ;;  %v37_v36 = vld [vmem:[%s712_s0 + $0x70] sm:$0xf]  ;;  %v224_v37 = vsel %vm81_vm0, %v13_v26, 4286644096 }
  0x1a   :  { %v227_v38 = vsel %vm81_vm0, %v21_v27, 4286644096  ;;  %v231_v39 = vsel %vm81_vm0, %v29_v28, 4286644096  ;;  %v14_v42 = vld [vmem:[%s712_s0 + $0x14] sm:$0xf] }
  0x1b   :  { %v183_v40 = vmax.bf16 %v181_v30, %v179_v32  ;;  %v210_v41 = vmax.bf16 %v208_v31, %v206_v34  ;;  %v22_v43 = vld [vmem:[%s712_s0 + $0x34] sm:$0xf]  ;;  %v45_v44 = vld [vmem:[%s712_s0 + $0x90] sm:$0xf]  ;;  %v229_v45 = vmax.bf16 %v227_v38, %v224_v37  ;;  %v216_v46 = vsel %vm81_vm0, %v68_v23, 4286644096 }
  0x1c   :  { %v30_v47 = vld [vmem:[%s712_s0 + $0x54] sm:$0xf]  ;;  %v235_v48 = vsel %vm81_vm0, %v37_v36, 4286644096  ;;  %v220_v50 = vsel %vm81_vm0, %v76_v29, 4286644096 }
  0x1d   :  { %v214_v49 = vmax.bf16 %v212_v35, %v210_v41  ;;  %v38_v51 = vld [vmem:[%s712_s0 + $0x74] sm:$0xf]  ;;  %v53_v52 = vld [vmem:[%s712_s0 + $0xb0] sm:$0xf]  ;;  %v233_v53 = vmax.bf16 %v231_v39, %v229_v45  ;;  %v187_v54 = vmax.bf16 %v185_v33, %v183_v40  ;;  %v239_v55 = vsel %vm81_vm0, %v45_v44, 4286644096 }
  0x1e   :  { %v259_v56 = vsel %vm81_vm0, %v14_v42, 4286644096  ;;  %v262_v57 = vsel %vm81_vm0, %v22_v43, 4286644096  ;;  %v46_v59 = vld [vmem:[%s712_s0 + $0x94] sm:$0xf] }
  0x1f   :  { %v218_v58 = vmax.bf16 %v216_v46, %v214_v49  ;;  %v61_v60 = vld [vmem:[%s712_s0 + $0xd0] sm:$0xf]  ;;  %v237_v61 = vmax.bf16 %v235_v48, %v233_v53  ;;  %v264_v62 = vmax.bf16 %v262_v57, %v259_v56  ;;  %v266_v63 = vsel %vm81_vm0, %v30_v47, 4286644096  ;;  %v54_v3 = vld [vmem:[%s712_s0 + $0xb4] sm:$0xf] }
  0x20   :  { %v243_v0 = vsel %vm81_vm0, %v53_v52, 4286644096  ;;  %v270_v1 = vsel %vm81_vm0, %v38_v51, 4286644096  ;;  %v62_v4 = vld [vmem:[%s712_s0 + $0xd4] sm:$0xf] }
  0x21   :  { %v222_v2 = vmax.bf16 %v220_v50, %v218_v58  ;;  %v69_v5 = vld [vmem:[%s712_s0 + $0xf0] sm:$0xf]  ;;  %v241_v6 = vmax.bf16 %v239_v55, %v237_v61  ;;  %v268_v7 = vmax.bf16 %v266_v63, %v264_v62  ;;  %v247_v9 = vsel %vm81_vm0, %v61_v60, 4286644096  ;;  %v70_v12 = vld [vmem:[%s712_s0 + $0xf4] sm:$0xf] }
  0x22   :  { %v77_v8 = vld [vmem:[%s712_s0 + $0x110] sm:$0xf]  ;;  %v274_v10 = vsel %vm81_vm0, %v46_v59, 4286644096  ;;  %v15_v15 = vld [vmem:[%s712_s0 + $0x18] sm:$0xf] }
  0x23   :  { %v396_v11 = vcombine.low %v187_v54, %v222_v2  ;;  %v245_v13 = vmax.bf16 %v243_v0, %v241_v6  ;;  %v272_v14 = vmax.bf16 %v270_v1, %v268_v7  ;;  %v23_v16 = vld [vmem:[%s712_s0 + $0x38] sm:$0xf]  ;;  %v78_v18 = vld [vmem:[%s712_s0 + $0x114] sm:$0xf]  ;;  %v251_v19 = vsel %vm81_vm0, %v69_v5, 4286644096 }
  0x24   :  { %v31_v17 = vld [vmem:[%s712_s0 + $0x58] sm:$0xf]  ;;  %v278_v20 = vsel %vm81_vm0, %v54_v3, 4286644096  ;;  %v282_v23 = vsel %vm81_vm0, %v62_v4, 4286644096 }
  0x25   :  { %397 = vst [vmem:[%s713_s1 + $0x8] sm:$0xff] %v396_v11   ;;  %v249_v21 = vmax.bf16 %v247_v9, %v245_v13  ;;  %v276_v22 = vmax.bf16 %v274_v10, %v272_v14  ;;  %v16_v24 = vld [vmem:[%s712_s0 + $0x1c] sm:$0xf]  ;;  %v39_v25 = vld [vmem:[%s712_s0 + $0x78] sm:$0xf] }
  0x26   :  { %v294_v26 = vsel %vm81_vm0, %v15_v15, 4286644096  ;;  %v297_v27 = vsel %vm81_vm0, %v23_v16, 4286644096  ;;  %v301_v28 = vsel %vm81_vm0, %v31_v17, 4286644096 }
  0x27   :  { %v253_v29 = vmax.bf16 %v251_v19, %v249_v21  ;;  %v255_v30 = vsel %vm81_vm0, %v77_v8, 4286644096  ;;  %v280_v31 = vmax.bf16 %v278_v20, %v276_v22  ;;  %v24_v32 = vld [vmem:[%s712_s0 + $0x3c] sm:$0xf]  ;;  %v47_v33 = vld [vmem:[%s712_s0 + $0x98] sm:$0xf]  ;;  %v299_v34 = vmax.bf16 %v297_v27, %v294_v26 }
  0x28   :  { %v286_v35 = vsel %vm81_vm0, %v70_v12, 4286644096  ;;  %v32_v36 = vld [vmem:[%s712_s0 + $0x5c] sm:$0xf]  ;;  %v305_v37 = vsel %vm81_vm0, %v39_v25, 4286644096 }
  0x29   :  { %v284_v38 = vmax.bf16 %v282_v23, %v280_v31  ;;  %v290_v39 = vsel %vm81_vm0, %v78_v18, 4286644096  ;;  %v40_v40 = vld [vmem:[%s712_s0 + $0x7c] sm:$0xf]  ;;  %v55_v41 = vld [vmem:[%s712_s0 + $0xb8] sm:$0xf]  ;;  %v303_v42 = vmax.bf16 %v301_v28, %v299_v34  ;;  %v257_v43 = vmax.bf16 %v255_v30, %v253_v29 }
  0x2a   :  { %v309_v44 = vsel %vm81_vm0, %v47_v33, 4286644096  ;;  %v329_v45 = vsel %vm81_vm0, %v16_v24, 4286644096  ;;  %v332_v46 = vsel %vm81_vm0, %v24_v32, 4286644096 }
  0x2b   :  { %v288_v47 = vmax.bf16 %v286_v35, %v284_v38  ;;  %v48_v48 = vld [vmem:[%s712_s0 + $0x9c] sm:$0xf]  ;;  %v63_v49 = vld [vmem:[%s712_s0 + $0xd8] sm:$0xf]  ;;  %v307_v50 = vmax.bf16 %v305_v37, %v303_v42  ;;  %v334_v51 = vmax.bf16 %v332_v46, %v329_v45  ;;  %v336_v52 = vsel %vm81_vm0, %v32_v36, 4286644096 }
  0x2c   :  { %v313_v53 = vsel %vm81_vm0, %v55_v41, 4286644096  ;;  %v340_v54 = vsel %vm81_vm0, %v40_v40, 4286644096  ;;  %v56_v56 = vld [vmem:[%s712_s0 + $0xbc] sm:$0xf] }
  0x2d   :  { %v292_v55 = vmax.bf16 %v290_v39, %v288_v47  ;;  %v71_v57 = vld [vmem:[%s712_s0 + $0xf8] sm:$0xf]  ;;  %v311_v58 = vmax.bf16 %v309_v44, %v307_v50  ;;  %v338_v59 = vmax.bf16 %v336_v52, %v334_v51  ;;  %v317_v60 = vsel %vm81_vm0, %v63_v49, 4286644096  ;;  %v64_v63 = vld [vmem:[%s712_s0 + $0xdc] sm:$0xf] }
  0x2e   :  { %v344_v61 = vsel %vm81_vm0, %v48_v48, 4286644096  ;;  %v321_v2 = vsel %vm81_vm0, %v71_v57, 4286644096  ;;  %v348_v3 = vsel %vm81_vm0, %v56_v56, 4286644096 }
  0x2f   :  { %v398_v62 = vcombine.low %v257_v43, %v292_v55  ;;  %v315_v0 = vmax.bf16 %v313_v53, %v311_v58  ;;  %v342_v1 = vmax.bf16 %v340_v54, %v338_v59  ;;  %v72_v4 = vld [vmem:[%s712_s0 + $0xfc] sm:$0xf]  ;;  %v79_v5 = vld [vmem:[%s712_s0 + $0x118] sm:$0xf]  ;;  %v352_v8 = vsel %vm81_vm0, %v64_v63, 4286644096 }
  0x30   :  { %v80_v9 = vld [vmem:[%s712_s0 + $0x11c] sm:$0xf]  ;;  %v325_v12 = vsel %vm81_vm0, %v79_v5, 4286644096  ;;  %v356_v13 = vsel %vm81_vm0, %v72_v4, 4286644096 }
  0x31   :  { %399 = vst [vmem:[%s713_s1 + $0x10] sm:$0xff] %v398_v62   ;;  %v319_v6 = vmax.bf16 %v317_v60, %v315_v0  ;;  %v346_v7 = vmax.bf16 %v344_v61, %v342_v1  ;;  %v360_v15 = vsel %vm81_vm0, %v80_v9, 4286644096 }
  0x33   :  { %v323_v10 = vmax.bf16 %v321_v2, %v319_v6  ;;  %v350_v11 = vmax.bf16 %v348_v3, %v346_v7 }
  0x35   :  { %v354_v14 = vmax.bf16 %v352_v8, %v350_v11  ;;  %v327_v16 = vmax.bf16 %v325_v12, %v323_v10 }
  0x37   :  { %v358_v17 = vmax.bf16 %v356_v13, %v354_v14 }
  0x39   :  { %v362_v18 = vmax.bf16 %v360_v15, %v358_v17 }
  0x3b   :  { %v400_v19 = vcombine.low %v327_v16, %v362_v18 }
  0x3d   :  { %401 = vst [vmem:[%s713_s1 + $0x18] sm:$0xff] %v400_v19  }

// kernel: resnet_forward.24
= control target key start
LH: loop header
LB: loop body
LE: loop exit
PB: predicated region body
PF: predicated region fallthrough
CT: control target
= control target key end

     0   :  { %s917_s15 = smov 0   ;;  %s919_s16 = smov 0   ;;  %s1018_s0 = inlined_call_operand.vmem [shape: bf16[64,640], index: 0, kind: input, shape index: {}]   ;;  %s1019_s1 = inlined_call_operand.vmem [shape: bf16[640,128], index: 1, kind: input, shape index: {}]   ;;  %s1020_s2 = inlined_call_operand.vmem [shape: f32[1,128], index: 2, kind: input, shape index: {}]   ;;  %s1021_s3 = inlined_call_operand.vmem [shape: f32[1,128], index: 3, kind: input, shape index: {}]   ;;  %s1022_s4 = inlined_call_operand.vmem [shape: bf16[64,128], index: 4, kind: output, shape index: {}]  }
   0x1   :  { %s921_s17 = smov 0   ;;  %s923_s18 = smov 0  }
   0x2   :  { %s925_s19 = smov 0  }
   0x3 LB: > { %s23_s20 = sadd.s32 1, %s885_s18  ;;  %p42_p1 = scmp.ne.s32.totalorder %s877_s16, %s873_s15  ;;  %s889_s19 = sphi %s925_s19, %s14_s19   ;;  %s885_s18 = sphi %s923_s18, %s1026_s18   ;;  %s881_s17 = sphi %s921_s17, %s1025_s17   ;;  %s877_s16 = sphi %s919_s16, %s1024_s16   ;;  %s873_s15 = sphi %s917_s15, %s1023_s15  }
   0x4   : > { %p24_p0 = scmp.ge.s32.totalorder %s23_s20, 5  ;;  %p43_p2 = scmp.eq.s32.totalorder %s889_s19, 0 }
   0x5   : > { %s35_s22 = sadd.s32 1, %s877_s16  ;;  %p680_p5 = scmp.ge.s32.totalorder %s889_s19, 5 }
   0x6   : > { %s1028_s20 = smov (%p24_p0, %s23_s20), 0  ;;  %p44_p3 = por %p43_p2, %p42_p1 }
   0x7   : > { %s31_s21 = ssub.s32 %s885_s18, %s1028_s20  ;;  %168 = sbr.rel (%p680_p5) target bundleno = 23 (0x17), region = 24 }
   0x8   : > { %p33_p4 = scmp.eq.s32.totalorder %s31_s21, 0 }
   0xa   : > { %s952_s23 = scalar_select %p33_p4, %s877_s16, %s35_s22  }
   0xe   : > { %171 = sbr.rel (!%p44_p3) target bundleno = 23 (0x17), region = 28  ;;  %s173_s24 = sand.u32 (%p44_p3), 1, %s877_s16  }
   0xf   : > { %s682_s25 = sshll.u32 (%p44_p3), %s885_s18, 2  ;;  %s681_s26 = sshll.u32 (%p44_p3), %s173_s24, 5 }
  0x10   : > { %s180_s29 = scalar_lea.vmem (%p44_p3), %s1018_s0, %s682_s25  ;;  %s175_s30 = scalar_lea.vmem (%p44_p3), [#allocation3], %s681_s26 }
  0x11   : > { %v196_v0 = vld [vmem:[%s180_s29] sm:$0xf] (%p44_p3)  ;;  %v198_v1 = vld [vmem:[%s180_s29 + $0x14] sm:$0xf] (%p44_p3)  ;;  %v200_v2 = vld [vmem:[%s180_s29 + $0x28] sm:$0xf] (%p44_p3) }
  0x12   : > { %197 = vst [vmem:[%s175_s30] sm:$0xf] (%p44_p3), %v196_v0  ;;  %199 = vst [vmem:[%s175_s30 + $0x4] sm:$0xf] (%p44_p3), %v198_v1  ;;  %v202_v3 = vld [vmem:[%s180_s29 + $0x3c] sm:$0xf] (%p44_p3) }
  0x13   : > { %v204_v4 = vld [vmem:[%s180_s29 + $0x50] sm:$0xf] (%p44_p3)  ;;  %201 = vst [vmem:[%s175_s30 + $0x8] sm:$0xf] (%p44_p3), %v200_v2  ;;  %203 = vst [vmem:[%s175_s30 + $0xc] sm:$0xf] (%p44_p3), %v202_v3 }
  0x14   : > { %205 = vst [vmem:[%s175_s30 + $0x10] sm:$0xf] (%p44_p3), %v204_v4  ;;  %v206_v5 = vld [vmem:[%s180_s29 + $0x64] sm:$0xf] (%p44_p3)  ;;  %v208_v6 = vld [vmem:[%s180_s29 + $0x78] sm:$0xf] (%p44_p3) }
  0x15   : > { %v210_v7 = vld [vmem:[%s180_s29 + $0x8c] sm:$0xf]  ;;  %207 = vst [vmem:[%s175_s30 + $0x14] sm:$0xf] %v206_v5  ;;  %209 = vst [vmem:[%s175_s30 + $0x18] sm:$0xf] %v208_v6 }
  0x16   : > { %211 = vst [vmem:[%s175_s30 + $0x1c] sm:$0xf] %v210_v7 }
  0x17 PF: > { %p683_p6 = scmp.ge.s32.totalorder %s889_s19, 1  ;;  %p258_p7 = scmp.lt.s32.totalorder %s889_s19, 6 }
  0x19   : > { %p259_p8 = pnand %p683_p6, %p258_p7 }
  0x1a   : > { %s265_s5 = sand.u32 (!%p259_p8), 1, %s873_s15   ;;  %s685_s6 = sshll.u32 (!%p259_p8), %s881_s17, 4 }
  0x1b   : > { %262 = sbr.rel (%p259_p8) target bundleno = 309 (0x135), region = 73  ;;  %s684_s7 = sshll.u32 (!%p259_p8), %s265_s5, 5 }
  0x1c   : > { %p297_p9 = scmp.lt.s32.totalorder (!%p259_p8), %s685_s6, 79  ;;  %s969_s12 = scalar_lea.vmem (!%p259_p8), [#allocation3], %s684_s7 }
  0x1d   : > { %p687_p10 = scmp.ne.s32.totalorder (!%p259_p8), %s881_s17, 0 }
  0x22   : > { %s1030_s6 = smov (!%p297_p9, %s685_s6), 79  ;;  %312 = sbr.rel (%p687_p10) target bundleno = 41 (0x29), region = 81 }
  0x23   : > { %s686_s8 = sshll.u32 %s1030_s6, 2  ;;  %v891_v8 = vmov (!%p687_p10), 0.0  }
  0x24   : > { %s967_s11 = scalar_lea.vmem %s1019_s1, %s686_s8  ;;  %313 = vst [vmem:[#allocation2] sm:$0xff] (!%p687_p10), %v891_v8  ;;  %314 = vst [vmem:[#allocation2 + $0x8] sm:$0xff] (!%p687_p10), %v891_v8 }
  0x25   : > { %315 = vst [vmem:[#allocation2 + $0x10] sm:$0xff] (!%p687_p10), %v891_v8  ;;  %316 = vst [vmem:[#allocation2 + $0x18] sm:$0xff] (!%p687_p10), %v891_v8 }
  0x26   : > { %317 = vst [vmem:[#allocation2 + $0x20] sm:$0xff] (!%p687_p10), %v891_v8  ;;  %318 = vst [vmem:[#allocation2 + $0x28] sm:$0xff] (!%p687_p10), %v891_v8 }
  0x27   : > { %319 = vst [vmem:[#allocation2 + $0x30] sm:$0xff] (!%p687_p10), %v891_v8  ;;  %320 = vst [vmem:[#allocation2 + $0x38] sm:$0xff] (!%p687_p10), %v891_v8 }
  0x29 PF: > { %v839_v9 = vld [vmem:[%s967_s11] sm:$0xff]   ;;  %v840_v10 = vld [vmem:[%s967_s11 + $0x8] sm:$0xff]   ;;  %v841_v11 = vld [vmem:[%s967_s11 + $0x10] sm:$0xff]   ;;  %p700_p11 = scmp.ne.s32.totalorder %s881_s17, 4 }
  0x2a   : > { %758 = vmatprep.subr.bf16.mxu0 %v839_v9  ;;  %782 = vmatprep.subr.bf16.mxu1 %v839_v9  ;;  %v842_v12 = vld [vmem:[%s967_s11 + $0x18] sm:$0xff]   ;;  %v847_v13 = vld [vmem:[%s969_s12] sm:$0xff]   ;;  %v848_v14 = vld [vmem:[%s969_s12 + $0x10] sm:$0xff]  }
  0x2b   : > { %759 = vmatpush3.bf16.msra.mxu0 %v839_v9  ;;  %790 = vmatpush3.bf16.msra.mxu1 %v839_v9  ;;  %v843_v15 = vld [vmem:[%s967_s11 + $0x20] sm:$0xff]   ;;  %v844_v16 = vld [vmem:[%s967_s11 + $0x28] sm:$0xff]   ;;  %v845_v17 = vld [vmem:[%s967_s11 + $0x30] sm:$0xff]  }
  0x2c   : > { %760 = vmatprep.subr.bf16.mxu0 %v840_v10  ;;  %783 = vmatprep.subr.bf16.mxu1 %v840_v10  ;;  %v846_v18 = vld [vmem:[%s967_s11 + $0x38] sm:$0xff]   ;;  %v849_v19 = vld [vmem:[%s969_s12 + $0x8] sm:$0xff]   ;;  %v323_v21 = vld [vmem:[#allocation2 + $0x10] sm:$0xff] }
  0x2d   : > { %774 = vmatprep.mubr.bf16.mxu0 %v847_v13  ;;  %778 = vmatprep.mubr.bf16.mxu1 %v848_v14  ;;  %v850_v20 = vld [vmem:[%s969_s12 + $0x18] sm:$0xff]   ;;  %v321_v23 = vld [vmem:[#allocation2] sm:$0xff]  ;;  %v322_v33 = vld [vmem:[#allocation2 + $0x8] sm:$0xff] }
  0x2e   : > { %v327_v22 = vld [vmem:[#allocation2 + $0x30] sm:$0xff]  ;;  %v325_v24 = vld [vmem:[#allocation2 + $0x20] sm:$0xff]  ;;  %v324_v27 = vld [vmem:[#allocation2 + $0x18] sm:$0xff] }
  0x2f   : > { %761 = vmatpush3.bf16.msra.mxu0 %v840_v10  ;;  %791 = vmatpush3.bf16.msra.mxu1 %v840_v10  ;;  %v328_v28 = vld [vmem:[#allocation2 + $0x38] sm:$0xff]  ;;  %v326_v34 = vld [vmem:[#allocation2 + $0x28] sm:$0xff]  ;;  %v701_v47 = vld [vmem:[%s1020_s2] ss:$0 sm:$0xff] (!%p700_p11) }
  0x30   : > { %762 = vmatprep.subr.bf16.mxu0 %v841_v11  ;;  %784 = vmatprep.subr.bf16.mxu1 %v841_v11  ;;  %v702_v50 = vld [vmem:[%s1021_s3] ss:$0 sm:$0xff] (!%p700_p11) }
  0x33   : > { %763 = vmatpush3.bf16.msra.mxu0 %v841_v11  ;;  %792 = vmatpush3.bf16.msra.mxu1 %v841_v11 }
  0x34   : > { %764 = vmatprep.subr.bf16.mxu0 %v842_v12  ;;  %785 = vmatprep.subr.bf16.mxu1 %v842_v12 }
  0x37   : > { %765 = vmatpush3.bf16.msra.mxu0 %v842_v12  ;;  %793 = vmatpush3.bf16.msra.mxu1 %v842_v12 }
  0x38   : > { %766 = vmatprep.subr.bf16.mxu0 %v843_v15  ;;  %786 = vmatprep.subr.bf16.mxu1 %v843_v15 }
  0x3b   : > { %767 = vmatpush3.bf16.msra.mxu0 %v843_v15  ;;  %794 = vmatpush3.bf16.msra.mxu1 %v843_v15 }
  0x3c   : > { %768 = vmatprep.subr.bf16.mxu0 %v844_v16  ;;  %787 = vmatprep.subr.bf16.mxu1 %v844_v16 }
  0x3f   : > { %769 = vmatpush3.bf16.msra.mxu0 %v844_v16  ;;  %795 = vmatpush3.bf16.msra.mxu1 %v844_v16 }
  0x40   : > { %770 = vmatprep.subr.bf16.mxu0 %v845_v17  ;;  %788 = vmatprep.subr.bf16.mxu1 %v845_v17 }
  0x43   : > { %771 = vmatpush3.bf16.msra.mxu0 %v845_v17  ;;  %796 = vmatpush3.bf16.msra.mxu1 %v845_v17 }
  0x44   : > { %772 = vmatprep.subr.bf16.mxu0 %v846_v18  ;;  %789 = vmatprep.subr.bf16.mxu1 %v846_v18 }
  0x47   : > { %773 = vmatpush3.bf16.msra.mxu0 %v846_v18  ;;  %797 = vmatpush3.bf16.msra.mxu1 %v846_v18 }
  0x4a   : > { %775 = vmatmul.mubr.bf16.vlgmr.msra.gmra.mrb[0].mxu0 %v849_v19  ;;  %779 = vmatmul.mubr.bf16.vlgmr.msra.gmra.mrb[0].mxu1 %v850_v20 }
 0x11d   : > { %v776_v25 = vpop.f32.mrb[0].mxu0  ;;  %v780_v26 = vpop.f32.mrb[0].mxu1  ;;  %509 = sbr.rel (%p700_p11) target bundleno = 309 (0x135), region = 85 }
 0x11e   : > { %v492_v29 = vadd.f32 %v776_v25, %v323_v21  ;;  %v496_v30 = vadd.f32 %v780_v26, %v327_v22  ;;  %v459_v31 = vpop.f32.mrb[1].mxu0  ;;  %v475_v32 = vpop.f32.mrb[1].mxu1 }
 0x11f   : > { %v490_v35 = vadd.f32 %v459_v31, %v321_v23  ;;  %v494_v36 = vadd.f32 %v475_v32, %v325_v24  ;;  %v777_v37 = vpop.f32.mrb[2].mxu0  ;;  %v781_v38 = vpop.f32.mrb[2].mxu1 }
 0x120   : > { %500 = vst [vmem:[#allocation2 + $0x10] sm:$0xff] %v492_v29  ;;  %504 = vst [vmem:[#allocation2 + $0x30] sm:$0xff] %v496_v30  ;;  %v493_v39 = vadd.f32 %v777_v37, %v324_v27  ;;  %v497_v40 = vadd.f32 %v781_v38, %v328_v28  ;;  %v462_v41 = vpop.f32.mrb[3].mxu0  ;;  %v478_v42 = vpop.f32.mrb[3].mxu1 }
 0x121   : > { %498 = vst [vmem:[#allocation2] sm:$0xff] %v490_v35  ;;  %502 = vst [vmem:[#allocation2 + $0x20] sm:$0xff] %v494_v36  ;;  %v491_v43 = vadd.f32 %v462_v41, %v322_v33  ;;  %v495_v44 = vadd.f32 %v478_v42, %v326_v34 }
 0x122   : > { %501 = vst [vmem:[#allocation2 + $0x18] sm:$0xff] %v493_v39  ;;  %505 = vst [vmem:[#allocation2 + $0x38] sm:$0xff] %v497_v40 }
 0x123   : > { %499 = vst [vmem:[#allocation2 + $0x8] sm:$0xff] %v491_v43  ;;  %503 = vst [vmem:[#allocation2 + $0x28] sm:$0xff] %v495_v44 }
 0x127   : > { %v512_v51 = vld [vmem:[#allocation2 + $0x10] sm:$0xff] }
 0x128   : > { %v510_v45 = vld [vmem:[#allocation2] sm:$0xff]  ;;  %v527_v53 = vmul.f32 %v701_v47, %v512_v51  ;;  %v516_v57 = vld [vmem:[#allocation2 + $0x30] sm:$0xff] }
 0x129   : > { %v525_v48 = vmul.f32 %v701_v47, %v510_v45  ;;  %v513_v52 = vld [vmem:[#allocation2 + $0x18] sm:$0xff]  ;;  %v514_v55 = vld [vmem:[#allocation2 + $0x20] sm:$0xff]  ;;  %v531_v1 = vmul.f32 %v701_v47, %v516_v57 }
 0x12a   : > { %v511_v46 = vld [vmem:[#allocation2 + $0x8] sm:$0xff]  ;;  %v528_v54 = vmul.f32 %v701_v47, %v513_v52  ;;  %v529_v60 = vmul.f32 %v701_v47, %v514_v55  ;;  %v517_v62 = vld [vmem:[#allocation2 + $0x38] sm:$0xff]  ;;  %v542_v63 = vadd.f32 %v702_v50, %v527_v53 }
 0x12b   : > { %v526_v49 = vmul.f32 %v701_v47, %v511_v46  ;;  %v515_v56 = vld [vmem:[#allocation2 + $0x28] sm:$0xff]  ;;  %v540_v58 = vadd.f32 %v702_v50, %v525_v48  ;;  %v532_v2 = vmul.f32 %v701_v47, %v517_v62  ;;  %v546_v9 = vadd.f32 %v702_v50, %v531_v1 }
 0x12c   : > { %v530_v61 = vmul.f32 %v701_v47, %v515_v56  ;;  %v543_v0 = vadd.f32 %v702_v50, %v528_v54  ;;  %v544_v5 = vadd.f32 %v702_v50, %v529_v60  ;;  %v550_v7 = vmax.f32 %v542_v63, 0.0 }
 0x12d   : > { %v541_v59 = vadd.f32 %v702_v50, %v526_v49  ;;  %v548_v3 = vmax.f32 %v540_v58, 0.0  ;;  %v547_v10 = vadd.f32 %v702_v50, %v532_v2  ;;  %v554_v15 = vmax.f32 %v546_v9, 0.0 }
 0x12e   : > { %v545_v6 = vadd.f32 %v702_v50, %v530_v61  ;;  %v551_v8 = vmax.f32 %v543_v0, 0.0  ;;  %v552_v12 = vmax.f32 %v544_v5, 0.0 }
 0x12f   : > { %v549_v4 = vmax.f32 %v541_v59, 0.0  ;;  %v555_v16 = vmax.f32 %v547_v10, 0.0 }
 0x130   : > { %v553_v13 = vmax.f32 %v545_v6, 0.0  ;;  %v731_v14 = vpack.c.bf16 %v551_v8, %v550_v7 }
 0x131   : > { %v726_v11 = vpack.c.bf16 %v549_v4, %v548_v3  ;;  %v741_v18 = vpack.c.bf16 %v555_v16, %v554_v15 }
 0x132   : > { %v736_v17 = vpack.c.bf16 %v553_v13, %v552_v12  ;;  %743 = vst [vmem:[%s1022_s4 + $0x8] sm:$0xff] %v731_v14  }
 0x133   : > { %727 = vst [vmem:[%s1022_s4] sm:$0xff] %v726_v11   ;;  %745 = vst [vmem:[%s1022_s4 + $0x18] sm:$0xff] %v741_v18  }
 0x134   : > { %744 = vst [vmem:[%s1022_s4 + $0x10] sm:$0xff] %v736_v17  }
 0x135 PF: > { %s14_s19 = sadd.s32 1, %s889_s19   ;;  %s1023_s15 = smov %s877_s16 }
 0x136   : > { %p11_p12 = scmp.ge.s32.totalorder %s14_s19, 7   ;;  %s1024_s16 = smov %s952_s23 }
 0x137   : > { %s1025_s17 = smov %s885_s18  ;;  %s1026_s18 = smov %s1028_s20 }
 0x138   :  { %13 = sbr.rel (!%p11_p12) target bundleno = 3 (0x3), region = 123 }

// kernel: resnet_forward.25
= control target key start
LH: loop header
LB: loop body
LE: loop exit
PB: predicated region body
PF: predicated region fallthrough
CT: control target
= control target key end

     0   :  { %s1030_s18 = smov 0   ;;  %s1032_s19 = smov 0   ;;  %s1143_s0 = inlined_call_operand.vmem [shape: bf16[64,640], index: 0, kind: input, shape index: {}]   ;;  %s1144_s1 = inlined_call_operand.vmem [shape: bf16[640,128], index: 1, kind: input, shape index: {}]   ;;  %s1145_s2 = inlined_call_operand.vmem [shape: f32[1,128], index: 2, kind: input, shape index: {}]   ;;  %s1146_s3 = inlined_call_operand.vmem [shape: f32[1,128], index: 3, kind: input, shape index: {}]   ;;  %s1147_s4 = inlined_call_operand.vmem [shape: bf16[64,128], index: 4, kind: input, shape index: {}]   ;;  %s1148_s5 = inlined_call_operand.vmem [shape: bf16[64,128], index: 5, kind: output, shape index: {}]  }
   0x1   :  { %s1034_s20 = smov 0   ;;  %s1036_s21 = smov 0  }
   0x2   :  { %s1038_s22 = smov 0  }
   0x3 LB: > { %s24_s23 = sadd.s32 1, %s993_s21  ;;  %p43_p1 = scmp.ne.s32.totalorder %s985_s19, %s981_s18  ;;  %s997_s22 = sphi %s1038_s22, %s15_s22   ;;  %s993_s21 = sphi %s1036_s21, %s1152_s21   ;;  %s989_s20 = sphi %s1034_s20, %s1151_s20   ;;  %s985_s19 = sphi %s1032_s19, %s1150_s19   ;;  %s981_s18 = sphi %s1030_s18, %s1149_s18  }
   0x4   : > { %p25_p0 = scmp.ge.s32.totalorder %s24_s23, 5  ;;  %p44_p2 = scmp.eq.s32.totalorder %s997_s22, 0 }
   0x5   : > { %s36_s25 = sadd.s32 1, %s985_s19  ;;  %p769_p5 = scmp.ge.s32.totalorder %s997_s22, 5 }
   0x6   : > { %s1154_s23 = smov (%p25_p0, %s24_s23), 0  ;;  %p45_p3 = por %p44_p2, %p43_p1 }
   0x7   : > { %s32_s24 = ssub.s32 %s993_s21, %s1154_s23  ;;  %204 = sbr.rel (%p769_p5) target bundleno = 23 (0x17), region = 28 }
   0x8   : > { %p34_p4 = scmp.eq.s32.totalorder %s32_s24, 0 }
   0xa   : > { %s1065_s26 = scalar_select %p34_p4, %s985_s19, %s36_s25  }
   0xe   : > { %207 = sbr.rel (!%p45_p3) target bundleno = 23 (0x17), region = 32  ;;  %s209_s27 = sand.u32 (%p45_p3), 1, %s985_s19  }
   0xf   : > { %s771_s28 = sshll.u32 (%p45_p3), %s993_s21, 2  ;;  %s770_s29 = sshll.u32 (%p45_p3), %s209_s27, 5 }
  0x10   : > { %s216_s7 = scalar_lea.vmem (%p45_p3), %s1143_s0, %s771_s28  ;;  %s211_s8 = scalar_lea.vmem (%p45_p3), [#allocation3], %s770_s29 }
  0x11   : > { %v232_v0 = vld [vmem:[%s216_s7] sm:$0xf] (%p45_p3)  ;;  %v234_v1 = vld [vmem:[%s216_s7 + $0x14] sm:$0xf] (%p45_p3)  ;;  %v236_v2 = vld [vmem:[%s216_s7 + $0x28] sm:$0xf] (%p45_p3) }
  0x12   : > { %233 = vst [vmem:[%s211_s8] sm:$0xf] (%p45_p3), %v232_v0  ;;  %235 = vst [vmem:[%s211_s8 + $0x4] sm:$0xf] (%p45_p3), %v234_v1  ;;  %v238_v3 = vld [vmem:[%s216_s7 + $0x3c] sm:$0xf] (%p45_p3) }
  0x13   : > { %v240_v4 = vld [vmem:[%s216_s7 + $0x50] sm:$0xf] (%p45_p3)  ;;  %237 = vst [vmem:[%s211_s8 + $0x8] sm:$0xf] (%p45_p3), %v236_v2  ;;  %239 = vst [vmem:[%s211_s8 + $0xc] sm:$0xf] (%p45_p3), %v238_v3 }
  0x14   : > { %241 = vst [vmem:[%s211_s8 + $0x10] sm:$0xf] (%p45_p3), %v240_v4  ;;  %v242_v5 = vld [vmem:[%s216_s7 + $0x64] sm:$0xf] (%p45_p3)  ;;  %v244_v6 = vld [vmem:[%s216_s7 + $0x78] sm:$0xf] (%p45_p3) }
  0x15   : > { %v246_v7 = vld [vmem:[%s216_s7 + $0x8c] sm:$0xf]  ;;  %243 = vst [vmem:[%s211_s8 + $0x14] sm:$0xf] %v242_v5  ;;  %245 = vst [vmem:[%s211_s8 + $0x18] sm:$0xf] %v244_v6 }
  0x16   : > { %247 = vst [vmem:[%s211_s8 + $0x1c] sm:$0xf] %v246_v7 }
  0x17 PF: > { %p772_p6 = scmp.ge.s32.totalorder %s997_s22, 1  ;;  %p294_p7 = scmp.lt.s32.totalorder %s997_s22, 6 }
  0x19   : > { %p295_p8 = pnand %p772_p6, %p294_p7 }
  0x1a   : > { %s301_s9 = sand.u32 (!%p295_p8), 1, %s981_s18   ;;  %s774_s10 = sshll.u32 (!%p295_p8), %s989_s20, 4 }
  0x1b   : > { %298 = sbr.rel (%p295_p8) target bundleno = 311 (0x137), region = 77  ;;  %s773_s11 = sshll.u32 (!%p295_p8), %s301_s9, 5 }
  0x1c   : > { %p340_p9 = scmp.lt.s32.totalorder (!%p295_p8), %s774_s10, 79  ;;  %s1082_s16 = scalar_lea.vmem (!%p295_p8), [#allocation3], %s773_s11 }
  0x1d   : > { %p776_p10 = scmp.ne.s32.totalorder (!%p295_p8), %s989_s20, 0 }
  0x22   : > { %s1156_s10 = smov (!%p340_p9, %s774_s10), 79  ;;  %361 = sbr.rel (%p776_p10) target bundleno = 41 (0x29), region = 85 }
  0x23   : > { %s775_s12 = sshll.u32 %s1156_s10, 2  ;;  %v999_v8 = vmov (!%p776_p10), 0.0  }
  0x24   : > { %s1080_s15 = scalar_lea.vmem %s1144_s1, %s775_s12  ;;  %362 = vst [vmem:[#allocation2] sm:$0xff] (!%p776_p10), %v999_v8  ;;  %363 = vst [vmem:[#allocation2 + $0x8] sm:$0xff] (!%p776_p10), %v999_v8 }
  0x25   : > { %364 = vst [vmem:[#allocation2 + $0x10] sm:$0xff] (!%p776_p10), %v999_v8  ;;  %365 = vst [vmem:[#allocation2 + $0x18] sm:$0xff] (!%p776_p10), %v999_v8 }
  0x26   : > { %366 = vst [vmem:[#allocation2 + $0x20] sm:$0xff] (!%p776_p10), %v999_v8  ;;  %367 = vst [vmem:[#allocation2 + $0x28] sm:$0xff] (!%p776_p10), %v999_v8 }
  0x27   : > { %368 = vst [vmem:[#allocation2 + $0x30] sm:$0xff] (!%p776_p10), %v999_v8  ;;  %369 = vst [vmem:[#allocation2 + $0x38] sm:$0xff] (!%p776_p10), %v999_v8 }
  0x29 PF: > { %v947_v9 = vld [vmem:[%s1080_s15] sm:$0xff]   ;;  %v948_v10 = vld [vmem:[%s1080_s15 + $0x8] sm:$0xff]   ;;  %v949_v11 = vld [vmem:[%s1080_s15 + $0x10] sm:$0xff]   ;;  %p789_p11 = scmp.ne.s32.totalorder %s989_s20, 4 }
  0x2a   : > { %866 = vmatprep.subr.bf16.mxu0 %v947_v9  ;;  %890 = vmatprep.subr.bf16.mxu1 %v947_v9  ;;  %v950_v12 = vld [vmem:[%s1080_s15 + $0x18] sm:$0xff]   ;;  %v955_v13 = vld [vmem:[%s1082_s16] sm:$0xff]   ;;  %v956_v14 = vld [vmem:[%s1082_s16 + $0x10] sm:$0xff]  }
  0x2b   : > { %867 = vmatpush3.bf16.msra.mxu0 %v947_v9  ;;  %898 = vmatpush3.bf16.msra.mxu1 %v947_v9  ;;  %v951_v15 = vld [vmem:[%s1080_s15 + $0x20] sm:$0xff]   ;;  %v952_v16 = vld [vmem:[%s1080_s15 + $0x28] sm:$0xff]   ;;  %v953_v17 = vld [vmem:[%s1080_s15 + $0x30] sm:$0xff]  }
  0x2c   : > { %868 = vmatprep.subr.bf16.mxu0 %v948_v10  ;;  %891 = vmatprep.subr.bf16.mxu1 %v948_v10  ;;  %v954_v18 = vld [vmem:[%s1080_s15 + $0x38] sm:$0xff]   ;;  %v957_v19 = vld [vmem:[%s1082_s16 + $0x8] sm:$0xff]   ;;  %v372_v21 = vld [vmem:[#allocation2 + $0x10] sm:$0xff] }
  0x2d   : > { %882 = vmatprep.mubr.bf16.mxu0 %v955_v13  ;;  %886 = vmatprep.mubr.bf16.mxu1 %v956_v14  ;;  %v958_v20 = vld [vmem:[%s1082_s16 + $0x18] sm:$0xff]   ;;  %v370_v23 = vld [vmem:[#allocation2] sm:$0xff]  ;;  %v371_v33 = vld [vmem:[#allocation2 + $0x8] sm:$0xff] }
  0x2e   : > { %v376_v22 = vld [vmem:[#allocation2 + $0x30] sm:$0xff]  ;;  %v374_v24 = vld [vmem:[#allocation2 + $0x20] sm:$0xff]  ;;  %v373_v27 = vld [vmem:[#allocation2 + $0x18] sm:$0xff] }
  0x2f   : > { %869 = vmatpush3.bf16.msra.mxu0 %v948_v10  ;;  %899 = vmatpush3.bf16.msra.mxu1 %v948_v10  ;;  %v377_v28 = vld [vmem:[#allocation2 + $0x38] sm:$0xff]  ;;  %v375_v34 = vld [vmem:[#allocation2 + $0x28] sm:$0xff]  ;;  %v790_v47 = vld [vmem:[%s1145_s2] ss:$0 sm:$0xff] (!%p789_p11) }
  0x30   : > { %870 = vmatprep.subr.bf16.mxu0 %v949_v11  ;;  %892 = vmatprep.subr.bf16.mxu1 %v949_v11  ;;  %v791_v50 = vld [vmem:[%s1146_s3] ss:$0 sm:$0xff] (!%p789_p11)  ;;  %v848_v57 = vld [vmem:[%s1147_s4 + $0x8] sm:$0xff] (!%p789_p11)   ;;  %v849_v0 = vld [vmem:[%s1147_s4 + $0x10] sm:$0xff] (!%p789_p11)  }
  0x31   : > { %v813_v51 = vld [vmem:[%s1147_s4] sm:$0xff] (!%p789_p11)   ;;  %v818_v62 = vunpack.c.l.bf16 (!%p789_p11), %v848_v57  ;;  %v819_v2 = vunpack.c.h.bf16 (!%p789_p11), %v848_v57  ;;  %v822_v9 = vunpack.c.l.bf16 (!%p789_p11), %v849_v0  ;;  %v823_v14 = vunpack.c.h.bf16 (!%p789_p11), %v849_v0 }
  0x32   : > { %v814_v53 = vunpack.c.l.bf16 (!%p789_p11), %v813_v51  ;;  %v815_v54 = vunpack.c.h.bf16 (!%p789_p11), %v813_v51 }
  0x33   : > { %871 = vmatpush3.bf16.msra.mxu0 %v949_v11  ;;  %900 = vmatpush3.bf16.msra.mxu1 %v949_v11 }
  0x34   : > { %872 = vmatprep.subr.bf16.mxu0 %v950_v12  ;;  %893 = vmatprep.subr.bf16.mxu1 %v950_v12 }
  0x37   : > { %873 = vmatpush3.bf16.msra.mxu0 %v950_v12  ;;  %901 = vmatpush3.bf16.msra.mxu1 %v950_v12 }
  0x38   : > { %874 = vmatprep.subr.bf16.mxu0 %v951_v15  ;;  %894 = vmatprep.subr.bf16.mxu1 %v951_v15 }
  0x3b   : > { %875 = vmatpush3.bf16.msra.mxu0 %v951_v15  ;;  %902 = vmatpush3.bf16.msra.mxu1 %v951_v15  ;;  %v850_v15 = vld [vmem:[%s1147_s4 + $0x18] sm:$0xff] (!%p789_p11)  }
  0x3c   : > { %876 = vmatprep.subr.bf16.mxu0 %v952_v16  ;;  %895 = vmatprep.subr.bf16.mxu1 %v952_v16 }
  0x3f   : > { %877 = vmatpush3.bf16.msra.mxu0 %v952_v16  ;;  %903 = vmatpush3.bf16.msra.mxu1 %v952_v16 }
  0x40   : > { %878 = vmatprep.subr.bf16.mxu0 %v953_v17  ;;  %896 = vmatprep.subr.bf16.mxu1 %v953_v17 }
  0x43   : > { %879 = vmatpush3.bf16.msra.mxu0 %v953_v17  ;;  %904 = vmatpush3.bf16.msra.mxu1 %v953_v17 }
  0x44   : > { %880 = vmatprep.subr.bf16.mxu0 %v954_v18  ;;  %897 = vmatprep.subr.bf16.mxu1 %v954_v18 }
  0x47   : > { %881 = vmatpush3.bf16.msra.mxu0 %v954_v18  ;;  %905 = vmatpush3.bf16.msra.mxu1 %v954_v18 }
  0x4a   : > { %883 = vmatmul.mubr.bf16.vlgmr.msra.gmra.mrb[0].mxu0 %v957_v19  ;;  %887 = vmatmul.mubr.bf16.vlgmr.msra.gmra.mrb[0].mxu1 %v958_v20 }
 0x11d   : > { %v884_v25 = vpop.f32.mrb[0].mxu0  ;;  %v888_v26 = vpop.f32.mrb[0].mxu1  ;;  %558 = sbr.rel (%p789_p11) target bundleno = 311 (0x137), region = 89 }
 0x11e   : > { %v541_v29 = vadd.f32 %v884_v25, %v372_v21  ;;  %v545_v30 = vadd.f32 %v888_v26, %v376_v22  ;;  %v508_v31 = vpop.f32.mrb[1].mxu0  ;;  %v524_v32 = vpop.f32.mrb[1].mxu1 }
 0x11f   : > { %v539_v35 = vadd.f32 %v508_v31, %v370_v23  ;;  %v543_v36 = vadd.f32 %v524_v32, %v374_v24  ;;  %v885_v37 = vpop.f32.mrb[2].mxu0  ;;  %v889_v38 = vpop.f32.mrb[2].mxu1  ;;  %v827_v31 = vunpack.c.h.bf16 (!%p789_p11), %v850_v15 }
 0x120   : > { %549 = vst [vmem:[#allocation2 + $0x10] sm:$0xff] %v541_v29  ;;  %553 = vst [vmem:[#allocation2 + $0x30] sm:$0xff] %v545_v30  ;;  %v542_v39 = vadd.f32 %v885_v37, %v373_v27  ;;  %v546_v40 = vadd.f32 %v889_v38, %v377_v28  ;;  %v511_v41 = vpop.f32.mrb[3].mxu0  ;;  %v527_v42 = vpop.f32.mrb[3].mxu1  ;;  %v826_v27 = vunpack.c.l.bf16 (!%p789_p11), %v850_v15 }
 0x121   : > { %547 = vst [vmem:[#allocation2] sm:$0xff] %v539_v35  ;;  %551 = vst [vmem:[#allocation2 + $0x20] sm:$0xff] %v543_v36  ;;  %v540_v43 = vadd.f32 %v511_v41, %v371_v33  ;;  %v544_v44 = vadd.f32 %v527_v42, %v375_v34 }
 0x122   : > { %550 = vst [vmem:[#allocation2 + $0x18] sm:$0xff] %v542_v39  ;;  %554 = vst [vmem:[#allocation2 + $0x38] sm:$0xff] %v546_v40 }
 0x123   : > { %548 = vst [vmem:[#allocation2 + $0x8] sm:$0xff] %v540_v43  ;;  %552 = vst [vmem:[#allocation2 + $0x28] sm:$0xff] %v544_v44 }
 0x127   : > { %v561_v52 = vld [vmem:[#allocation2 + $0x10] sm:$0xff] }
 0x128   : > { %v559_v45 = vld [vmem:[#allocation2] sm:$0xff]  ;;  %v576_v56 = vmul.f32 %v790_v47, %v561_v52  ;;  %v565_v5 = vld [vmem:[#allocation2 + $0x30] sm:$0xff] }
 0x129   : > { %v574_v48 = vmul.f32 %v790_v47, %v559_v45  ;;  %v562_v55 = vld [vmem:[#allocation2 + $0x18] sm:$0xff]  ;;  %v563_v58 = vld [vmem:[#allocation2 + $0x20] sm:$0xff]  ;;  %v580_v19 = vmul.f32 %v790_v47, %v565_v5 }
 0x12a   : > { %v560_v46 = vld [vmem:[#allocation2 + $0x8] sm:$0xff]  ;;  %v577_v61 = vmul.f32 %v790_v47, %v562_v55  ;;  %v591_v1 = vadd.f32 %v791_v50, %v576_v56  ;;  %v578_v3 = vmul.f32 %v790_v47, %v563_v58  ;;  %v566_v10 = vld [vmem:[#allocation2 + $0x38] sm:$0xff] }
 0x12b   : > { %v575_v49 = vmul.f32 %v790_v47, %v560_v46  ;;  %v589_v59 = vadd.f32 %v791_v50, %v574_v48  ;;  %v564_v63 = vld [vmem:[#allocation2 + $0x28] sm:$0xff]  ;;  %v581_v23 = vmul.f32 %v790_v47, %v566_v10  ;;  %v595_v26 = vadd.f32 %v791_v50, %v580_v19 }
 0x12c   : > { %v579_v4 = vmul.f32 %v790_v47, %v564_v63  ;;  %v592_v8 = vadd.f32 %v791_v50, %v577_v61  ;;  %v615_v11 = vadd.f32 %v818_v62, %v591_v1  ;;  %v593_v12 = vadd.f32 %v791_v50, %v578_v3 }
 0x12d   : > { %v590_v60 = vadd.f32 %v791_v50, %v575_v49  ;;  %v613_v6 = vadd.f32 %v814_v53, %v589_v59  ;;  %v596_v30 = vadd.f32 %v791_v50, %v581_v23  ;;  %v619_v33 = vadd.f32 %v826_v27, %v595_v26 }
 0x12e   : > { %v594_v13 = vadd.f32 %v791_v50, %v579_v4  ;;  %v616_v18 = vadd.f32 %v819_v2, %v592_v8  ;;  %v623_v20 = vmax.f32 %v615_v11, 0.0  ;;  %v617_v21 = vadd.f32 %v822_v9, %v593_v12 }
 0x12f   : > { %v614_v7 = vadd.f32 %v815_v54, %v590_v60  ;;  %v621_v16 = vmax.f32 %v613_v6, 0.0  ;;  %v620_v35 = vadd.f32 %v827_v31, %v596_v30  ;;  %v627_v36 = vmax.f32 %v619_v33, 0.0 }
 0x130   : > { %v618_v22 = vadd.f32 %v823_v14, %v594_v13  ;;  %v624_v25 = vmax.f32 %v616_v18, 0.0  ;;  %v625_v28 = vmax.f32 %v617_v21, 0.0 }
 0x131   : > { %v622_v17 = vmax.f32 %v614_v7, 0.0  ;;  %v628_v37 = vmax.f32 %v620_v35, 0.0 }
 0x132   : > { %v626_v29 = vmax.f32 %v618_v22, 0.0  ;;  %v836_v32 = vpack.c.bf16 %v624_v25, %v623_v20 }
 0x133   : > { %v831_v24 = vpack.c.bf16 %v622_v17, %v621_v16  ;;  %v846_v38 = vpack.c.bf16 %v628_v37, %v627_v36 }
 0x134   : > { %v841_v34 = vpack.c.bf16 %v626_v29, %v625_v28  ;;  %851 = vst [vmem:[%s1148_s5 + $0x8] sm:$0xff] %v836_v32  }
 0x135   : > { %832 = vst [vmem:[%s1148_s5] sm:$0xff] %v831_v24   ;;  %853 = vst [vmem:[%s1148_s5 + $0x18] sm:$0xff] %v846_v38  }
 0x136   : > { %852 = vst [vmem:[%s1148_s5 + $0x10] sm:$0xff] %v841_v34  }
 0x137 PF: > { %s15_s22 = sadd.s32 1, %s997_s22   ;;  %s1149_s18 = smov %s985_s19 }
 0x138   : > { %p12_p12 = scmp.ge.s32.totalorder %s15_s22, 7   ;;  %s1150_s19 = smov %s1065_s26 }
 0x139   : > { %s1151_s20 = smov %s993_s21  ;;  %s1152_s21 = smov %s1154_s23 }
 0x13a   :  { %14 = sbr.rel (!%p12_p12) target bundleno = 3 (0x3), region = 130 }

// kernel: resnet_forward.29
= control target key start
LH: loop header
LB: loop body
LE: loop exit
PB: predicated region body
PF: predicated region fallthrough
CT: control target
= control target key end

     0   :  { %s712_s15 = smov 0   ;;  %s714_s16 = smov 0   ;;  %s803_s0 = inlined_call_operand.vmem [shape: bf16[16,640], index: 0, kind: input, shape index: {}]   ;;  %s804_s1 = inlined_call_operand.vmem [shape: bf16[640,128], index: 1, kind: input, shape index: {}]   ;;  %s805_s2 = inlined_call_operand.vmem [shape: f32[1,128], index: 2, kind: input, shape index: {}]   ;;  %s806_s3 = inlined_call_operand.vmem [shape: f32[1,128], index: 3, kind: input, shape index: {}]   ;;  %s807_s4 = inlined_call_operand.vmem [shape: bf16[16,128], index: 4, kind: output, shape index: {}]  }
   0x1   :  { %s716_s17 = smov 0   ;;  %s718_s18 = smov 0  }
   0x2   :  { %s720_s19 = smov 0  }
   0x3 LB: > { %s23_s20 = sadd.s32 1, %s678_s18  ;;  %p42_p1 = scmp.ne.s32.totalorder %s670_s16, %s666_s15  ;;  %s682_s19 = sphi %s720_s19, %s14_s19   ;;  %s678_s18 = sphi %s718_s18, %s811_s18   ;;  %s674_s17 = sphi %s716_s17, %s810_s17   ;;  %s670_s16 = sphi %s714_s16, %s809_s16   ;;  %s666_s15 = sphi %s712_s15, %s808_s15  }
   0x4   : > { %p24_p0 = scmp.ge.s32.totalorder %s23_s20, 5  ;;  %p43_p2 = scmp.eq.s32.totalorder %s682_s19, 0 }
   0x5   : > { %s35_s22 = sadd.s32 1, %s670_s16  ;;  %p530_p5 = scmp.ge.s32.totalorder %s682_s19, 5 }
   0x6   : > { %s813_s20 = smov (%p24_p0, %s23_s20), 0  ;;  %p44_p3 = por %p43_p2, %p42_p1 }
   0x7   : > { %s31_s21 = ssub.s32 %s678_s18, %s813_s20  ;;  %168 = sbr.rel (%p530_p5) target bundleno = 21 (0x15), region = 24 }
   0x8   : > { %p33_p4 = scmp.eq.s32.totalorder %s31_s21, 0 }
   0xa   : > { %s747_s23 = scalar_select %p33_p4, %s670_s16, %s35_s22  }
   0xe   : > { %171 = sbr.rel (!%p44_p3) target bundleno = 21 (0x15), region = 28  ;;  %s173_s24 = sand.u32 (%p44_p3), 1, %s670_s16  }
   0xf   : > { %s532_s25 = sshll.u32 (%p44_p3), %s678_s18, 2  ;;  %s531_s26 = sshll.u32 (%p44_p3), %s173_s24, 3 }
  0x10   : > { %s180_s29 = scalar_lea.vmem (%p44_p3), %s803_s0, %s532_s25  ;;  %s175_s30 = scalar_lea.vmem (%p44_p3), [#allocation3], %s531_s26 }
  0x11   : > { %v196_v0 = vld [vmem:[%s180_s29] sm:$0xf] (%p44_p3)  ;;  %v198_v1 = vld [vmem:[%s180_s29 + $0x14] sm:$0xf] (%p44_p3) }
  0x12   : > { %197 = vst [vmem:[%s175_s30] sm:$0xf] (%p44_p3), %v196_v0  ;;  %199 = vst [vmem:[%s175_s30 + $0x4] sm:$0xf] (%p44_p3), %v198_v1 }
  0x15 PF: > { %p533_p6 = scmp.ge.s32.totalorder %s682_s19, 1  ;;  %p234_p7 = scmp.lt.s32.totalorder %s682_s19, 6 }
  0x17   : > { %p235_p8 = pnand %p533_p6, %p234_p7 }
  0x18   : > { %s241_s5 = sand.u32 (!%p235_p8), 1, %s666_s15   ;;  %s535_s6 = sshll.u32 (!%p235_p8), %s674_s17, 4 }
  0x19   : > { %238 = sbr.rel (%p235_p8) target bundleno = 305 (0x131), region = 73  ;;  %s759_s7 = sshll.u32 (!%p235_p8), %s241_s5, 3 }
  0x1a   : > { %p273_p9 = scmp.lt.s32.totalorder (!%p235_p8), %s535_s6, 79  ;;  %s243_s12 = scalar_lea.vmem (!%p235_p8), [#allocation3], %s759_s7 }
  0x1b   : > { %p537_p10 = scmp.ne.s32.totalorder (!%p235_p8), %s674_s17, 0 }
  0x20   : > { %s815_s6 = smov (!%p273_p9, %s535_s6), 79  ;;  %288 = sbr.rel (%p537_p10) target bundleno = 39 (0x27), region = 81 }
  0x21   : > { %s536_s8 = sshll.u32 %s815_s6, 2  ;;  %v684_v2 = vmov (!%p537_p10), 0.0  }
  0x22   : > { %s764_s11 = scalar_lea.vmem %s804_s1, %s536_s8  ;;  %289 = vst [vmem:[#allocation2] sm:$0xff] (!%p537_p10), %v684_v2  ;;  %290 = vst [vmem:[#allocation2 + $0x8] sm:$0xff] (!%p537_p10), %v684_v2 }
  0x27 PF: > { %v635_v3 = vld [vmem:[%s764_s11] sm:$0xff]   ;;  %v685_v4 = vmov 0.0   ;;  %v636_v5 = vld [vmem:[%s764_s11 + $0x8] sm:$0xff]   ;;  %vm686_vm0 = vmmov 0   ;;  %v637_v6 = vld [vmem:[%s764_s11 + $0x10] sm:$0xff]   ;;  %p547_p11 = scmp.ne.s32.totalorder %s674_s17, 4 }
  0x28   : > { %572 = vmatprep.subr.bf16.mxu0 %v685_v4  ;;  %588 = vmatprep.mubr.msk.bf16.mxu0 %vm686_vm0, %v685_v4  ;;  %v638_v7 = vld [vmem:[%s764_s11 + $0x18] sm:$0xff]   ;;  %v639_v8 = vld [vmem:[%s764_s11 + $0x20] sm:$0xff]   ;;  %v640_v9 = vld [vmem:[%s764_s11 + $0x28] sm:$0xff]  }
  0x29   : > { %573 = vmatpush3.bf16.msra.mxu0 %v635_v3  ;;  %v641_v10 = vld [vmem:[%s764_s11 + $0x30] sm:$0xff]   ;;  %v642_v11 = vld [vmem:[%s764_s11 + $0x38] sm:$0xff]   ;;  %v291_v13 = vld [vmem:[#allocation2] sm:$0xff] }
  0x2a   : > { %574 = vmatprep.subr.bf16.mxu0 %v685_v4  ;;  %v643_v12 = vld [vmem:[%s243_s12] sm:$0xff]   ;;  %v292_v15 = vld [vmem:[#allocation2 + $0x8] sm:$0xff]  ;;  %v548_v23 = vld [vmem:[%s805_s2] ss:$0 sm:$0xff] (!%p547_p11) }
  0x2b   : > { %v549_v26 = vld [vmem:[%s806_s3] ss:$0 sm:$0xff] (!%p547_p11) }
  0x2d   : > { %575 = vmatpush3.bf16.msra.mxu0 %v636_v5 }
  0x2e   : > { %576 = vmatprep.subr.bf16.mxu0 %v685_v4 }
  0x31   : > { %577 = vmatpush3.bf16.msra.mxu0 %v637_v6 }
  0x32   : > { %578 = vmatprep.subr.bf16.mxu0 %v685_v4 }
  0x35   : > { %579 = vmatpush3.bf16.msra.mxu0 %v638_v7 }
  0x36   : > { %580 = vmatprep.subr.bf16.mxu0 %v685_v4 }
  0x39   : > { %581 = vmatpush3.bf16.msra.mxu0 %v639_v8 }
  0x3a   : > { %582 = vmatprep.subr.bf16.mxu0 %v685_v4 }
  0x3d   : > { %583 = vmatpush3.bf16.msra.mxu0 %v640_v9 }
  0x3e   : > { %584 = vmatprep.subr.bf16.mxu0 %v685_v4 }
  0x41   : > { %585 = vmatpush3.bf16.msra.mxu0 %v641_v10 }
  0x42   : > { %586 = vmatprep.subr.bf16.mxu0 %v685_v4 }
  0x45   : > { %587 = vmatpush3.bf16.msra.mxu0 %v642_v11 }
  0x48   : > { %589 = vmatmul.mubr.bf16.vlgmr.msra.gmra.mrb[0].mxu0 %v643_v12 }
 0x11a   : > { %413 = sbr.rel (%p547_p11) target bundleno = 305 (0x131), region = 85 }
 0x11b   : > { %v399_v14 = vpop.f32.mrb[0].mxu0 }
 0x11c   : > { %v406_v16 = vadd.f32 %v399_v14, %v291_v13  ;;  %v590_v17 = vpop.f32.mrb[1].mxu0 }
 0x11d   : > { %v402_v18 = vpop.f32.mrb[2].mxu0 }
 0x11e   : > { %408 = vst [vmem:[#allocation2] sm:$0xff] %v406_v16  ;;  %v407_v19 = vadd.f32 %v402_v18, %v292_v15  ;;  %v591_v20 = vpop.f32.mrb[3].mxu0 }
 0x120   : > { %409 = vst [vmem:[#allocation2 + $0x8] sm:$0xff] %v407_v19 }
 0x125   : > { %v414_v21 = vld [vmem:[#allocation2] sm:$0xff] }
 0x126   : > { %v423_v24 = vmul.f32 %v548_v23, %v414_v21 }
 0x127   : > { %v415_v22 = vld [vmem:[#allocation2 + $0x8] sm:$0xff] }
 0x128   : > { %v424_v25 = vmul.f32 %v548_v23, %v415_v22  ;;  %v432_v27 = vadd.f32 %v549_v26, %v423_v24 }
 0x12a   : > { %v433_v28 = vadd.f32 %v549_v26, %v424_v25  ;;  %v434_v29 = vmax.f32 %v432_v27, 0.0 }
 0x12c   : > { %v435_v30 = vmax.f32 %v433_v28, 0.0 }
 0x12e   : > { %v561_v31 = vpack.c.bf16 %v435_v30, %v434_v29 }
 0x130   : > { %562 = vst [vmem:[%s807_s4] sm:$0xff] %v561_v31  }
 0x131 PF: > { %s14_s19 = sadd.s32 1, %s682_s19   ;;  %s808_s15 = smov %s670_s16 }
 0x132   : > { %p11_p12 = scmp.ge.s32.totalorder %s14_s19, 7   ;;  %s809_s16 = smov %s747_s23 }
 0x133   : > { %s810_s17 = smov %s678_s18  ;;  %s811_s18 = smov %s813_s20 }
 0x134   :  { %13 = sbr.rel (!%p11_p12) target bundleno = 3 (0x3), region = 123 }

// kernel: resnet_forward.32
= control target key start
LH: loop header
LB: loop body
LE: loop exit
PB: predicated region body
PF: predicated region fallthrough
CT: control target
= control target key end

     0   :  { %10 = vsyncpa [#allocation5], 0  ;;  %s1358_s0 = inlined_call_operand.vmem [shape: bf16[16,1152], index: 0, kind: input, shape index: {}]   ;;  %s1359_s1 = inlined_call_operand.vmem [shape: bf16[1152,128], index: 1, kind: input, shape index: {}]   ;;  %s1360_s2 = inlined_call_operand.hbm [shape: f32[1,128], index: 2, kind: input, shape index: {}]   ;;  %s1361_s3 = inlined_call_operand.hbm [shape: f32[1,128], index: 3, kind: input, shape index: {}]   ;;  %s1362_s4 = inlined_call_operand.vmem [shape: bf16[16,128], index: 4, kind: input, shape index: {}]   ;;  %s1363_s5 = inlined_call_operand.vmem [shape: bf16[16,128], index: 5, kind: output, shape index: {}]  }
   0x1   :  { %11 = vsyncpa [#allocation7], 0  ;;  %s1171_s18 = smov 0   ;;  %s1173_s19 = smov 0  }
   0x2   :  { %s1175_s20 = smov 0   ;;  %s1177_s21 = smov 0  }
   0x3   :  { %s1179_s22 = smov 0  }
   0x4 LB: > { %s823_s23 = sadd.s32 4294967295, %s1134_s22   ;;  %s26_s24 = sadd.s32 1, %s1130_s21  ;;  %s1134_s22 = sphi %s1179_s22, %s17_s22   ;;  %s1130_s21 = sphi %s1177_s21, %s1377_s21   ;;  %s1126_s20 = sphi %s1175_s20, %s1376_s20   ;;  %s1122_s19 = sphi %s1173_s19, %s1375_s19   ;;  %s1118_s18 = sphi %s1171_s18, %s1374_s18  }
   0x5   : > { %p27_p0 = scmp.ge.s32.totalorder %s26_s24, 3  ;;  %s38_s25 = sadd.s32 1, %s1122_s19 }
   0x6   : > { %p45_p1 = scmp.ne.s32.totalorder %s1122_s19, %s1118_s18  ;;  %p46_p2 = scmp.eq.s32.totalorder %s1134_s22, 0 }
   0x7   : > { %s1379_s24 = smov (%p27_p0, %s26_s24), 0  ;;  %p824_p4 = scmp.ge.s32.totalorder %s1134_s22, 1 }
   0x8   : > { %p1204_p3 = por %p46_p2, %p45_p1  ;;  %s34_s27 = ssub.s32 %s1130_s21, %s1379_s24 }
   0x9   : > { %p182_p5 = scmp.lt.s32.totalorder %s1134_s22, 4  ;;  %p36_p6 = scmp.eq.s32.totalorder %s34_s27, 0 }
   0xa   : > { %s1367_s26 = scalar_select %p1204_p3, 1, 0 }
   0xb   : > { %p1212_p7 = pnand %p824_p4, %p182_p5  ;;  %p1216_p8 = scmp.eq.s32.totalorder %s823_s23, 0 }
   0xc   : > { %s1221_s30 = scalar_select %p36_p6, %s1122_s19, %s38_s25  }
   0xd   : > { %s1368_s28 = scalar_select %p1212_p7, 1, 0 }
   0xe   : > { %s1369_s29 = scalar_select %p1216_p8, 1, 0 }
   0xf   : > { %p948_p9 = pneg %p1212_p7  ;;  %s1136_s6 = smov [#allocation4]  }
  0x10   : > { %s195_s7 = sshll.u32 %s1136_s6, 4  ;;  %s1137_s9 = smov [#allocation6]   ;;  %s196_s7 = int_to_ptr.vmem [resolvable:$true] %s195_s7 }
  0x11   : > { %p1227_p10 = pnand %p1216_p8, %p948_p9  ;;  %s206_s10 = sshll.u32 %s1137_s9, 4  ;;  %s1231_s10 = int_to_ptr.vmem [resolvable:$true] %s206_s10 }
  0x12   : > { %s1032_s13 = scalar_lea.hbm %s1360_s2, 16 }
  0x13   : > { %p1033_p11 = scmp.ne.s32.totalorder %s1360_s2, %s1032_s13  ;;  %p1034_p12 = pneg %p1227_p10 }
  0x14   : > { %p1039_p1 = scmp.lt.u32.totalorder %s1032_s13, %s1360_s2 }
  0x15   : > { %p1035_p13 = pnand %p1034_p12, %p1033_p11 }
  0x17   : > { %p1036_p0 = pneg %p1035_p13 }
  0x19   : > { %p1041_p2 = pnand %p1039_p1, %p1036_p0 }
  0x1b   : > { %1044 = shalt.err (!%p1041_p2)
}
  0x1c   : > { %s1045_s23 = scalar_lea.vmem %s196_s7, 16  ;;  %s1052_s25 = scalar_lea.vmem %s196_s7, 32 }
  0x1d   : > { %p1046_p4 = scmp.ne.s32.totalorder %s196_s7, %s1045_s23  ;;  %p1053_p9 = scmp.lt.s32.totalorder %s196_s7, %s196_s7 }
  0x1e   : > { %p1054_p8 = scmp.lt.s32.totalorder %s1052_s25, %s1045_s23 }
  0x1f   : > { %p1048_p5 = pnand %p1046_p4, %p1034_p12 }
  0x20   : > { %p1055_p7 = por %p1054_p8, %p1053_p9 }
  0x21   : > { %p1049_p6 = pneg %p1048_p5 }
  0x23   : > { %p1056_p3 = pnand %p1055_p7, %p1049_p6 }
  0x25   : > { %1059 = shalt.err (!%p1056_p3)
}
  0x26   : > { %951 = dma.hbm_to_vmem [thread:$0]  (!%p1227_p10), %s1360_s2, 16, %s196_s7, [#allocation5]  }
  0x27   : > { %s1060_s12 = scalar_lea.hbm %s1361_s3, 16 }
  0x28   : > { %p1061_p11 = scmp.ne.s32.totalorder %s1361_s3, %s1060_s12  ;;  %p1067_p3 = scmp.lt.u32.totalorder %s1060_s12, %s1361_s3 }
  0x2a   : > { %p1063_p8 = pnand %p1061_p11, %p1034_p12 }
  0x2c   : > { %p1064_p7 = pneg %p1063_p8 }
  0x2e   : > { %p1069_p13 = pnand %p1067_p3, %p1064_p7 }
  0x30   : > { %1072 = shalt.err (!%p1069_p13)
}
  0x31   : > { %s1073_s7 = scalar_lea.vmem %s1231_s10, 16  ;;  %s1080_s17 = scalar_lea.vmem %s1231_s10, 32 }
  0x32   : > { %p1074_p0 = scmp.ne.s32.totalorder %s1231_s10, %s1073_s7  ;;  %p1081_p4 = scmp.lt.s32.totalorder %s1231_s10, %s1231_s10 }
  0x33   : > { %p1082_p5 = scmp.lt.s32.totalorder %s1080_s17, %s1073_s7 }
  0x34   : > { %p1076_p1 = pnand %p1074_p0, %p1034_p12 }
  0x35   : > { %p1083_p6 = por %p1082_p5, %p1081_p4 }
  0x36   : > { %p1077_p2 = pneg %p1076_p1 }
  0x38   : > { %p1084_p9 = pnand %p1083_p6, %p1077_p2 }
  0x3a   : > { %1087 = shalt.err (!%p1084_p9)
}
  0x3b   : > { %954 = dma.hbm_to_vmem [thread:$0]  (!%p1227_p10), %s1361_s3, 16, %s1231_s10, [#allocation7]  }
  0x3c   : > { %p828_p11 = scmp.ge.s32.totalorder %s1134_s22, 3 }
  0x3d   : > { %p1371_p12 = scmp.ne.s32.totalorder (!%p828_p11), %s1367_s26, 0 }
  0x3e   : > { %222 = sbr.rel (%p828_p11) target bundleno = 76 (0x4c), region = 28 }
  0x45   : > { %225 = sbr.rel (!%p1371_p12) target bundleno = 76 (0x4c), region = 32  ;;  %s227_s27 = sand.u32 (%p1371_p12), 1, %s1122_s19  }
  0x46   : > { %s875_s6 = smul.u32 (%p1371_p12), 12, %s1130_s21 }
  0x47   : > { %s938_s9 = smul.u32 (%p1371_p12), 24, %s227_s27 }
  0x48   : > { %s235_s8 = scalar_lea.vmem (%p1371_p12), %s1358_s0, %s875_s6 }
  0x49   : > { %v250_v0 = vld [vmem:[%s235_s8] sm:$0xff] (%p1371_p12)  ;;  %v830_v2 = vld [vmem:[%s235_s8 + $0x8] sm:$0xf] (%p1371_p12)  ;;  %s229_s13 = scalar_lea.vmem (%p1371_p12), [#allocation3], %s938_s9  ;;  %v832_v3 = vld [vmem:[%s235_s8 + $0x2c] sm:$0xf] (%p1371_p12) }
  0x4a   : > { %v252_v1 = vld [vmem:[%s235_s8 + $0x24] sm:$0xff] (%p1371_p12)  ;;  %251 = vst [vmem:[%s229_s13] sm:$0xff] (%p1371_p12), %v250_v0  ;;  %831 = vst [vmem:[%s229_s13 + $0x8] sm:$0xf] (%p1371_p12), %v830_v2 }
  0x4b   : > { %253 = vst [vmem:[%s229_s13 + $0xc] sm:$0xff] (%p1371_p12), %v252_v1  ;;  %833 = vst [vmem:[%s229_s13 + $0x14] sm:$0xf] (%p1371_p12), %v832_v3 }
  0x4c PF: > { %p1372_p10 = scmp.ne.s32.totalorder %s1368_s28, 0 }
  0x4d   : > { %s285_s26 = sand.u32 (!%p1372_p10), 1, %s1118_s18   ;;  %p1373_p8 = scmp.ne.s32.totalorder (!%p1372_p10), %s1369_s29, 0 }
  0x4e   : > { %282 = sbr.rel (%p1372_p10) target bundleno = 370 (0x172), region = 62 }
  0x4f   : > { %s939_s10 = smul.u32 (!%p1372_p10), 24, %s285_s26 }
  0x51   : > { %s1292_s14 = scalar_lea.vmem (!%p1372_p10), [#allocation3], %s939_s10 }
  0x55   : > { %1109 = dma.done.wait (%p1373_p8), [#allocation5], 16  }
  0x56   : > { %1111 = vsyncadd (%p1373_p8), [#allocation5], 4294967280 }
  0x57   : > { %1113 = dma.done.wait (%p1373_p8), [#allocation7], 16  }
  0x58   : > { %1115 = vsyncadd (%p1373_p8), [#allocation7], 4294967280  ;;  %s332_s28 = smul.u32 48, %s1126_s20  ;;  %p838_p3 = scmp.ne.s32.totalorder %s1126_s20, 0 }
  0x59   : > { %v1138_v4 = vmov (!%p838_p3), 0.0  }
  0x5a   : > { %p333_p7 = scmp.lt.s32.totalorder %s332_s28, 143  ;;  %354 = sbr.rel (%p838_p3) target bundleno = 97 (0x61), region = 78  ;;  %355 = vst [vmem:[#allocation2] sm:$0xff] (!%p838_p3), %v1138_v4  ;;  %356 = vst [vmem:[#allocation2 + $0x8] sm:$0xff] (!%p838_p3), %v1138_v4 }
  0x5c   : > { %s1381_s28 = smov (!%p333_p7, %s332_s28), 143 }
  0x5d   : > { %s837_s15 = sshll.u32 %s1381_s28, 2 }
  0x5e   : > { %s1306_s7 = scalar_lea.vmem %s1359_s1, %s837_s15 }
  0x61 PF: > { %v1004_v5 = vld [vmem:[%s1306_s7 + $0x40] sm:$0xff]   ;;  %v1139_v6 = vmov 0.0   ;;  %vm1140_vm0 = vmmov 0   ;;  %v1007_v9 = vld [vmem:[%s1306_s7 + $0x48] sm:$0xff]   ;;  %v1010_v12 = vld [vmem:[%s1306_s7 + $0x50] sm:$0xff]   ;;  %p866_p13 = scmp.ne.s32.totalorder %s1126_s20, 2 }
  0x62   : > { %918 = vmatprep.subr.bf16.mxu1 %v1139_v6  ;;  %v1005_v7 = vld [vmem:[%s1306_s7] sm:$0xff]   ;;  %887 = vmatprep.subr.bf16.mxu0 %v1004_v5  ;;  %v1008_v10 = vld [vmem:[%s1306_s7 + $0x8] sm:$0xff]   ;;  %v1011_v13 = vld [vmem:[%s1306_s7 + $0x10] sm:$0xff]  }
  0x63   : > { %v1006_v8 = vld [vmem:[%s1306_s7 + $0x80] sm:$0xff]   ;;  %934 = vmatprep.mubr.msk.bf16.mxu1 %vm1140_vm0, %v1139_v6  ;;  %888 = vmatpush3.bf16.msra.mxu0 %v1005_v7  ;;  %v1009_v11 = vld [vmem:[%s1306_s7 + $0x88] sm:$0xff]   ;;  %v1012_v14 = vld [vmem:[%s1306_s7 + $0x90] sm:$0xff]  }
  0x64   : > { %919 = vmatpush3.bf16.msra.mxu1 %v1006_v8  ;;  %889 = vmatprep.subr.bf16.mxu0 %v1007_v9  ;;  %v1013_v15 = vld [vmem:[%s1306_s7 + $0x58] sm:$0xff]   ;;  %v1016_v18 = vld [vmem:[%s1306_s7 + $0x60] sm:$0xff]   ;;  %v1019_v21 = vld [vmem:[%s1306_s7 + $0x68] sm:$0xff]  }
  0x65   : > { %920 = vmatprep.subr.bf16.mxu1 %v1139_v6  ;;  %v1014_v16 = vld [vmem:[%s1306_s7 + $0x18] sm:$0xff]   ;;  %v1017_v19 = vld [vmem:[%s1306_s7 + $0x20] sm:$0xff]   ;;  %v1020_v22 = vld [vmem:[%s1306_s7 + $0x28] sm:$0xff]  }
  0x66   : > { %v1015_v17 = vld [vmem:[%s1306_s7 + $0x98] sm:$0xff]   ;;  %v1018_v20 = vld [vmem:[%s1306_s7 + $0xa0] sm:$0xff]   ;;  %v1021_v23 = vld [vmem:[%s1306_s7 + $0xa8] sm:$0xff]  }
  0x67   : > { %890 = vmatpush3.bf16.msra.mxu0 %v1008_v10  ;;  %v1022_v24 = vld [vmem:[%s1306_s7 + $0x70] sm:$0xff]   ;;  %v1025_v27 = vld [vmem:[%s1306_s7 + $0x78] sm:$0xff]   ;;  %v357_v39 = vld [vmem:[#allocation2] sm:$0xff] }
  0x68   : > { %921 = vmatpush3.bf16.msra.mxu1 %v1009_v11  ;;  %891 = vmatprep.subr.bf16.mxu0 %v1010_v12  ;;  %v1023_v25 = vld [vmem:[%s1306_s7 + $0x30] sm:$0xff]   ;;  %v1026_v29 = vld [vmem:[%s1306_s7 + $0x38] sm:$0xff]   ;;  %v358_v45 = vld [vmem:[#allocation2 + $0x8] sm:$0xff] }
  0x69   : > { %922 = vmatprep.subr.bf16.mxu1 %v1139_v6  ;;  %v1024_v26 = vld [vmem:[%s1306_s7 + $0xb0] sm:$0xff]   ;;  %v1027_v30 = vld [vmem:[%s1306_s7 + $0xb8] sm:$0xff]   ;;  %v867_v51 = vld [vmem:[#allocation4] ss:$0 sm:$0xff] (!%p866_p13) }
  0x6a   : > { %v1030_v28 = vld [vmem:[%s1292_s14 + $0x4] ss:$12 sps:$4 sm:$0xff]   ;;  %v1028_v31 = vld [vmem:[%s1292_s14] ss:$12 sps:$4 sm:$0xff]   ;;  %v1031_v32 = vld [vmem:[%s1292_s14 + $0x8] ss:$12 sps:$4 sm:$0xff]  }
  0x6b   : > { %892 = vmatpush3.bf16.msra.mxu0 %v1011_v13  ;;  %603 = vmatprep.mubr.bf16.mxu0 %v1030_v28  ;;  %v868_v54 = vld [vmem:[#allocation6] ss:$0 sm:$0xff] (!%p866_p13) }
  0x6c   : > { %923 = vmatpush3.bf16.msra.mxu1 %v1012_v14  ;;  %893 = vmatprep.subr.bf16.mxu0 %v1013_v15  ;;  %v879_v55 = vld [vmem:[%s1362_s4] sm:$0xff] (!%p866_p13)  }
  0x6d   : > { %924 = vmatprep.subr.bf16.mxu1 %v1139_v6  ;;  %v880_v56 = vunpack.c.l.bf16 (!%p866_p13), %v879_v55  ;;  %v881_v57 = vunpack.c.h.bf16 (!%p866_p13), %v879_v55 }
  0x6f   : > { %894 = vmatpush3.bf16.msra.mxu0 %v1014_v16 }
  0x70   : > { %925 = vmatpush3.bf16.msra.mxu1 %v1015_v17  ;;  %895 = vmatprep.subr.bf16.mxu0 %v1016_v18 }
  0x71   : > { %926 = vmatprep.subr.bf16.mxu1 %v1139_v6 }
  0x73   : > { %896 = vmatpush3.bf16.msra.mxu0 %v1017_v19 }
  0x74   : > { %927 = vmatpush3.bf16.msra.mxu1 %v1018_v20  ;;  %897 = vmatprep.subr.bf16.mxu0 %v1019_v21 }
  0x75   : > { %928 = vmatprep.subr.bf16.mxu1 %v1139_v6 }
  0x77   : > { %898 = vmatpush3.bf16.msra.mxu0 %v1020_v22 }
  0x78   : > { %929 = vmatpush3.bf16.msra.mxu1 %v1021_v23  ;;  %899 = vmatprep.subr.bf16.mxu0 %v1022_v24 }
  0x79   : > { %930 = vmatprep.subr.bf16.mxu1 %v1139_v6 }
  0x7b   : > { %900 = vmatpush3.bf16.msra.mxu0 %v1023_v25 }
  0x7c   : > { %931 = vmatpush3.bf16.msra.mxu1 %v1024_v26  ;;  %901 = vmatprep.subr.bf16.mxu0 %v1025_v27 }
  0x7d   : > { %932 = vmatprep.subr.bf16.mxu1 %v1139_v6 }
  0x7f   : > { %902 = vmatpush3.bf16.msra.mxu0 %v1026_v29 }
  0x80   : > { %933 = vmatpush3.bf16.msra.mxu1 %v1027_v30 }
  0x82   : > { %604 = vmatmul.mubr.bf16.vlgmr.msra.gmra.mrb[0].mxu0 %v1028_v31 }
  0x83   : > { %935 = vmatmul.mubr.bf16.vlgmr.msra.gmra.mrb[0].mxu1 %v1031_v32 }
 0x155   : > { %v903_v33 = vpop.f32.mrb[0].mxu0 }
 0x156   : > { %v646_v34 = vpop.f32.mrb[0].mxu1  ;;  %v904_v35 = vpop.f32.mrb[1].mxu0 }
 0x157   : > { %v905_v36 = vadd.f32 %v904_v35, %v903_v33  ;;  %v936_v37 = vpop.f32.mrb[1].mxu1  ;;  %v906_v38 = vpop.f32.mrb[2].mxu0 }
 0x158   : > { %v649_v40 = vpop.f32.mrb[2].mxu1  ;;  %v907_v41 = vpop.f32.mrb[3].mxu0 }
 0x159   : > { %v647_v42 = vadd.f32 %v905_v36, %v646_v34  ;;  %v908_v43 = vadd.f32 %v907_v41, %v906_v38  ;;  %v937_v44 = vpop.f32.mrb[3].mxu1  ;;  %660 = sbr.rel (%p866_p13) target bundleno = 370 (0x172), region = 82 }
 0x15b   : > { %v653_v46 = vadd.f32 %v647_v42, %v357_v39  ;;  %v650_v47 = vadd.f32 %v908_v43, %v649_v40 }
 0x15d   : > { %655 = vst [vmem:[#allocation2] sm:$0xff] %v653_v46  ;;  %v654_v48 = vadd.f32 %v650_v47, %v358_v45 }
 0x15f   : > { %656 = vst [vmem:[#allocation2 + $0x8] sm:$0xff] %v654_v48 }
 0x164   : > { %v661_v49 = vld [vmem:[#allocation2] sm:$0xff] }
 0x165   : > { %v670_v52 = vmul.f32 %v867_v51, %v661_v49 }
 0x166   : > { %v662_v50 = vld [vmem:[#allocation2 + $0x8] sm:$0xff] }
 0x167   : > { %v671_v53 = vmul.f32 %v867_v51, %v662_v50  ;;  %v679_v58 = vadd.f32 %v868_v54, %v670_v52 }
 0x169   : > { %v680_v59 = vadd.f32 %v868_v54, %v671_v53  ;;  %v685_v60 = vadd.f32 %v880_v56, %v679_v58 }
 0x16b   : > { %v686_v61 = vadd.f32 %v881_v57, %v680_v59  ;;  %v687_v62 = vmax.f32 %v685_v60, 0.0 }
 0x16d   : > { %v688_v63 = vmax.f32 %v686_v61, 0.0 }
 0x16f   : > { %v885_v0 = vpack.c.bf16 %v688_v63, %v687_v62 }
 0x171   : > { %886 = vst [vmem:[%s1363_s5] sm:$0xff] %v885_v0  }
 0x172 PF: > { %s17_s22 = sadd.s32 1, %s1134_s22   ;;  %s1374_s18 = smov %s1122_s19 }
 0x173   : > { %p14_p0 = scmp.ge.s32.totalorder %s17_s22, 5   ;;  %s1375_s19 = smov %s1221_s30 }
 0x174   : > { %s1376_s20 = smov %s1130_s21  ;;  %s1377_s21 = smov %s1379_s24 }
 0x175   :  { %16 = sbr.rel (!%p14_p0) target bundleno = 4 (0x4), region = 130 }
 0x17c   :  { %721 = vsyncpa [#allocation5], 1 }
 0x17d   :  { %723 = vsyncpa [#allocation5 + $0x1], 1 }
 0x17e   :  { %724 = vsyncpa [#allocation7], 1 }

// kernel: resnet_forward.28
= control target key start
LH: loop header
LB: loop body
LE: loop exit
PB: predicated region body
PF: predicated region fallthrough
CT: control target
= control target key end

     0   :  { %v240_v0 = vmov 0.0   ;;  %vm241_vm0 = vmmov 0   ;;  %s303_s1 = inlined_call_operand.vmem [shape: bf16[128,128], index: 1, kind: input, shape index: {}]   ;;  %s304_s0 = inlined_call_operand.vmem [shape: bf16[16,128], index: 0, kind: input, shape index: {}]   ;;  %s305_s2 = inlined_call_operand.vmem [shape: f32[1,128], index: 2, kind: input, shape index: {}]   ;;  %s306_s3 = inlined_call_operand.vmem [shape: f32[1,128], index: 3, kind: input, shape index: {}]   ;;  %s307_s4 = inlined_call_operand.vmem [shape: bf16[16,128], index: 4, kind: output, shape index: {}]  }
   0x1   :  { %209 = vmatprep.subr.bf16.mxu0 %v240_v0  ;;  %v231_v1 = vld [vmem:[%s303_s1] sm:$0xff]   ;;  %225 = vmatprep.mubr.msk.bf16.mxu0 %vm241_vm0, %v240_v0  ;;  %v232_v2 = vld [vmem:[%s303_s1 + $0x8] sm:$0xff]   ;;  %v233_v3 = vld [vmem:[%s303_s1 + $0x10] sm:$0xff]  }
   0x2   :  { %210 = vmatpush3.bf16.msra.mxu0 %v231_v1  ;;  %v234_v4 = vld [vmem:[%s303_s1 + $0x18] sm:$0xff]   ;;  %v235_v5 = vld [vmem:[%s303_s1 + $0x20] sm:$0xff]   ;;  %v236_v6 = vld [vmem:[%s303_s1 + $0x28] sm:$0xff]  }
   0x3   :  { %211 = vmatprep.subr.bf16.mxu0 %v240_v0  ;;  %v237_v7 = vld [vmem:[%s303_s1 + $0x30] sm:$0xff]   ;;  %v238_v8 = vld [vmem:[%s303_s1 + $0x38] sm:$0xff]   ;;  %v239_v9 = vld [vmem:[%s304_s0] sm:$0xff]  }
   0x4   :  { %v189_v10 = vld [vmem:[%s305_s2] ss:$0 sm:$0xff] }
   0x5   :  { %v190_v14 = vld [vmem:[%s306_s3] ss:$0 sm:$0xff] }
   0x6   :  { %212 = vmatpush3.bf16.msra.mxu0 %v232_v2 }
   0x7   :  { %213 = vmatprep.subr.bf16.mxu0 %v240_v0 }
   0xa   :  { %214 = vmatpush3.bf16.msra.mxu0 %v233_v3 }
   0xb   :  { %215 = vmatprep.subr.bf16.mxu0 %v240_v0 }
   0xe   :  { %216 = vmatpush3.bf16.msra.mxu0 %v234_v4 }
   0xf   :  { %217 = vmatprep.subr.bf16.mxu0 %v240_v0 }
  0x12   :  { %218 = vmatpush3.bf16.msra.mxu0 %v235_v5 }
  0x13   :  { %219 = vmatprep.subr.bf16.mxu0 %v240_v0 }
  0x16   :  { %220 = vmatpush3.bf16.msra.mxu0 %v236_v6 }
  0x17   :  { %221 = vmatprep.subr.bf16.mxu0 %v240_v0 }
  0x1a   :  { %222 = vmatpush3.bf16.msra.mxu0 %v237_v7 }
  0x1b   :  { %223 = vmatprep.subr.bf16.mxu0 %v240_v0 }
  0x1e   :  { %224 = vmatpush3.bf16.msra.mxu0 %v238_v8 }
  0x21   :  { %226 = vmatmul.mubr.bf16.vlgmr.msra.gmra.mrb[0].mxu0 %v239_v9 }
  0xf4   :  { %v132_v11 = vpop.f32.mrb[0].mxu0 }
  0xf5   :  { %v155_v12 = vmul.f32 %v189_v10, %v132_v11  ;;  %v227_v13 = vpop.f32.mrb[1].mxu0 }
  0xf6   :  { %v135_v15 = vpop.f32.mrb[2].mxu0 }
  0xf7   :  { %v156_v16 = vmul.f32 %v189_v10, %v135_v15  ;;  %v228_v17 = vpop.f32.mrb[3].mxu0  ;;  %v164_v18 = vadd.f32 %v190_v14, %v155_v12 }
  0xf9   :  { %v165_v19 = vadd.f32 %v190_v14, %v156_v16 }
  0xfb   :  { %v198_v20 = vpack.c.bf16 %v165_v19, %v164_v18 }
  0xfd   :  { %199 = vst [vmem:[%s307_s4] sm:$0xff] %v198_v20  }

// kernel: resnet_forward.30
= control target key start
LH: loop header
LB: loop body
LE: loop exit
PB: predicated region body
PF: predicated region fallthrough
CT: control target
= control target key end

     0   :  { %s1032_s18 = smov 0   ;;  %s1034_s19 = smov 0   ;;  %s1142_s0 = inlined_call_operand.vmem [shape: bf16[16,1152], index: 0, kind: input, shape index: {}]   ;;  %s1143_s1 = inlined_call_operand.vmem [shape: bf16[1152,128], index: 1, kind: input, shape index: {}]   ;;  %s1144_s2 = inlined_call_operand.vmem [shape: f32[1,128], index: 2, kind: input, shape index: {}]   ;;  %s1145_s3 = inlined_call_operand.vmem [shape: f32[1,128], index: 3, kind: input, shape index: {}]   ;;  %s1146_s4 = inlined_call_operand.vmem [shape: bf16[16,128], index: 4, kind: input, shape index: {}]   ;;  %s1147_s5 = inlined_call_operand.vmem [shape: bf16[16,128], index: 5, kind: output, shape index: {}]  }
   0x1   :  { %s1036_s20 = smov 0   ;;  %s1038_s21 = smov 0  }
   0x2   :  { %s1040_s22 = smov 0  }
   0x3 LB: > { %s24_s23 = sadd.s32 1, %s993_s21  ;;  %p43_p1 = scmp.ne.s32.totalorder %s985_s19, %s981_s18  ;;  %s997_s22 = sphi %s1040_s22, %s15_s22   ;;  %s993_s21 = sphi %s1038_s21, %s1151_s21   ;;  %s989_s20 = sphi %s1036_s20, %s1150_s20   ;;  %s985_s19 = sphi %s1034_s19, %s1149_s19   ;;  %s981_s18 = sphi %s1032_s18, %s1148_s18  }
   0x4   : > { %p25_p0 = scmp.ge.s32.totalorder %s24_s23, 3  ;;  %p44_p2 = scmp.eq.s32.totalorder %s997_s22, 0 }
   0x5   : > { %s36_s25 = sadd.s32 1, %s985_s19  ;;  %p778_p5 = scmp.ge.s32.totalorder %s997_s22, 3 }
   0x6   : > { %s1153_s23 = smov (%p25_p0, %s24_s23), 0  ;;  %p45_p3 = por %p44_p2, %p43_p1 }
   0x7   : > { %s32_s24 = ssub.s32 %s993_s21, %s1153_s23  ;;  %204 = sbr.rel (%p778_p5) target bundleno = 21 (0x15), region = 28 }
   0x8   : > { %p34_p4 = scmp.eq.s32.totalorder %s32_s24, 0 }
   0xa   : > { %s1067_s26 = scalar_select %p34_p4, %s985_s19, %s36_s25  }
   0xe   : > { %207 = sbr.rel (!%p45_p3) target bundleno = 21 (0x15), region = 32  ;;  %s209_s27 = sand.u32 (%p45_p3), 1, %s985_s19  }
   0xf   : > { %s823_s28 = smul.u32 (%p45_p3), 12, %s993_s21 }
  0x10   : > { %s886_s29 = smul.u32 (%p45_p3), 24, %s209_s27 }
  0x11   : > { %s217_s7 = scalar_lea.vmem (%p45_p3), %s1142_s0, %s823_s28 }
  0x12   : > { %v232_v0 = vld [vmem:[%s217_s7] sm:$0xff] (%p45_p3)  ;;  %v780_v2 = vld [vmem:[%s217_s7 + $0x8] sm:$0xf] (%p45_p3)  ;;  %s211_s8 = scalar_lea.vmem (%p45_p3), [#allocation3], %s886_s29  ;;  %v782_v3 = vld [vmem:[%s217_s7 + $0x2c] sm:$0xf] (%p45_p3) }
  0x13   : > { %v234_v1 = vld [vmem:[%s217_s7 + $0x24] sm:$0xff] (%p45_p3)  ;;  %233 = vst [vmem:[%s211_s8] sm:$0xff] (%p45_p3), %v232_v0  ;;  %781 = vst [vmem:[%s211_s8 + $0x8] sm:$0xf] (%p45_p3), %v780_v2 }
  0x14   : > { %235 = vst [vmem:[%s211_s8 + $0xc] sm:$0xff] (%p45_p3), %v234_v1  ;;  %783 = vst [vmem:[%s211_s8 + $0x14] sm:$0xf] (%p45_p3), %v782_v3 }
  0x15 PF: > { %p784_p6 = scmp.ge.s32.totalorder %s997_s22, 1  ;;  %p260_p7 = scmp.lt.s32.totalorder %s997_s22, 4 }
  0x17   : > { %p261_p8 = pnand %p784_p6, %p260_p7 }
  0x18   : > { %s267_s9 = sand.u32 (!%p261_p8), 1, %s981_s18   ;;  %s306_s10 = smul.u32 (!%p261_p8), 48, %s989_s20 }
  0x19   : > { %264 = sbr.rel (%p261_p8) target bundleno = 312 (0x138), region = 62  ;;  %p786_p10 = scmp.ne.s32.totalorder (!%p261_p8), %s989_s20, 0 }
  0x1a   : > { %s887_s11 = smul.u32 (!%p261_p8), 24, %s267_s9  ;;  %p307_p9 = scmp.lt.s32.totalorder (!%p261_p8), %s306_s10, 143 }
  0x1c   : > { %s1084_s16 = scalar_lea.vmem (!%p261_p8), [#allocation3], %s887_s11 }
  0x20   : > { %s1155_s10 = smov (!%p307_p9, %s306_s10), 143  ;;  %328 = sbr.rel (%p786_p10) target bundleno = 39 (0x27), region = 70 }
  0x21   : > { %s785_s12 = sshll.u32 %s1155_s10, 2  ;;  %v999_v4 = vmov (!%p786_p10), 0.0  }
  0x22   : > { %s1082_s15 = scalar_lea.vmem %s1143_s1, %s785_s12  ;;  %329 = vst [vmem:[#allocation2] sm:$0xff] (!%p786_p10), %v999_v4  ;;  %330 = vst [vmem:[#allocation2 + $0x8] sm:$0xff] (!%p786_p10), %v999_v4 }
  0x27 PF: > { %v931_v5 = vld [vmem:[%s1082_s15 + $0x40] sm:$0xff]   ;;  %v1000_v6 = vmov 0.0   ;;  %vm1001_vm0 = vmmov 0   ;;  %v934_v9 = vld [vmem:[%s1082_s15 + $0x48] sm:$0xff]   ;;  %v937_v12 = vld [vmem:[%s1082_s15 + $0x50] sm:$0xff]   ;;  %p814_p11 = scmp.ne.s32.totalorder %s989_s20, 2 }
  0x28   : > { %866 = vmatprep.subr.bf16.mxu1 %v1000_v6  ;;  %v932_v7 = vld [vmem:[%s1082_s15] sm:$0xff]   ;;  %835 = vmatprep.subr.bf16.mxu0 %v931_v5  ;;  %v935_v10 = vld [vmem:[%s1082_s15 + $0x8] sm:$0xff]   ;;  %v938_v13 = vld [vmem:[%s1082_s15 + $0x10] sm:$0xff]  }
  0x29   : > { %v933_v8 = vld [vmem:[%s1082_s15 + $0x80] sm:$0xff]   ;;  %882 = vmatprep.mubr.msk.bf16.mxu1 %vm1001_vm0, %v1000_v6  ;;  %836 = vmatpush3.bf16.msra.mxu0 %v932_v7  ;;  %v936_v11 = vld [vmem:[%s1082_s15 + $0x88] sm:$0xff]   ;;  %v939_v14 = vld [vmem:[%s1082_s15 + $0x90] sm:$0xff]  }
  0x2a   : > { %867 = vmatpush3.bf16.msra.mxu1 %v933_v8  ;;  %837 = vmatprep.subr.bf16.mxu0 %v934_v9  ;;  %v940_v15 = vld [vmem:[%s1082_s15 + $0x58] sm:$0xff]   ;;  %v943_v18 = vld [vmem:[%s1082_s15 + $0x60] sm:$0xff]   ;;  %v946_v21 = vld [vmem:[%s1082_s15 + $0x68] sm:$0xff]  }
  0x2b   : > { %868 = vmatprep.subr.bf16.mxu1 %v1000_v6  ;;  %v941_v16 = vld [vmem:[%s1082_s15 + $0x18] sm:$0xff]   ;;  %v944_v19 = vld [vmem:[%s1082_s15 + $0x20] sm:$0xff]   ;;  %v947_v22 = vld [vmem:[%s1082_s15 + $0x28] sm:$0xff]  }
  0x2c   : > { %v942_v17 = vld [vmem:[%s1082_s15 + $0x98] sm:$0xff]   ;;  %v945_v20 = vld [vmem:[%s1082_s15 + $0xa0] sm:$0xff]   ;;  %v948_v23 = vld [vmem:[%s1082_s15 + $0xa8] sm:$0xff]  }
  0x2d   : > { %838 = vmatpush3.bf16.msra.mxu0 %v935_v10  ;;  %v949_v24 = vld [vmem:[%s1082_s15 + $0x70] sm:$0xff]   ;;  %v952_v27 = vld [vmem:[%s1082_s15 + $0x78] sm:$0xff]   ;;  %v331_v39 = vld [vmem:[#allocation2] sm:$0xff] }
  0x2e   : > { %869 = vmatpush3.bf16.msra.mxu1 %v936_v11  ;;  %839 = vmatprep.subr.bf16.mxu0 %v937_v12  ;;  %v950_v25 = vld [vmem:[%s1082_s15 + $0x30] sm:$0xff]   ;;  %v953_v29 = vld [vmem:[%s1082_s15 + $0x38] sm:$0xff]   ;;  %v332_v45 = vld [vmem:[#allocation2 + $0x8] sm:$0xff] }
  0x2f   : > { %870 = vmatprep.subr.bf16.mxu1 %v1000_v6  ;;  %v951_v26 = vld [vmem:[%s1082_s15 + $0xb0] sm:$0xff]   ;;  %v954_v30 = vld [vmem:[%s1082_s15 + $0xb8] sm:$0xff]   ;;  %v815_v51 = vld [vmem:[%s1144_s2] ss:$0 sm:$0xff] (!%p814_p11) }
  0x30   : > { %v957_v28 = vld [vmem:[%s1084_s16 + $0x4] ss:$12 sps:$4 sm:$0xff]   ;;  %v955_v31 = vld [vmem:[%s1084_s16] ss:$12 sps:$4 sm:$0xff]   ;;  %v958_v32 = vld [vmem:[%s1084_s16 + $0x8] ss:$12 sps:$4 sm:$0xff]  }
  0x31   : > { %840 = vmatpush3.bf16.msra.mxu0 %v938_v13  ;;  %577 = vmatprep.mubr.bf16.mxu0 %v957_v28  ;;  %v816_v54 = vld [vmem:[%s1145_s3] ss:$0 sm:$0xff] (!%p814_p11) }
  0x32   : > { %871 = vmatpush3.bf16.msra.mxu1 %v939_v14  ;;  %841 = vmatprep.subr.bf16.mxu0 %v940_v15  ;;  %v827_v55 = vld [vmem:[%s1146_s4] sm:$0xff] (!%p814_p11)  }
  0x33   : > { %872 = vmatprep.subr.bf16.mxu1 %v1000_v6  ;;  %v828_v56 = vunpack.c.l.bf16 (!%p814_p11), %v827_v55  ;;  %v829_v57 = vunpack.c.h.bf16 (!%p814_p11), %v827_v55 }
  0x35   : > { %842 = vmatpush3.bf16.msra.mxu0 %v941_v16 }
  0x36   : > { %873 = vmatpush3.bf16.msra.mxu1 %v942_v17  ;;  %843 = vmatprep.subr.bf16.mxu0 %v943_v18 }
  0x37   : > { %874 = vmatprep.subr.bf16.mxu1 %v1000_v6 }
  0x39   : > { %844 = vmatpush3.bf16.msra.mxu0 %v944_v19 }
  0x3a   : > { %875 = vmatpush3.bf16.msra.mxu1 %v945_v20  ;;  %845 = vmatprep.subr.bf16.mxu0 %v946_v21 }
  0x3b   : > { %876 = vmatprep.subr.bf16.mxu1 %v1000_v6 }
  0x3d   : > { %846 = vmatpush3.bf16.msra.mxu0 %v947_v22 }
  0x3e   : > { %877 = vmatpush3.bf16.msra.mxu1 %v948_v23  ;;  %847 = vmatprep.subr.bf16.mxu0 %v949_v24 }
  0x3f   : > { %878 = vmatprep.subr.bf16.mxu1 %v1000_v6 }
  0x41   : > { %848 = vmatpush3.bf16.msra.mxu0 %v950_v25 }
  0x42   : > { %879 = vmatpush3.bf16.msra.mxu1 %v951_v26  ;;  %849 = vmatprep.subr.bf16.mxu0 %v952_v27 }
  0x43   : > { %880 = vmatprep.subr.bf16.mxu1 %v1000_v6 }
  0x45   : > { %850 = vmatpush3.bf16.msra.mxu0 %v953_v29 }
  0x46   : > { %881 = vmatpush3.bf16.msra.mxu1 %v954_v30 }
  0x48   : > { %578 = vmatmul.mubr.bf16.vlgmr.msra.gmra.mrb[0].mxu0 %v955_v31 }
  0x49   : > { %883 = vmatmul.mubr.bf16.vlgmr.msra.gmra.mrb[0].mxu1 %v958_v32 }
 0x11b   : > { %v851_v33 = vpop.f32.mrb[0].mxu0 }
 0x11c   : > { %v620_v34 = vpop.f32.mrb[0].mxu1  ;;  %v852_v35 = vpop.f32.mrb[1].mxu0 }
 0x11d   : > { %v853_v36 = vadd.f32 %v852_v35, %v851_v33  ;;  %v884_v37 = vpop.f32.mrb[1].mxu1  ;;  %v854_v38 = vpop.f32.mrb[2].mxu0 }
 0x11e   : > { %v623_v40 = vpop.f32.mrb[2].mxu1  ;;  %v855_v41 = vpop.f32.mrb[3].mxu0 }
 0x11f   : > { %v621_v42 = vadd.f32 %v853_v36, %v620_v34  ;;  %v856_v43 = vadd.f32 %v855_v41, %v854_v38  ;;  %v885_v44 = vpop.f32.mrb[3].mxu1  ;;  %634 = sbr.rel (%p814_p11) target bundleno = 312 (0x138), region = 74 }
 0x121   : > { %v627_v46 = vadd.f32 %v621_v42, %v331_v39  ;;  %v624_v47 = vadd.f32 %v856_v43, %v623_v40 }
 0x123   : > { %629 = vst [vmem:[#allocation2] sm:$0xff] %v627_v46  ;;  %v628_v48 = vadd.f32 %v624_v47, %v332_v45 }
 0x125   : > { %630 = vst [vmem:[#allocation2 + $0x8] sm:$0xff] %v628_v48 }
 0x12a   : > { %v635_v49 = vld [vmem:[#allocation2] sm:$0xff] }
 0x12b   : > { %v644_v52 = vmul.f32 %v815_v51, %v635_v49 }
 0x12c   : > { %v636_v50 = vld [vmem:[#allocation2 + $0x8] sm:$0xff] }
 0x12d   : > { %v645_v53 = vmul.f32 %v815_v51, %v636_v50  ;;  %v653_v58 = vadd.f32 %v816_v54, %v644_v52 }
 0x12f   : > { %v654_v59 = vadd.f32 %v816_v54, %v645_v53  ;;  %v659_v60 = vadd.f32 %v828_v56, %v653_v58 }
 0x131   : > { %v660_v61 = vadd.f32 %v829_v57, %v654_v59  ;;  %v661_v62 = vmax.f32 %v659_v60, 0.0 }
 0x133   : > { %v662_v63 = vmax.f32 %v660_v61, 0.0 }
 0x135   : > { %v833_v0 = vpack.c.bf16 %v662_v63, %v661_v62 }
 0x137   : > { %834 = vst [vmem:[%s1147_s5] sm:$0xff] %v833_v0  }
 0x138 PF: > { %s15_s22 = sadd.s32 1, %s997_s22   ;;  %s1148_s18 = smov %s985_s19 }
 0x139   : > { %p12_p12 = scmp.ge.s32.totalorder %s15_s22, 5   ;;  %s1149_s19 = smov %s1067_s26 }
 0x13a   : > { %s1150_s20 = smov %s993_s21  ;;  %s1151_s21 = smov %s1153_s23 }
 0x13b   :  { %14 = sbr.rel (!%p12_p12) target bundleno = 3 (0x3), region = 121 }

// kernel: resnet_forward.31
= control target key start
LH: loop header
LB: loop body
LE: loop exit
PB: predicated region body
PF: predicated region fallthrough
CT: control target
= control target key end

     0   :  { %s952_s15 = smov 0   ;;  %s954_s16 = smov 0   ;;  %s1059_s0 = inlined_call_operand.vmem [shape: bf16[16,1152], index: 0, kind: input, shape index: {}]   ;;  %s1060_s1 = inlined_call_operand.vmem [shape: bf16[1152,128], index: 1, kind: input, shape index: {}]   ;;  %s1061_s2 = inlined_call_operand.vmem [shape: f32[1,128], index: 2, kind: input, shape index: {}]   ;;  %s1062_s3 = inlined_call_operand.vmem [shape: f32[1,128], index: 3, kind: input, shape index: {}]   ;;  %s1063_s4 = inlined_call_operand.vmem [shape: bf16[16,128], index: 4, kind: output, shape index: {}]  }
   0x1   :  { %s956_s17 = smov 0   ;;  %s958_s18 = smov 0  }
   0x2   :  { %s960_s19 = smov 0  }
   0x3 LB: > { %s23_s20 = sadd.s32 1, %s918_s18  ;;  %p42_p1 = scmp.ne.s32.totalorder %s910_s16, %s906_s15  ;;  %s922_s19 = sphi %s960_s19, %s14_s19   ;;  %s918_s18 = sphi %s958_s18, %s1067_s18   ;;  %s914_s17 = sphi %s956_s17, %s1066_s17   ;;  %s910_s16 = sphi %s954_s16, %s1065_s16   ;;  %s906_s15 = sphi %s952_s15, %s1064_s15  }
   0x4   : > { %p24_p0 = scmp.ge.s32.totalorder %s23_s20, 3  ;;  %p43_p2 = scmp.eq.s32.totalorder %s922_s19, 0 }
   0x5   : > { %s35_s22 = sadd.s32 1, %s910_s16  ;;  %p707_p5 = scmp.ge.s32.totalorder %s922_s19, 3 }
   0x6   : > { %s1069_s20 = smov (%p24_p0, %s23_s20), 0  ;;  %p44_p3 = por %p43_p2, %p42_p1 }
   0x7   : > { %s31_s21 = ssub.s32 %s918_s18, %s1069_s20  ;;  %168 = sbr.rel (%p707_p5) target bundleno = 21 (0x15), region = 24 }
   0x8   : > { %p33_p4 = scmp.eq.s32.totalorder %s31_s21, 0 }
   0xa   : > { %s987_s23 = scalar_select %p33_p4, %s910_s16, %s35_s22  }
   0xe   : > { %171 = sbr.rel (!%p44_p3) target bundleno = 21 (0x15), region = 28  ;;  %s173_s24 = sand.u32 (%p44_p3), 1, %s910_s16  }
   0xf   : > { %s752_s25 = smul.u32 (%p44_p3), 12, %s918_s18 }
  0x10   : > { %s811_s26 = smul.u32 (%p44_p3), 24, %s173_s24 }
  0x11   : > { %s181_s29 = scalar_lea.vmem (%p44_p3), %s1059_s0, %s752_s25 }
  0x12   : > { %v196_v0 = vld [vmem:[%s181_s29] sm:$0xff] (%p44_p3)  ;;  %v709_v2 = vld [vmem:[%s181_s29 + $0x8] sm:$0xf] (%p44_p3)  ;;  %s175_s30 = scalar_lea.vmem (%p44_p3), [#allocation3], %s811_s26  ;;  %v711_v3 = vld [vmem:[%s181_s29 + $0x2c] sm:$0xf] (%p44_p3) }
  0x13   : > { %v198_v1 = vld [vmem:[%s181_s29 + $0x24] sm:$0xff] (%p44_p3)  ;;  %197 = vst [vmem:[%s175_s30] sm:$0xff] (%p44_p3), %v196_v0  ;;  %710 = vst [vmem:[%s175_s30 + $0x8] sm:$0xf] (%p44_p3), %v709_v2 }
  0x14   : > { %199 = vst [vmem:[%s175_s30 + $0xc] sm:$0xff] (%p44_p3), %v198_v1  ;;  %712 = vst [vmem:[%s175_s30 + $0x14] sm:$0xf] (%p44_p3), %v711_v3 }
  0x15 PF: > { %p713_p6 = scmp.ge.s32.totalorder %s922_s19, 1  ;;  %p224_p7 = scmp.lt.s32.totalorder %s922_s19, 4 }
  0x17   : > { %p225_p8 = pnand %p713_p6, %p224_p7 }
  0x18   : > { %s231_s5 = sand.u32 (!%p225_p8), 1, %s906_s15   ;;  %s263_s6 = smul.u32 (!%p225_p8), 48, %s914_s17 }
  0x19   : > { %228 = sbr.rel (%p225_p8) target bundleno = 310 (0x136), region = 58  ;;  %p715_p10 = scmp.ne.s32.totalorder (!%p225_p8), %s914_s17, 0 }
  0x1a   : > { %s812_s7 = smul.u32 (!%p225_p8), 24, %s231_s5  ;;  %p264_p9 = scmp.lt.s32.totalorder (!%p225_p8), %s263_s6, 143 }
  0x1c   : > { %s1004_s12 = scalar_lea.vmem (!%p225_p8), [#allocation3], %s812_s7 }
  0x20   : > { %s1071_s6 = smov (!%p264_p9, %s263_s6), 143  ;;  %279 = sbr.rel (%p715_p10) target bundleno = 39 (0x27), region = 66 }
  0x21   : > { %s714_s8 = sshll.u32 %s1071_s6, 2  ;;  %v924_v4 = vmov (!%p715_p10), 0.0  }
  0x22   : > { %s1002_s11 = scalar_lea.vmem %s1060_s1, %s714_s8  ;;  %280 = vst [vmem:[#allocation2] sm:$0xff] (!%p715_p10), %v924_v4  ;;  %281 = vst [vmem:[#allocation2 + $0x8] sm:$0xff] (!%p715_p10), %v924_v4 }
  0x27 PF: > { %v856_v5 = vld [vmem:[%s1002_s11 + $0x40] sm:$0xff]   ;;  %v925_v6 = vmov 0.0   ;;  %vm926_vm0 = vmmov 0   ;;  %v859_v9 = vld [vmem:[%s1002_s11 + $0x48] sm:$0xff]   ;;  %v862_v12 = vld [vmem:[%s1002_s11 + $0x50] sm:$0xff]   ;;  %p743_p11 = scmp.ne.s32.totalorder %s914_s17, 2 }
  0x28   : > { %791 = vmatprep.subr.bf16.mxu1 %v925_v6  ;;  %v857_v7 = vld [vmem:[%s1002_s11] sm:$0xff]   ;;  %760 = vmatprep.subr.bf16.mxu0 %v856_v5  ;;  %v860_v10 = vld [vmem:[%s1002_s11 + $0x8] sm:$0xff]   ;;  %v863_v13 = vld [vmem:[%s1002_s11 + $0x10] sm:$0xff]  }
  0x29   : > { %v858_v8 = vld [vmem:[%s1002_s11 + $0x80] sm:$0xff]   ;;  %807 = vmatprep.mubr.msk.bf16.mxu1 %vm926_vm0, %v925_v6  ;;  %761 = vmatpush3.bf16.msra.mxu0 %v857_v7  ;;  %v861_v11 = vld [vmem:[%s1002_s11 + $0x88] sm:$0xff]   ;;  %v864_v14 = vld [vmem:[%s1002_s11 + $0x90] sm:$0xff]  }
  0x2a   : > { %792 = vmatpush3.bf16.msra.mxu1 %v858_v8  ;;  %762 = vmatprep.subr.bf16.mxu0 %v859_v9  ;;  %v865_v15 = vld [vmem:[%s1002_s11 + $0x58] sm:$0xff]   ;;  %v868_v18 = vld [vmem:[%s1002_s11 + $0x60] sm:$0xff]   ;;  %v871_v21 = vld [vmem:[%s1002_s11 + $0x68] sm:$0xff]  }
  0x2b   : > { %793 = vmatprep.subr.bf16.mxu1 %v925_v6  ;;  %v866_v16 = vld [vmem:[%s1002_s11 + $0x18] sm:$0xff]   ;;  %v869_v19 = vld [vmem:[%s1002_s11 + $0x20] sm:$0xff]   ;;  %v872_v22 = vld [vmem:[%s1002_s11 + $0x28] sm:$0xff]  }
  0x2c   : > { %v867_v17 = vld [vmem:[%s1002_s11 + $0x98] sm:$0xff]   ;;  %v870_v20 = vld [vmem:[%s1002_s11 + $0xa0] sm:$0xff]   ;;  %v873_v23 = vld [vmem:[%s1002_s11 + $0xa8] sm:$0xff]  }
  0x2d   : > { %763 = vmatpush3.bf16.msra.mxu0 %v860_v10  ;;  %v874_v24 = vld [vmem:[%s1002_s11 + $0x70] sm:$0xff]   ;;  %v877_v27 = vld [vmem:[%s1002_s11 + $0x78] sm:$0xff]   ;;  %v282_v39 = vld [vmem:[#allocation2] sm:$0xff] }
  0x2e   : > { %794 = vmatpush3.bf16.msra.mxu1 %v861_v11  ;;  %764 = vmatprep.subr.bf16.mxu0 %v862_v12  ;;  %v875_v25 = vld [vmem:[%s1002_s11 + $0x30] sm:$0xff]   ;;  %v878_v29 = vld [vmem:[%s1002_s11 + $0x38] sm:$0xff]   ;;  %v283_v45 = vld [vmem:[#allocation2 + $0x8] sm:$0xff] }
  0x2f   : > { %795 = vmatprep.subr.bf16.mxu1 %v925_v6  ;;  %v876_v26 = vld [vmem:[%s1002_s11 + $0xb0] sm:$0xff]   ;;  %v879_v30 = vld [vmem:[%s1002_s11 + $0xb8] sm:$0xff]   ;;  %v744_v51 = vld [vmem:[%s1061_s2] ss:$0 sm:$0xff] (!%p743_p11) }
  0x30   : > { %v882_v28 = vld [vmem:[%s1004_s12 + $0x4] ss:$12 sps:$4 sm:$0xff]   ;;  %v880_v31 = vld [vmem:[%s1004_s12] ss:$12 sps:$4 sm:$0xff]   ;;  %v883_v32 = vld [vmem:[%s1004_s12 + $0x8] ss:$12 sps:$4 sm:$0xff]  }
  0x31   : > { %765 = vmatpush3.bf16.msra.mxu0 %v863_v13  ;;  %528 = vmatprep.mubr.bf16.mxu0 %v882_v28  ;;  %v745_v54 = vld [vmem:[%s1062_s3] ss:$0 sm:$0xff] (!%p743_p11) }
  0x32   : > { %796 = vmatpush3.bf16.msra.mxu1 %v864_v14  ;;  %766 = vmatprep.subr.bf16.mxu0 %v865_v15 }
  0x33   : > { %797 = vmatprep.subr.bf16.mxu1 %v925_v6 }
  0x35   : > { %767 = vmatpush3.bf16.msra.mxu0 %v866_v16 }
  0x36   : > { %798 = vmatpush3.bf16.msra.mxu1 %v867_v17  ;;  %768 = vmatprep.subr.bf16.mxu0 %v868_v18 }
  0x37   : > { %799 = vmatprep.subr.bf16.mxu1 %v925_v6 }
  0x39   : > { %769 = vmatpush3.bf16.msra.mxu0 %v869_v19 }
  0x3a   : > { %800 = vmatpush3.bf16.msra.mxu1 %v870_v20  ;;  %770 = vmatprep.subr.bf16.mxu0 %v871_v21 }
  0x3b   : > { %801 = vmatprep.subr.bf16.mxu1 %v925_v6 }
  0x3d   : > { %771 = vmatpush3.bf16.msra.mxu0 %v872_v22 }
  0x3e   : > { %802 = vmatpush3.bf16.msra.mxu1 %v873_v23  ;;  %772 = vmatprep.subr.bf16.mxu0 %v874_v24 }
  0x3f   : > { %803 = vmatprep.subr.bf16.mxu1 %v925_v6 }
  0x41   : > { %773 = vmatpush3.bf16.msra.mxu0 %v875_v25 }
  0x42   : > { %804 = vmatpush3.bf16.msra.mxu1 %v876_v26  ;;  %774 = vmatprep.subr.bf16.mxu0 %v877_v27 }
  0x43   : > { %805 = vmatprep.subr.bf16.mxu1 %v925_v6 }
  0x45   : > { %775 = vmatpush3.bf16.msra.mxu0 %v878_v29 }
  0x46   : > { %806 = vmatpush3.bf16.msra.mxu1 %v879_v30 }
  0x48   : > { %529 = vmatmul.mubr.bf16.vlgmr.msra.gmra.mrb[0].mxu0 %v880_v31 }
  0x49   : > { %808 = vmatmul.mubr.bf16.vlgmr.msra.gmra.mrb[0].mxu1 %v883_v32 }
 0x11b   : > { %v776_v33 = vpop.f32.mrb[0].mxu0 }
 0x11c   : > { %v571_v34 = vpop.f32.mrb[0].mxu1  ;;  %v777_v35 = vpop.f32.mrb[1].mxu0 }
 0x11d   : > { %v778_v36 = vadd.f32 %v777_v35, %v776_v33  ;;  %v809_v37 = vpop.f32.mrb[1].mxu1  ;;  %v779_v38 = vpop.f32.mrb[2].mxu0 }
 0x11e   : > { %v574_v40 = vpop.f32.mrb[2].mxu1  ;;  %v780_v41 = vpop.f32.mrb[3].mxu0 }
 0x11f   : > { %v572_v42 = vadd.f32 %v778_v36, %v571_v34  ;;  %v781_v43 = vadd.f32 %v780_v41, %v779_v38  ;;  %v810_v44 = vpop.f32.mrb[3].mxu1  ;;  %585 = sbr.rel (%p743_p11) target bundleno = 310 (0x136), region = 70 }
 0x121   : > { %v578_v46 = vadd.f32 %v572_v42, %v282_v39  ;;  %v575_v47 = vadd.f32 %v781_v43, %v574_v40 }
 0x123   : > { %580 = vst [vmem:[#allocation2] sm:$0xff] %v578_v46  ;;  %v579_v48 = vadd.f32 %v575_v47, %v283_v45 }
 0x125   : > { %581 = vst [vmem:[#allocation2 + $0x8] sm:$0xff] %v579_v48 }
 0x12a   : > { %v586_v49 = vld [vmem:[#allocation2] sm:$0xff] }
 0x12b   : > { %v595_v52 = vmul.f32 %v744_v51, %v586_v49 }
 0x12c   : > { %v587_v50 = vld [vmem:[#allocation2 + $0x8] sm:$0xff] }
 0x12d   : > { %v596_v53 = vmul.f32 %v744_v51, %v587_v50  ;;  %v604_v55 = vadd.f32 %v745_v54, %v595_v52 }
 0x12f   : > { %v605_v56 = vadd.f32 %v745_v54, %v596_v53  ;;  %v606_v57 = vmax.f32 %v604_v55, 0.0 }
 0x131   : > { %v607_v58 = vmax.f32 %v605_v56, 0.0 }
 0x133   : > { %v758_v59 = vpack.c.bf16 %v607_v58, %v606_v57 }
 0x135   : > { %759 = vst [vmem:[%s1063_s4] sm:$0xff] %v758_v59  }
 0x136 PF: > { %s14_s19 = sadd.s32 1, %s922_s19   ;;  %s1064_s15 = smov %s910_s16 }
 0x137   : > { %p11_p12 = scmp.ge.s32.totalorder %s14_s19, 5   ;;  %s1065_s16 = smov %s987_s23 }
 0x138   : > { %s1066_s17 = smov %s918_s18  ;;  %s1067_s18 = smov %s1069_s20 }
 0x139   :  { %13 = sbr.rel (!%p11_p12) target bundleno = 3 (0x3), region = 114 }

// kernel: resnet_forward.33
= control target key start
LH: loop header
LB: loop body
LE: loop exit
PB: predicated region body
PF: predicated region fallthrough
CT: control target
= control target key end

     0   :  { %v257_v1 = vmov 0   ;;  %v175_v18 = vlaneseq  ;;  %s343_s1 = inlined_call_operand.vmem [shape: bf16[128,256], index: 1, kind: input, shape index: {}]   ;;  %s344_s0 = inlined_call_operand.vmem [shape: bf16[8,128], index: 0, kind: input, shape index: {}]   ;;  %s345_s2 = inlined_call_operand.vmem [shape: f32[1,256], index: 2, kind: input, shape index: {}]   ;;  %s346_s3 = inlined_call_operand.vmem [shape: f32[1,256], index: 3, kind: input, shape index: {}]   ;;  %s347_s4 = inlined_call_operand.vmem [shape: bf16[8,256], index: 4, kind: output, shape index: {}]  }
   0x1   :  { %v233_v0 = vld [vmem:[%s343_s1 + $0x4] ss:$8 sps:$4 sm:$0xff]   ;;  %155 = vmatprep.mubr.bf16.mxu0 %v257_v1  ;;  %v235_v2 = vld [vmem:[%s343_s1] ss:$8 sps:$4 sm:$0xff]   ;;  %v236_v3 = vld [vmem:[%s343_s1 + $0x14] ss:$8 sps:$4 sm:$0xff]  }
   0x2   :  { %123 = vmatprep.subr.bf16.mxu0 %v233_v0  ;;  %v238_v4 = vld [vmem:[%s343_s1 + $0x10] ss:$8 sps:$4 sm:$0xff]   ;;  %v239_v5 = vld [vmem:[%s343_s1 + $0x24] ss:$8 sps:$4 sm:$0xff]   ;;  %v241_v6 = vld [vmem:[%s343_s1 + $0x20] ss:$8 sps:$4 sm:$0xff]  }
   0x3   :  { %124 = vmatpush1.bf16.msra.mxu0 %v235_v2  ;;  %v242_v7 = vld [vmem:[%s343_s1 + $0x34] ss:$8 sps:$4 sm:$0xff]   ;;  %v244_v8 = vld [vmem:[%s343_s1 + $0x30] ss:$8 sps:$4 sm:$0xff]   ;;  %v245_v9 = vld [vmem:[%s343_s1 + $0x44] ss:$8 sps:$4 sm:$0xff]  }
   0x4   :  { %125 = vmatprep.subr.bf16.mxu0 %v236_v3  ;;  %v247_v10 = vld [vmem:[%s343_s1 + $0x40] ss:$8 sps:$4 sm:$0xff]   ;;  %v248_v11 = vld [vmem:[%s343_s1 + $0x54] ss:$8 sps:$4 sm:$0xff]   ;;  %v250_v12 = vld [vmem:[%s343_s1 + $0x50] ss:$8 sps:$4 sm:$0xff]  }
   0x5   :  { %v251_v13 = vld [vmem:[%s343_s1 + $0x64] ss:$8 sps:$4 sm:$0xff]   ;;  %v253_v14 = vld [vmem:[%s343_s1 + $0x60] ss:$8 sps:$4 sm:$0xff]   ;;  %v254_v15 = vld [vmem:[%s343_s1 + $0x74] ss:$8 sps:$4 sm:$0xff]  }
   0x6   :  { %v256_v16 = vld [vmem:[%s343_s1 + $0x70] ss:$8 sps:$4 sm:$0xff]   ;;  %v26_v17 = vld [vmem:[%s344_s0] sm:$0xf]  ;;  %v176_v19 = vshrl.u32 %v175_v18, 7 }
   0x7   :  { %126 = vmatpush1.bf16.msra.mxu0 %v238_v4  ;;  %v173_v21 = vld [vmem:[%s345_s2] sm:$0x3] }
   0x8   :  { %127 = vmatprep.subr.bf16.mxu0 %v239_v5  ;;  %v177_v20 = vsub.s32 0, %v176_v19  ;;  %v181_v22 = vsub.s32 1, %v176_v19  ;;  %v187_v23 = vld [vmem:[%s346_s3] sm:$0x3] }
   0xa   :  { %v178_v24 = vrot.slane %v173_v21, %v177_v20  ;;  %v182_v25 = vrot.slane %v173_v21, %v181_v22  ;;  %v192_v26 = vrot.slane %v187_v23, %v177_v20  ;;  %v196_v28 = vrot.slane %v187_v23, %v181_v22 }
   0xb   :  { %128 = vmatpush1.bf16.msra.mxu0 %v241_v6 }
   0xc   :  { %129 = vmatprep.subr.bf16.mxu0 %v242_v7 }
   0xf   :  { %130 = vmatpush1.bf16.msra.mxu0 %v244_v8 }
  0x10   :  { %131 = vmatprep.subr.bf16.mxu0 %v245_v9 }
  0x13   :  { %132 = vmatpush1.bf16.msra.mxu0 %v247_v10 }
  0x14   :  { %133 = vmatprep.subr.bf16.mxu0 %v248_v11 }
  0x17   :  { %134 = vmatpush1.bf16.msra.mxu0 %v250_v12 }
  0x18   :  { %135 = vmatprep.subr.bf16.mxu0 %v251_v13 }
  0x1b   :  { %136 = vmatpush1.bf16.msra.mxu0 %v253_v14 }
  0x1c   :  { %137 = vmatprep.subr.bf16.mxu0 %v254_v15 }
  0x1f   :  { %138 = vmatpush1.bf16.msra.mxu0 %v256_v16 }
  0x22   :  { %156 = vmatmul.mubr.bf16.vlgmr.msra.gmra.mrb[0].mxu0 %v26_v17 }
  0xf5   :  { %v157_v27 = vpop.f32.mrb[0].mxu0 }
  0xf6   :  { %v185_v29 = vmul.f32 %v178_v24, %v157_v27  ;;  %v159_v30 = vpop.f32.mrb[1].mxu0 }
  0xf7   :  { %v186_v31 = vmul.f32 %v182_v25, %v159_v30  ;;  %v161_v32 = vpop.f32.mrb[2].mxu0 }
  0xf8   :  { %v199_v33 = vadd.f32 %v192_v26, %v185_v29  ;;  %v162_v34 = vpop.f32.mrb[3].mxu0 }
  0xf9   :  { %v200_v35 = vadd.f32 %v196_v28, %v186_v31 }
  0xfb   :  { %v231_v36 = vpack.c.bf16 %v200_v35, %v199_v33 }
  0xfd   :  { %209 = vst [vmem:[%s347_s4] sm:$0xff] %v231_v36 }

// kernel: resnet_forward.34
= control target key start
LH: loop header
LB: loop body
LE: loop exit
PB: predicated region body
PF: predicated region fallthrough
CT: control target
= control target key end

     0   :  { %s989_s15 = smov 0   ;;  %s991_s16 = smov 0   ;;  %s1091_s0 = inlined_call_operand.vmem [shape: bf16[8,1152], index: 0, kind: input, shape index: {}]   ;;  %s1092_s1 = inlined_call_operand.vmem [shape: bf16[1152,256], index: 1, kind: input, shape index: {}]   ;;  %s1093_s2 = inlined_call_operand.vmem [shape: f32[1,256], index: 2, kind: input, shape index: {}]   ;;  %s1094_s3 = inlined_call_operand.vmem [shape: f32[1,256], index: 3, kind: input, shape index: {}]   ;;  %s1095_s4 = inlined_call_operand.vmem [shape: bf16[8,256], index: 4, kind: output, shape index: {}]  }
   0x1   :  { %s993_s17 = smov 0  }
   0x2 LB: > { %s23_s18 = sadd.s32 1, %s956_s16  ;;  %p774_p0 = scmp.ge.s32.totalorder %s960_s17, 1  ;;  %s960_s17 = sphi %s993_s17, %s14_s17   ;;  %s956_s16 = sphi %s991_s16, %s1097_s16   ;;  %s952_s15 = sphi %s989_s15, %s1096_s15  }
   0x3   : > { %p24_p1 = scmp.ge.s32.totalorder %s23_s18, 3  ;;  %p193_p2 = scmp.lt.s32.totalorder %s960_s17, 4 }
   0x5   : > { %s1099_s18 = smov (%p24_p1, %s23_s18), 0  ;;  %p194_p3 = pnand %p774_p0, %p193_p2 }
   0x6   : > { %s229_s19 = smul.u32 (!%p194_p3), 3, %s952_s15  ;;  %p778_p6 = scmp.ne.s32.totalorder (!%p194_p3), %s952_s15, 0 }
   0x7   : > { %197 = sbr.rel (%p194_p3) target bundleno = 323 (0x143), region = 36 }
   0x8   : > { %s239_s20 = smul.u32 (!%p194_p3), 48, %s952_s15  ;;  %p232_p4 = scmp.lt.s32.totalorder (!%p194_p3), %s229_s19, 8 }
   0xa   : > { %p240_p5 = scmp.lt.s32.totalorder (!%p194_p3), %s239_s20, 143 }
   0xe   : > { %s1101_s19 = smov (!%p232_p4, %s229_s19), 8  ;;  %s1103_s20 = smov (!%p240_p5, %s239_s20), 143 }
   0xf   : > { %s775_s21 = sshll.u32 %s1101_s19, 2  ;;  %s835_s25 = sshll.u32 %s1103_s20, 3  ;;  %v962_v0 = vmov (!%p778_p6), 0.0  }
  0x10   : > { %s1014_s24 = scalar_lea.vmem %s1091_s0, %s775_s21  ;;  %s1019_s28 = scalar_lea.vmem %s1092_s1, %s835_s25  ;;  %256 = vst [vmem:[#allocation2] sm:$0xff] (!%p778_p6), %v962_v0  ;;  %257 = vst [vmem:[#allocation2 + $0x8] sm:$0xff] (!%p778_p6), %v962_v0 }
  0x11   : > { %255 = sbr.rel (%p778_p6) target bundleno = 24 (0x18), region = 40 }
  0x18 PF: > { %v863_v1 = vld [vmem:[%s1019_s28 + $0x4] ss:$8 sps:$4 sm:$0xff]   ;;  %v865_v2 = vld [vmem:[%s1019_s28] ss:$8 sps:$4 sm:$0xff]   ;;  %v963_v3 = vmov 0   ;;  %p830_p7 = scmp.ne.s32.totalorder %s952_s15, 2 }
  0x19   : > { %634 = vmatprep.mubr.bf16.mxu1 %v963_v3  ;;  %561 = vmatprep.subr.bf16.mxu0 %v863_v1  ;;  %v866_v4 = vld [vmem:[%s1019_s28 + $0x14] ss:$8 sps:$4 sm:$0xff]   ;;  %v868_v5 = vld [vmem:[%s1019_s28 + $0x10] ss:$8 sps:$4 sm:$0xff]   ;;  %v869_v6 = vld [vmem:[%s1019_s28 + $0x24] ss:$8 sps:$4 sm:$0xff]  }
  0x1a   : > { %562 = vmatpush1.bf16.msra.mxu0 %v865_v2  ;;  %v871_v7 = vld [vmem:[%s1019_s28 + $0x20] ss:$8 sps:$4 sm:$0xff]   ;;  %v872_v8 = vld [vmem:[%s1019_s28 + $0x34] ss:$8 sps:$4 sm:$0xff]   ;;  %v874_v9 = vld [vmem:[%s1019_s28 + $0x30] ss:$8 sps:$4 sm:$0xff]  }
  0x1b   : > { %563 = vmatprep.subr.bf16.mxu0 %v866_v4  ;;  %v887_v10 = vld [vmem:[%s1019_s28 + $0x104] ss:$8 sps:$4 sm:$0xff]   ;;  %v889_v11 = vld [vmem:[%s1019_s28 + $0x100] ss:$8 sps:$4 sm:$0xff]   ;;  %v893_v13 = vld [vmem:[%s1019_s28 + $0x114] ss:$8 sps:$4 sm:$0xff]   ;;  %v655_v4 = vlaneseq (!%p830_p7) }
  0x1c   : > { %v875_v12 = vld [vmem:[%s1019_s28 + $0x44] ss:$8 sps:$4 sm:$0xff]   ;;  %602 = vmatprep.subr.bf16.mxu1 %v887_v10  ;;  %v895_v14 = vld [vmem:[%s1019_s28 + $0x110] ss:$8 sps:$4 sm:$0xff]   ;;  %v877_v15 = vld [vmem:[%s1019_s28 + $0x40] ss:$8 sps:$4 sm:$0xff]  }
  0x1d   : > { %603 = vmatpush1.bf16.msra.mxu1 %v889_v11  ;;  %v878_v16 = vld [vmem:[%s1019_s28 + $0x54] ss:$8 sps:$4 sm:$0xff]   ;;  %v899_v17 = vld [vmem:[%s1019_s28 + $0x124] ss:$8 sps:$4 sm:$0xff]   ;;  %v901_v18 = vld [vmem:[%s1019_s28 + $0x120] ss:$8 sps:$4 sm:$0xff]  }
  0x1e   : > { %564 = vmatpush1.bf16.msra.mxu0 %v868_v5  ;;  %604 = vmatprep.subr.bf16.mxu1 %v893_v13  ;;  %v880_v19 = vld [vmem:[%s1019_s28 + $0x50] ss:$8 sps:$4 sm:$0xff]   ;;  %v905_v20 = vld [vmem:[%s1019_s28 + $0x134] ss:$8 sps:$4 sm:$0xff]   ;;  %v881_v21 = vld [vmem:[%s1019_s28 + $0x64] ss:$8 sps:$4 sm:$0xff]  }
  0x1f   : > { %565 = vmatprep.subr.bf16.mxu0 %v869_v6  ;;  %v907_v22 = vld [vmem:[%s1019_s28 + $0x130] ss:$8 sps:$4 sm:$0xff]   ;;  %v883_v23 = vld [vmem:[%s1019_s28 + $0x60] ss:$8 sps:$4 sm:$0xff]   ;;  %v911_v24 = vld [vmem:[%s1019_s28 + $0x144] ss:$8 sps:$4 sm:$0xff]  }
  0x20   : > { %v884_v25 = vld [vmem:[%s1019_s28 + $0x74] ss:$8 sps:$4 sm:$0xff]   ;;  %v913_v26 = vld [vmem:[%s1019_s28 + $0x140] ss:$8 sps:$4 sm:$0xff]   ;;  %v886_v27 = vld [vmem:[%s1019_s28 + $0x70] ss:$8 sps:$4 sm:$0xff]  }
  0x21   : > { %605 = vmatpush1.bf16.msra.mxu1 %v895_v14  ;;  %v917_v28 = vld [vmem:[%s1019_s28 + $0x154] ss:$8 sps:$4 sm:$0xff]   ;;  %v890_v29 = vld [vmem:[%s1019_s28 + $0x84] ss:$8 sps:$4 sm:$0xff]   ;;  %v919_v30 = vld [vmem:[%s1019_s28 + $0x150] ss:$8 sps:$4 sm:$0xff]  }
  0x22   : > { %566 = vmatpush1.bf16.msra.mxu0 %v871_v7  ;;  %606 = vmatprep.subr.bf16.mxu1 %v899_v17  ;;  %v892_v31 = vld [vmem:[%s1019_s28 + $0x80] ss:$8 sps:$4 sm:$0xff]   ;;  %v923_v32 = vld [vmem:[%s1019_s28 + $0x164] ss:$8 sps:$4 sm:$0xff]   ;;  %v896_v33 = vld [vmem:[%s1019_s28 + $0x94] ss:$8 sps:$4 sm:$0xff]  }
  0x23   : > { %567 = vmatprep.subr.bf16.mxu0 %v872_v8  ;;  %v260_v34 = vld [vmem:[%s1014_s24] sm:$0xff]  ;;  %v898_v37 = vld [vmem:[%s1019_s28 + $0x90] ss:$8 sps:$4 sm:$0xff]   ;;  %v929_v38 = vld [vmem:[%s1019_s28 + $0x174] ss:$8 sps:$4 sm:$0xff]   ;;  %v656_v5 = vshrl.u32 (!%p830_p7), %v655_v4, 7 }
  0x24   : > { %v780_v35 = vcombine.high %v260_v34, %v260_v34  ;;  %v925_v36 = vld [vmem:[%s1019_s28 + $0x160] ss:$8 sps:$4 sm:$0xff]   ;;  %v902_v39 = vld [vmem:[%s1019_s28 + $0xa4] ss:$8 sps:$4 sm:$0xff]   ;;  %v931_v40 = vld [vmem:[%s1019_s28 + $0x170] ss:$8 sps:$4 sm:$0xff]   ;;  %v779_v53 = vcombine.low %v260_v34, %v260_v34 }
  0x25   : > { %607 = vmatpush1.bf16.msra.mxu1 %v901_v18  ;;  %v904_v41 = vld [vmem:[%s1019_s28 + $0xa0] ss:$8 sps:$4 sm:$0xff]   ;;  %v908_v42 = vld [vmem:[%s1019_s28 + $0xb4] ss:$8 sps:$4 sm:$0xff]   ;;  %v910_v44 = vld [vmem:[%s1019_s28 + $0xb0] ss:$8 sps:$4 sm:$0xff]  }
  0x26   : > { %568 = vmatpush1.bf16.msra.mxu0 %v874_v9  ;;  %608 = vmatprep.subr.bf16.mxu1 %v905_v20  ;;  %v935_v43 = vld [vmem:[%s1014_s24 + $0x8] ss:$0 sps:$4 sm:$0xff]   ;;  %v914_v45 = vld [vmem:[%s1019_s28 + $0xc4] ss:$8 sps:$4 sm:$0xff]   ;;  %v920_v47 = vld [vmem:[%s1019_s28 + $0xd4] ss:$8 sps:$4 sm:$0xff]  }
  0x27   : > { %569 = vmatprep.subr.bf16.mxu0 %v875_v12  ;;  %593 = vmatprep.mubr.bf16.mxu0 %v780_v35  ;;  %v916_v46 = vld [vmem:[%s1019_s28 + $0xc0] ss:$8 sps:$4 sm:$0xff]   ;;  %v922_v48 = vld [vmem:[%s1019_s28 + $0xd0] ss:$8 sps:$4 sm:$0xff]   ;;  %v926_v49 = vld [vmem:[%s1019_s28 + $0xe4] ss:$8 sps:$4 sm:$0xff]  }
  0x28   : > { %v928_v50 = vld [vmem:[%s1019_s28 + $0xe0] ss:$8 sps:$4 sm:$0xff]   ;;  %v932_v51 = vld [vmem:[%s1019_s28 + $0xf4] ss:$8 sps:$4 sm:$0xff]   ;;  %v934_v52 = vld [vmem:[%s1019_s28 + $0xf0] ss:$8 sps:$4 sm:$0xff]  }
  0x29   : > { %609 = vmatpush1.bf16.msra.mxu1 %v907_v22  ;;  %v258_v58 = vld [vmem:[#allocation2] sm:$0xff]  ;;  %v259_v61 = vld [vmem:[#allocation2 + $0x8] sm:$0xff]  ;;  %v657_v8 = vsub.s32 (!%p830_p7), 0, %v656_v5  ;;  %v661_v9 = vsub.s32 (!%p830_p7), 1, %v656_v5 }
  0x2a   : > { %570 = vmatpush1.bf16.msra.mxu0 %v877_v15  ;;  %610 = vmatprep.subr.bf16.mxu1 %v911_v24  ;;  %v653_v6 = vld [vmem:[%s1093_s2] sm:$0x3] (!%p830_p7) }
  0x2b   : > { %571 = vmatprep.subr.bf16.mxu0 %v878_v16  ;;  %v667_v7 = vld [vmem:[%s1094_s3] sm:$0x3] (!%p830_p7)  ;;  %v658_v12 = vrot.slane (!%p830_p7), %v653_v6, %v657_v8  ;;  %v662_v13 = vrot.slane (!%p830_p7), %v653_v6, %v661_v9 }
  0x2c   : > { %v672_v14 = vrot.slane (!%p830_p7), %v667_v7, %v657_v8  ;;  %v676_v15 = vrot.slane (!%p830_p7), %v667_v7, %v661_v9 }
  0x2d   : > { %611 = vmatpush1.bf16.msra.mxu1 %v913_v26 }
  0x2e   : > { %572 = vmatpush1.bf16.msra.mxu0 %v880_v19  ;;  %612 = vmatprep.subr.bf16.mxu1 %v917_v28 }
  0x2f   : > { %573 = vmatprep.subr.bf16.mxu0 %v881_v21 }
  0x31   : > { %613 = vmatpush1.bf16.msra.mxu1 %v919_v30 }
  0x32   : > { %574 = vmatpush1.bf16.msra.mxu0 %v883_v23  ;;  %614 = vmatprep.subr.bf16.mxu1 %v923_v32 }
  0x33   : > { %575 = vmatprep.subr.bf16.mxu0 %v884_v25 }
  0x35   : > { %615 = vmatpush1.bf16.msra.mxu1 %v925_v36 }
  0x36   : > { %576 = vmatpush1.bf16.msra.mxu0 %v886_v27  ;;  %616 = vmatprep.subr.bf16.mxu1 %v929_v38 }
  0x37   : > { %577 = vmatprep.subr.bf16.mxu0 %v890_v29 }
  0x39   : > { %617 = vmatpush1.bf16.msra.mxu1 %v931_v40 }
  0x3a   : > { %578 = vmatpush1.bf16.msra.mxu0 %v892_v31 }
  0x3b   : > { %579 = vmatprep.subr.bf16.mxu0 %v896_v33 }
  0x3c   : > { %635 = vmatmul.mubr.bf16.vlgmr.msra.gmra.mrb[0].mxu1 %v935_v43 }
  0x3e   : > { %580 = vmatpush1.bf16.msra.mxu0 %v898_v37 }
  0x3f   : > { %581 = vmatprep.subr.bf16.mxu0 %v902_v39 }
  0x42   : > { %582 = vmatpush1.bf16.msra.mxu0 %v904_v41 }
  0x43   : > { %583 = vmatprep.subr.bf16.mxu0 %v908_v42 }
  0x46   : > { %584 = vmatpush1.bf16.msra.mxu0 %v910_v44 }
  0x47   : > { %585 = vmatprep.subr.bf16.mxu0 %v914_v45 }
  0x4a   : > { %586 = vmatpush1.bf16.msra.mxu0 %v916_v46 }
  0x4b   : > { %587 = vmatprep.subr.bf16.mxu0 %v920_v47 }
  0x4e   : > { %588 = vmatpush1.bf16.msra.mxu0 %v922_v48 }
  0x4f   : > { %589 = vmatprep.subr.bf16.mxu0 %v926_v49 }
  0x52   : > { %590 = vmatpush1.bf16.msra.mxu0 %v928_v50 }
  0x53   : > { %591 = vmatprep.subr.bf16.mxu0 %v932_v51 }
  0x56   : > { %592 = vmatpush1.bf16.msra.mxu0 %v934_v52 }
  0x59   : > { %594 = vmatmul.mubr.bf16.vlgmr.msra.gmra.mrb[0].mxu0 %v779_v53 }
 0x10f   : > { %v636_v54 = vpop.f32.mrb[0].mxu1 }
 0x110   : > { %v638_v55 = vpop.f32.mrb[1].mxu1 }
 0x111   : > { %v640_v56 = vpop.f32.mrb[2].mxu1 }
 0x112   : > { %v641_v57 = vpop.f32.mrb[3].mxu1 }
 0x12c   : > { %v595_v59 = vpop.f32.mrb[0].mxu0  ;;  %650 = sbr.rel (%p830_p7) target bundleno = 323 (0x143), region = 44 }
 0x12d   : > { %v637_v60 = vadd.f32 %v636_v54, %v595_v59  ;;  %v597_v62 = vpop.f32.mrb[1].mxu0 }
 0x12e   : > { %v639_v63 = vadd.f32 %v638_v55, %v597_v62  ;;  %v599_v0 = vpop.f32.mrb[2].mxu0 }
 0x12f   : > { %v643_v1 = vadd.f32 %v637_v60, %v258_v58  ;;  %v600_v2 = vpop.f32.mrb[3].mxu0 }
 0x130   : > { %v644_v3 = vadd.f32 %v639_v63, %v259_v61 }
 0x131   : > { %645 = vst [vmem:[#allocation2] sm:$0xff] %v643_v1 }
 0x132   : > { %646 = vst [vmem:[#allocation2 + $0x8] sm:$0xff] %v644_v3 }
 0x138   : > { %v651_v10 = vld [vmem:[#allocation2] sm:$0xff] }
 0x139   : > { %v652_v11 = vld [vmem:[#allocation2 + $0x8] sm:$0xff]  ;;  %v665_v16 = vmul.f32 %v658_v12, %v651_v10 }
 0x13a   : > { %v666_v17 = vmul.f32 %v662_v13, %v652_v11 }
 0x13b   : > { %v679_v18 = vadd.f32 %v672_v14, %v665_v16 }
 0x13c   : > { %v680_v19 = vadd.f32 %v676_v15, %v666_v17 }
 0x13d   : > { %v681_v20 = vmax.f32 %v679_v18, 0.0 }
 0x13e   : > { %v682_v21 = vmax.f32 %v680_v19, 0.0 }
 0x140   : > { %v836_v22 = vpack.c.bf16 %v682_v21, %v681_v20 }
 0x142   : > { %691 = vst [vmem:[%s1095_s4] sm:$0xff] %v836_v22 }
 0x143 PF: > { %s14_s17 = sadd.s32 1, %s960_s17   ;;  %s1096_s15 = smov %s956_s16 }
 0x144   : > { %p11_p8 = scmp.ge.s32.totalorder %s14_s17, 5   ;;  %s1097_s16 = smov %s1099_s18 }
 0x146   :  { %13 = sbr.rel (!%p11_p8) target bundleno = 2 (0x2), region = 77 }

// kernel: resnet_forward.35
= control target key start
LH: loop header
LB: loop body
LE: loop exit
PB: predicated region body
PF: predicated region fallthrough
CT: control target
= control target key end

     0   :  { %s1062_s18 = smov 0   ;;  %s1064_s19 = smov 0   ;;  %s1167_s0 = inlined_call_operand.vmem [shape: bf16[8,2304], index: 0, kind: input, shape index: {}]   ;;  %s1168_s1 = inlined_call_operand.vmem [shape: bf16[2304,256], index: 1, kind: input, shape index: {}]   ;;  %s1169_s2 = inlined_call_operand.vmem [shape: f32[1,256], index: 2, kind: input, shape index: {}]   ;;  %s1170_s3 = inlined_call_operand.vmem [shape: f32[1,256], index: 3, kind: input, shape index: {}]   ;;  %s1171_s4 = inlined_call_operand.vmem [shape: bf16[8,256], index: 4, kind: input, shape index: {}]   ;;  %s1172_s5 = inlined_call_operand.vmem [shape: bf16[8,256], index: 5, kind: output, shape index: {}]  }
   0x1   :  { %s1066_s20 = smov 0  }
   0x2 LB: > { %s24_s21 = sadd.s32 1, %s1024_s19  ;;  %p842_p0 = scmp.ge.s32.totalorder %s1028_s20, 1  ;;  %s1028_s20 = sphi %s1066_s20, %s15_s20   ;;  %s1024_s19 = sphi %s1064_s19, %s1174_s19   ;;  %s1020_s18 = sphi %s1062_s18, %s1173_s18  }
   0x3   : > { %p25_p1 = scmp.ge.s32.totalorder %s24_s21, 6  ;;  %p228_p2 = scmp.lt.s32.totalorder %s1028_s20, 7 }
   0x5   : > { %s1176_s21 = smov (%p25_p1, %s24_s21), 0  ;;  %p229_p3 = pnand %p842_p0, %p228_p2 }
   0x6   : > { %s271_s22 = smul.u32 (!%p229_p3), 3, %s1020_s18  ;;  %p846_p6 = scmp.ne.s32.totalorder (!%p229_p3), %s1020_s18, 0 }
   0x7   : > { %232 = sbr.rel (%p229_p3) target bundleno = 325 (0x145), region = 40 }
   0x8   : > { %s281_s23 = smul.u32 (!%p229_p3), 48, %s1020_s18  ;;  %p274_p4 = scmp.lt.s32.totalorder (!%p229_p3), %s271_s22, 17 }
   0xa   : > { %p282_p5 = scmp.lt.s32.totalorder (!%p229_p3), %s281_s23, 287 }
   0xe   : > { %s1178_s22 = smov (!%p274_p4, %s271_s22), 17  ;;  %s1180_s23 = smov (!%p282_p5, %s281_s23), 287 }
   0xf   : > { %s843_s24 = sshll.u32 %s1178_s22, 2  ;;  %s903_s28 = sshll.u32 %s1180_s23, 3  ;;  %v1030_v0 = vmov (!%p846_p6), 0.0  }
  0x10   : > { %s1087_s27 = scalar_lea.vmem %s1167_s0, %s843_s24  ;;  %s1092_s6 = scalar_lea.vmem %s1168_s1, %s903_s28  ;;  %303 = vst [vmem:[#allocation2] sm:$0xff] (!%p846_p6), %v1030_v0  ;;  %304 = vst [vmem:[#allocation2 + $0x8] sm:$0xff] (!%p846_p6), %v1030_v0 }
  0x11   : > { %302 = sbr.rel (%p846_p6) target bundleno = 24 (0x18), region = 44 }
  0x18 PF: > { %v931_v1 = vld [vmem:[%s1092_s6 + $0x4] ss:$8 sps:$4 sm:$0xff]   ;;  %v933_v2 = vld [vmem:[%s1092_s6] ss:$8 sps:$4 sm:$0xff]   ;;  %v1031_v3 = vmov 0   ;;  %p898_p7 = scmp.ne.s32.totalorder %s1020_s18, 5 }
  0x19   : > { %681 = vmatprep.mubr.bf16.mxu1 %v1031_v3  ;;  %608 = vmatprep.subr.bf16.mxu0 %v931_v1  ;;  %v934_v4 = vld [vmem:[%s1092_s6 + $0x14] ss:$8 sps:$4 sm:$0xff]   ;;  %v936_v5 = vld [vmem:[%s1092_s6 + $0x10] ss:$8 sps:$4 sm:$0xff]   ;;  %v937_v6 = vld [vmem:[%s1092_s6 + $0x24] ss:$8 sps:$4 sm:$0xff]  }
  0x1a   : > { %609 = vmatpush1.bf16.msra.mxu0 %v933_v2  ;;  %v939_v7 = vld [vmem:[%s1092_s6 + $0x20] ss:$8 sps:$4 sm:$0xff]   ;;  %v940_v8 = vld [vmem:[%s1092_s6 + $0x34] ss:$8 sps:$4 sm:$0xff]   ;;  %v942_v9 = vld [vmem:[%s1092_s6 + $0x30] ss:$8 sps:$4 sm:$0xff]  }
  0x1b   : > { %610 = vmatprep.subr.bf16.mxu0 %v934_v4  ;;  %v955_v10 = vld [vmem:[%s1092_s6 + $0x104] ss:$8 sps:$4 sm:$0xff]   ;;  %v957_v11 = vld [vmem:[%s1092_s6 + $0x100] ss:$8 sps:$4 sm:$0xff]   ;;  %v961_v13 = vld [vmem:[%s1092_s6 + $0x114] ss:$8 sps:$4 sm:$0xff]   ;;  %v702_v4 = vlaneseq (!%p898_p7) }
  0x1c   : > { %v943_v12 = vld [vmem:[%s1092_s6 + $0x44] ss:$8 sps:$4 sm:$0xff]   ;;  %649 = vmatprep.subr.bf16.mxu1 %v955_v10  ;;  %v963_v14 = vld [vmem:[%s1092_s6 + $0x110] ss:$8 sps:$4 sm:$0xff]   ;;  %v945_v15 = vld [vmem:[%s1092_s6 + $0x40] ss:$8 sps:$4 sm:$0xff]  }
  0x1d   : > { %650 = vmatpush1.bf16.msra.mxu1 %v957_v11  ;;  %v946_v16 = vld [vmem:[%s1092_s6 + $0x54] ss:$8 sps:$4 sm:$0xff]   ;;  %v967_v17 = vld [vmem:[%s1092_s6 + $0x124] ss:$8 sps:$4 sm:$0xff]   ;;  %v969_v18 = vld [vmem:[%s1092_s6 + $0x120] ss:$8 sps:$4 sm:$0xff]  }
  0x1e   : > { %611 = vmatpush1.bf16.msra.mxu0 %v936_v5  ;;  %651 = vmatprep.subr.bf16.mxu1 %v961_v13  ;;  %v948_v19 = vld [vmem:[%s1092_s6 + $0x50] ss:$8 sps:$4 sm:$0xff]   ;;  %v973_v20 = vld [vmem:[%s1092_s6 + $0x134] ss:$8 sps:$4 sm:$0xff]   ;;  %v949_v21 = vld [vmem:[%s1092_s6 + $0x64] ss:$8 sps:$4 sm:$0xff]  }
  0x1f   : > { %612 = vmatprep.subr.bf16.mxu0 %v937_v6  ;;  %v975_v22 = vld [vmem:[%s1092_s6 + $0x130] ss:$8 sps:$4 sm:$0xff]   ;;  %v951_v23 = vld [vmem:[%s1092_s6 + $0x60] ss:$8 sps:$4 sm:$0xff]   ;;  %v979_v24 = vld [vmem:[%s1092_s6 + $0x144] ss:$8 sps:$4 sm:$0xff]  }
  0x20   : > { %v952_v25 = vld [vmem:[%s1092_s6 + $0x74] ss:$8 sps:$4 sm:$0xff]   ;;  %v981_v26 = vld [vmem:[%s1092_s6 + $0x140] ss:$8 sps:$4 sm:$0xff]   ;;  %v954_v27 = vld [vmem:[%s1092_s6 + $0x70] ss:$8 sps:$4 sm:$0xff]  }
  0x21   : > { %652 = vmatpush1.bf16.msra.mxu1 %v963_v14  ;;  %v985_v28 = vld [vmem:[%s1092_s6 + $0x154] ss:$8 sps:$4 sm:$0xff]   ;;  %v958_v29 = vld [vmem:[%s1092_s6 + $0x84] ss:$8 sps:$4 sm:$0xff]   ;;  %v987_v30 = vld [vmem:[%s1092_s6 + $0x150] ss:$8 sps:$4 sm:$0xff]  }
  0x22   : > { %613 = vmatpush1.bf16.msra.mxu0 %v939_v7  ;;  %653 = vmatprep.subr.bf16.mxu1 %v967_v17  ;;  %v960_v31 = vld [vmem:[%s1092_s6 + $0x80] ss:$8 sps:$4 sm:$0xff]   ;;  %v991_v32 = vld [vmem:[%s1092_s6 + $0x164] ss:$8 sps:$4 sm:$0xff]   ;;  %v964_v33 = vld [vmem:[%s1092_s6 + $0x94] ss:$8 sps:$4 sm:$0xff]  }
  0x23   : > { %614 = vmatprep.subr.bf16.mxu0 %v940_v8  ;;  %v307_v34 = vld [vmem:[%s1087_s27] sm:$0xff]  ;;  %v966_v37 = vld [vmem:[%s1092_s6 + $0x90] ss:$8 sps:$4 sm:$0xff]   ;;  %v997_v38 = vld [vmem:[%s1092_s6 + $0x174] ss:$8 sps:$4 sm:$0xff]   ;;  %v703_v5 = vshrl.u32 (!%p898_p7), %v702_v4, 7 }
  0x24   : > { %v848_v35 = vcombine.high %v307_v34, %v307_v34  ;;  %v993_v36 = vld [vmem:[%s1092_s6 + $0x160] ss:$8 sps:$4 sm:$0xff]   ;;  %v970_v39 = vld [vmem:[%s1092_s6 + $0xa4] ss:$8 sps:$4 sm:$0xff]   ;;  %v999_v40 = vld [vmem:[%s1092_s6 + $0x170] ss:$8 sps:$4 sm:$0xff]   ;;  %v847_v53 = vcombine.low %v307_v34, %v307_v34 }
  0x25   : > { %654 = vmatpush1.bf16.msra.mxu1 %v969_v18  ;;  %v972_v41 = vld [vmem:[%s1092_s6 + $0xa0] ss:$8 sps:$4 sm:$0xff]   ;;  %v976_v42 = vld [vmem:[%s1092_s6 + $0xb4] ss:$8 sps:$4 sm:$0xff]   ;;  %v978_v44 = vld [vmem:[%s1092_s6 + $0xb0] ss:$8 sps:$4 sm:$0xff]  }
  0x26   : > { %615 = vmatpush1.bf16.msra.mxu0 %v942_v9  ;;  %655 = vmatprep.subr.bf16.mxu1 %v973_v20  ;;  %v1003_v43 = vld [vmem:[%s1087_s27 + $0x8] ss:$0 sps:$4 sm:$0xff]   ;;  %v982_v45 = vld [vmem:[%s1092_s6 + $0xc4] ss:$8 sps:$4 sm:$0xff]   ;;  %v988_v47 = vld [vmem:[%s1092_s6 + $0xd4] ss:$8 sps:$4 sm:$0xff]  }
  0x27   : > { %616 = vmatprep.subr.bf16.mxu0 %v943_v12  ;;  %640 = vmatprep.mubr.bf16.mxu0 %v848_v35  ;;  %v984_v46 = vld [vmem:[%s1092_s6 + $0xc0] ss:$8 sps:$4 sm:$0xff]   ;;  %v990_v48 = vld [vmem:[%s1092_s6 + $0xd0] ss:$8 sps:$4 sm:$0xff]   ;;  %v994_v49 = vld [vmem:[%s1092_s6 + $0xe4] ss:$8 sps:$4 sm:$0xff]  }
  0x28   : > { %v996_v50 = vld [vmem:[%s1092_s6 + $0xe0] ss:$8 sps:$4 sm:$0xff]   ;;  %v1000_v51 = vld [vmem:[%s1092_s6 + $0xf4] ss:$8 sps:$4 sm:$0xff]   ;;  %v1002_v52 = vld [vmem:[%s1092_s6 + $0xf0] ss:$8 sps:$4 sm:$0xff]  }
  0x29   : > { %656 = vmatpush1.bf16.msra.mxu1 %v975_v22  ;;  %v305_v58 = vld [vmem:[#allocation2] sm:$0xff]  ;;  %v306_v61 = vld [vmem:[#allocation2 + $0x8] sm:$0xff]  ;;  %v704_v8 = vsub.s32 (!%p898_p7), 0, %v703_v5  ;;  %v708_v9 = vsub.s32 (!%p898_p7), 1, %v703_v5 }
  0x2a   : > { %617 = vmatpush1.bf16.msra.mxu0 %v945_v15  ;;  %657 = vmatprep.subr.bf16.mxu1 %v979_v24  ;;  %v700_v6 = vld [vmem:[%s1169_s2] sm:$0x3] (!%p898_p7) }
  0x2b   : > { %618 = vmatprep.subr.bf16.mxu0 %v946_v16  ;;  %v714_v7 = vld [vmem:[%s1170_s3] sm:$0x3] (!%p898_p7)  ;;  %v705_v13 = vrot.slane (!%p898_p7), %v700_v6, %v704_v8  ;;  %v709_v14 = vrot.slane (!%p898_p7), %v700_v6, %v708_v9 }
  0x2c   : > { %v728_v12 = vld [vmem:[%s1171_s4] sm:$0xff] (!%p898_p7)  ;;  %v719_v15 = vrot.slane (!%p898_p7), %v714_v7, %v704_v8  ;;  %v723_v16 = vrot.slane (!%p898_p7), %v714_v7, %v708_v9 }
  0x2d   : > { %658 = vmatpush1.bf16.msra.mxu1 %v981_v26  ;;  %v730_v20 = vunpack.c.h.bf16 (!%p898_p7), %v728_v12 }
  0x2e   : > { %619 = vmatpush1.bf16.msra.mxu0 %v948_v19  ;;  %659 = vmatprep.subr.bf16.mxu1 %v985_v28  ;;  %v729_v19 = vunpack.c.l.bf16 (!%p898_p7), %v728_v12 }
  0x2f   : > { %620 = vmatprep.subr.bf16.mxu0 %v949_v21 }
  0x31   : > { %660 = vmatpush1.bf16.msra.mxu1 %v987_v30 }
  0x32   : > { %621 = vmatpush1.bf16.msra.mxu0 %v951_v23  ;;  %661 = vmatprep.subr.bf16.mxu1 %v991_v32 }
  0x33   : > { %622 = vmatprep.subr.bf16.mxu0 %v952_v25 }
  0x35   : > { %662 = vmatpush1.bf16.msra.mxu1 %v993_v36 }
  0x36   : > { %623 = vmatpush1.bf16.msra.mxu0 %v954_v27  ;;  %663 = vmatprep.subr.bf16.mxu1 %v997_v38 }
  0x37   : > { %624 = vmatprep.subr.bf16.mxu0 %v958_v29 }
  0x39   : > { %664 = vmatpush1.bf16.msra.mxu1 %v999_v40 }
  0x3a   : > { %625 = vmatpush1.bf16.msra.mxu0 %v960_v31 }
  0x3b   : > { %626 = vmatprep.subr.bf16.mxu0 %v964_v33 }
  0x3c   : > { %682 = vmatmul.mubr.bf16.vlgmr.msra.gmra.mrb[0].mxu1 %v1003_v43 }
  0x3e   : > { %627 = vmatpush1.bf16.msra.mxu0 %v966_v37 }
  0x3f   : > { %628 = vmatprep.subr.bf16.mxu0 %v970_v39 }
  0x42   : > { %629 = vmatpush1.bf16.msra.mxu0 %v972_v41 }
  0x43   : > { %630 = vmatprep.subr.bf16.mxu0 %v976_v42 }
  0x46   : > { %631 = vmatpush1.bf16.msra.mxu0 %v978_v44 }
  0x47   : > { %632 = vmatprep.subr.bf16.mxu0 %v982_v45 }
  0x4a   : > { %633 = vmatpush1.bf16.msra.mxu0 %v984_v46 }
  0x4b   : > { %634 = vmatprep.subr.bf16.mxu0 %v988_v47 }
  0x4e   : > { %635 = vmatpush1.bf16.msra.mxu0 %v990_v48 }
  0x4f   : > { %636 = vmatprep.subr.bf16.mxu0 %v994_v49 }
  0x52   : > { %637 = vmatpush1.bf16.msra.mxu0 %v996_v50 }
  0x53   : > { %638 = vmatprep.subr.bf16.mxu0 %v1000_v51 }
  0x56   : > { %639 = vmatpush1.bf16.msra.mxu0 %v1002_v52 }
  0x59   : > { %641 = vmatmul.mubr.bf16.vlgmr.msra.gmra.mrb[0].mxu0 %v847_v53 }
 0x10f   : > { %v683_v54 = vpop.f32.mrb[0].mxu1 }
 0x110   : > { %v685_v55 = vpop.f32.mrb[1].mxu1 }
 0x111   : > { %v687_v56 = vpop.f32.mrb[2].mxu1 }
 0x112   : > { %v688_v57 = vpop.f32.mrb[3].mxu1 }
 0x12c   : > { %v642_v59 = vpop.f32.mrb[0].mxu0  ;;  %697 = sbr.rel (%p898_p7) target bundleno = 325 (0x145), region = 48 }
 0x12d   : > { %v684_v60 = vadd.f32 %v683_v54, %v642_v59  ;;  %v644_v62 = vpop.f32.mrb[1].mxu0 }
 0x12e   : > { %v686_v63 = vadd.f32 %v685_v55, %v644_v62  ;;  %v646_v0 = vpop.f32.mrb[2].mxu0 }
 0x12f   : > { %v690_v1 = vadd.f32 %v684_v60, %v305_v58  ;;  %v647_v2 = vpop.f32.mrb[3].mxu0 }
 0x130   : > { %v691_v3 = vadd.f32 %v686_v63, %v306_v61 }
 0x131   : > { %692 = vst [vmem:[#allocation2] sm:$0xff] %v690_v1 }
 0x132   : > { %693 = vst [vmem:[#allocation2 + $0x8] sm:$0xff] %v691_v3 }
 0x138   : > { %v698_v10 = vld [vmem:[#allocation2] sm:$0xff] }
 0x139   : > { %v699_v11 = vld [vmem:[#allocation2 + $0x8] sm:$0xff]  ;;  %v712_v17 = vmul.f32 %v705_v13, %v698_v10 }
 0x13a   : > { %v713_v18 = vmul.f32 %v709_v14, %v699_v11 }
 0x13b   : > { %v726_v21 = vadd.f32 %v719_v15, %v712_v17 }
 0x13c   : > { %v727_v22 = vadd.f32 %v723_v16, %v713_v18 }
 0x13d   : > { %v731_v23 = vadd.f32 %v729_v19, %v726_v21 }
 0x13e   : > { %v732_v24 = vadd.f32 %v730_v20, %v727_v22 }
 0x13f   : > { %v733_v25 = vmax.f32 %v731_v23, 0.0 }
 0x140   : > { %v734_v26 = vmax.f32 %v732_v24, 0.0 }
 0x142   : > { %v904_v27 = vpack.c.bf16 %v734_v26, %v733_v25 }
 0x144   : > { %743 = vst [vmem:[%s1172_s5] sm:$0xff] %v904_v27 }
 0x145 PF: > { %s15_s20 = sadd.s32 1, %s1028_s20   ;;  %s1173_s18 = smov %s1024_s19 }
 0x146   : > { %p12_p8 = scmp.ge.s32.totalorder %s15_s20, 8   ;;  %s1174_s19 = smov %s1176_s21 }
 0x148   :  { %14 = sbr.rel (!%p12_p8) target bundleno = 2 (0x2), region = 84 }

// kernel: resnet_forward.36
= control target key start
LH: loop header
LB: loop body
LE: loop exit
PB: predicated region body
PF: predicated region fallthrough
CT: control target
= control target key end

     0   :  { %s989_s15 = smov 0   ;;  %s991_s16 = smov 0   ;;  %s1091_s0 = inlined_call_operand.vmem [shape: bf16[8,2304], index: 0, kind: input, shape index: {}]   ;;  %s1092_s1 = inlined_call_operand.vmem [shape: bf16[2304,256], index: 1, kind: input, shape index: {}]   ;;  %s1093_s2 = inlined_call_operand.vmem [shape: f32[1,256], index: 2, kind: input, shape index: {}]   ;;  %s1094_s3 = inlined_call_operand.vmem [shape: f32[1,256], index: 3, kind: input, shape index: {}]   ;;  %s1095_s4 = inlined_call_operand.vmem [shape: bf16[8,256], index: 4, kind: output, shape index: {}]  }
   0x1   :  { %s993_s17 = smov 0  }
   0x2 LB: > { %s23_s18 = sadd.s32 1, %s956_s16  ;;  %p774_p0 = scmp.ge.s32.totalorder %s960_s17, 1  ;;  %s960_s17 = sphi %s993_s17, %s14_s17   ;;  %s956_s16 = sphi %s991_s16, %s1097_s16   ;;  %s952_s15 = sphi %s989_s15, %s1096_s15  }
   0x3   : > { %p24_p1 = scmp.ge.s32.totalorder %s23_s18, 6  ;;  %p193_p2 = scmp.lt.s32.totalorder %s960_s17, 7 }
   0x5   : > { %s1099_s18 = smov (%p24_p1, %s23_s18), 0  ;;  %p194_p3 = pnand %p774_p0, %p193_p2 }
   0x6   : > { %s229_s19 = smul.u32 (!%p194_p3), 3, %s952_s15  ;;  %p778_p6 = scmp.ne.s32.totalorder (!%p194_p3), %s952_s15, 0 }
   0x7   : > { %197 = sbr.rel (%p194_p3) target bundleno = 323 (0x143), region = 36 }
   0x8   : > { %s239_s20 = smul.u32 (!%p194_p3), 48, %s952_s15  ;;  %p232_p4 = scmp.lt.s32.totalorder (!%p194_p3), %s229_s19, 17 }
   0xa   : > { %p240_p5 = scmp.lt.s32.totalorder (!%p194_p3), %s239_s20, 287 }
   0xe   : > { %s1101_s19 = smov (!%p232_p4, %s229_s19), 17  ;;  %s1103_s20 = smov (!%p240_p5, %s239_s20), 287 }
   0xf   : > { %s775_s21 = sshll.u32 %s1101_s19, 2  ;;  %s835_s25 = sshll.u32 %s1103_s20, 3  ;;  %v962_v0 = vmov (!%p778_p6), 0.0  }
  0x10   : > { %s1014_s24 = scalar_lea.vmem %s1091_s0, %s775_s21  ;;  %s1019_s28 = scalar_lea.vmem %s1092_s1, %s835_s25  ;;  %256 = vst [vmem:[#allocation2] sm:$0xff] (!%p778_p6), %v962_v0  ;;  %257 = vst [vmem:[#allocation2 + $0x8] sm:$0xff] (!%p778_p6), %v962_v0 }
  0x11   : > { %255 = sbr.rel (%p778_p6) target bundleno = 24 (0x18), region = 40 }
  0x18 PF: > { %v863_v1 = vld [vmem:[%s1019_s28 + $0x4] ss:$8 sps:$4 sm:$0xff]   ;;  %v865_v2 = vld [vmem:[%s1019_s28] ss:$8 sps:$4 sm:$0xff]   ;;  %v963_v3 = vmov 0   ;;  %p830_p7 = scmp.ne.s32.totalorder %s952_s15, 5 }
  0x19   : > { %634 = vmatprep.mubr.bf16.mxu1 %v963_v3  ;;  %561 = vmatprep.subr.bf16.mxu0 %v863_v1  ;;  %v866_v4 = vld [vmem:[%s1019_s28 + $0x14] ss:$8 sps:$4 sm:$0xff]   ;;  %v868_v5 = vld [vmem:[%s1019_s28 + $0x10] ss:$8 sps:$4 sm:$0xff]   ;;  %v869_v6 = vld [vmem:[%s1019_s28 + $0x24] ss:$8 sps:$4 sm:$0xff]  }
  0x1a   : > { %562 = vmatpush1.bf16.msra.mxu0 %v865_v2  ;;  %v871_v7 = vld [vmem:[%s1019_s28 + $0x20] ss:$8 sps:$4 sm:$0xff]   ;;  %v872_v8 = vld [vmem:[%s1019_s28 + $0x34] ss:$8 sps:$4 sm:$0xff]   ;;  %v874_v9 = vld [vmem:[%s1019_s28 + $0x30] ss:$8 sps:$4 sm:$0xff]  }
  0x1b   : > { %563 = vmatprep.subr.bf16.mxu0 %v866_v4  ;;  %v887_v10 = vld [vmem:[%s1019_s28 + $0x104] ss:$8 sps:$4 sm:$0xff]   ;;  %v889_v11 = vld [vmem:[%s1019_s28 + $0x100] ss:$8 sps:$4 sm:$0xff]   ;;  %v893_v13 = vld [vmem:[%s1019_s28 + $0x114] ss:$8 sps:$4 sm:$0xff]   ;;  %v655_v4 = vlaneseq (!%p830_p7) }
  0x1c   : > { %v875_v12 = vld [vmem:[%s1019_s28 + $0x44] ss:$8 sps:$4 sm:$0xff]   ;;  %602 = vmatprep.subr.bf16.mxu1 %v887_v10  ;;  %v895_v14 = vld [vmem:[%s1019_s28 + $0x110] ss:$8 sps:$4 sm:$0xff]   ;;  %v877_v15 = vld [vmem:[%s1019_s28 + $0x40] ss:$8 sps:$4 sm:$0xff]  }
  0x1d   : > { %603 = vmatpush1.bf16.msra.mxu1 %v889_v11  ;;  %v878_v16 = vld [vmem:[%s1019_s28 + $0x54] ss:$8 sps:$4 sm:$0xff]   ;;  %v899_v17 = vld [vmem:[%s1019_s28 + $0x124] ss:$8 sps:$4 sm:$0xff]   ;;  %v901_v18 = vld [vmem:[%s1019_s28 + $0x120] ss:$8 sps:$4 sm:$0xff]  }
  0x1e   : > { %564 = vmatpush1.bf16.msra.mxu0 %v868_v5  ;;  %604 = vmatprep.subr.bf16.mxu1 %v893_v13  ;;  %v880_v19 = vld [vmem:[%s1019_s28 + $0x50] ss:$8 sps:$4 sm:$0xff]   ;;  %v905_v20 = vld [vmem:[%s1019_s28 + $0x134] ss:$8 sps:$4 sm:$0xff]   ;;  %v881_v21 = vld [vmem:[%s1019_s28 + $0x64] ss:$8 sps:$4 sm:$0xff]  }
  0x1f   : > { %565 = vmatprep.subr.bf16.mxu0 %v869_v6  ;;  %v907_v22 = vld [vmem:[%s1019_s28 + $0x130] ss:$8 sps:$4 sm:$0xff]   ;;  %v883_v23 = vld [vmem:[%s1019_s28 + $0x60] ss:$8 sps:$4 sm:$0xff]   ;;  %v911_v24 = vld [vmem:[%s1019_s28 + $0x144] ss:$8 sps:$4 sm:$0xff]  }
  0x20   : > { %v884_v25 = vld [vmem:[%s1019_s28 + $0x74] ss:$8 sps:$4 sm:$0xff]   ;;  %v913_v26 = vld [vmem:[%s1019_s28 + $0x140] ss:$8 sps:$4 sm:$0xff]   ;;  %v886_v27 = vld [vmem:[%s1019_s28 + $0x70] ss:$8 sps:$4 sm:$0xff]  }
  0x21   : > { %605 = vmatpush1.bf16.msra.mxu1 %v895_v14  ;;  %v917_v28 = vld [vmem:[%s1019_s28 + $0x154] ss:$8 sps:$4 sm:$0xff]   ;;  %v890_v29 = vld [vmem:[%s1019_s28 + $0x84] ss:$8 sps:$4 sm:$0xff]   ;;  %v919_v30 = vld [vmem:[%s1019_s28 + $0x150] ss:$8 sps:$4 sm:$0xff]  }
  0x22   : > { %566 = vmatpush1.bf16.msra.mxu0 %v871_v7  ;;  %606 = vmatprep.subr.bf16.mxu1 %v899_v17  ;;  %v892_v31 = vld [vmem:[%s1019_s28 + $0x80] ss:$8 sps:$4 sm:$0xff]   ;;  %v923_v32 = vld [vmem:[%s1019_s28 + $0x164] ss:$8 sps:$4 sm:$0xff]   ;;  %v896_v33 = vld [vmem:[%s1019_s28 + $0x94] ss:$8 sps:$4 sm:$0xff]  }
  0x23   : > { %567 = vmatprep.subr.bf16.mxu0 %v872_v8  ;;  %v260_v34 = vld [vmem:[%s1014_s24] sm:$0xff]  ;;  %v898_v37 = vld [vmem:[%s1019_s28 + $0x90] ss:$8 sps:$4 sm:$0xff]   ;;  %v929_v38 = vld [vmem:[%s1019_s28 + $0x174] ss:$8 sps:$4 sm:$0xff]   ;;  %v656_v5 = vshrl.u32 (!%p830_p7), %v655_v4, 7 }
  0x24   : > { %v780_v35 = vcombine.high %v260_v34, %v260_v34  ;;  %v925_v36 = vld [vmem:[%s1019_s28 + $0x160] ss:$8 sps:$4 sm:$0xff]   ;;  %v902_v39 = vld [vmem:[%s1019_s28 + $0xa4] ss:$8 sps:$4 sm:$0xff]   ;;  %v931_v40 = vld [vmem:[%s1019_s28 + $0x170] ss:$8 sps:$4 sm:$0xff]   ;;  %v779_v53 = vcombine.low %v260_v34, %v260_v34 }
  0x25   : > { %607 = vmatpush1.bf16.msra.mxu1 %v901_v18  ;;  %v904_v41 = vld [vmem:[%s1019_s28 + $0xa0] ss:$8 sps:$4 sm:$0xff]   ;;  %v908_v42 = vld [vmem:[%s1019_s28 + $0xb4] ss:$8 sps:$4 sm:$0xff]   ;;  %v910_v44 = vld [vmem:[%s1019_s28 + $0xb0] ss:$8 sps:$4 sm:$0xff]  }
  0x26   : > { %568 = vmatpush1.bf16.msra.mxu0 %v874_v9  ;;  %608 = vmatprep.subr.bf16.mxu1 %v905_v20  ;;  %v935_v43 = vld [vmem:[%s1014_s24 + $0x8] ss:$0 sps:$4 sm:$0xff]   ;;  %v914_v45 = vld [vmem:[%s1019_s28 + $0xc4] ss:$8 sps:$4 sm:$0xff]   ;;  %v920_v47 = vld [vmem:[%s1019_s28 + $0xd4] ss:$8 sps:$4 sm:$0xff]  }
  0x27   : > { %569 = vmatprep.subr.bf16.mxu0 %v875_v12  ;;  %593 = vmatprep.mubr.bf16.mxu0 %v780_v35  ;;  %v916_v46 = vld [vmem:[%s1019_s28 + $0xc0] ss:$8 sps:$4 sm:$0xff]   ;;  %v922_v48 = vld [vmem:[%s1019_s28 + $0xd0] ss:$8 sps:$4 sm:$0xff]   ;;  %v926_v49 = vld [vmem:[%s1019_s28 + $0xe4] ss:$8 sps:$4 sm:$0xff]  }
  0x28   : > { %v928_v50 = vld [vmem:[%s1019_s28 + $0xe0] ss:$8 sps:$4 sm:$0xff]   ;;  %v932_v51 = vld [vmem:[%s1019_s28 + $0xf4] ss:$8 sps:$4 sm:$0xff]   ;;  %v934_v52 = vld [vmem:[%s1019_s28 + $0xf0] ss:$8 sps:$4 sm:$0xff]  }
  0x29   : > { %609 = vmatpush1.bf16.msra.mxu1 %v907_v22  ;;  %v258_v58 = vld [vmem:[#allocation2] sm:$0xff]  ;;  %v259_v61 = vld [vmem:[#allocation2 + $0x8] sm:$0xff]  ;;  %v657_v8 = vsub.s32 (!%p830_p7), 0, %v656_v5  ;;  %v661_v9 = vsub.s32 (!%p830_p7), 1, %v656_v5 }
  0x2a   : > { %570 = vmatpush1.bf16.msra.mxu0 %v877_v15  ;;  %610 = vmatprep.subr.bf16.mxu1 %v911_v24  ;;  %v653_v6 = vld [vmem:[%s1093_s2] sm:$0x3] (!%p830_p7) }
  0x2b   : > { %571 = vmatprep.subr.bf16.mxu0 %v878_v16  ;;  %v667_v7 = vld [vmem:[%s1094_s3] sm:$0x3] (!%p830_p7)  ;;  %v658_v12 = vrot.slane (!%p830_p7), %v653_v6, %v657_v8  ;;  %v662_v13 = vrot.slane (!%p830_p7), %v653_v6, %v661_v9 }
  0x2c   : > { %v672_v14 = vrot.slane (!%p830_p7), %v667_v7, %v657_v8  ;;  %v676_v15 = vrot.slane (!%p830_p7), %v667_v7, %v661_v9 }
  0x2d   : > { %611 = vmatpush1.bf16.msra.mxu1 %v913_v26 }
  0x2e   : > { %572 = vmatpush1.bf16.msra.mxu0 %v880_v19  ;;  %612 = vmatprep.subr.bf16.mxu1 %v917_v28 }
  0x2f   : > { %573 = vmatprep.subr.bf16.mxu0 %v881_v21 }
  0x31   : > { %613 = vmatpush1.bf16.msra.mxu1 %v919_v30 }
  0x32   : > { %574 = vmatpush1.bf16.msra.mxu0 %v883_v23  ;;  %614 = vmatprep.subr.bf16.mxu1 %v923_v32 }
  0x33   : > { %575 = vmatprep.subr.bf16.mxu0 %v884_v25 }
  0x35   : > { %615 = vmatpush1.bf16.msra.mxu1 %v925_v36 }
  0x36   : > { %576 = vmatpush1.bf16.msra.mxu0 %v886_v27  ;;  %616 = vmatprep.subr.bf16.mxu1 %v929_v38 }
  0x37   : > { %577 = vmatprep.subr.bf16.mxu0 %v890_v29 }
  0x39   : > { %617 = vmatpush1.bf16.msra.mxu1 %v931_v40 }
  0x3a   : > { %578 = vmatpush1.bf16.msra.mxu0 %v892_v31 }
  0x3b   : > { %579 = vmatprep.subr.bf16.mxu0 %v896_v33 }
  0x3c   : > { %635 = vmatmul.mubr.bf16.vlgmr.msra.gmra.mrb[0].mxu1 %v935_v43 }
  0x3e   : > { %580 = vmatpush1.bf16.msra.mxu0 %v898_v37 }
  0x3f   : > { %581 = vmatprep.subr.bf16.mxu0 %v902_v39 }
  0x42   : > { %582 = vmatpush1.bf16.msra.mxu0 %v904_v41 }
  0x43   : > { %583 = vmatprep.subr.bf16.mxu0 %v908_v42 }
  0x46   : > { %584 = vmatpush1.bf16.msra.mxu0 %v910_v44 }
  0x47   : > { %585 = vmatprep.subr.bf16.mxu0 %v914_v45 }
  0x4a   : > { %586 = vmatpush1.bf16.msra.mxu0 %v916_v46 }
  0x4b   : > { %587 = vmatprep.subr.bf16.mxu0 %v920_v47 }
  0x4e   : > { %588 = vmatpush1.bf16.msra.mxu0 %v922_v48 }
  0x4f   : > { %589 = vmatprep.subr.bf16.mxu0 %v926_v49 }
  0x52   : > { %590 = vmatpush1.bf16.msra.mxu0 %v928_v50 }
  0x53   : > { %591 = vmatprep.subr.bf16.mxu0 %v932_v51 }
  0x56   : > { %592 = vmatpush1.bf16.msra.mxu0 %v934_v52 }
  0x59   : > { %594 = vmatmul.mubr.bf16.vlgmr.msra.gmra.mrb[0].mxu0 %v779_v53 }
 0x10f   : > { %v636_v54 = vpop.f32.mrb[0].mxu1 }
 0x110   : > { %v638_v55 = vpop.f32.mrb[1].mxu1 }
 0x111   : > { %v640_v56 = vpop.f32.mrb[2].mxu1 }
 0x112   : > { %v641_v57 = vpop.f32.mrb[3].mxu1 }
 0x12c   : > { %v595_v59 = vpop.f32.mrb[0].mxu0  ;;  %650 = sbr.rel (%p830_p7) target bundleno = 323 (0x143), region = 44 }
 0x12d   : > { %v637_v60 = vadd.f32 %v636_v54, %v595_v59  ;;  %v597_v62 = vpop.f32.mrb[1].mxu0 }
 0x12e   : > { %v639_v63 = vadd.f32 %v638_v55, %v597_v62  ;;  %v599_v0 = vpop.f32.mrb[2].mxu0 }
 0x12f   : > { %v643_v1 = vadd.f32 %v637_v60, %v258_v58  ;;  %v600_v2 = vpop.f32.mrb[3].mxu0 }
 0x130   : > { %v644_v3 = vadd.f32 %v639_v63, %v259_v61 }
 0x131   : > { %645 = vst [vmem:[#allocation2] sm:$0xff] %v643_v1 }
 0x132   : > { %646 = vst [vmem:[#allocation2 + $0x8] sm:$0xff] %v644_v3 }
 0x138   : > { %v651_v10 = vld [vmem:[#allocation2] sm:$0xff] }
 0x139   : > { %v652_v11 = vld [vmem:[#allocation2 + $0x8] sm:$0xff]  ;;  %v665_v16 = vmul.f32 %v658_v12, %v651_v10 }
 0x13a   : > { %v666_v17 = vmul.f32 %v662_v13, %v652_v11 }
 0x13b   : > { %v679_v18 = vadd.f32 %v672_v14, %v665_v16 }
 0x13c   : > { %v680_v19 = vadd.f32 %v676_v15, %v666_v17 }
 0x13d   : > { %v681_v20 = vmax.f32 %v679_v18, 0.0 }
 0x13e   : > { %v682_v21 = vmax.f32 %v680_v19, 0.0 }
 0x140   : > { %v836_v22 = vpack.c.bf16 %v682_v21, %v681_v20 }
 0x142   : > { %691 = vst [vmem:[%s1095_s4] sm:$0xff] %v836_v22 }
 0x143 PF: > { %s14_s17 = sadd.s32 1, %s960_s17   ;;  %s1096_s15 = smov %s956_s16 }
 0x144   : > { %p11_p8 = scmp.ge.s32.totalorder %s14_s17, 8   ;;  %s1097_s16 = smov %s1099_s18 }
 0x146   :  { %13 = sbr.rel (!%p11_p8) target bundleno = 2 (0x2), region = 77 }

// kernel: resnet_forward.39
= control target key start
LH: loop header
LB: loop body
LE: loop exit
PB: predicated region body
PF: predicated region fallthrough
CT: control target
= control target key end

     0   :  { %s1526_s15 = smov 0   ;;  %s1528_s16 = smov 0   ;;  %s1689_s0 = inlined_call_operand.vmem [shape: bf16[8,2304], index: 0, kind: input, shape index: {}]   ;;  %s1690_s1 = inlined_call_operand.vmem [shape: bf16[2304,512], index: 1, kind: input, shape index: {}]   ;;  %s1691_s2 = inlined_call_operand.vmem [shape: f32[1,512], index: 2, kind: input, shape index: {}]   ;;  %s1692_s3 = inlined_call_operand.vmem [shape: f32[1,512], index: 3, kind: input, shape index: {}]   ;;  %s1693_s4 = inlined_call_operand.vmem [shape: bf16[8,512], index: 4, kind: output, shape index: {}]  }
   0x1   :  { %s1530_s17 = smov 0  }
   0x2 LB: > { %s23_s18 = sadd.s32 1, %s1493_s16  ;;  %p1189_p0 = scmp.ge.s32.totalorder %s1497_s17, 1  ;;  %s1497_s17 = sphi %s1530_s17, %s14_s17   ;;  %s1493_s16 = sphi %s1528_s16, %s1695_s16   ;;  %s1489_s15 = sphi %s1526_s15, %s1694_s15  }
   0x3   : > { %p24_p1 = scmp.ge.s32.totalorder %s23_s18, 6  ;;  %p193_p2 = scmp.lt.s32.totalorder %s1497_s17, 7 }
   0x5   : > { %s1697_s18 = smov (%p24_p1, %s23_s18), 0  ;;  %p194_p3 = pnand %p1189_p0, %p193_p2 }
   0x6   : > { %s229_s19 = smul.u32 (!%p194_p3), 3, %s1489_s15  ;;  %p1193_p6 = scmp.ne.s32.totalorder (!%p194_p3), %s1489_s15, 0 }
   0x7   : > { %197 = sbr.rel (%p194_p3) target bundleno = 356 (0x164), region = 36 }
   0x8   : > { %s239_s20 = smul.u32 (!%p194_p3), 48, %s1489_s15  ;;  %p232_p4 = scmp.lt.s32.totalorder (!%p194_p3), %s229_s19, 17 }
   0xa   : > { %p240_p5 = scmp.lt.s32.totalorder (!%p194_p3), %s239_s20, 287 }
   0xe   : > { %s1699_s19 = smov (!%p232_p4, %s229_s19), 17  ;;  %s1701_s20 = smov (!%p240_p5, %s239_s20), 287 }
   0xf   : > { %s1190_s21 = sshll.u32 %s1699_s19, 2  ;;  %s1299_s25 = sshll.u32 %s1701_s20, 4  ;;  %v1499_v0 = vmov (!%p1193_p6), 0.0  }
  0x10   : > { %s1551_s24 = scalar_lea.vmem %s1689_s0, %s1190_s21  ;;  %s1556_s28 = scalar_lea.vmem %s1690_s1, %s1299_s25  ;;  %256 = vst [vmem:[#allocation2] sm:$0xff] (!%p1193_p6), %v1499_v0  ;;  %257 = vst [vmem:[#allocation2 + $0x8] sm:$0xff] (!%p1193_p6), %v1499_v0 }
  0x11   : > { %255 = sbr.rel (%p1193_p6) target bundleno = 24 (0x18), region = 40  ;;  %258 = vst [vmem:[#allocation2 + $0x10] sm:$0xff] (!%p1193_p6), %v1499_v0  ;;  %259 = vst [vmem:[#allocation2 + $0x18] sm:$0xff] (!%p1193_p6), %v1499_v0 }
  0x18 PF: > { %v1328_v1 = vld [vmem:[%s1556_s28 + $0x4] ss:$16 sps:$4 sm:$0xff]   ;;  %v1500_v3 = vmov 0   ;;  %v1332_v4 = vld [vmem:[%s1556_s28] ss:$16 sps:$4 sm:$0xff]   ;;  %p1293_p7 = scmp.ne.s32.totalorder %s1489_s15, 5 }
  0x19   : > { %v1330_v2 = vld [vmem:[%s1556_s28 + $0x204] ss:$16 sps:$4 sm:$0xff]   ;;  %926 = vmatprep.mubr.bf16.mxu1 %v1500_v3  ;;  %853 = vmatprep.subr.bf16.mxu0 %v1328_v1  ;;  %v1333_v5 = vld [vmem:[%s1556_s28 + $0x200] ss:$16 sps:$4 sm:$0xff]   ;;  %v1381_v35 = vld [vmem:[%s1556_s28 + $0xc] ss:$16 sps:$4 sm:$0xff]  }
  0x1a   : > { %894 = vmatprep.subr.bf16.mxu1 %v1330_v2  ;;  %v1334_v6 = vld [vmem:[%s1556_s28 + $0x24] ss:$16 sps:$4 sm:$0xff]   ;;  %854 = vmatpush1.bf16.msra.mxu0 %v1332_v4  ;;  %v1338_v8 = vld [vmem:[%s1556_s28 + $0x20] ss:$16 sps:$4 sm:$0xff]   ;;  %v1595_v36 = vld [vmem:[%s1551_s24 + $0x8] ss:$0 sps:$4 sm:$0xff]  }
  0x1b   : > { %895 = vmatpush1.bf16.msra.mxu1 %v1333_v5  ;;  %v1336_v7 = vld [vmem:[%s1556_s28 + $0x224] ss:$16 sps:$4 sm:$0xff]   ;;  %855 = vmatprep.subr.bf16.mxu0 %v1334_v6  ;;  %v1339_v9 = vld [vmem:[%s1556_s28 + $0x220] ss:$16 sps:$4 sm:$0xff]   ;;  %v1379_v37 = vld [vmem:[%s1556_s28 + $0x8] ss:$16 sps:$4 sm:$0xff]  }
  0x1c   : > { %896 = vmatprep.subr.bf16.mxu1 %v1336_v7  ;;  %v1340_v10 = vld [vmem:[%s1556_s28 + $0x44] ss:$16 sps:$4 sm:$0xff]   ;;  %v1344_v12 = vld [vmem:[%s1556_s28 + $0x40] ss:$16 sps:$4 sm:$0xff]   ;;  %v1387_v40 = vld [vmem:[%s1556_s28 + $0x2c] ss:$16 sps:$4 sm:$0xff]  }
  0x1d   : > { %v1342_v11 = vld [vmem:[%s1556_s28 + $0x244] ss:$16 sps:$4 sm:$0xff]   ;;  %v1345_v13 = vld [vmem:[%s1556_s28 + $0x240] ss:$16 sps:$4 sm:$0xff]   ;;  %v1385_v41 = vld [vmem:[%s1556_s28 + $0x28] ss:$16 sps:$4 sm:$0xff]  }
  0x1e   : > { %856 = vmatpush1.bf16.msra.mxu0 %v1338_v8  ;;  %v1346_v14 = vld [vmem:[%s1556_s28 + $0x64] ss:$16 sps:$4 sm:$0xff]   ;;  %v1350_v16 = vld [vmem:[%s1556_s28 + $0x60] ss:$16 sps:$4 sm:$0xff]   ;;  %v1393_v44 = vld [vmem:[%s1556_s28 + $0x4c] ss:$16 sps:$4 sm:$0xff]  }
  0x1f   : > { %897 = vmatpush1.bf16.msra.mxu1 %v1339_v9  ;;  %857 = vmatprep.subr.bf16.mxu0 %v1340_v10  ;;  %v1348_v15 = vld [vmem:[%s1556_s28 + $0x264] ss:$16 sps:$4 sm:$0xff]   ;;  %v1351_v17 = vld [vmem:[%s1556_s28 + $0x260] ss:$16 sps:$4 sm:$0xff]   ;;  %v1391_v45 = vld [vmem:[%s1556_s28 + $0x48] ss:$16 sps:$4 sm:$0xff]  }
  0x20   : > { %898 = vmatprep.subr.bf16.mxu1 %v1342_v11  ;;  %v1352_v18 = vld [vmem:[%s1556_s28 + $0x84] ss:$16 sps:$4 sm:$0xff]   ;;  %v1356_v20 = vld [vmem:[%s1556_s28 + $0x80] ss:$16 sps:$4 sm:$0xff]   ;;  %v1399_v48 = vld [vmem:[%s1556_s28 + $0x6c] ss:$16 sps:$4 sm:$0xff]  }
  0x21   : > { %v1354_v19 = vld [vmem:[%s1556_s28 + $0x284] ss:$16 sps:$4 sm:$0xff]   ;;  %v1357_v21 = vld [vmem:[%s1556_s28 + $0x280] ss:$16 sps:$4 sm:$0xff]   ;;  %v1397_v49 = vld [vmem:[%s1556_s28 + $0x68] ss:$16 sps:$4 sm:$0xff]  }
  0x22   : > { %858 = vmatpush1.bf16.msra.mxu0 %v1344_v12  ;;  %v1358_v22 = vld [vmem:[%s1556_s28 + $0xa4] ss:$16 sps:$4 sm:$0xff]   ;;  %v1362_v24 = vld [vmem:[%s1556_s28 + $0xa0] ss:$16 sps:$4 sm:$0xff]   ;;  %v1405_v54 = vld [vmem:[%s1556_s28 + $0x8c] ss:$16 sps:$4 sm:$0xff]  }
  0x23   : > { %899 = vmatpush1.bf16.msra.mxu1 %v1345_v13  ;;  %859 = vmatprep.subr.bf16.mxu0 %v1346_v14  ;;  %v1360_v23 = vld [vmem:[%s1556_s28 + $0x2a4] ss:$16 sps:$4 sm:$0xff]   ;;  %v1363_v25 = vld [vmem:[%s1556_s28 + $0x2a0] ss:$16 sps:$4 sm:$0xff]   ;;  %v1403_v55 = vld [vmem:[%s1556_s28 + $0x88] ss:$16 sps:$4 sm:$0xff]  }
  0x24   : > { %900 = vmatprep.subr.bf16.mxu1 %v1348_v15  ;;  %v1364_v26 = vld [vmem:[%s1556_s28 + $0xc4] ss:$16 sps:$4 sm:$0xff]   ;;  %v1368_v28 = vld [vmem:[%s1556_s28 + $0xc0] ss:$16 sps:$4 sm:$0xff]   ;;  %v1411_v58 = vld [vmem:[%s1556_s28 + $0xac] ss:$16 sps:$4 sm:$0xff]  }
  0x25   : > { %v1366_v27 = vld [vmem:[%s1556_s28 + $0x2c4] ss:$16 sps:$4 sm:$0xff]   ;;  %v1369_v29 = vld [vmem:[%s1556_s28 + $0x2c0] ss:$16 sps:$4 sm:$0xff]   ;;  %v1409_v59 = vld [vmem:[%s1556_s28 + $0xa8] ss:$16 sps:$4 sm:$0xff]  }
  0x26   : > { %860 = vmatpush1.bf16.msra.mxu0 %v1350_v16  ;;  %v1370_v30 = vld [vmem:[%s1556_s28 + $0xe4] ss:$16 sps:$4 sm:$0xff]   ;;  %v1374_v32 = vld [vmem:[%s1556_s28 + $0xe0] ss:$16 sps:$4 sm:$0xff]   ;;  %v1417_v62 = vld [vmem:[%s1556_s28 + $0xcc] ss:$16 sps:$4 sm:$0xff]  }
  0x27   : > { %901 = vmatpush1.bf16.msra.mxu1 %v1351_v17  ;;  %861 = vmatprep.subr.bf16.mxu0 %v1352_v18  ;;  %v1372_v31 = vld [vmem:[%s1556_s28 + $0x2e4] ss:$16 sps:$4 sm:$0xff]   ;;  %v1375_v33 = vld [vmem:[%s1556_s28 + $0x2e0] ss:$16 sps:$4 sm:$0xff]   ;;  %v1415_v63 = vld [vmem:[%s1556_s28 + $0xc8] ss:$16 sps:$4 sm:$0xff]  }
  0x28   : > { %902 = vmatprep.subr.bf16.mxu1 %v1354_v19  ;;  %v1376_v34 = vld [vmem:[%s1556_s28 + $0x104] ss:$16 sps:$4 sm:$0xff]   ;;  %v1382_v38 = vld [vmem:[%s1556_s28 + $0x100] ss:$16 sps:$4 sm:$0xff]   ;;  %v1423_v2 = vld [vmem:[%s1556_s28 + $0xec] ss:$16 sps:$4 sm:$0xff]  }
  0x29   : > { %v1383_v39 = vld [vmem:[%s1556_s28 + $0x124] ss:$16 sps:$4 sm:$0xff]   ;;  %v1388_v42 = vld [vmem:[%s1556_s28 + $0x120] ss:$16 sps:$4 sm:$0xff]   ;;  %v1421_v4 = vld [vmem:[%s1556_s28 + $0xe8] ss:$16 sps:$4 sm:$0xff]  }
  0x2a   : > { %862 = vmatpush1.bf16.msra.mxu0 %v1356_v20  ;;  %v1389_v43 = vld [vmem:[%s1556_s28 + $0x144] ss:$16 sps:$4 sm:$0xff]   ;;  %v1394_v46 = vld [vmem:[%s1556_s28 + $0x140] ss:$16 sps:$4 sm:$0xff]   ;;  %v1429_v6 = vld [vmem:[%s1556_s28 + $0x10c] ss:$16 sps:$4 sm:$0xff]  }
  0x2b   : > { %903 = vmatpush1.bf16.msra.mxu1 %v1357_v21  ;;  %863 = vmatprep.subr.bf16.mxu0 %v1358_v22  ;;  %v1395_v47 = vld [vmem:[%s1556_s28 + $0x164] ss:$16 sps:$4 sm:$0xff]   ;;  %v1400_v51 = vld [vmem:[%s1556_s28 + $0x160] ss:$16 sps:$4 sm:$0xff]   ;;  %v1432_v7 = vld [vmem:[%s1556_s28 + $0x20c] ss:$16 sps:$4 sm:$0xff]  }
  0x2c   : > { %904 = vmatprep.subr.bf16.mxu1 %v1360_v23  ;;  %v264_v50 = vld [vmem:[%s1551_s24] sm:$0xff]  ;;  %v1427_v9 = vld [vmem:[%s1556_s28 + $0x108] ss:$16 sps:$4 sm:$0xff]   ;;  %v1435_v11 = vld [vmem:[%s1556_s28 + $0x12c] ss:$16 sps:$4 sm:$0xff]  }
  0x2d   : > { %v1401_v52 = vld [vmem:[%s1556_s28 + $0x184] ss:$16 sps:$4 sm:$0xff]   ;;  %v1195_v53 = vcombine.high %v264_v50, %v264_v50  ;;  %v1406_v56 = vld [vmem:[%s1556_s28 + $0x180] ss:$16 sps:$4 sm:$0xff]   ;;  %v1631_v8 = vcombine.low %v264_v50, %v264_v50  ;;  %v1430_v10 = vld [vmem:[%s1556_s28 + $0x208] ss:$16 sps:$4 sm:$0xff]  }
  0x2e   : > { %864 = vmatpush1.bf16.msra.mxu0 %v1362_v24  ;;  %v1407_v57 = vld [vmem:[%s1556_s28 + $0x1a4] ss:$16 sps:$4 sm:$0xff]   ;;  %v1412_v60 = vld [vmem:[%s1556_s28 + $0x1a0] ss:$16 sps:$4 sm:$0xff]   ;;  %v1438_v12 = vld [vmem:[%s1556_s28 + $0x22c] ss:$16 sps:$4 sm:$0xff]  }
  0x2f   : > { %905 = vmatpush1.bf16.msra.mxu1 %v1363_v25  ;;  %865 = vmatprep.subr.bf16.mxu0 %v1364_v26  ;;  %v1413_v61 = vld [vmem:[%s1556_s28 + $0x1c4] ss:$16 sps:$4 sm:$0xff]   ;;  %v1418_v0 = vld [vmem:[%s1556_s28 + $0x1c0] ss:$16 sps:$4 sm:$0xff]   ;;  %v1433_v13 = vld [vmem:[%s1556_s28 + $0x128] ss:$16 sps:$4 sm:$0xff]  }
  0x30   : > { %906 = vmatprep.subr.bf16.mxu1 %v1366_v27  ;;  %885 = vmatprep.mubr.bf16.mxu0 %v1195_v53  ;;  %v1419_v1 = vld [vmem:[%s1556_s28 + $0x1e4] ss:$16 sps:$4 sm:$0xff]   ;;  %v1424_v5 = vld [vmem:[%s1556_s28 + $0x1e0] ss:$16 sps:$4 sm:$0xff]   ;;  %v1436_v14 = vld [vmem:[%s1556_s28 + $0x228] ss:$16 sps:$4 sm:$0xff]  }
  0x31   : > { %v1441_v15 = vld [vmem:[%s1556_s28 + $0x14c] ss:$16 sps:$4 sm:$0xff]   ;;  %v1439_v17 = vld [vmem:[%s1556_s28 + $0x148] ss:$16 sps:$4 sm:$0xff]  }
  0x32   : > { %866 = vmatpush1.bf16.msra.mxu0 %v1368_v28  ;;  %v1444_v16 = vld [vmem:[%s1556_s28 + $0x24c] ss:$16 sps:$4 sm:$0xff]   ;;  %v1442_v18 = vld [vmem:[%s1556_s28 + $0x248] ss:$16 sps:$4 sm:$0xff]  }
  0x33   : > { %907 = vmatpush1.bf16.msra.mxu1 %v1369_v29  ;;  %867 = vmatprep.subr.bf16.mxu0 %v1370_v30  ;;  %v1447_v19 = vld [vmem:[%s1556_s28 + $0x16c] ss:$16 sps:$4 sm:$0xff]   ;;  %v1445_v21 = vld [vmem:[%s1556_s28 + $0x168] ss:$16 sps:$4 sm:$0xff]  }
  0x34   : > { %908 = vmatprep.subr.bf16.mxu1 %v1372_v31  ;;  %v1450_v20 = vld [vmem:[%s1556_s28 + $0x26c] ss:$16 sps:$4 sm:$0xff]   ;;  %v1448_v22 = vld [vmem:[%s1556_s28 + $0x268] ss:$16 sps:$4 sm:$0xff]  }
  0x35   : > { %v1456_v23 = vld [vmem:[%s1556_s28 + $0x28c] ss:$16 sps:$4 sm:$0xff]   ;;  %v1451_v24 = vld [vmem:[%s1556_s28 + $0x188] ss:$16 sps:$4 sm:$0xff]  }
  0x36   : > { %868 = vmatpush1.bf16.msra.mxu0 %v1374_v32  ;;  %v1454_v25 = vld [vmem:[%s1556_s28 + $0x288] ss:$16 sps:$4 sm:$0xff]   ;;  %v1459_v26 = vld [vmem:[%s1556_s28 + $0x1ac] ss:$16 sps:$4 sm:$0xff]  }
  0x37   : > { %909 = vmatpush1.bf16.msra.mxu1 %v1375_v33  ;;  %869 = vmatprep.subr.bf16.mxu0 %v1376_v34  ;;  %v1462_v27 = vld [vmem:[%s1556_s28 + $0x2ac] ss:$16 sps:$4 sm:$0xff]   ;;  %v1457_v28 = vld [vmem:[%s1556_s28 + $0x1a8] ss:$16 sps:$4 sm:$0xff]  }
  0x38   : > { %935 = vmatprep.subr.bf16.mxu1 %v1381_v35  ;;  %v1460_v29 = vld [vmem:[%s1556_s28 + $0x2a8] ss:$16 sps:$4 sm:$0xff]   ;;  %v1465_v30 = vld [vmem:[%s1556_s28 + $0x1cc] ss:$16 sps:$4 sm:$0xff]  }
  0x39   : > { %v1468_v31 = vld [vmem:[%s1556_s28 + $0x2cc] ss:$16 sps:$4 sm:$0xff]   ;;  %v1463_v32 = vld [vmem:[%s1556_s28 + $0x1c8] ss:$16 sps:$4 sm:$0xff]  }
  0x3a   : > { %927 = vmatmul.mubr.bf16.vlgmr.msra.gmra.mrb[0].mxu1 %v1595_v36  ;;  %870 = vmatpush1.bf16.msra.mxu0 %v1382_v38  ;;  %v1466_v33 = vld [vmem:[%s1556_s28 + $0x2c8] ss:$16 sps:$4 sm:$0xff]   ;;  %v1471_v34 = vld [vmem:[%s1556_s28 + $0x1ec] ss:$16 sps:$4 sm:$0xff]  }
  0x3b   : > { %936 = vmatpush1.bf16.msra.mxu1 %v1379_v37  ;;  %871 = vmatprep.subr.bf16.mxu0 %v1383_v39  ;;  %v1474_v35 = vld [vmem:[%s1556_s28 + $0x2ec] ss:$16 sps:$4 sm:$0xff]   ;;  %v1469_v37 = vld [vmem:[%s1556_s28 + $0x1e8] ss:$16 sps:$4 sm:$0xff]  }
  0x3c   : > { %937 = vmatprep.subr.bf16.mxu1 %v1387_v40  ;;  %967 = vmatprep.mubr.bf16.mxu1 %v1195_v53  ;;  %v1472_v38 = vld [vmem:[%s1556_s28 + $0x2e8] ss:$16 sps:$4 sm:$0xff]  }
  0x3e   : > { %872 = vmatpush1.bf16.msra.mxu0 %v1388_v42 }
  0x3f   : > { %938 = vmatpush1.bf16.msra.mxu1 %v1385_v41  ;;  %873 = vmatprep.subr.bf16.mxu0 %v1389_v43  ;;  %v260_v43 = vld [vmem:[#allocation2] sm:$0xff] }
  0x40   : > { %939 = vmatprep.subr.bf16.mxu1 %v1393_v44 }
  0x42   : > { %874 = vmatpush1.bf16.msra.mxu0 %v1394_v46  ;;  %v261_v46 = vld [vmem:[#allocation2 + $0x8] sm:$0xff] }
  0x43   : > { %940 = vmatpush1.bf16.msra.mxu1 %v1391_v45  ;;  %875 = vmatprep.subr.bf16.mxu0 %v1395_v47 }
  0x44   : > { %941 = vmatprep.subr.bf16.mxu1 %v1399_v48 }
  0x46   : > { %876 = vmatpush1.bf16.msra.mxu0 %v1400_v51 }
  0x47   : > { %942 = vmatpush1.bf16.msra.mxu1 %v1397_v49  ;;  %877 = vmatprep.subr.bf16.mxu0 %v1401_v52 }
  0x48   : > { %943 = vmatprep.subr.bf16.mxu1 %v1405_v54  ;;  %v262_v54 = vld [vmem:[#allocation2 + $0x10] sm:$0xff] }
  0x4a   : > { %878 = vmatpush1.bf16.msra.mxu0 %v1406_v56 }
  0x4b   : > { %944 = vmatpush1.bf16.msra.mxu1 %v1403_v55  ;;  %879 = vmatprep.subr.bf16.mxu0 %v1407_v57  ;;  %v263_v57 = vld [vmem:[#allocation2 + $0x18] sm:$0xff] }
  0x4c   : > { %945 = vmatprep.subr.bf16.mxu1 %v1411_v58 }
  0x4e   : > { %880 = vmatpush1.bf16.msra.mxu0 %v1412_v60 }
  0x4f   : > { %946 = vmatpush1.bf16.msra.mxu1 %v1409_v59  ;;  %881 = vmatprep.subr.bf16.mxu0 %v1413_v61 }
  0x50   : > { %947 = vmatprep.subr.bf16.mxu1 %v1417_v62 }
  0x52   : > { %882 = vmatpush1.bf16.msra.mxu0 %v1418_v0 }
  0x53   : > { %948 = vmatpush1.bf16.msra.mxu1 %v1415_v63  ;;  %883 = vmatprep.subr.bf16.mxu0 %v1419_v1 }
  0x54   : > { %949 = vmatprep.subr.bf16.mxu1 %v1423_v2  ;;  %v1035_v2 = vlaneseq (!%p1293_p7) }
  0x56   : > { %884 = vmatpush1.bf16.msra.mxu0 %v1424_v5  ;;  %v1033_v5 = vld [vmem:[%s1691_s2] sm:$0xf] (!%p1293_p7) }
  0x57   : > { %950 = vmatpush1.bf16.msra.mxu1 %v1421_v4  ;;  %976 = vmatprep.subr.bf16.mxu0 %v1432_v7  ;;  %v1036_v4 = vshrl.u32 (!%p1293_p7), %v1035_v2, 7 }
  0x58   : > { %951 = vmatprep.subr.bf16.mxu1 %v1429_v6  ;;  %v1059_v6 = vld [vmem:[%s1692_s3] sm:$0xf] (!%p1293_p7) }
  0x59   : > { %886 = vmatmul.mubr.bf16.vlgmr.msra.gmra.mrb[0].mxu0 %v1631_v8  ;;  %v1037_v7 = vsub.s32 (!%p1293_p7), 0, %v1036_v4 }
  0x5a   : > { %977 = vmatpush1.bf16.msra.mxu0 %v1430_v10  ;;  %1008 = vmatprep.mubr.bf16.mxu0 %v1500_v3  ;;  %v1453_v3 = vld [vmem:[%s1556_s28 + $0x18c] ss:$16 sps:$4 sm:$0xff]   ;;  %v1049_v10 = vsub.s32 (!%p1293_p7), 3, %v1036_v4 }
  0x5b   : > { %952 = vmatpush1.bf16.msra.mxu1 %v1427_v9  ;;  %978 = vmatprep.subr.bf16.mxu0 %v1438_v12  ;;  %v1045_v9 = vsub.s32 (!%p1293_p7), 2, %v1036_v4 }
  0x5c   : > { %953 = vmatprep.subr.bf16.mxu1 %v1435_v11 }
  0x5e   : > { %979 = vmatpush1.bf16.msra.mxu0 %v1436_v14 }
  0x5f   : > { %954 = vmatpush1.bf16.msra.mxu1 %v1433_v13  ;;  %980 = vmatprep.subr.bf16.mxu0 %v1444_v16  ;;  %v1038_v13 = vrot.slane (!%p1293_p7), %v1033_v5, %v1037_v7 }
  0x60   : > { %955 = vmatprep.subr.bf16.mxu1 %v1441_v15  ;;  %v1064_v15 = vrot.slane (!%p1293_p7), %v1059_v6, %v1037_v7 }
  0x62   : > { %981 = vmatpush1.bf16.msra.mxu0 %v1442_v18 }
  0x63   : > { %956 = vmatpush1.bf16.msra.mxu1 %v1439_v17  ;;  %982 = vmatprep.subr.bf16.mxu0 %v1450_v20  ;;  %v1050_v20 = vrot.slane (!%p1293_p7), %v1033_v5, %v1049_v10 }
  0x64   : > { %957 = vmatprep.subr.bf16.mxu1 %v1447_v19  ;;  %v1046_v19 = vrot.slane (!%p1293_p7), %v1033_v5, %v1045_v9 }
  0x66   : > { %983 = vmatpush1.bf16.msra.mxu0 %v1448_v22  ;;  %v1076_v22 = vrot.slane (!%p1293_p7), %v1059_v6, %v1049_v10 }
  0x67   : > { %958 = vmatpush1.bf16.msra.mxu1 %v1445_v21  ;;  %984 = vmatprep.subr.bf16.mxu0 %v1456_v23  ;;  %v1072_v21 = vrot.slane (!%p1293_p7), %v1059_v6, %v1045_v9 }
  0x68   : > { %959 = vmatprep.subr.bf16.mxu1 %v1453_v3 }
  0x6a   : > { %985 = vmatpush1.bf16.msra.mxu0 %v1454_v25 }
  0x6b   : > { %960 = vmatpush1.bf16.msra.mxu1 %v1451_v24  ;;  %986 = vmatprep.subr.bf16.mxu0 %v1462_v27 }
  0x6c   : > { %961 = vmatprep.subr.bf16.mxu1 %v1459_v26 }
  0x6e   : > { %987 = vmatpush1.bf16.msra.mxu0 %v1460_v29 }
  0x6f   : > { %962 = vmatpush1.bf16.msra.mxu1 %v1457_v28  ;;  %988 = vmatprep.subr.bf16.mxu0 %v1468_v31 }
  0x70   : > { %963 = vmatprep.subr.bf16.mxu1 %v1465_v30 }
  0x72   : > { %989 = vmatpush1.bf16.msra.mxu0 %v1466_v33 }
  0x73   : > { %964 = vmatpush1.bf16.msra.mxu1 %v1463_v32  ;;  %990 = vmatprep.subr.bf16.mxu0 %v1474_v35 }
  0x74   : > { %965 = vmatprep.subr.bf16.mxu1 %v1471_v34 }
  0x76   : > { %991 = vmatpush1.bf16.msra.mxu0 %v1472_v38 }
  0x77   : > { %966 = vmatpush1.bf16.msra.mxu1 %v1469_v37 }
  0x79   : > { %1009 = vmatmul.mubr.bf16.vlgmr.msra.gmra.mrb[4].mxu0 %v1595_v36 }
  0x7a   : > { %968 = vmatmul.mubr.bf16.vlgmr.msra.gmra.mrb[4].mxu1 %v1631_v8  ;;  %v1041_v8 = vsub.s32 (!%p1293_p7), 1, %v1036_v4 }
  0x7c   : > { %v1042_v14 = vrot.slane (!%p1293_p7), %v1033_v5, %v1041_v8  ;;  %v1068_v16 = vrot.slane (!%p1293_p7), %v1059_v6, %v1041_v8 }
 0x10d   : > { %v928_v39 = vpop.f32.mrb[0].mxu1 }
 0x10e   : > { %v930_v40 = vpop.f32.mrb[1].mxu1 }
 0x10f   : > { %v932_v41 = vpop.f32.mrb[2].mxu1 }
 0x110   : > { %v933_v42 = vpop.f32.mrb[3].mxu1 }
 0x12c   : > { %v887_v44 = vpop.f32.mrb[0].mxu0 }
 0x12d   : > { %v929_v45 = vadd.f32 %v928_v39, %v887_v44  ;;  %v889_v47 = vpop.f32.mrb[1].mxu0 }
 0x12e   : > { %v931_v48 = vadd.f32 %v930_v40, %v889_v47  ;;  %v891_v49 = vpop.f32.mrb[2].mxu0 }
 0x12f   : > { %v1017_v50 = vadd.f32 %v929_v45, %v260_v43  ;;  %v892_v51 = vpop.f32.mrb[3].mxu0 }
 0x130   : > { %v1018_v52 = vadd.f32 %v931_v48, %v261_v46 }
 0x131   : > { %1021 = vst [vmem:[#allocation2] sm:$0xff] %v1017_v50 }
 0x132   : > { %1022 = vst [vmem:[#allocation2 + $0x8] sm:$0xff] %v1018_v52 }
 0x138   : > { %v1029_v11 = vld [vmem:[#allocation2] sm:$0xff] (!%p1293_p7) }
 0x139   : > { %v1030_v12 = vld [vmem:[#allocation2 + $0x8] sm:$0xff] (!%p1293_p7)  ;;  %v1055_v3 = vmul.f32 (!%p1293_p7), %v1038_v13, %v1029_v11 }
 0x13a   : > { %v1056_v23 = vmul.f32 (!%p1293_p7), %v1042_v14, %v1030_v12 }
 0x13b   : > { %v1081_v26 = vadd.f32 (!%p1293_p7), %v1064_v15, %v1055_v3 }
 0x13c   : > { %v1082_v27 = vadd.f32 (!%p1293_p7), %v1068_v16, %v1056_v23 }
 0x13d   : > { %v1085_v30 = vmax.f32 (!%p1293_p7), %v1081_v26, 0.0 }
 0x13e   : > { %v1086_v31 = vmax.f32 (!%p1293_p7), %v1082_v27, 0.0 }
 0x140   : > { %v1300_v34 = vpack.c.bf16 (!%p1293_p7), %v1086_v31, %v1085_v30 }
 0x142   : > { %1105 = vst [vmem:[%s1693_s4] sm:$0xff] (!%p1293_p7), %v1300_v34 }
 0x14c   : > { %v1010_v55 = vpop.f32.mrb[4].mxu0 }
 0x14d   : > { %v969_v53 = vpop.f32.mrb[4].mxu1  ;;  %v1012_v58 = vpop.f32.mrb[5].mxu0  ;;  %1028 = sbr.rel (%p1293_p7) target bundleno = 356 (0x164), region = 44 }
 0x14e   : > { %v1011_v36 = vadd.f32 %v1010_v55, %v969_v53  ;;  %v971_v56 = vpop.f32.mrb[5].mxu1  ;;  %v1014_v61 = vpop.f32.mrb[6].mxu0 }
 0x14f   : > { %v1013_v59 = vadd.f32 %v1012_v58, %v971_v56  ;;  %v973_v60 = vpop.f32.mrb[6].mxu1  ;;  %v1015_v0 = vpop.f32.mrb[7].mxu0 }
 0x150   : > { %v1019_v62 = vadd.f32 %v1011_v36, %v262_v54  ;;  %v974_v63 = vpop.f32.mrb[7].mxu1 }
 0x151   : > { %v1020_v1 = vadd.f32 %v1013_v59, %v263_v57 }
 0x152   : > { %1023 = vst [vmem:[#allocation2 + $0x10] sm:$0xff] %v1019_v62 }
 0x153   : > { %1024 = vst [vmem:[#allocation2 + $0x18] sm:$0xff] %v1020_v1 }
 0x159   : > { %v1031_v17 = vld [vmem:[#allocation2 + $0x10] sm:$0xff] }
 0x15a   : > { %v1032_v18 = vld [vmem:[#allocation2 + $0x18] sm:$0xff]  ;;  %v1057_v24 = vmul.f32 %v1046_v19, %v1031_v17 }
 0x15b   : > { %v1058_v25 = vmul.f32 %v1050_v20, %v1032_v18 }
 0x15c   : > { %v1083_v28 = vadd.f32 %v1072_v21, %v1057_v24 }
 0x15d   : > { %v1084_v29 = vadd.f32 %v1076_v22, %v1058_v25 }
 0x15e   : > { %v1087_v32 = vmax.f32 %v1083_v28, 0.0 }
 0x15f   : > { %v1088_v33 = vmax.f32 %v1084_v29, 0.0 }
 0x161   : > { %v1301_v35 = vpack.c.bf16 %v1088_v33, %v1087_v32 }
 0x163   : > { %1106 = vst [vmem:[%s1693_s4 + $0x8] sm:$0xff] %v1301_v35 }
 0x164 PF: > { %s14_s17 = sadd.s32 1, %s1497_s17   ;;  %s1694_s15 = smov %s1493_s16 }
 0x165   : > { %p11_p8 = scmp.ge.s32.totalorder %s14_s17, 8   ;;  %s1695_s16 = smov %s1697_s18 }
 0x167   :  { %13 = sbr.rel (!%p11_p8) target bundleno = 2 (0x2), region = 77 }

// kernel: resnet_forward.38
= control target key start
LH: loop header
LB: loop body
LE: loop exit
PB: predicated region body
PF: predicated region fallthrough
CT: control target
= control target key end

     0   :  { %s992_s1 = inlined_call_operand.vmem [shape: bf16[256,512], index: 1, kind: input, shape index: {}]   ;;  %s993_s0 = inlined_call_operand.vmem [shape: bf16[8,256], index: 0, kind: input, shape index: {}]   ;;  %s994_s2 = inlined_call_operand.vmem [shape: f32[1,512], index: 2, kind: input, shape index: {}]   ;;  %s995_s3 = inlined_call_operand.vmem [shape: f32[1,512], index: 3, kind: input, shape index: {}]   ;;  %s996_s4 = inlined_call_operand.vmem [shape: bf16[8,512], index: 4, kind: output, shape index: {}]  }
   0x1   :  { %v662_v0 = vld [vmem:[%s992_s1 + $0x4] ss:$16 sps:$4 sm:$0xff]   ;;  %v664_v1 = vld [vmem:[%s992_s1 + $0xc] ss:$16 sps:$4 sm:$0xff]   ;;  %v666_v2 = vld [vmem:[%s992_s1] ss:$16 sps:$4 sm:$0xff]  }
   0x2   :  { %421 = vmatprep.subr.bf16.mxu0 %v662_v0  ;;  %v667_v3 = vld [vmem:[%s992_s1 + $0x8] ss:$16 sps:$4 sm:$0xff]   ;;  %462 = vmatprep.subr.bf16.mxu1 %v664_v1  ;;  %v668_v4 = vld [vmem:[%s992_s1 + $0x24] ss:$16 sps:$4 sm:$0xff]   ;;  %v670_v5 = vld [vmem:[%s992_s1 + $0x2c] ss:$16 sps:$4 sm:$0xff]  }
   0x3   :  { %422 = vmatpush1.bf16.msra.mxu0 %v666_v2  ;;  %463 = vmatpush1.bf16.msra.mxu1 %v667_v3  ;;  %v672_v6 = vld [vmem:[%s992_s1 + $0x20] ss:$16 sps:$4 sm:$0xff]   ;;  %v673_v7 = vld [vmem:[%s992_s1 + $0x28] ss:$16 sps:$4 sm:$0xff]   ;;  %v674_v8 = vld [vmem:[%s992_s1 + $0x44] ss:$16 sps:$4 sm:$0xff]   ;;  %v520_v3 = vlaneseq }
   0x4   :  { %423 = vmatprep.subr.bf16.mxu0 %v668_v4  ;;  %464 = vmatprep.subr.bf16.mxu1 %v670_v5  ;;  %v676_v9 = vld [vmem:[%s992_s1 + $0x4c] ss:$16 sps:$4 sm:$0xff]   ;;  %v678_v10 = vld [vmem:[%s992_s1 + $0x40] ss:$16 sps:$4 sm:$0xff]   ;;  %v679_v11 = vld [vmem:[%s992_s1 + $0x48] ss:$16 sps:$4 sm:$0xff]  }
   0x5   :  { %v680_v12 = vld [vmem:[%s992_s1 + $0x64] ss:$16 sps:$4 sm:$0xff]   ;;  %v682_v13 = vld [vmem:[%s992_s1 + $0x6c] ss:$16 sps:$4 sm:$0xff]   ;;  %v684_v14 = vld [vmem:[%s992_s1 + $0x60] ss:$16 sps:$4 sm:$0xff]  }
   0x6   :  { %v685_v15 = vld [vmem:[%s992_s1 + $0x68] ss:$16 sps:$4 sm:$0xff]   ;;  %v686_v16 = vld [vmem:[%s992_s1 + $0x84] ss:$16 sps:$4 sm:$0xff]   ;;  %v688_v17 = vld [vmem:[%s992_s1 + $0x8c] ss:$16 sps:$4 sm:$0xff]  }
   0x7   :  { %424 = vmatpush1.bf16.msra.mxu0 %v672_v6  ;;  %465 = vmatpush1.bf16.msra.mxu1 %v673_v7  ;;  %v690_v18 = vld [vmem:[%s992_s1 + $0x80] ss:$16 sps:$4 sm:$0xff]   ;;  %v691_v19 = vld [vmem:[%s992_s1 + $0x88] ss:$16 sps:$4 sm:$0xff]   ;;  %v692_v20 = vld [vmem:[%s992_s1 + $0xa4] ss:$16 sps:$4 sm:$0xff]  }
   0x8   :  { %425 = vmatprep.subr.bf16.mxu0 %v674_v8  ;;  %466 = vmatprep.subr.bf16.mxu1 %v676_v9  ;;  %v694_v21 = vld [vmem:[%s992_s1 + $0xac] ss:$16 sps:$4 sm:$0xff]   ;;  %v696_v22 = vld [vmem:[%s992_s1 + $0xa0] ss:$16 sps:$4 sm:$0xff]   ;;  %v697_v23 = vld [vmem:[%s992_s1 + $0xa8] ss:$16 sps:$4 sm:$0xff]  }
   0x9   :  { %v698_v24 = vld [vmem:[%s992_s1 + $0xc4] ss:$16 sps:$4 sm:$0xff]   ;;  %v700_v25 = vld [vmem:[%s992_s1 + $0xcc] ss:$16 sps:$4 sm:$0xff]   ;;  %v702_v26 = vld [vmem:[%s992_s1 + $0xc0] ss:$16 sps:$4 sm:$0xff]  }
   0xa   :  { %v703_v27 = vld [vmem:[%s992_s1 + $0xc8] ss:$16 sps:$4 sm:$0xff]   ;;  %v704_v28 = vld [vmem:[%s992_s1 + $0xe4] ss:$16 sps:$4 sm:$0xff]   ;;  %v706_v29 = vld [vmem:[%s992_s1 + $0xec] ss:$16 sps:$4 sm:$0xff]  }
   0xb   :  { %426 = vmatpush1.bf16.msra.mxu0 %v678_v10  ;;  %467 = vmatpush1.bf16.msra.mxu1 %v679_v11  ;;  %v708_v30 = vld [vmem:[%s992_s1 + $0xe0] ss:$16 sps:$4 sm:$0xff]   ;;  %v709_v31 = vld [vmem:[%s992_s1 + $0xe8] ss:$16 sps:$4 sm:$0xff]   ;;  %v710_v32 = vld [vmem:[%s992_s1 + $0x104] ss:$16 sps:$4 sm:$0xff]  }
   0xc   :  { %427 = vmatprep.subr.bf16.mxu0 %v680_v12  ;;  %468 = vmatprep.subr.bf16.mxu1 %v682_v13  ;;  %v712_v33 = vld [vmem:[%s992_s1 + $0x10c] ss:$16 sps:$4 sm:$0xff]   ;;  %v714_v34 = vld [vmem:[%s992_s1 + $0x100] ss:$16 sps:$4 sm:$0xff]   ;;  %v715_v35 = vld [vmem:[%s992_s1 + $0x108] ss:$16 sps:$4 sm:$0xff]  }
   0xd   :  { %v716_v36 = vld [vmem:[%s992_s1 + $0x124] ss:$16 sps:$4 sm:$0xff]   ;;  %v718_v37 = vld [vmem:[%s992_s1 + $0x12c] ss:$16 sps:$4 sm:$0xff]   ;;  %v720_v38 = vld [vmem:[%s992_s1 + $0x120] ss:$16 sps:$4 sm:$0xff]  }
   0xe   :  { %v721_v39 = vld [vmem:[%s992_s1 + $0x128] ss:$16 sps:$4 sm:$0xff]   ;;  %v722_v40 = vld [vmem:[%s992_s1 + $0x144] ss:$16 sps:$4 sm:$0xff]   ;;  %v724_v41 = vld [vmem:[%s992_s1 + $0x14c] ss:$16 sps:$4 sm:$0xff]  }
   0xf   :  { %428 = vmatpush1.bf16.msra.mxu0 %v684_v14  ;;  %469 = vmatpush1.bf16.msra.mxu1 %v685_v15  ;;  %v726_v42 = vld [vmem:[%s992_s1 + $0x140] ss:$16 sps:$4 sm:$0xff]   ;;  %v727_v43 = vld [vmem:[%s992_s1 + $0x148] ss:$16 sps:$4 sm:$0xff]   ;;  %v728_v44 = vld [vmem:[%s992_s1 + $0x164] ss:$16 sps:$4 sm:$0xff]  }
  0x10   :  { %429 = vmatprep.subr.bf16.mxu0 %v686_v16  ;;  %470 = vmatprep.subr.bf16.mxu1 %v688_v17  ;;  %v730_v45 = vld [vmem:[%s992_s1 + $0x16c] ss:$16 sps:$4 sm:$0xff]   ;;  %v29_v46 = vld [vmem:[%s993_s0] sm:$0xff]  ;;  %v733_v49 = vld [vmem:[%s992_s1 + $0x168] ss:$16 sps:$4 sm:$0xff]   ;;  %v521_v4 = vshrl.u32 %v520_v3, 7 }
  0x11   :  { %v593_v47 = vcombine.high %v29_v46, %v29_v46  ;;  %v732_v48 = vld [vmem:[%s992_s1 + $0x160] ss:$16 sps:$4 sm:$0xff]   ;;  %v734_v50 = vld [vmem:[%s992_s1 + $0x184] ss:$16 sps:$4 sm:$0xff]   ;;  %v736_v51 = vld [vmem:[%s992_s1 + $0x18c] ss:$16 sps:$4 sm:$0xff]   ;;  %v592_v2 = vcombine.low %v29_v46, %v29_v46 }
  0x12   :  { %v738_v52 = vld [vmem:[%s992_s1 + $0x180] ss:$16 sps:$4 sm:$0xff]   ;;  %v739_v53 = vld [vmem:[%s992_s1 + $0x188] ss:$16 sps:$4 sm:$0xff]   ;;  %v740_v54 = vld [vmem:[%s992_s1 + $0x1a4] ss:$16 sps:$4 sm:$0xff]  }
  0x13   :  { %430 = vmatpush1.bf16.msra.mxu0 %v690_v18  ;;  %471 = vmatpush1.bf16.msra.mxu1 %v691_v19  ;;  %v742_v55 = vld [vmem:[%s992_s1 + $0x1ac] ss:$16 sps:$4 sm:$0xff]   ;;  %v744_v56 = vld [vmem:[%s992_s1 + $0x1a0] ss:$16 sps:$4 sm:$0xff]   ;;  %v745_v57 = vld [vmem:[%s992_s1 + $0x1a8] ss:$16 sps:$4 sm:$0xff]  }
  0x14   :  { %431 = vmatprep.subr.bf16.mxu0 %v692_v20  ;;  %472 = vmatprep.subr.bf16.mxu1 %v694_v21  ;;  %v746_v58 = vld [vmem:[%s992_s1 + $0x1c4] ss:$16 sps:$4 sm:$0xff]   ;;  %v748_v59 = vld [vmem:[%s992_s1 + $0x1cc] ss:$16 sps:$4 sm:$0xff]   ;;  %v750_v60 = vld [vmem:[%s992_s1 + $0x1c0] ss:$16 sps:$4 sm:$0xff]  }
  0x15   :  { %453 = vmatprep.mubr.bf16.mxu0 %v593_v47  ;;  %494 = vmatprep.mubr.bf16.mxu1 %v593_v47  ;;  %v751_v61 = vld [vmem:[%s992_s1 + $0x1c8] ss:$16 sps:$4 sm:$0xff]   ;;  %v752_v62 = vld [vmem:[%s992_s1 + $0x1e4] ss:$16 sps:$4 sm:$0xff]   ;;  %v754_v63 = vld [vmem:[%s992_s1 + $0x1ec] ss:$16 sps:$4 sm:$0xff]  }
  0x16   :  { %v756_v0 = vld [vmem:[%s992_s1 + $0x1e0] ss:$16 sps:$4 sm:$0xff]   ;;  %v757_v1 = vld [vmem:[%s992_s1 + $0x1e8] ss:$16 sps:$4 sm:$0xff]   ;;  %v522_v5 = vsub.s32 0, %v521_v4  ;;  %v530_v6 = vsub.s32 2, %v521_v4 }
  0x17   :  { %432 = vmatpush1.bf16.msra.mxu0 %v696_v22  ;;  %473 = vmatpush1.bf16.msra.mxu1 %v697_v23  ;;  %v518_v7 = vld [vmem:[%s994_s2] sm:$0xf]  ;;  %v526_v8 = vsub.s32 1, %v521_v4  ;;  %v534_v9 = vsub.s32 3, %v521_v4 }
  0x18   :  { %433 = vmatprep.subr.bf16.mxu0 %v698_v24  ;;  %474 = vmatprep.subr.bf16.mxu1 %v700_v25  ;;  %v544_v10 = vld [vmem:[%s995_s3] sm:$0xf]  ;;  %v523_v11 = vrot.slane %v518_v7, %v522_v5  ;;  %v531_v12 = vrot.slane %v518_v7, %v530_v6 }
  0x19   :  { %v527_v13 = vrot.slane %v518_v7, %v526_v8  ;;  %v535_v14 = vrot.slane %v518_v7, %v534_v9  ;;  %v549_v15 = vrot.slane %v544_v10, %v522_v5  ;;  %v557_v16 = vrot.slane %v544_v10, %v530_v6 }
  0x1a   :  { %v553_v19 = vrot.slane %v544_v10, %v526_v8  ;;  %v561_v20 = vrot.slane %v544_v10, %v534_v9 }
  0x1b   :  { %434 = vmatpush1.bf16.msra.mxu0 %v702_v26  ;;  %475 = vmatpush1.bf16.msra.mxu1 %v703_v27 }
  0x1c   :  { %435 = vmatprep.subr.bf16.mxu0 %v704_v28  ;;  %476 = vmatprep.subr.bf16.mxu1 %v706_v29 }
  0x1f   :  { %436 = vmatpush1.bf16.msra.mxu0 %v708_v30  ;;  %477 = vmatpush1.bf16.msra.mxu1 %v709_v31 }
  0x20   :  { %437 = vmatprep.subr.bf16.mxu0 %v710_v32  ;;  %478 = vmatprep.subr.bf16.mxu1 %v712_v33 }
  0x23   :  { %438 = vmatpush1.bf16.msra.mxu0 %v714_v34  ;;  %479 = vmatpush1.bf16.msra.mxu1 %v715_v35 }
  0x24   :  { %439 = vmatprep.subr.bf16.mxu0 %v716_v36  ;;  %480 = vmatprep.subr.bf16.mxu1 %v718_v37 }
  0x27   :  { %440 = vmatpush1.bf16.msra.mxu0 %v720_v38  ;;  %481 = vmatpush1.bf16.msra.mxu1 %v721_v39 }
  0x28   :  { %441 = vmatprep.subr.bf16.mxu0 %v722_v40  ;;  %482 = vmatprep.subr.bf16.mxu1 %v724_v41 }
  0x2b   :  { %442 = vmatpush1.bf16.msra.mxu0 %v726_v42  ;;  %483 = vmatpush1.bf16.msra.mxu1 %v727_v43 }
  0x2c   :  { %443 = vmatprep.subr.bf16.mxu0 %v728_v44  ;;  %484 = vmatprep.subr.bf16.mxu1 %v730_v45 }
  0x2f   :  { %444 = vmatpush1.bf16.msra.mxu0 %v732_v48  ;;  %485 = vmatpush1.bf16.msra.mxu1 %v733_v49 }
  0x30   :  { %445 = vmatprep.subr.bf16.mxu0 %v734_v50  ;;  %486 = vmatprep.subr.bf16.mxu1 %v736_v51 }
  0x33   :  { %446 = vmatpush1.bf16.msra.mxu0 %v738_v52  ;;  %487 = vmatpush1.bf16.msra.mxu1 %v739_v53 }
  0x34   :  { %447 = vmatprep.subr.bf16.mxu0 %v740_v54  ;;  %488 = vmatprep.subr.bf16.mxu1 %v742_v55 }
  0x37   :  { %448 = vmatpush1.bf16.msra.mxu0 %v744_v56  ;;  %489 = vmatpush1.bf16.msra.mxu1 %v745_v57 }
  0x38   :  { %449 = vmatprep.subr.bf16.mxu0 %v746_v58  ;;  %490 = vmatprep.subr.bf16.mxu1 %v748_v59 }
  0x3b   :  { %450 = vmatpush1.bf16.msra.mxu0 %v750_v60  ;;  %491 = vmatpush1.bf16.msra.mxu1 %v751_v61 }
  0x3c   :  { %451 = vmatprep.subr.bf16.mxu0 %v752_v62  ;;  %492 = vmatprep.subr.bf16.mxu1 %v754_v63 }
  0x3f   :  { %452 = vmatpush1.bf16.msra.mxu0 %v756_v0  ;;  %493 = vmatpush1.bf16.msra.mxu1 %v757_v1 }
  0x42   :  { %454 = vmatmul.mubr.bf16.vlgmr.msra.gmra.mrb[0].mxu0 %v592_v2  ;;  %495 = vmatmul.mubr.bf16.vlgmr.msra.gmra.mrb[0].mxu1 %v592_v2 }
 0x115   :  { %v455_v17 = vpop.f32.mrb[0].mxu0  ;;  %v496_v18 = vpop.f32.mrb[0].mxu1 }
 0x116   :  { %v540_v21 = vmul.f32 %v523_v11, %v455_v17  ;;  %v542_v22 = vmul.f32 %v531_v12, %v496_v18  ;;  %v457_v23 = vpop.f32.mrb[1].mxu0  ;;  %v498_v24 = vpop.f32.mrb[1].mxu1 }
 0x117   :  { %v541_v25 = vmul.f32 %v527_v13, %v457_v23  ;;  %v543_v26 = vmul.f32 %v535_v14, %v498_v24  ;;  %v459_v27 = vpop.f32.mrb[2].mxu0  ;;  %v500_v28 = vpop.f32.mrb[2].mxu1 }
 0x118   :  { %v566_v29 = vadd.f32 %v549_v15, %v540_v21  ;;  %v568_v30 = vadd.f32 %v557_v16, %v542_v22  ;;  %v460_v31 = vpop.f32.mrb[3].mxu0  ;;  %v501_v32 = vpop.f32.mrb[3].mxu1 }
 0x119   :  { %v567_v33 = vadd.f32 %v553_v19, %v541_v25  ;;  %v569_v34 = vadd.f32 %v561_v20, %v543_v26 }
 0x11b   :  { %v660_v35 = vpack.c.bf16 %v567_v33, %v566_v29  ;;  %v661_v36 = vpack.c.bf16 %v569_v34, %v568_v30 }
 0x11d   :  { %586 = vst [vmem:[%s996_s4] sm:$0xff] %v660_v35  ;;  %587 = vst [vmem:[%s996_s4 + $0x8] sm:$0xff] %v661_v36 }

// kernel: resnet_forward.40
= control target key start
LH: loop header
LB: loop body
LE: loop exit
PB: predicated region body
PF: predicated region fallthrough
CT: control target
= control target key end

     0   :  { %s1880_s18 = smov 0   ;;  %s1882_s19 = smov 0   ;;  %s2083_s0 = inlined_call_operand.vmem [shape: bf16[8,4608], index: 0, kind: input, shape index: {}]   ;;  %s2084_s1 = inlined_call_operand.vmem [shape: bf16[4608,512], index: 1, kind: input, shape index: {}]   ;;  %s2085_s2 = inlined_call_operand.vmem [shape: f32[1,512], index: 2, kind: input, shape index: {}]   ;;  %s2086_s3 = inlined_call_operand.vmem [shape: f32[1,512], index: 3, kind: input, shape index: {}]   ;;  %s2087_s4 = inlined_call_operand.vmem [shape: bf16[8,512], index: 4, kind: input, shape index: {}]   ;;  %s2088_s5 = inlined_call_operand.vmem [shape: bf16[8,512], index: 5, kind: output, shape index: {}]  }
   0x1   :  { %s1884_s20 = smov 0  }
   0x2 LB: > { %s24_s21 = sadd.s32 1, %s1843_s19  ;;  %p1456_p0 = scmp.ge.s32.totalorder %s1847_s20, 1  ;;  %s1847_s20 = sphi %s1884_s20, %s15_s20   ;;  %s1843_s19 = sphi %s1882_s19, %s2090_s19   ;;  %s1839_s18 = sphi %s1880_s18, %s2089_s18  }
   0x3   : > { %p25_p1 = scmp.ge.s32.totalorder %s24_s21, 9  ;;  %p228_p2 = scmp.lt.s32.totalorder %s1847_s20, 10 }
   0x5   : > { %s2092_s21 = smov (%p25_p1, %s24_s21), 0  ;;  %p229_p3 = pnand %p1456_p0, %p228_p2 }
   0x6   : > { %s1457_s22 = sshll.u32 (!%p229_p3), %s1839_s18, 2  ;;  %s1459_s23 = sshll.u32 (!%p229_p3), %s1839_s18, 6 }
   0x7   : > { %232 = sbr.rel (%p229_p3) target bundleno = 390 (0x186), region = 40  ;;  %p274_p4 = scmp.lt.s32.totalorder (!%p229_p3), %s1457_s22, 35 }
   0x8   : > { %p282_p5 = scmp.lt.s32.totalorder (!%p229_p3), %s1459_s23, 575  ;;  %p1462_p6 = scmp.ne.s32.totalorder (!%p229_p3), %s1839_s18, 0 }
   0xe   : > { %s2094_s22 = smov (!%p274_p4, %s1457_s22), 35  ;;  %s2096_s23 = smov (!%p282_p5, %s1459_s23), 575 }
   0xf   : > { %s1458_s24 = sshll.u32 %s2094_s22, 2  ;;  %s1601_s28 = sshll.u32 %s2096_s23, 4  ;;  %v1849_v0 = vmov (!%p1462_p6), 0.0  }
  0x10   : > { %s1905_s27 = scalar_lea.vmem %s2083_s0, %s1458_s24  ;;  %s1910_s6 = scalar_lea.vmem %s2084_s1, %s1601_s28  ;;  %302 = vst [vmem:[#allocation2] sm:$0xff] (!%p1462_p6), %v1849_v0  ;;  %303 = vst [vmem:[#allocation2 + $0x8] sm:$0xff] (!%p1462_p6), %v1849_v0 }
  0x11   : > { %301 = sbr.rel (%p1462_p6) target bundleno = 24 (0x18), region = 44  ;;  %304 = vst [vmem:[#allocation2 + $0x10] sm:$0xff] (!%p1462_p6), %v1849_v0  ;;  %305 = vst [vmem:[#allocation2 + $0x18] sm:$0xff] (!%p1462_p6), %v1849_v0 }
  0x18 PF: > { %v1629_v1 = vld [vmem:[%s1910_s6 + $0x4] ss:$16 sps:$4 sm:$0xff]   ;;  %v1633_v3 = vld [vmem:[%s1910_s6] ss:$16 sps:$4 sm:$0xff]   ;;  %v311_v49 = vld [vmem:[%s1905_s27 + $0x8] sm:$0xff]  ;;  %p1595_p7 = scmp.ne.s32.totalorder %s1839_s18, 8 }
  0x19   : > { %v1631_v2 = vld [vmem:[%s1910_s6 + $0x204] ss:$16 sps:$4 sm:$0xff]   ;;  %1094 = vmatprep.subr.bf16.mxu0 %v1629_v1  ;;  %v1634_v4 = vld [vmem:[%s1910_s6 + $0x200] ss:$16 sps:$4 sm:$0xff]   ;;  %v1466_v52 = vcombine.high %v311_v49, %v311_v49 }
  0x1a   : > { %1135 = vmatprep.subr.bf16.mxu1 %v1631_v2  ;;  %v1635_v5 = vld [vmem:[%s1910_s6 + $0x24] ss:$16 sps:$4 sm:$0xff]   ;;  %1095 = vmatpush1.bf16.msra.mxu0 %v1633_v3  ;;  %v1639_v7 = vld [vmem:[%s1910_s6 + $0x20] ss:$16 sps:$4 sm:$0xff]  }
  0x1b   : > { %1136 = vmatpush1.bf16.msra.mxu1 %v1634_v4  ;;  %v1637_v6 = vld [vmem:[%s1910_s6 + $0x224] ss:$16 sps:$4 sm:$0xff]   ;;  %1096 = vmatprep.subr.bf16.mxu0 %v1635_v5  ;;  %v1640_v8 = vld [vmem:[%s1910_s6 + $0x220] ss:$16 sps:$4 sm:$0xff]   ;;  %v1731_v5 = vld [vmem:[%s1910_s6 + $0xc] ss:$16 sps:$4 sm:$0xff]  }
  0x1c   : > { %1137 = vmatprep.subr.bf16.mxu1 %v1637_v6  ;;  %v1641_v9 = vld [vmem:[%s1910_s6 + $0x44] ss:$16 sps:$4 sm:$0xff]   ;;  %v1645_v11 = vld [vmem:[%s1910_s6 + $0x40] ss:$16 sps:$4 sm:$0xff]   ;;  %1167 = vmatprep.mubr.bf16.mxu1 %v1466_v52  ;;  %v1734_v6 = vld [vmem:[%s1910_s6 + $0x20c] ss:$16 sps:$4 sm:$0xff]  }
  0x1d   : > { %v1643_v10 = vld [vmem:[%s1910_s6 + $0x244] ss:$16 sps:$4 sm:$0xff]   ;;  %v1646_v12 = vld [vmem:[%s1910_s6 + $0x240] ss:$16 sps:$4 sm:$0xff]  }
  0x1e   : > { %1097 = vmatpush1.bf16.msra.mxu0 %v1639_v7  ;;  %v1647_v13 = vld [vmem:[%s1910_s6 + $0x64] ss:$16 sps:$4 sm:$0xff]   ;;  %v1651_v15 = vld [vmem:[%s1910_s6 + $0x60] ss:$16 sps:$4 sm:$0xff]  }
  0x1f   : > { %1138 = vmatpush1.bf16.msra.mxu1 %v1640_v8  ;;  %1098 = vmatprep.subr.bf16.mxu0 %v1641_v9  ;;  %v1649_v14 = vld [vmem:[%s1910_s6 + $0x264] ss:$16 sps:$4 sm:$0xff]   ;;  %v1652_v16 = vld [vmem:[%s1910_s6 + $0x260] ss:$16 sps:$4 sm:$0xff]   ;;  %v1986_v8 = vcombine.low %v311_v49, %v311_v49  ;;  %v1729_v9 = vld [vmem:[%s1910_s6 + $0x8] ss:$16 sps:$4 sm:$0xff]  }
  0x20   : > { %1139 = vmatprep.subr.bf16.mxu1 %v1643_v10  ;;  %v1653_v17 = vld [vmem:[%s1910_s6 + $0x84] ss:$16 sps:$4 sm:$0xff]   ;;  %v1657_v19 = vld [vmem:[%s1910_s6 + $0x80] ss:$16 sps:$4 sm:$0xff]   ;;  %v1732_v10 = vld [vmem:[%s1910_s6 + $0x208] ss:$16 sps:$4 sm:$0xff]  }
  0x21   : > { %v1655_v18 = vld [vmem:[%s1910_s6 + $0x284] ss:$16 sps:$4 sm:$0xff]   ;;  %v1658_v20 = vld [vmem:[%s1910_s6 + $0x280] ss:$16 sps:$4 sm:$0xff]   ;;  %v1789_v49 = vld [vmem:[%s1910_s6 + $0x148] ss:$16 sps:$4 sm:$0xff]  }
  0x22   : > { %1099 = vmatpush1.bf16.msra.mxu0 %v1645_v11  ;;  %v1659_v21 = vld [vmem:[%s1910_s6 + $0xa4] ss:$16 sps:$4 sm:$0xff]   ;;  %v1663_v23 = vld [vmem:[%s1910_s6 + $0xa0] ss:$16 sps:$4 sm:$0xff]   ;;  %v1737_v11 = vld [vmem:[%s1910_s6 + $0x2c] ss:$16 sps:$4 sm:$0xff]  }
  0x23   : > { %1140 = vmatpush1.bf16.msra.mxu1 %v1646_v12  ;;  %1100 = vmatprep.subr.bf16.mxu0 %v1647_v13  ;;  %v1661_v22 = vld [vmem:[%s1910_s6 + $0x2a4] ss:$16 sps:$4 sm:$0xff]   ;;  %v1664_v24 = vld [vmem:[%s1910_s6 + $0x2a0] ss:$16 sps:$4 sm:$0xff]   ;;  %v1740_v12 = vld [vmem:[%s1910_s6 + $0x22c] ss:$16 sps:$4 sm:$0xff]  }
  0x24   : > { %1141 = vmatprep.subr.bf16.mxu1 %v1649_v14  ;;  %v1665_v25 = vld [vmem:[%s1910_s6 + $0xc4] ss:$16 sps:$4 sm:$0xff]   ;;  %v1669_v27 = vld [vmem:[%s1910_s6 + $0xc0] ss:$16 sps:$4 sm:$0xff]   ;;  %v1735_v13 = vld [vmem:[%s1910_s6 + $0x28] ss:$16 sps:$4 sm:$0xff]  }
  0x25   : > { %v1667_v26 = vld [vmem:[%s1910_s6 + $0x2c4] ss:$16 sps:$4 sm:$0xff]   ;;  %v1670_v28 = vld [vmem:[%s1910_s6 + $0x2c0] ss:$16 sps:$4 sm:$0xff]   ;;  %v1738_v14 = vld [vmem:[%s1910_s6 + $0x228] ss:$16 sps:$4 sm:$0xff]  }
  0x26   : > { %1101 = vmatpush1.bf16.msra.mxu0 %v1651_v15  ;;  %v1671_v29 = vld [vmem:[%s1910_s6 + $0xe4] ss:$16 sps:$4 sm:$0xff]   ;;  %v1675_v31 = vld [vmem:[%s1910_s6 + $0xe0] ss:$16 sps:$4 sm:$0xff]   ;;  %v1743_v15 = vld [vmem:[%s1910_s6 + $0x4c] ss:$16 sps:$4 sm:$0xff]  }
  0x27   : > { %1142 = vmatpush1.bf16.msra.mxu1 %v1652_v16  ;;  %1102 = vmatprep.subr.bf16.mxu0 %v1653_v17  ;;  %v1673_v30 = vld [vmem:[%s1910_s6 + $0x2e4] ss:$16 sps:$4 sm:$0xff]   ;;  %v1676_v32 = vld [vmem:[%s1910_s6 + $0x2e0] ss:$16 sps:$4 sm:$0xff]   ;;  %v1746_v16 = vld [vmem:[%s1910_s6 + $0x24c] ss:$16 sps:$4 sm:$0xff]  }
  0x28   : > { %1143 = vmatprep.subr.bf16.mxu1 %v1655_v18  ;;  %v1677_v33 = vld [vmem:[%s1910_s6 + $0x104] ss:$16 sps:$4 sm:$0xff]   ;;  %v1681_v35 = vld [vmem:[%s1910_s6 + $0x100] ss:$16 sps:$4 sm:$0xff]   ;;  %v1741_v17 = vld [vmem:[%s1910_s6 + $0x48] ss:$16 sps:$4 sm:$0xff]  }
  0x29   : > { %v1679_v34 = vld [vmem:[%s1910_s6 + $0x304] ss:$16 sps:$4 sm:$0xff]   ;;  %v1682_v36 = vld [vmem:[%s1910_s6 + $0x300] ss:$16 sps:$4 sm:$0xff]   ;;  %v1744_v18 = vld [vmem:[%s1910_s6 + $0x248] ss:$16 sps:$4 sm:$0xff]  }
  0x2a   : > { %1103 = vmatpush1.bf16.msra.mxu0 %v1657_v19  ;;  %v1683_v37 = vld [vmem:[%s1910_s6 + $0x124] ss:$16 sps:$4 sm:$0xff]   ;;  %v1687_v39 = vld [vmem:[%s1910_s6 + $0x120] ss:$16 sps:$4 sm:$0xff]   ;;  %v1749_v19 = vld [vmem:[%s1910_s6 + $0x6c] ss:$16 sps:$4 sm:$0xff]  }
  0x2b   : > { %1144 = vmatpush1.bf16.msra.mxu1 %v1658_v20  ;;  %1104 = vmatprep.subr.bf16.mxu0 %v1659_v21  ;;  %v1685_v38 = vld [vmem:[%s1910_s6 + $0x324] ss:$16 sps:$4 sm:$0xff]   ;;  %v1688_v40 = vld [vmem:[%s1910_s6 + $0x320] ss:$16 sps:$4 sm:$0xff]   ;;  %v1752_v20 = vld [vmem:[%s1910_s6 + $0x26c] ss:$16 sps:$4 sm:$0xff]  }
  0x2c   : > { %1145 = vmatprep.subr.bf16.mxu1 %v1661_v22  ;;  %v1689_v41 = vld [vmem:[%s1910_s6 + $0x144] ss:$16 sps:$4 sm:$0xff]   ;;  %v1693_v43 = vld [vmem:[%s1910_s6 + $0x140] ss:$16 sps:$4 sm:$0xff]   ;;  %v1747_v21 = vld [vmem:[%s1910_s6 + $0x68] ss:$16 sps:$4 sm:$0xff]  }
  0x2d   : > { %v1691_v42 = vld [vmem:[%s1910_s6 + $0x344] ss:$16 sps:$4 sm:$0xff]   ;;  %v1694_v44 = vld [vmem:[%s1910_s6 + $0x340] ss:$16 sps:$4 sm:$0xff]   ;;  %v1750_v22 = vld [vmem:[%s1910_s6 + $0x268] ss:$16 sps:$4 sm:$0xff]  }
  0x2e   : > { %1105 = vmatpush1.bf16.msra.mxu0 %v1663_v23  ;;  %v1695_v45 = vld [vmem:[%s1910_s6 + $0x164] ss:$16 sps:$4 sm:$0xff]   ;;  %v1699_v50 = vld [vmem:[%s1910_s6 + $0x160] ss:$16 sps:$4 sm:$0xff]   ;;  %v1755_v23 = vld [vmem:[%s1910_s6 + $0x8c] ss:$16 sps:$4 sm:$0xff]  }
  0x2f   : > { %1146 = vmatpush1.bf16.msra.mxu1 %v1664_v24  ;;  %1106 = vmatprep.subr.bf16.mxu0 %v1665_v25  ;;  %v1697_v46 = vld [vmem:[%s1910_s6 + $0x364] ss:$16 sps:$4 sm:$0xff]   ;;  %v1700_v51 = vld [vmem:[%s1910_s6 + $0x360] ss:$16 sps:$4 sm:$0xff]   ;;  %v1758_v24 = vld [vmem:[%s1910_s6 + $0x28c] ss:$16 sps:$4 sm:$0xff]  }
  0x30   : > { %1147 = vmatprep.subr.bf16.mxu1 %v1667_v26  ;;  %v310_v47 = vld [vmem:[%s1905_s27] sm:$0xff]  ;;  %v1753_v25 = vld [vmem:[%s1910_s6 + $0x88] ss:$16 sps:$4 sm:$0xff]  }
  0x31   : > { %v1960_v48 = vcombine.high %v310_v47, %v310_v47  ;;  %v1701_v53 = vld [vmem:[%s1910_s6 + $0x184] ss:$16 sps:$4 sm:$0xff]   ;;  %v1705_v55 = vld [vmem:[%s1910_s6 + $0x180] ss:$16 sps:$4 sm:$0xff]   ;;  %v1984_v7 = vcombine.low %v310_v47, %v310_v47  ;;  %v1756_v26 = vld [vmem:[%s1910_s6 + $0x288] ss:$16 sps:$4 sm:$0xff]  }
  0x32   : > { %1107 = vmatpush1.bf16.msra.mxu0 %v1669_v27  ;;  %v1703_v54 = vld [vmem:[%s1910_s6 + $0x384] ss:$16 sps:$4 sm:$0xff]   ;;  %v1706_v56 = vld [vmem:[%s1910_s6 + $0x380] ss:$16 sps:$4 sm:$0xff]   ;;  %v1761_v27 = vld [vmem:[%s1910_s6 + $0xac] ss:$16 sps:$4 sm:$0xff]  }
  0x33   : > { %1148 = vmatpush1.bf16.msra.mxu1 %v1670_v28  ;;  %1108 = vmatprep.subr.bf16.mxu0 %v1671_v29  ;;  %v1707_v57 = vld [vmem:[%s1910_s6 + $0x1a4] ss:$16 sps:$4 sm:$0xff]   ;;  %v1711_v59 = vld [vmem:[%s1910_s6 + $0x1a0] ss:$16 sps:$4 sm:$0xff]   ;;  %v1764_v28 = vld [vmem:[%s1910_s6 + $0x2ac] ss:$16 sps:$4 sm:$0xff]  }
  0x34   : > { %1149 = vmatprep.subr.bf16.mxu1 %v1673_v30  ;;  %1126 = vmatprep.mubr.bf16.mxu0 %v1960_v48  ;;  %v1709_v58 = vld [vmem:[%s1910_s6 + $0x3a4] ss:$16 sps:$4 sm:$0xff]   ;;  %v1712_v60 = vld [vmem:[%s1910_s6 + $0x3a0] ss:$16 sps:$4 sm:$0xff]   ;;  %v1759_v29 = vld [vmem:[%s1910_s6 + $0xa8] ss:$16 sps:$4 sm:$0xff]  }
  0x35   : > { %v1713_v61 = vld [vmem:[%s1910_s6 + $0x1c4] ss:$16 sps:$4 sm:$0xff]   ;;  %v1717_v63 = vld [vmem:[%s1910_s6 + $0x1c0] ss:$16 sps:$4 sm:$0xff]   ;;  %v1762_v30 = vld [vmem:[%s1910_s6 + $0x2a8] ss:$16 sps:$4 sm:$0xff]  }
  0x36   : > { %1109 = vmatpush1.bf16.msra.mxu0 %v1675_v31  ;;  %v1715_v62 = vld [vmem:[%s1910_s6 + $0x3c4] ss:$16 sps:$4 sm:$0xff]   ;;  %v1718_v0 = vld [vmem:[%s1910_s6 + $0x3c0] ss:$16 sps:$4 sm:$0xff]   ;;  %v1767_v31 = vld [vmem:[%s1910_s6 + $0xcc] ss:$16 sps:$4 sm:$0xff]  }
  0x37   : > { %1150 = vmatpush1.bf16.msra.mxu1 %v1676_v32  ;;  %1110 = vmatprep.subr.bf16.mxu0 %v1677_v33  ;;  %v1719_v1 = vld [vmem:[%s1910_s6 + $0x1e4] ss:$16 sps:$4 sm:$0xff]   ;;  %v1723_v3 = vld [vmem:[%s1910_s6 + $0x1e0] ss:$16 sps:$4 sm:$0xff]   ;;  %v1770_v32 = vld [vmem:[%s1910_s6 + $0x2cc] ss:$16 sps:$4 sm:$0xff]  }
  0x38   : > { %1151 = vmatprep.subr.bf16.mxu1 %v1679_v34  ;;  %v1721_v2 = vld [vmem:[%s1910_s6 + $0x3e4] ss:$16 sps:$4 sm:$0xff]   ;;  %v1724_v4 = vld [vmem:[%s1910_s6 + $0x3e0] ss:$16 sps:$4 sm:$0xff]   ;;  %v1765_v33 = vld [vmem:[%s1910_s6 + $0xc8] ss:$16 sps:$4 sm:$0xff]  }
  0x39   : > { %v1768_v34 = vld [vmem:[%s1910_s6 + $0x2c8] ss:$16 sps:$4 sm:$0xff]   ;;  %v1791_v47 = vld [vmem:[%s1910_s6 + $0x14c] ss:$16 sps:$4 sm:$0xff]  }
  0x3a   : > { %1111 = vmatpush1.bf16.msra.mxu0 %v1681_v35  ;;  %v1773_v35 = vld [vmem:[%s1910_s6 + $0xec] ss:$16 sps:$4 sm:$0xff]  }
  0x3b   : > { %1152 = vmatpush1.bf16.msra.mxu1 %v1682_v36  ;;  %1112 = vmatprep.subr.bf16.mxu0 %v1683_v37  ;;  %v1776_v36 = vld [vmem:[%s1910_s6 + $0x2ec] ss:$16 sps:$4 sm:$0xff]   ;;  %v1771_v37 = vld [vmem:[%s1910_s6 + $0xe8] ss:$16 sps:$4 sm:$0xff]  }
  0x3c   : > { %1153 = vmatprep.subr.bf16.mxu1 %v1685_v38  ;;  %v1774_v38 = vld [vmem:[%s1910_s6 + $0x2e8] ss:$16 sps:$4 sm:$0xff]  }
  0x3e   : > { %1113 = vmatpush1.bf16.msra.mxu0 %v1687_v39  ;;  %v1779_v39 = vld [vmem:[%s1910_s6 + $0x10c] ss:$16 sps:$4 sm:$0xff]  }
  0x3f   : > { %1154 = vmatpush1.bf16.msra.mxu1 %v1688_v40  ;;  %1114 = vmatprep.subr.bf16.mxu0 %v1689_v41  ;;  %v1782_v40 = vld [vmem:[%s1910_s6 + $0x30c] ss:$16 sps:$4 sm:$0xff]   ;;  %v1777_v41 = vld [vmem:[%s1910_s6 + $0x108] ss:$16 sps:$4 sm:$0xff]  }
  0x40   : > { %1155 = vmatprep.subr.bf16.mxu1 %v1691_v42  ;;  %v1780_v42 = vld [vmem:[%s1910_s6 + $0x308] ss:$16 sps:$4 sm:$0xff]  }
  0x42   : > { %1115 = vmatpush1.bf16.msra.mxu0 %v1693_v43  ;;  %v1785_v43 = vld [vmem:[%s1910_s6 + $0x12c] ss:$16 sps:$4 sm:$0xff]  }
  0x43   : > { %1156 = vmatpush1.bf16.msra.mxu1 %v1694_v44  ;;  %1116 = vmatprep.subr.bf16.mxu0 %v1695_v45  ;;  %v1788_v44 = vld [vmem:[%s1910_s6 + $0x32c] ss:$16 sps:$4 sm:$0xff]   ;;  %v1783_v45 = vld [vmem:[%s1910_s6 + $0x128] ss:$16 sps:$4 sm:$0xff]  }
  0x44   : > { %1157 = vmatprep.subr.bf16.mxu1 %v1697_v46  ;;  %v1786_v46 = vld [vmem:[%s1910_s6 + $0x328] ss:$16 sps:$4 sm:$0xff]  }
  0x46   : > { %1117 = vmatpush1.bf16.msra.mxu0 %v1699_v50  ;;  %v1792_v50 = vld [vmem:[%s1910_s6 + $0x348] ss:$16 sps:$4 sm:$0xff]  }
  0x47   : > { %1158 = vmatpush1.bf16.msra.mxu1 %v1700_v51  ;;  %1118 = vmatprep.subr.bf16.mxu0 %v1701_v53  ;;  %v1797_v51 = vld [vmem:[%s1910_s6 + $0x16c] ss:$16 sps:$4 sm:$0xff]   ;;  %v1795_v53 = vld [vmem:[%s1910_s6 + $0x168] ss:$16 sps:$4 sm:$0xff]  }
  0x48   : > { %1159 = vmatprep.subr.bf16.mxu1 %v1703_v54  ;;  %v1798_v54 = vld [vmem:[%s1910_s6 + $0x368] ss:$16 sps:$4 sm:$0xff]  }
  0x4a   : > { %1119 = vmatpush1.bf16.msra.mxu0 %v1705_v55  ;;  %v1803_v55 = vld [vmem:[%s1910_s6 + $0x18c] ss:$16 sps:$4 sm:$0xff]  }
  0x4b   : > { %1160 = vmatpush1.bf16.msra.mxu1 %v1706_v56  ;;  %1120 = vmatprep.subr.bf16.mxu0 %v1707_v57  ;;  %v1806_v56 = vld [vmem:[%s1910_s6 + $0x38c] ss:$16 sps:$4 sm:$0xff]   ;;  %v1801_v57 = vld [vmem:[%s1910_s6 + $0x188] ss:$16 sps:$4 sm:$0xff]  }
  0x4c   : > { %1161 = vmatprep.subr.bf16.mxu1 %v1709_v58  ;;  %v1804_v58 = vld [vmem:[%s1910_s6 + $0x388] ss:$16 sps:$4 sm:$0xff]  }
  0x4e   : > { %1121 = vmatpush1.bf16.msra.mxu0 %v1711_v59  ;;  %v1809_v59 = vld [vmem:[%s1910_s6 + $0x1ac] ss:$16 sps:$4 sm:$0xff]  }
  0x4f   : > { %1162 = vmatpush1.bf16.msra.mxu1 %v1712_v60  ;;  %1122 = vmatprep.subr.bf16.mxu0 %v1713_v61  ;;  %v1812_v60 = vld [vmem:[%s1910_s6 + $0x3ac] ss:$16 sps:$4 sm:$0xff]   ;;  %v1807_v61 = vld [vmem:[%s1910_s6 + $0x1a8] ss:$16 sps:$4 sm:$0xff]  }
  0x50   : > { %1163 = vmatprep.subr.bf16.mxu1 %v1715_v62  ;;  %v1810_v62 = vld [vmem:[%s1910_s6 + $0x3a8] ss:$16 sps:$4 sm:$0xff]  }
  0x52   : > { %1123 = vmatpush1.bf16.msra.mxu0 %v1717_v63  ;;  %v1815_v63 = vld [vmem:[%s1910_s6 + $0x1cc] ss:$16 sps:$4 sm:$0xff]  }
  0x53   : > { %1164 = vmatpush1.bf16.msra.mxu1 %v1718_v0  ;;  %1124 = vmatprep.subr.bf16.mxu0 %v1719_v1  ;;  %v1818_v0 = vld [vmem:[%s1910_s6 + $0x3cc] ss:$16 sps:$4 sm:$0xff]   ;;  %v1813_v1 = vld [vmem:[%s1910_s6 + $0x1c8] ss:$16 sps:$4 sm:$0xff]  }
  0x54   : > { %1165 = vmatprep.subr.bf16.mxu1 %v1721_v2  ;;  %v1816_v2 = vld [vmem:[%s1910_s6 + $0x3c8] ss:$16 sps:$4 sm:$0xff]  }
  0x56   : > { %1125 = vmatpush1.bf16.msra.mxu0 %v1723_v3  ;;  %v1821_v3 = vld [vmem:[%s1910_s6 + $0x1ec] ss:$16 sps:$4 sm:$0xff]  }
  0x57   : > { %1166 = vmatpush1.bf16.msra.mxu1 %v1724_v4  ;;  %1176 = vmatprep.subr.bf16.mxu0 %v1731_v5  ;;  %v1824_v4 = vld [vmem:[%s1910_s6 + $0x3ec] ss:$16 sps:$4 sm:$0xff]   ;;  %v1819_v5 = vld [vmem:[%s1910_s6 + $0x1e8] ss:$16 sps:$4 sm:$0xff]  }
  0x58   : > { %1217 = vmatprep.subr.bf16.mxu1 %v1734_v6  ;;  %v1822_v6 = vld [vmem:[%s1910_s6 + $0x3e8] ss:$16 sps:$4 sm:$0xff]  }
  0x59   : > { %1127 = vmatmul.mubr.bf16.vlgmr.msra.gmra.mrb[0].mxu0 %v1984_v7 }
  0x5a   : > { %1168 = vmatmul.mubr.bf16.vlgmr.msra.gmra.mrb[0].mxu1 %v1986_v8  ;;  %1177 = vmatpush1.bf16.msra.mxu0 %v1729_v9 }
  0x5b   : > { %1218 = vmatpush1.bf16.msra.mxu1 %v1732_v10  ;;  %1178 = vmatprep.subr.bf16.mxu0 %v1737_v11  ;;  %v306_v10 = vld [vmem:[#allocation2] sm:$0xff] }
  0x5c   : > { %1219 = vmatprep.subr.bf16.mxu1 %v1740_v12  ;;  %1208 = vmatprep.mubr.bf16.mxu0 %v1960_v48  ;;  %v1794_v48 = vld [vmem:[%s1910_s6 + $0x34c] ss:$16 sps:$4 sm:$0xff]  }
  0x5d   : > { %1249 = vmatprep.mubr.bf16.mxu1 %v1466_v52  ;;  %v1800_v52 = vld [vmem:[%s1910_s6 + $0x36c] ss:$16 sps:$4 sm:$0xff]  }
  0x5e   : > { %1179 = vmatpush1.bf16.msra.mxu0 %v1735_v13 }
  0x5f   : > { %1220 = vmatpush1.bf16.msra.mxu1 %v1738_v14  ;;  %1180 = vmatprep.subr.bf16.mxu0 %v1743_v15  ;;  %v307_v14 = vld [vmem:[#allocation2 + $0x8] sm:$0xff] }
  0x60   : > { %1221 = vmatprep.subr.bf16.mxu1 %v1746_v16 }
  0x62   : > { %1181 = vmatpush1.bf16.msra.mxu0 %v1741_v17 }
  0x63   : > { %1222 = vmatpush1.bf16.msra.mxu1 %v1744_v18  ;;  %1182 = vmatprep.subr.bf16.mxu0 %v1749_v19 }
  0x64   : > { %1223 = vmatprep.subr.bf16.mxu1 %v1752_v20 }
  0x66   : > { %1183 = vmatpush1.bf16.msra.mxu0 %v1747_v21 }
  0x67   : > { %1224 = vmatpush1.bf16.msra.mxu1 %v1750_v22  ;;  %1184 = vmatprep.subr.bf16.mxu0 %v1755_v23 }
  0x68   : > { %1225 = vmatprep.subr.bf16.mxu1 %v1758_v24 }
  0x6a   : > { %1185 = vmatpush1.bf16.msra.mxu0 %v1753_v25 }
  0x6b   : > { %1226 = vmatpush1.bf16.msra.mxu1 %v1756_v26  ;;  %1186 = vmatprep.subr.bf16.mxu0 %v1761_v27  ;;  %v309_v26 = vld [vmem:[#allocation2 + $0x18] sm:$0xff] }
  0x6c   : > { %1227 = vmatprep.subr.bf16.mxu1 %v1764_v28 }
  0x6e   : > { %1187 = vmatpush1.bf16.msra.mxu0 %v1759_v29 }
  0x6f   : > { %1228 = vmatpush1.bf16.msra.mxu1 %v1762_v30  ;;  %1188 = vmatprep.subr.bf16.mxu0 %v1767_v31 }
  0x70   : > { %1229 = vmatprep.subr.bf16.mxu1 %v1770_v32 }
  0x72   : > { %1189 = vmatpush1.bf16.msra.mxu0 %v1765_v33 }
  0x73   : > { %1230 = vmatpush1.bf16.msra.mxu1 %v1768_v34  ;;  %1190 = vmatprep.subr.bf16.mxu0 %v1773_v35  ;;  %v1276_v35 = vlaneseq (!%p1595_p7) }
  0x74   : > { %1231 = vmatprep.subr.bf16.mxu1 %v1776_v36 }
  0x75   : > { %v1277_v36 = vshrl.u32 (!%p1595_p7), %v1276_v35, 7 }
  0x76   : > { %1191 = vmatpush1.bf16.msra.mxu0 %v1771_v37  ;;  %v1274_v37 = vld [vmem:[%s2085_s2] sm:$0xf] (!%p1595_p7) }
  0x77   : > { %1232 = vmatpush1.bf16.msra.mxu1 %v1774_v38  ;;  %1192 = vmatprep.subr.bf16.mxu0 %v1779_v39  ;;  %v1300_v38 = vld [vmem:[%s2086_s3] sm:$0xf] (!%p1595_p7)  ;;  %v1278_v39 = vsub.s32 (!%p1595_p7), 0, %v1277_v36 }
  0x78   : > { %1233 = vmatprep.subr.bf16.mxu1 %v1782_v40  ;;  %v1282_v40 = vsub.s32 (!%p1595_p7), 1, %v1277_v36 }
  0x7a   : > { %1193 = vmatpush1.bf16.msra.mxu0 %v1777_v41  ;;  %v1286_v41 = vsub.s32 (!%p1595_p7), 2, %v1277_v36 }
  0x7b   : > { %1234 = vmatpush1.bf16.msra.mxu1 %v1780_v42  ;;  %1194 = vmatprep.subr.bf16.mxu0 %v1785_v43  ;;  %v1290_v42 = vsub.s32 (!%p1595_p7), 3, %v1277_v36 }
  0x7c   : > { %1235 = vmatprep.subr.bf16.mxu1 %v1788_v44 }
  0x7e   : > { %1195 = vmatpush1.bf16.msra.mxu0 %v1783_v45  ;;  %v1326_v45 = vld [vmem:[%s2087_s4] sm:$0xff] (!%p1595_p7) }
  0x7f   : > { %1236 = vmatpush1.bf16.msra.mxu1 %v1786_v46  ;;  %1196 = vmatprep.subr.bf16.mxu0 %v1791_v47  ;;  %v1279_v46 = vrot.slane (!%p1595_p7), %v1274_v37, %v1278_v39  ;;  %v1283_v47 = vrot.slane (!%p1595_p7), %v1274_v37, %v1282_v40 }
  0x80   : > { %1237 = vmatprep.subr.bf16.mxu1 %v1794_v48  ;;  %v1305_v48 = vrot.slane (!%p1595_p7), %v1300_v38, %v1278_v39 }
  0x82   : > { %1197 = vmatpush1.bf16.msra.mxu0 %v1789_v49  ;;  %v1309_v49 = vrot.slane (!%p1595_p7), %v1300_v38, %v1282_v40 }
  0x83   : > { %1238 = vmatpush1.bf16.msra.mxu1 %v1792_v50  ;;  %1198 = vmatprep.subr.bf16.mxu0 %v1797_v51 }
  0x84   : > { %1239 = vmatprep.subr.bf16.mxu1 %v1800_v52  ;;  %v1327_v52 = vld [vmem:[%s2087_s4 + $0x8] sm:$0xff] (!%p1595_p7) }
  0x86   : > { %1199 = vmatpush1.bf16.msra.mxu0 %v1795_v53  ;;  %v1287_v53 = vrot.slane (!%p1595_p7), %v1274_v37, %v1286_v41 }
  0x87   : > { %1240 = vmatpush1.bf16.msra.mxu1 %v1798_v54  ;;  %1200 = vmatprep.subr.bf16.mxu0 %v1803_v55  ;;  %v1291_v54 = vrot.slane (!%p1595_p7), %v1274_v37, %v1290_v42  ;;  %v1313_v55 = vrot.slane (!%p1595_p7), %v1300_v38, %v1286_v41 }
  0x88   : > { %1241 = vmatprep.subr.bf16.mxu1 %v1806_v56  ;;  %v1317_v56 = vrot.slane (!%p1595_p7), %v1300_v38, %v1290_v42 }
  0x8a   : > { %1201 = vmatpush1.bf16.msra.mxu0 %v1801_v57 }
  0x8b   : > { %1242 = vmatpush1.bf16.msra.mxu1 %v1804_v58  ;;  %1202 = vmatprep.subr.bf16.mxu0 %v1809_v59  ;;  %v1328_v59 = vunpack.c.l.bf16 (!%p1595_p7), %v1326_v45 }
  0x8c   : > { %1243 = vmatprep.subr.bf16.mxu1 %v1812_v60  ;;  %v1329_v60 = vunpack.c.h.bf16 (!%p1595_p7), %v1326_v45 }
  0x8e   : > { %1203 = vmatpush1.bf16.msra.mxu0 %v1807_v61 }
  0x8f   : > { %1244 = vmatpush1.bf16.msra.mxu1 %v1810_v62  ;;  %1204 = vmatprep.subr.bf16.mxu0 %v1815_v63  ;;  %v1330_v63 = vunpack.c.l.bf16 (!%p1595_p7), %v1327_v52 }
  0x90   : > { %1245 = vmatprep.subr.bf16.mxu1 %v1818_v0  ;;  %v1331_v0 = vunpack.c.h.bf16 (!%p1595_p7), %v1327_v52 }
  0x92   : > { %1205 = vmatpush1.bf16.msra.mxu0 %v1813_v1 }
  0x93   : > { %1246 = vmatpush1.bf16.msra.mxu1 %v1816_v2  ;;  %1206 = vmatprep.subr.bf16.mxu0 %v1821_v3 }
  0x94   : > { %1247 = vmatprep.subr.bf16.mxu1 %v1824_v4 }
  0x96   : > { %1207 = vmatpush1.bf16.msra.mxu0 %v1819_v5 }
  0x97   : > { %1248 = vmatpush1.bf16.msra.mxu1 %v1822_v6 }
  0x99   : > { %1209 = vmatmul.mubr.bf16.vlgmr.msra.gmra.mrb[4].mxu0 %v1984_v7  ;;  %v308_v7 = vld [vmem:[#allocation2 + $0x10] sm:$0xff] }
  0x9a   : > { %1250 = vmatmul.mubr.bf16.vlgmr.msra.gmra.mrb[4].mxu1 %v1986_v8 }
 0x12c   : > { %v1128_v9 = vpop.f32.mrb[0].mxu0 }
 0x12d   : > { %v1169_v11 = vpop.f32.mrb[0].mxu1  ;;  %v1130_v13 = vpop.f32.mrb[1].mxu0 }
 0x12e   : > { %v1170_v12 = vadd.f32 %v1169_v11, %v1128_v9  ;;  %v1171_v15 = vpop.f32.mrb[1].mxu1  ;;  %v1132_v17 = vpop.f32.mrb[2].mxu0 }
 0x12f   : > { %v1172_v16 = vadd.f32 %v1171_v15, %v1130_v13  ;;  %v1173_v18 = vpop.f32.mrb[2].mxu1  ;;  %v1133_v20 = vpop.f32.mrb[3].mxu0 }
 0x130   : > { %v1258_v19 = vadd.f32 %v1170_v12, %v306_v10  ;;  %v1174_v21 = vpop.f32.mrb[3].mxu1 }
 0x131   : > { %v1259_v22 = vadd.f32 %v1172_v16, %v307_v14 }
 0x132   : > { %1262 = vst [vmem:[#allocation2] sm:$0xff] %v1258_v19 }
 0x133   : > { %1263 = vst [vmem:[#allocation2 + $0x8] sm:$0xff] %v1259_v22 }
 0x139   : > { %v1270_v43 = vld [vmem:[#allocation2] sm:$0xff] (!%p1595_p7) }
 0x13a   : > { %v1271_v44 = vld [vmem:[#allocation2 + $0x8] sm:$0xff] (!%p1595_p7)  ;;  %v1296_v57 = vmul.f32 (!%p1595_p7), %v1279_v46, %v1270_v43 }
 0x13b   : > { %v1297_v58 = vmul.f32 (!%p1595_p7), %v1283_v47, %v1271_v44 }
 0x13c   : > { %v1322_v1 = vadd.f32 (!%p1595_p7), %v1305_v48, %v1296_v57 }
 0x13d   : > { %v1323_v2 = vadd.f32 (!%p1595_p7), %v1309_v49, %v1297_v58 }
 0x13e   : > { %v1332_v5 = vadd.f32 (!%p1595_p7), %v1328_v59, %v1322_v1 }
 0x13f   : > { %v1333_v6 = vadd.f32 (!%p1595_p7), %v1329_v60, %v1323_v2 }
 0x140   : > { %v1336_v11 = vmax.f32 (!%p1595_p7), %v1332_v5, 0.0 }
 0x141   : > { %v1337_v12 = vmax.f32 (!%p1595_p7), %v1333_v6, 0.0 }
 0x143   : > { %v1602_v15 = vpack.c.bf16 (!%p1595_p7), %v1337_v12, %v1336_v11 }
 0x145   : > { %1356 = vst [vmem:[%s2088_s5] sm:$0xff] (!%p1595_p7), %v1602_v15 }
 0x16c   : > { %v1210_v23 = vpop.f32.mrb[4].mxu0 }
 0x16d   : > { %v1251_v24 = vpop.f32.mrb[4].mxu1  ;;  %v1212_v25 = vpop.f32.mrb[5].mxu0  ;;  %1269 = sbr.rel (%p1595_p7) target bundleno = 390 (0x186), region = 48 }
 0x16e   : > { %v1252_v8 = vadd.f32 %v1251_v24, %v1210_v23  ;;  %v1253_v27 = vpop.f32.mrb[5].mxu1  ;;  %v1214_v29 = vpop.f32.mrb[6].mxu0 }
 0x16f   : > { %v1254_v28 = vadd.f32 %v1253_v27, %v1212_v25  ;;  %v1255_v30 = vpop.f32.mrb[6].mxu1  ;;  %v1215_v32 = vpop.f32.mrb[7].mxu0 }
 0x170   : > { %v1260_v31 = vadd.f32 %v1252_v8, %v308_v7  ;;  %v1256_v33 = vpop.f32.mrb[7].mxu1 }
 0x171   : > { %v1261_v34 = vadd.f32 %v1254_v28, %v309_v26 }
 0x172   : > { %1264 = vst [vmem:[#allocation2 + $0x10] sm:$0xff] %v1260_v31 }
 0x173   : > { %1265 = vst [vmem:[#allocation2 + $0x18] sm:$0xff] %v1261_v34 }
 0x179   : > { %v1272_v50 = vld [vmem:[#allocation2 + $0x10] sm:$0xff] }
 0x17a   : > { %v1273_v51 = vld [vmem:[#allocation2 + $0x18] sm:$0xff]  ;;  %v1298_v61 = vmul.f32 %v1287_v53, %v1272_v50 }
 0x17b   : > { %v1299_v62 = vmul.f32 %v1291_v54, %v1273_v51 }
 0x17c   : > { %v1324_v3 = vadd.f32 %v1313_v55, %v1298_v61 }
 0x17d   : > { %v1325_v4 = vadd.f32 %v1317_v56, %v1299_v62 }
 0x17e   : > { %v1334_v9 = vadd.f32 %v1330_v63, %v1324_v3 }
 0x17f   : > { %v1335_v10 = vadd.f32 %v1331_v0, %v1325_v4 }
 0x180   : > { %v1338_v13 = vmax.f32 %v1334_v9, 0.0 }
 0x181   : > { %v1339_v14 = vmax.f32 %v1335_v10, 0.0 }
 0x183   : > { %v1603_v16 = vpack.c.bf16 %v1339_v14, %v1338_v13 }
 0x185   : > { %1357 = vst [vmem:[%s2088_s5 + $0x8] sm:$0xff] %v1603_v16 }
 0x186 PF: > { %s15_s20 = sadd.s32 1, %s1847_s20   ;;  %s2089_s18 = smov %s1843_s19 }
 0x187   : > { %p12_p8 = scmp.ge.s32.totalorder %s15_s20, 11   ;;  %s2090_s19 = smov %s2092_s21 }
 0x189   :  { %14 = sbr.rel (!%p12_p8) target bundleno = 2 (0x2), region = 84 }

// kernel: resnet_forward.43
= control target key start
LH: loop header
LB: loop body
LE: loop exit
PB: predicated region body
PF: predicated region fallthrough
CT: control target
= control target key end

     0   :  { %s627_s1 = inlined_call_operand.vmem [shape: bf16[512,128], index: 1, kind: input, shape index: {}]   ;;  %s628_s0 = inlined_call_operand.vmem [shape: bf16[8,512], index: 0, kind: input, shape index: {}]   ;;  %s629_s2 = inlined_call_operand.vmem [shape: f32[1,128], index: 2, kind: input, shape index: {}]   ;;  %s630_s3 = inlined_call_operand.vmem [shape: f32[1,128], index: 3, kind: output, shape index: {}]  }
   0x1   :  { %v467_v0 = vld [vmem:[%s627_s1 + $0x40] sm:$0xff]   ;;  %v471_v4 = vld [vmem:[%s627_s1 + $0x48] sm:$0xff]   ;;  %v475_v8 = vld [vmem:[%s627_s1 + $0x50] sm:$0xff]  }
   0x2   :  { %v468_v1 = vld [vmem:[%s627_s1 + $0xc0] sm:$0xff]   ;;  %423 = vmatprep.subr.bf16.mxu0 %v467_v0  ;;  %v472_v5 = vld [vmem:[%s627_s1 + $0xc8] sm:$0xff]   ;;  %v476_v9 = vld [vmem:[%s627_s1 + $0xd0] sm:$0xff]  }
   0x3   :  { %v469_v2 = vld [vmem:[%s627_s1] sm:$0xff]   ;;  %445 = vmatprep.subr.bf16.mxu1 %v468_v1  ;;  %v473_v6 = vld [vmem:[%s627_s1 + $0x8] sm:$0xff]   ;;  %v477_v10 = vld [vmem:[%s627_s1 + $0x10] sm:$0xff]  }
   0x4   :  { %v470_v3 = vld [vmem:[%s627_s1 + $0x80] sm:$0xff]   ;;  %424 = vmatpush3.bf16.msra.mxu0 %v469_v2  ;;  %v474_v7 = vld [vmem:[%s627_s1 + $0x88] sm:$0xff]   ;;  %v478_v11 = vld [vmem:[%s627_s1 + $0x90] sm:$0xff]  }
   0x5   :  { %446 = vmatpush3.bf16.msra.mxu1 %v470_v3  ;;  %425 = vmatprep.subr.bf16.mxu0 %v471_v4  ;;  %v479_v12 = vld [vmem:[%s627_s1 + $0x58] sm:$0xff]   ;;  %v483_v16 = vld [vmem:[%s627_s1 + $0x60] sm:$0xff]   ;;  %v487_v20 = vld [vmem:[%s627_s1 + $0x68] sm:$0xff]  }
   0x6   :  { %447 = vmatprep.subr.bf16.mxu1 %v472_v5  ;;  %v480_v13 = vld [vmem:[%s627_s1 + $0xd8] sm:$0xff]   ;;  %v484_v17 = vld [vmem:[%s627_s1 + $0xe0] sm:$0xff]   ;;  %v488_v21 = vld [vmem:[%s627_s1 + $0xe8] sm:$0xff]  }
   0x7   :  { %v481_v14 = vld [vmem:[%s627_s1 + $0x18] sm:$0xff]   ;;  %v485_v18 = vld [vmem:[%s627_s1 + $0x20] sm:$0xff]   ;;  %v489_v22 = vld [vmem:[%s627_s1 + $0x28] sm:$0xff]  }
   0x8   :  { %426 = vmatpush3.bf16.msra.mxu0 %v473_v6  ;;  %v482_v15 = vld [vmem:[%s627_s1 + $0x98] sm:$0xff]   ;;  %v486_v19 = vld [vmem:[%s627_s1 + $0xa0] sm:$0xff]   ;;  %v490_v23 = vld [vmem:[%s627_s1 + $0xa8] sm:$0xff]  }
   0x9   :  { %448 = vmatpush3.bf16.msra.mxu1 %v474_v7  ;;  %427 = vmatprep.subr.bf16.mxu0 %v475_v8  ;;  %v491_v24 = vld [vmem:[%s627_s1 + $0x70] sm:$0xff]   ;;  %v495_v28 = vld [vmem:[%s627_s1 + $0x78] sm:$0xff]   ;;  %v15_v32 = vld [vmem:[%s628_s0] sm:$0xff] }
   0xa   :  { %449 = vmatprep.subr.bf16.mxu1 %v476_v9  ;;  %v492_v25 = vld [vmem:[%s627_s1 + $0xf0] sm:$0xff]   ;;  %v496_v29 = vld [vmem:[%s627_s1 + $0xf8] sm:$0xff]   ;;  %v16_v33 = vld [vmem:[%s628_s0 + $0x8] sm:$0xff]  ;;  %v17_v34 = vunpack.c.l.bf16 %v15_v32  ;;  %v18_v35 = vunpack.c.h.bf16 %v15_v32 }
   0xb   :  { %v493_v26 = vld [vmem:[%s627_s1 + $0x30] sm:$0xff]   ;;  %v497_v30 = vld [vmem:[%s627_s1 + $0x38] sm:$0xff]   ;;  %v19_v36 = vunpack.c.l.bf16 %v16_v33  ;;  %v20_v37 = vunpack.c.h.bf16 %v16_v33  ;;  %v113_v4 = vld [vmem:[%s629_s2] sm:$0x1] }
   0xc   :  { %428 = vmatpush3.bf16.msra.mxu0 %v477_v10  ;;  %v494_v27 = vld [vmem:[%s627_s1 + $0xb0] sm:$0xff]   ;;  %v498_v31 = vld [vmem:[%s627_s1 + $0xb8] sm:$0xff]   ;;  %v27_v38 = vrot.slane %v18_v35, 4  ;;  %v21_v40 = vrot.slane %v17_v34, 4 }
   0xd   :  { %450 = vmatpush3.bf16.msra.mxu1 %v478_v11  ;;  %429 = vmatprep.subr.bf16.mxu0 %v479_v12  ;;  %v39_v39 = vrot.slane %v20_v37, 4  ;;  %v33_v41 = vrot.slane %v19_v36, 4 }
   0xe   :  { %451 = vmatprep.subr.bf16.mxu1 %v480_v13  ;;  %v28_v42 = vadd.f32 %v27_v38, %v18_v35  ;;  %v22_v44 = vadd.f32 %v21_v40, %v17_v34 }
   0xf   :  { %v40_v43 = vadd.f32 %v39_v39, %v20_v37  ;;  %v34_v45 = vadd.f32 %v33_v41, %v19_v36 }
  0x10   :  { %430 = vmatpush3.bf16.msra.mxu0 %v481_v14  ;;  %v29_v46 = vrot.slane %v28_v42, 2  ;;  %v23_v48 = vrot.slane %v22_v44, 2 }
  0x11   :  { %452 = vmatpush3.bf16.msra.mxu1 %v482_v15  ;;  %431 = vmatprep.subr.bf16.mxu0 %v483_v16  ;;  %v41_v47 = vrot.slane %v40_v43, 2  ;;  %v35_v49 = vrot.slane %v34_v45, 2 }
  0x12   :  { %453 = vmatprep.subr.bf16.mxu1 %v484_v17  ;;  %v30_v50 = vadd.f32 %v29_v46, %v28_v42  ;;  %v24_v52 = vadd.f32 %v23_v48, %v22_v44 }
  0x13   :  { %v42_v51 = vadd.f32 %v41_v47, %v40_v43  ;;  %v36_v53 = vadd.f32 %v35_v49, %v34_v45 }
  0x14   :  { %432 = vmatpush3.bf16.msra.mxu0 %v485_v18  ;;  %v31_v54 = vrot.slane %v30_v50, 1  ;;  %v25_v56 = vrot.slane %v24_v52, 1 }
  0x15   :  { %454 = vmatpush3.bf16.msra.mxu1 %v486_v19  ;;  %433 = vmatprep.subr.bf16.mxu0 %v487_v20  ;;  %v43_v55 = vrot.slane %v42_v51, 1  ;;  %v37_v57 = vrot.slane %v36_v53, 1 }
  0x16   :  { %455 = vmatprep.subr.bf16.mxu1 %v488_v21  ;;  %v32_v58 = vadd.f32 %v31_v54, %v30_v50  ;;  %v26_v60 = vadd.f32 %v25_v56, %v24_v52 }
  0x17   :  { %v44_v59 = vadd.f32 %v43_v55, %v42_v51  ;;  %v38_v61 = vadd.f32 %v37_v57, %v36_v53 }
  0x18   :  { %434 = vmatpush3.bf16.msra.mxu0 %v489_v22  ;;  %v46_v62 = vpack.c.bf16 %v32_v58, %v32_v58  ;;  %v45_v0 = vpack.c.bf16 %v26_v60, %v26_v60 }
  0x19   :  { %456 = vmatpush3.bf16.msra.mxu1 %v490_v23  ;;  %435 = vmatprep.subr.bf16.mxu0 %v491_v24  ;;  %v48_v63 = vpack.c.bf16 %v44_v59, %v44_v59  ;;  %v47_v1 = vpack.c.bf16 %v38_v61, %v38_v61 }
  0x1a   :  { %457 = vmatprep.subr.bf16.mxu1 %v492_v25  ;;  %338 = vmatprep.mubr.bf16.mxu0 %v46_v62 }
  0x1b   :  { %378 = vmatprep.mubr.bf16.mxu1 %v48_v63 }
  0x1c   :  { %436 = vmatpush3.bf16.msra.mxu0 %v493_v26 }
  0x1d   :  { %458 = vmatpush3.bf16.msra.mxu1 %v494_v27  ;;  %437 = vmatprep.subr.bf16.mxu0 %v495_v28 }
  0x1e   :  { %459 = vmatprep.subr.bf16.mxu1 %v496_v29 }
  0x20   :  { %438 = vmatpush3.bf16.msra.mxu0 %v497_v30 }
  0x21   :  { %460 = vmatpush3.bf16.msra.mxu1 %v498_v31 }
  0x23   :  { %339 = vmatmul.mubr.bf16.vlgmr.msra.gmra.mrb[0].mxu0 %v45_v0 }
  0x24   :  { %379 = vmatmul.mubr.bf16.vlgmr.msra.gmra.mrb[0].mxu1 %v47_v1 }
  0xf6   :  { %v439_v2 = vpop.f32.mrb[0].mxu0 }
  0xf7   :  { %v461_v3 = vpop.f32.mrb[0].mxu1  ;;  %v440_v5 = vpop.f32.mrb[1].mxu0 }
  0xf8   :  { %v462_v6 = vpop.f32.mrb[1].mxu1  ;;  %v441_v7 = vadd.f32 %v440_v5, %v439_v2  ;;  %v442_v9 = vpop.f32.mrb[2].mxu0 }
  0xf9   :  { %v463_v8 = vadd.f32 %v462_v6, %v461_v3  ;;  %v464_v10 = vpop.f32.mrb[2].mxu1  ;;  %v443_v11 = vpop.f32.mrb[3].mxu0 }
  0xfa   :  { %v465_v12 = vpop.f32.mrb[3].mxu1  ;;  %v341_v13 = vadd.f32 %v441_v7, %v113_v4 }
  0xfc   :  { %v381_v14 = vadd.f32 %v463_v8, %v341_v13 }
  0xfe   :  { %386 = vst [vmem:[%s630_s3] sm:$0x1] %v381_v14 }

// kernel: resnet_forward.41
= control target key start
LH: loop header
LB: loop body
LE: loop exit
PB: predicated region body
PF: predicated region fallthrough
CT: control target
= control target key end

     0   :  { %s1802_s15 = smov 0   ;;  %s1804_s16 = smov 0   ;;  %s1999_s0 = inlined_call_operand.vmem [shape: bf16[8,4608], index: 0, kind: input, shape index: {}]   ;;  %s2000_s1 = inlined_call_operand.vmem [shape: bf16[4608,512], index: 1, kind: input, shape index: {}]   ;;  %s2001_s2 = inlined_call_operand.vmem [shape: f32[1,512], index: 2, kind: input, shape index: {}]   ;;  %s2002_s3 = inlined_call_operand.vmem [shape: f32[1,512], index: 3, kind: input, shape index: {}]   ;;  %s2003_s4 = inlined_call_operand.vmem [shape: bf16[8,512], index: 4, kind: output, shape index: {}]  }
   0x1   :  { %s1806_s17 = smov 0  }
   0x2 LB: > { %s23_s18 = sadd.s32 1, %s1770_s16  ;;  %p1383_p0 = scmp.ge.s32.totalorder %s1774_s17, 1  ;;  %s1774_s17 = sphi %s1806_s17, %s14_s17   ;;  %s1770_s16 = sphi %s1804_s16, %s2005_s16   ;;  %s1766_s15 = sphi %s1802_s15, %s2004_s15  }
   0x3   : > { %p24_p1 = scmp.ge.s32.totalorder %s23_s18, 9  ;;  %p193_p2 = scmp.lt.s32.totalorder %s1774_s17, 10 }
   0x5   : > { %s2007_s18 = smov (%p24_p1, %s23_s18), 0  ;;  %p194_p3 = pnand %p1383_p0, %p193_p2 }
   0x6   : > { %s1384_s19 = sshll.u32 (!%p194_p3), %s1766_s15, 2  ;;  %s1386_s20 = sshll.u32 (!%p194_p3), %s1766_s15, 6 }
   0x7   : > { %197 = sbr.rel (%p194_p3) target bundleno = 388 (0x184), region = 36  ;;  %p232_p4 = scmp.lt.s32.totalorder (!%p194_p3), %s1384_s19, 35 }
   0x8   : > { %p240_p5 = scmp.lt.s32.totalorder (!%p194_p3), %s1386_s20, 575  ;;  %p1389_p6 = scmp.ne.s32.totalorder (!%p194_p3), %s1766_s15, 0 }
   0xe   : > { %s2009_s19 = smov (!%p232_p4, %s1384_s19), 35  ;;  %s2011_s20 = smov (!%p240_p5, %s1386_s20), 575 }
   0xf   : > { %s1385_s21 = sshll.u32 %s2009_s19, 2  ;;  %s1528_s25 = sshll.u32 %s2011_s20, 4  ;;  %v1776_v0 = vmov (!%p1389_p6), 0.0  }
  0x10   : > { %s1827_s24 = scalar_lea.vmem %s1999_s0, %s1385_s21  ;;  %s1832_s28 = scalar_lea.vmem %s2000_s1, %s1528_s25  ;;  %255 = vst [vmem:[#allocation2] sm:$0xff] (!%p1389_p6), %v1776_v0  ;;  %256 = vst [vmem:[#allocation2 + $0x8] sm:$0xff] (!%p1389_p6), %v1776_v0 }
  0x11   : > { %254 = sbr.rel (%p1389_p6) target bundleno = 24 (0x18), region = 40  ;;  %257 = vst [vmem:[#allocation2 + $0x10] sm:$0xff] (!%p1389_p6), %v1776_v0  ;;  %258 = vst [vmem:[#allocation2 + $0x18] sm:$0xff] (!%p1389_p6), %v1776_v0 }
  0x18 PF: > { %v1556_v1 = vld [vmem:[%s1832_s28 + $0x4] ss:$16 sps:$4 sm:$0xff]   ;;  %v1560_v3 = vld [vmem:[%s1832_s28] ss:$16 sps:$4 sm:$0xff]   ;;  %v264_v49 = vld [vmem:[%s1827_s24 + $0x8] sm:$0xff]  ;;  %p1522_p7 = scmp.ne.s32.totalorder %s1766_s15, 8 }
  0x19   : > { %v1558_v2 = vld [vmem:[%s1832_s28 + $0x204] ss:$16 sps:$4 sm:$0xff]   ;;  %1047 = vmatprep.subr.bf16.mxu0 %v1556_v1  ;;  %v1561_v4 = vld [vmem:[%s1832_s28 + $0x200] ss:$16 sps:$4 sm:$0xff]   ;;  %v1393_v52 = vcombine.high %v264_v49, %v264_v49 }
  0x1a   : > { %1088 = vmatprep.subr.bf16.mxu1 %v1558_v2  ;;  %v1562_v5 = vld [vmem:[%s1832_s28 + $0x24] ss:$16 sps:$4 sm:$0xff]   ;;  %1048 = vmatpush1.bf16.msra.mxu0 %v1560_v3  ;;  %v1566_v7 = vld [vmem:[%s1832_s28 + $0x20] ss:$16 sps:$4 sm:$0xff]  }
  0x1b   : > { %1089 = vmatpush1.bf16.msra.mxu1 %v1561_v4  ;;  %v1564_v6 = vld [vmem:[%s1832_s28 + $0x224] ss:$16 sps:$4 sm:$0xff]   ;;  %1049 = vmatprep.subr.bf16.mxu0 %v1562_v5  ;;  %v1567_v8 = vld [vmem:[%s1832_s28 + $0x220] ss:$16 sps:$4 sm:$0xff]   ;;  %v1658_v5 = vld [vmem:[%s1832_s28 + $0xc] ss:$16 sps:$4 sm:$0xff]  }
  0x1c   : > { %1090 = vmatprep.subr.bf16.mxu1 %v1564_v6  ;;  %v1568_v9 = vld [vmem:[%s1832_s28 + $0x44] ss:$16 sps:$4 sm:$0xff]   ;;  %v1572_v11 = vld [vmem:[%s1832_s28 + $0x40] ss:$16 sps:$4 sm:$0xff]   ;;  %1120 = vmatprep.mubr.bf16.mxu1 %v1393_v52  ;;  %v1661_v6 = vld [vmem:[%s1832_s28 + $0x20c] ss:$16 sps:$4 sm:$0xff]  }
  0x1d   : > { %v1570_v10 = vld [vmem:[%s1832_s28 + $0x244] ss:$16 sps:$4 sm:$0xff]   ;;  %v1573_v12 = vld [vmem:[%s1832_s28 + $0x240] ss:$16 sps:$4 sm:$0xff]  }
  0x1e   : > { %1050 = vmatpush1.bf16.msra.mxu0 %v1566_v7  ;;  %v1574_v13 = vld [vmem:[%s1832_s28 + $0x64] ss:$16 sps:$4 sm:$0xff]   ;;  %v1578_v15 = vld [vmem:[%s1832_s28 + $0x60] ss:$16 sps:$4 sm:$0xff]  }
  0x1f   : > { %1091 = vmatpush1.bf16.msra.mxu1 %v1567_v8  ;;  %1051 = vmatprep.subr.bf16.mxu0 %v1568_v9  ;;  %v1576_v14 = vld [vmem:[%s1832_s28 + $0x264] ss:$16 sps:$4 sm:$0xff]   ;;  %v1579_v16 = vld [vmem:[%s1832_s28 + $0x260] ss:$16 sps:$4 sm:$0xff]   ;;  %v1908_v8 = vcombine.low %v264_v49, %v264_v49  ;;  %v1656_v9 = vld [vmem:[%s1832_s28 + $0x8] ss:$16 sps:$4 sm:$0xff]  }
  0x20   : > { %1092 = vmatprep.subr.bf16.mxu1 %v1570_v10  ;;  %v1580_v17 = vld [vmem:[%s1832_s28 + $0x84] ss:$16 sps:$4 sm:$0xff]   ;;  %v1584_v19 = vld [vmem:[%s1832_s28 + $0x80] ss:$16 sps:$4 sm:$0xff]   ;;  %v1659_v10 = vld [vmem:[%s1832_s28 + $0x208] ss:$16 sps:$4 sm:$0xff]  }
  0x21   : > { %v1582_v18 = vld [vmem:[%s1832_s28 + $0x284] ss:$16 sps:$4 sm:$0xff]   ;;  %v1585_v20 = vld [vmem:[%s1832_s28 + $0x280] ss:$16 sps:$4 sm:$0xff]   ;;  %v1716_v49 = vld [vmem:[%s1832_s28 + $0x148] ss:$16 sps:$4 sm:$0xff]  }
  0x22   : > { %1052 = vmatpush1.bf16.msra.mxu0 %v1572_v11  ;;  %v1586_v21 = vld [vmem:[%s1832_s28 + $0xa4] ss:$16 sps:$4 sm:$0xff]   ;;  %v1590_v23 = vld [vmem:[%s1832_s28 + $0xa0] ss:$16 sps:$4 sm:$0xff]   ;;  %v1664_v11 = vld [vmem:[%s1832_s28 + $0x2c] ss:$16 sps:$4 sm:$0xff]  }
  0x23   : > { %1093 = vmatpush1.bf16.msra.mxu1 %v1573_v12  ;;  %1053 = vmatprep.subr.bf16.mxu0 %v1574_v13  ;;  %v1588_v22 = vld [vmem:[%s1832_s28 + $0x2a4] ss:$16 sps:$4 sm:$0xff]   ;;  %v1591_v24 = vld [vmem:[%s1832_s28 + $0x2a0] ss:$16 sps:$4 sm:$0xff]   ;;  %v1667_v12 = vld [vmem:[%s1832_s28 + $0x22c] ss:$16 sps:$4 sm:$0xff]  }
  0x24   : > { %1094 = vmatprep.subr.bf16.mxu1 %v1576_v14  ;;  %v1592_v25 = vld [vmem:[%s1832_s28 + $0xc4] ss:$16 sps:$4 sm:$0xff]   ;;  %v1596_v27 = vld [vmem:[%s1832_s28 + $0xc0] ss:$16 sps:$4 sm:$0xff]   ;;  %v1662_v13 = vld [vmem:[%s1832_s28 + $0x28] ss:$16 sps:$4 sm:$0xff]  }
  0x25   : > { %v1594_v26 = vld [vmem:[%s1832_s28 + $0x2c4] ss:$16 sps:$4 sm:$0xff]   ;;  %v1597_v28 = vld [vmem:[%s1832_s28 + $0x2c0] ss:$16 sps:$4 sm:$0xff]   ;;  %v1665_v14 = vld [vmem:[%s1832_s28 + $0x228] ss:$16 sps:$4 sm:$0xff]  }
  0x26   : > { %1054 = vmatpush1.bf16.msra.mxu0 %v1578_v15  ;;  %v1598_v29 = vld [vmem:[%s1832_s28 + $0xe4] ss:$16 sps:$4 sm:$0xff]   ;;  %v1602_v31 = vld [vmem:[%s1832_s28 + $0xe0] ss:$16 sps:$4 sm:$0xff]   ;;  %v1670_v15 = vld [vmem:[%s1832_s28 + $0x4c] ss:$16 sps:$4 sm:$0xff]  }
  0x27   : > { %1095 = vmatpush1.bf16.msra.mxu1 %v1579_v16  ;;  %1055 = vmatprep.subr.bf16.mxu0 %v1580_v17  ;;  %v1600_v30 = vld [vmem:[%s1832_s28 + $0x2e4] ss:$16 sps:$4 sm:$0xff]   ;;  %v1603_v32 = vld [vmem:[%s1832_s28 + $0x2e0] ss:$16 sps:$4 sm:$0xff]   ;;  %v1673_v16 = vld [vmem:[%s1832_s28 + $0x24c] ss:$16 sps:$4 sm:$0xff]  }
  0x28   : > { %1096 = vmatprep.subr.bf16.mxu1 %v1582_v18  ;;  %v1604_v33 = vld [vmem:[%s1832_s28 + $0x104] ss:$16 sps:$4 sm:$0xff]   ;;  %v1608_v35 = vld [vmem:[%s1832_s28 + $0x100] ss:$16 sps:$4 sm:$0xff]   ;;  %v1668_v17 = vld [vmem:[%s1832_s28 + $0x48] ss:$16 sps:$4 sm:$0xff]  }
  0x29   : > { %v1606_v34 = vld [vmem:[%s1832_s28 + $0x304] ss:$16 sps:$4 sm:$0xff]   ;;  %v1609_v36 = vld [vmem:[%s1832_s28 + $0x300] ss:$16 sps:$4 sm:$0xff]   ;;  %v1671_v18 = vld [vmem:[%s1832_s28 + $0x248] ss:$16 sps:$4 sm:$0xff]  }
  0x2a   : > { %1056 = vmatpush1.bf16.msra.mxu0 %v1584_v19  ;;  %v1610_v37 = vld [vmem:[%s1832_s28 + $0x124] ss:$16 sps:$4 sm:$0xff]   ;;  %v1614_v39 = vld [vmem:[%s1832_s28 + $0x120] ss:$16 sps:$4 sm:$0xff]   ;;  %v1676_v19 = vld [vmem:[%s1832_s28 + $0x6c] ss:$16 sps:$4 sm:$0xff]  }
  0x2b   : > { %1097 = vmatpush1.bf16.msra.mxu1 %v1585_v20  ;;  %1057 = vmatprep.subr.bf16.mxu0 %v1586_v21  ;;  %v1612_v38 = vld [vmem:[%s1832_s28 + $0x324] ss:$16 sps:$4 sm:$0xff]   ;;  %v1615_v40 = vld [vmem:[%s1832_s28 + $0x320] ss:$16 sps:$4 sm:$0xff]   ;;  %v1679_v20 = vld [vmem:[%s1832_s28 + $0x26c] ss:$16 sps:$4 sm:$0xff]  }
  0x2c   : > { %1098 = vmatprep.subr.bf16.mxu1 %v1588_v22  ;;  %v1616_v41 = vld [vmem:[%s1832_s28 + $0x144] ss:$16 sps:$4 sm:$0xff]   ;;  %v1620_v43 = vld [vmem:[%s1832_s28 + $0x140] ss:$16 sps:$4 sm:$0xff]   ;;  %v1674_v21 = vld [vmem:[%s1832_s28 + $0x68] ss:$16 sps:$4 sm:$0xff]  }
  0x2d   : > { %v1618_v42 = vld [vmem:[%s1832_s28 + $0x344] ss:$16 sps:$4 sm:$0xff]   ;;  %v1621_v44 = vld [vmem:[%s1832_s28 + $0x340] ss:$16 sps:$4 sm:$0xff]   ;;  %v1677_v22 = vld [vmem:[%s1832_s28 + $0x268] ss:$16 sps:$4 sm:$0xff]  }
  0x2e   : > { %1058 = vmatpush1.bf16.msra.mxu0 %v1590_v23  ;;  %v1622_v45 = vld [vmem:[%s1832_s28 + $0x164] ss:$16 sps:$4 sm:$0xff]   ;;  %v1626_v50 = vld [vmem:[%s1832_s28 + $0x160] ss:$16 sps:$4 sm:$0xff]   ;;  %v1682_v23 = vld [vmem:[%s1832_s28 + $0x8c] ss:$16 sps:$4 sm:$0xff]  }
  0x2f   : > { %1099 = vmatpush1.bf16.msra.mxu1 %v1591_v24  ;;  %1059 = vmatprep.subr.bf16.mxu0 %v1592_v25  ;;  %v1624_v46 = vld [vmem:[%s1832_s28 + $0x364] ss:$16 sps:$4 sm:$0xff]   ;;  %v1627_v51 = vld [vmem:[%s1832_s28 + $0x360] ss:$16 sps:$4 sm:$0xff]   ;;  %v1685_v24 = vld [vmem:[%s1832_s28 + $0x28c] ss:$16 sps:$4 sm:$0xff]  }
  0x30   : > { %1100 = vmatprep.subr.bf16.mxu1 %v1594_v26  ;;  %v263_v47 = vld [vmem:[%s1827_s24] sm:$0xff]  ;;  %v1680_v25 = vld [vmem:[%s1832_s28 + $0x88] ss:$16 sps:$4 sm:$0xff]  }
  0x31   : > { %v1882_v48 = vcombine.high %v263_v47, %v263_v47  ;;  %v1628_v53 = vld [vmem:[%s1832_s28 + $0x184] ss:$16 sps:$4 sm:$0xff]   ;;  %v1632_v55 = vld [vmem:[%s1832_s28 + $0x180] ss:$16 sps:$4 sm:$0xff]   ;;  %v1906_v7 = vcombine.low %v263_v47, %v263_v47  ;;  %v1683_v26 = vld [vmem:[%s1832_s28 + $0x288] ss:$16 sps:$4 sm:$0xff]  }
  0x32   : > { %1060 = vmatpush1.bf16.msra.mxu0 %v1596_v27  ;;  %v1630_v54 = vld [vmem:[%s1832_s28 + $0x384] ss:$16 sps:$4 sm:$0xff]   ;;  %v1633_v56 = vld [vmem:[%s1832_s28 + $0x380] ss:$16 sps:$4 sm:$0xff]   ;;  %v1688_v27 = vld [vmem:[%s1832_s28 + $0xac] ss:$16 sps:$4 sm:$0xff]  }
  0x33   : > { %1101 = vmatpush1.bf16.msra.mxu1 %v1597_v28  ;;  %1061 = vmatprep.subr.bf16.mxu0 %v1598_v29  ;;  %v1634_v57 = vld [vmem:[%s1832_s28 + $0x1a4] ss:$16 sps:$4 sm:$0xff]   ;;  %v1638_v59 = vld [vmem:[%s1832_s28 + $0x1a0] ss:$16 sps:$4 sm:$0xff]   ;;  %v1691_v28 = vld [vmem:[%s1832_s28 + $0x2ac] ss:$16 sps:$4 sm:$0xff]  }
  0x34   : > { %1102 = vmatprep.subr.bf16.mxu1 %v1600_v30  ;;  %1079 = vmatprep.mubr.bf16.mxu0 %v1882_v48  ;;  %v1636_v58 = vld [vmem:[%s1832_s28 + $0x3a4] ss:$16 sps:$4 sm:$0xff]   ;;  %v1639_v60 = vld [vmem:[%s1832_s28 + $0x3a0] ss:$16 sps:$4 sm:$0xff]   ;;  %v1686_v29 = vld [vmem:[%s1832_s28 + $0xa8] ss:$16 sps:$4 sm:$0xff]  }
  0x35   : > { %v1640_v61 = vld [vmem:[%s1832_s28 + $0x1c4] ss:$16 sps:$4 sm:$0xff]   ;;  %v1644_v63 = vld [vmem:[%s1832_s28 + $0x1c0] ss:$16 sps:$4 sm:$0xff]   ;;  %v1689_v30 = vld [vmem:[%s1832_s28 + $0x2a8] ss:$16 sps:$4 sm:$0xff]  }
  0x36   : > { %1062 = vmatpush1.bf16.msra.mxu0 %v1602_v31  ;;  %v1642_v62 = vld [vmem:[%s1832_s28 + $0x3c4] ss:$16 sps:$4 sm:$0xff]   ;;  %v1645_v0 = vld [vmem:[%s1832_s28 + $0x3c0] ss:$16 sps:$4 sm:$0xff]   ;;  %v1694_v31 = vld [vmem:[%s1832_s28 + $0xcc] ss:$16 sps:$4 sm:$0xff]  }
  0x37   : > { %1103 = vmatpush1.bf16.msra.mxu1 %v1603_v32  ;;  %1063 = vmatprep.subr.bf16.mxu0 %v1604_v33  ;;  %v1646_v1 = vld [vmem:[%s1832_s28 + $0x1e4] ss:$16 sps:$4 sm:$0xff]   ;;  %v1650_v3 = vld [vmem:[%s1832_s28 + $0x1e0] ss:$16 sps:$4 sm:$0xff]   ;;  %v1697_v32 = vld [vmem:[%s1832_s28 + $0x2cc] ss:$16 sps:$4 sm:$0xff]  }
  0x38   : > { %1104 = vmatprep.subr.bf16.mxu1 %v1606_v34  ;;  %v1648_v2 = vld [vmem:[%s1832_s28 + $0x3e4] ss:$16 sps:$4 sm:$0xff]   ;;  %v1651_v4 = vld [vmem:[%s1832_s28 + $0x3e0] ss:$16 sps:$4 sm:$0xff]   ;;  %v1692_v33 = vld [vmem:[%s1832_s28 + $0xc8] ss:$16 sps:$4 sm:$0xff]  }
  0x39   : > { %v1695_v34 = vld [vmem:[%s1832_s28 + $0x2c8] ss:$16 sps:$4 sm:$0xff]   ;;  %v1718_v47 = vld [vmem:[%s1832_s28 + $0x14c] ss:$16 sps:$4 sm:$0xff]  }
  0x3a   : > { %1064 = vmatpush1.bf16.msra.mxu0 %v1608_v35  ;;  %v1700_v35 = vld [vmem:[%s1832_s28 + $0xec] ss:$16 sps:$4 sm:$0xff]  }
  0x3b   : > { %1105 = vmatpush1.bf16.msra.mxu1 %v1609_v36  ;;  %1065 = vmatprep.subr.bf16.mxu0 %v1610_v37  ;;  %v1703_v36 = vld [vmem:[%s1832_s28 + $0x2ec] ss:$16 sps:$4 sm:$0xff]   ;;  %v1698_v37 = vld [vmem:[%s1832_s28 + $0xe8] ss:$16 sps:$4 sm:$0xff]  }
  0x3c   : > { %1106 = vmatprep.subr.bf16.mxu1 %v1612_v38  ;;  %v1701_v38 = vld [vmem:[%s1832_s28 + $0x2e8] ss:$16 sps:$4 sm:$0xff]  }
  0x3e   : > { %1066 = vmatpush1.bf16.msra.mxu0 %v1614_v39  ;;  %v1706_v39 = vld [vmem:[%s1832_s28 + $0x10c] ss:$16 sps:$4 sm:$0xff]  }
  0x3f   : > { %1107 = vmatpush1.bf16.msra.mxu1 %v1615_v40  ;;  %1067 = vmatprep.subr.bf16.mxu0 %v1616_v41  ;;  %v1709_v40 = vld [vmem:[%s1832_s28 + $0x30c] ss:$16 sps:$4 sm:$0xff]   ;;  %v1704_v41 = vld [vmem:[%s1832_s28 + $0x108] ss:$16 sps:$4 sm:$0xff]  }
  0x40   : > { %1108 = vmatprep.subr.bf16.mxu1 %v1618_v42  ;;  %v1707_v42 = vld [vmem:[%s1832_s28 + $0x308] ss:$16 sps:$4 sm:$0xff]  }
  0x42   : > { %1068 = vmatpush1.bf16.msra.mxu0 %v1620_v43  ;;  %v1712_v43 = vld [vmem:[%s1832_s28 + $0x12c] ss:$16 sps:$4 sm:$0xff]  }
  0x43   : > { %1109 = vmatpush1.bf16.msra.mxu1 %v1621_v44  ;;  %1069 = vmatprep.subr.bf16.mxu0 %v1622_v45  ;;  %v1715_v44 = vld [vmem:[%s1832_s28 + $0x32c] ss:$16 sps:$4 sm:$0xff]   ;;  %v1710_v45 = vld [vmem:[%s1832_s28 + $0x128] ss:$16 sps:$4 sm:$0xff]  }
  0x44   : > { %1110 = vmatprep.subr.bf16.mxu1 %v1624_v46  ;;  %v1713_v46 = vld [vmem:[%s1832_s28 + $0x328] ss:$16 sps:$4 sm:$0xff]  }
  0x46   : > { %1070 = vmatpush1.bf16.msra.mxu0 %v1626_v50  ;;  %v1719_v50 = vld [vmem:[%s1832_s28 + $0x348] ss:$16 sps:$4 sm:$0xff]  }
  0x47   : > { %1111 = vmatpush1.bf16.msra.mxu1 %v1627_v51  ;;  %1071 = vmatprep.subr.bf16.mxu0 %v1628_v53  ;;  %v1724_v51 = vld [vmem:[%s1832_s28 + $0x16c] ss:$16 sps:$4 sm:$0xff]   ;;  %v1722_v53 = vld [vmem:[%s1832_s28 + $0x168] ss:$16 sps:$4 sm:$0xff]  }
  0x48   : > { %1112 = vmatprep.subr.bf16.mxu1 %v1630_v54  ;;  %v1725_v54 = vld [vmem:[%s1832_s28 + $0x368] ss:$16 sps:$4 sm:$0xff]  }
  0x4a   : > { %1072 = vmatpush1.bf16.msra.mxu0 %v1632_v55  ;;  %v1730_v55 = vld [vmem:[%s1832_s28 + $0x18c] ss:$16 sps:$4 sm:$0xff]  }
  0x4b   : > { %1113 = vmatpush1.bf16.msra.mxu1 %v1633_v56  ;;  %1073 = vmatprep.subr.bf16.mxu0 %v1634_v57  ;;  %v1733_v56 = vld [vmem:[%s1832_s28 + $0x38c] ss:$16 sps:$4 sm:$0xff]   ;;  %v1728_v57 = vld [vmem:[%s1832_s28 + $0x188] ss:$16 sps:$4 sm:$0xff]  }
  0x4c   : > { %1114 = vmatprep.subr.bf16.mxu1 %v1636_v58  ;;  %v1731_v58 = vld [vmem:[%s1832_s28 + $0x388] ss:$16 sps:$4 sm:$0xff]  }
  0x4e   : > { %1074 = vmatpush1.bf16.msra.mxu0 %v1638_v59  ;;  %v1736_v59 = vld [vmem:[%s1832_s28 + $0x1ac] ss:$16 sps:$4 sm:$0xff]  }
  0x4f   : > { %1115 = vmatpush1.bf16.msra.mxu1 %v1639_v60  ;;  %1075 = vmatprep.subr.bf16.mxu0 %v1640_v61  ;;  %v1739_v60 = vld [vmem:[%s1832_s28 + $0x3ac] ss:$16 sps:$4 sm:$0xff]   ;;  %v1734_v61 = vld [vmem:[%s1832_s28 + $0x1a8] ss:$16 sps:$4 sm:$0xff]  }
  0x50   : > { %1116 = vmatprep.subr.bf16.mxu1 %v1642_v62  ;;  %v1737_v62 = vld [vmem:[%s1832_s28 + $0x3a8] ss:$16 sps:$4 sm:$0xff]  }
  0x52   : > { %1076 = vmatpush1.bf16.msra.mxu0 %v1644_v63  ;;  %v1742_v63 = vld [vmem:[%s1832_s28 + $0x1cc] ss:$16 sps:$4 sm:$0xff]  }
  0x53   : > { %1117 = vmatpush1.bf16.msra.mxu1 %v1645_v0  ;;  %1077 = vmatprep.subr.bf16.mxu0 %v1646_v1  ;;  %v1745_v0 = vld [vmem:[%s1832_s28 + $0x3cc] ss:$16 sps:$4 sm:$0xff]   ;;  %v1740_v1 = vld [vmem:[%s1832_s28 + $0x1c8] ss:$16 sps:$4 sm:$0xff]  }
  0x54   : > { %1118 = vmatprep.subr.bf16.mxu1 %v1648_v2  ;;  %v1743_v2 = vld [vmem:[%s1832_s28 + $0x3c8] ss:$16 sps:$4 sm:$0xff]  }
  0x56   : > { %1078 = vmatpush1.bf16.msra.mxu0 %v1650_v3  ;;  %v1748_v3 = vld [vmem:[%s1832_s28 + $0x1ec] ss:$16 sps:$4 sm:$0xff]  }
  0x57   : > { %1119 = vmatpush1.bf16.msra.mxu1 %v1651_v4  ;;  %1129 = vmatprep.subr.bf16.mxu0 %v1658_v5  ;;  %v1751_v4 = vld [vmem:[%s1832_s28 + $0x3ec] ss:$16 sps:$4 sm:$0xff]   ;;  %v1746_v5 = vld [vmem:[%s1832_s28 + $0x1e8] ss:$16 sps:$4 sm:$0xff]  }
  0x58   : > { %1170 = vmatprep.subr.bf16.mxu1 %v1661_v6  ;;  %v1749_v6 = vld [vmem:[%s1832_s28 + $0x3e8] ss:$16 sps:$4 sm:$0xff]  }
  0x59   : > { %1080 = vmatmul.mubr.bf16.vlgmr.msra.gmra.mrb[0].mxu0 %v1906_v7 }
  0x5a   : > { %1121 = vmatmul.mubr.bf16.vlgmr.msra.gmra.mrb[0].mxu1 %v1908_v8  ;;  %1130 = vmatpush1.bf16.msra.mxu0 %v1656_v9 }
  0x5b   : > { %1171 = vmatpush1.bf16.msra.mxu1 %v1659_v10  ;;  %1131 = vmatprep.subr.bf16.mxu0 %v1664_v11  ;;  %v259_v10 = vld [vmem:[#allocation2] sm:$0xff] }
  0x5c   : > { %1172 = vmatprep.subr.bf16.mxu1 %v1667_v12  ;;  %1161 = vmatprep.mubr.bf16.mxu0 %v1882_v48  ;;  %v1721_v48 = vld [vmem:[%s1832_s28 + $0x34c] ss:$16 sps:$4 sm:$0xff]  }
  0x5d   : > { %1202 = vmatprep.mubr.bf16.mxu1 %v1393_v52  ;;  %v1727_v52 = vld [vmem:[%s1832_s28 + $0x36c] ss:$16 sps:$4 sm:$0xff]  }
  0x5e   : > { %1132 = vmatpush1.bf16.msra.mxu0 %v1662_v13 }
  0x5f   : > { %1173 = vmatpush1.bf16.msra.mxu1 %v1665_v14  ;;  %1133 = vmatprep.subr.bf16.mxu0 %v1670_v15  ;;  %v260_v14 = vld [vmem:[#allocation2 + $0x8] sm:$0xff] }
  0x60   : > { %1174 = vmatprep.subr.bf16.mxu1 %v1673_v16 }
  0x62   : > { %1134 = vmatpush1.bf16.msra.mxu0 %v1668_v17 }
  0x63   : > { %1175 = vmatpush1.bf16.msra.mxu1 %v1671_v18  ;;  %1135 = vmatprep.subr.bf16.mxu0 %v1676_v19 }
  0x64   : > { %1176 = vmatprep.subr.bf16.mxu1 %v1679_v20 }
  0x66   : > { %1136 = vmatpush1.bf16.msra.mxu0 %v1674_v21 }
  0x67   : > { %1177 = vmatpush1.bf16.msra.mxu1 %v1677_v22  ;;  %1137 = vmatprep.subr.bf16.mxu0 %v1682_v23 }
  0x68   : > { %1178 = vmatprep.subr.bf16.mxu1 %v1685_v24 }
  0x6a   : > { %1138 = vmatpush1.bf16.msra.mxu0 %v1680_v25 }
  0x6b   : > { %1179 = vmatpush1.bf16.msra.mxu1 %v1683_v26  ;;  %1139 = vmatprep.subr.bf16.mxu0 %v1688_v27  ;;  %v262_v26 = vld [vmem:[#allocation2 + $0x18] sm:$0xff] }
  0x6c   : > { %1180 = vmatprep.subr.bf16.mxu1 %v1691_v28 }
  0x6e   : > { %1140 = vmatpush1.bf16.msra.mxu0 %v1686_v29 }
  0x6f   : > { %1181 = vmatpush1.bf16.msra.mxu1 %v1689_v30  ;;  %1141 = vmatprep.subr.bf16.mxu0 %v1694_v31 }
  0x70   : > { %1182 = vmatprep.subr.bf16.mxu1 %v1697_v32 }
  0x72   : > { %1142 = vmatpush1.bf16.msra.mxu0 %v1692_v33 }
  0x73   : > { %1183 = vmatpush1.bf16.msra.mxu1 %v1695_v34  ;;  %1143 = vmatprep.subr.bf16.mxu0 %v1700_v35  ;;  %v1229_v35 = vlaneseq (!%p1522_p7) }
  0x74   : > { %1184 = vmatprep.subr.bf16.mxu1 %v1703_v36 }
  0x75   : > { %v1230_v36 = vshrl.u32 (!%p1522_p7), %v1229_v35, 7 }
  0x76   : > { %1144 = vmatpush1.bf16.msra.mxu0 %v1698_v37  ;;  %v1227_v37 = vld [vmem:[%s2001_s2] sm:$0xf] (!%p1522_p7) }
  0x77   : > { %1185 = vmatpush1.bf16.msra.mxu1 %v1701_v38  ;;  %1145 = vmatprep.subr.bf16.mxu0 %v1706_v39  ;;  %v1253_v38 = vld [vmem:[%s2002_s3] sm:$0xf] (!%p1522_p7)  ;;  %v1231_v39 = vsub.s32 (!%p1522_p7), 0, %v1230_v36 }
  0x78   : > { %1186 = vmatprep.subr.bf16.mxu1 %v1709_v40  ;;  %v1235_v40 = vsub.s32 (!%p1522_p7), 1, %v1230_v36 }
  0x7a   : > { %1146 = vmatpush1.bf16.msra.mxu0 %v1704_v41  ;;  %v1239_v41 = vsub.s32 (!%p1522_p7), 2, %v1230_v36 }
  0x7b   : > { %1187 = vmatpush1.bf16.msra.mxu1 %v1707_v42  ;;  %1147 = vmatprep.subr.bf16.mxu0 %v1712_v43  ;;  %v1243_v42 = vsub.s32 (!%p1522_p7), 3, %v1230_v36 }
  0x7c   : > { %1188 = vmatprep.subr.bf16.mxu1 %v1715_v44 }
  0x7e   : > { %1148 = vmatpush1.bf16.msra.mxu0 %v1710_v45  ;;  %v1232_v45 = vrot.slane (!%p1522_p7), %v1227_v37, %v1231_v39 }
  0x7f   : > { %1189 = vmatpush1.bf16.msra.mxu1 %v1713_v46  ;;  %1149 = vmatprep.subr.bf16.mxu0 %v1718_v47  ;;  %v1236_v46 = vrot.slane (!%p1522_p7), %v1227_v37, %v1235_v40  ;;  %v1258_v47 = vrot.slane (!%p1522_p7), %v1253_v38, %v1231_v39 }
  0x80   : > { %1190 = vmatprep.subr.bf16.mxu1 %v1721_v48  ;;  %v1262_v48 = vrot.slane (!%p1522_p7), %v1253_v38, %v1235_v40 }
  0x82   : > { %1150 = vmatpush1.bf16.msra.mxu0 %v1716_v49 }
  0x83   : > { %1191 = vmatpush1.bf16.msra.mxu1 %v1719_v50  ;;  %1151 = vmatprep.subr.bf16.mxu0 %v1724_v51  ;;  %v1240_v51 = vrot.slane (!%p1522_p7), %v1227_v37, %v1239_v41 }
  0x84   : > { %1192 = vmatprep.subr.bf16.mxu1 %v1727_v52  ;;  %v1244_v52 = vrot.slane (!%p1522_p7), %v1227_v37, %v1243_v42 }
  0x86   : > { %1152 = vmatpush1.bf16.msra.mxu0 %v1722_v53  ;;  %v1266_v53 = vrot.slane (!%p1522_p7), %v1253_v38, %v1239_v41 }
  0x87   : > { %1193 = vmatpush1.bf16.msra.mxu1 %v1725_v54  ;;  %1153 = vmatprep.subr.bf16.mxu0 %v1730_v55  ;;  %v1270_v54 = vrot.slane (!%p1522_p7), %v1253_v38, %v1243_v42 }
  0x88   : > { %1194 = vmatprep.subr.bf16.mxu1 %v1733_v56 }
  0x8a   : > { %1154 = vmatpush1.bf16.msra.mxu0 %v1728_v57 }
  0x8b   : > { %1195 = vmatpush1.bf16.msra.mxu1 %v1731_v58  ;;  %1155 = vmatprep.subr.bf16.mxu0 %v1736_v59 }
  0x8c   : > { %1196 = vmatprep.subr.bf16.mxu1 %v1739_v60 }
  0x8e   : > { %1156 = vmatpush1.bf16.msra.mxu0 %v1734_v61 }
  0x8f   : > { %1197 = vmatpush1.bf16.msra.mxu1 %v1737_v62  ;;  %1157 = vmatprep.subr.bf16.mxu0 %v1742_v63 }
  0x90   : > { %1198 = vmatprep.subr.bf16.mxu1 %v1745_v0 }
  0x92   : > { %1158 = vmatpush1.bf16.msra.mxu0 %v1740_v1 }
  0x93   : > { %1199 = vmatpush1.bf16.msra.mxu1 %v1743_v2  ;;  %1159 = vmatprep.subr.bf16.mxu0 %v1748_v3 }
  0x94   : > { %1200 = vmatprep.subr.bf16.mxu1 %v1751_v4 }
  0x96   : > { %1160 = vmatpush1.bf16.msra.mxu0 %v1746_v5 }
  0x97   : > { %1201 = vmatpush1.bf16.msra.mxu1 %v1749_v6 }
  0x99   : > { %1162 = vmatmul.mubr.bf16.vlgmr.msra.gmra.mrb[4].mxu0 %v1906_v7  ;;  %v261_v7 = vld [vmem:[#allocation2 + $0x10] sm:$0xff] }
  0x9a   : > { %1203 = vmatmul.mubr.bf16.vlgmr.msra.gmra.mrb[4].mxu1 %v1908_v8 }
 0x12c   : > { %v1081_v9 = vpop.f32.mrb[0].mxu0 }
 0x12d   : > { %v1122_v11 = vpop.f32.mrb[0].mxu1  ;;  %v1083_v13 = vpop.f32.mrb[1].mxu0 }
 0x12e   : > { %v1123_v12 = vadd.f32 %v1122_v11, %v1081_v9  ;;  %v1124_v15 = vpop.f32.mrb[1].mxu1  ;;  %v1085_v17 = vpop.f32.mrb[2].mxu0 }
 0x12f   : > { %v1125_v16 = vadd.f32 %v1124_v15, %v1083_v13  ;;  %v1126_v18 = vpop.f32.mrb[2].mxu1  ;;  %v1086_v20 = vpop.f32.mrb[3].mxu0 }
 0x130   : > { %v1211_v19 = vadd.f32 %v1123_v12, %v259_v10  ;;  %v1127_v21 = vpop.f32.mrb[3].mxu1 }
 0x131   : > { %v1212_v22 = vadd.f32 %v1125_v16, %v260_v14 }
 0x132   : > { %1215 = vst [vmem:[#allocation2] sm:$0xff] %v1211_v19 }
 0x133   : > { %1216 = vst [vmem:[#allocation2 + $0x8] sm:$0xff] %v1212_v22 }
 0x139   : > { %v1223_v43 = vld [vmem:[#allocation2] sm:$0xff] (!%p1522_p7) }
 0x13a   : > { %v1224_v44 = vld [vmem:[#allocation2 + $0x8] sm:$0xff] (!%p1522_p7)  ;;  %v1249_v55 = vmul.f32 (!%p1522_p7), %v1232_v45, %v1223_v43 }
 0x13b   : > { %v1250_v56 = vmul.f32 (!%p1522_p7), %v1236_v46, %v1224_v44 }
 0x13c   : > { %v1275_v59 = vadd.f32 (!%p1522_p7), %v1258_v47, %v1249_v55 }
 0x13d   : > { %v1276_v60 = vadd.f32 (!%p1522_p7), %v1262_v48, %v1250_v56 }
 0x13e   : > { %v1279_v63 = vmax.f32 (!%p1522_p7), %v1275_v59, 0.0 }
 0x13f   : > { %v1280_v0 = vmax.f32 (!%p1522_p7), %v1276_v60, 0.0 }
 0x141   : > { %v1529_v3 = vpack.c.bf16 (!%p1522_p7), %v1280_v0, %v1279_v63 }
 0x143   : > { %1299 = vst [vmem:[%s2003_s4] sm:$0xff] (!%p1522_p7), %v1529_v3 }
 0x16c   : > { %v1163_v23 = vpop.f32.mrb[4].mxu0 }
 0x16d   : > { %v1204_v24 = vpop.f32.mrb[4].mxu1  ;;  %v1165_v25 = vpop.f32.mrb[5].mxu0  ;;  %1222 = sbr.rel (%p1522_p7) target bundleno = 388 (0x184), region = 44 }
 0x16e   : > { %v1205_v8 = vadd.f32 %v1204_v24, %v1163_v23  ;;  %v1206_v27 = vpop.f32.mrb[5].mxu1  ;;  %v1167_v29 = vpop.f32.mrb[6].mxu0 }
 0x16f   : > { %v1207_v28 = vadd.f32 %v1206_v27, %v1165_v25  ;;  %v1208_v30 = vpop.f32.mrb[6].mxu1  ;;  %v1168_v32 = vpop.f32.mrb[7].mxu0 }
 0x170   : > { %v1213_v31 = vadd.f32 %v1205_v8, %v261_v7  ;;  %v1209_v33 = vpop.f32.mrb[7].mxu1 }
 0x171   : > { %v1214_v34 = vadd.f32 %v1207_v28, %v262_v26 }
 0x172   : > { %1217 = vst [vmem:[#allocation2 + $0x10] sm:$0xff] %v1213_v31 }
 0x173   : > { %1218 = vst [vmem:[#allocation2 + $0x18] sm:$0xff] %v1214_v34 }
 0x179   : > { %v1225_v49 = vld [vmem:[#allocation2 + $0x10] sm:$0xff] }
 0x17a   : > { %v1226_v50 = vld [vmem:[#allocation2 + $0x18] sm:$0xff]  ;;  %v1251_v57 = vmul.f32 %v1240_v51, %v1225_v49 }
 0x17b   : > { %v1252_v58 = vmul.f32 %v1244_v52, %v1226_v50 }
 0x17c   : > { %v1277_v61 = vadd.f32 %v1266_v53, %v1251_v57 }
 0x17d   : > { %v1278_v62 = vadd.f32 %v1270_v54, %v1252_v58 }
 0x17e   : > { %v1281_v1 = vmax.f32 %v1277_v61, 0.0 }
 0x17f   : > { %v1282_v2 = vmax.f32 %v1278_v62, 0.0 }
 0x181   : > { %v1530_v4 = vpack.c.bf16 %v1282_v2, %v1281_v1 }
 0x183   : > { %1300 = vst [vmem:[%s2003_s4 + $0x8] sm:$0xff] %v1530_v4 }
 0x184 PF: > { %s14_s17 = sadd.s32 1, %s1774_s17   ;;  %s2004_s15 = smov %s1770_s16 }
 0x185   : > { %p11_p8 = scmp.ge.s32.totalorder %s14_s17, 11   ;;  %s2005_s16 = smov %s2007_s18 }
 0x187   :  { %13 = sbr.rel (!%p11_p8) target bundleno = 2 (0x2), region = 77 }

</bundles_post_ra>
